<compile_context>
chip_gen: v7x
topology: tpu7x:2x2x1
jax: 0.10.0
libtpu: 0.0.40
codegen_flags: <defaults>
</compile_context>

<pallas_src>
import functools
import math

import jax
import jax.numpy as jnp
from jax.experimental import pallas as pl
from jax.experimental.pallas import tpu as pltpu


def _round_up(x, m):
    return (x + m - 1) // m * m


# --------------------------------------------------------------------------
# Pallas MXU kernel: out = act((A @ B) * scale + bias)
#   A: [tm, tk] bf16, B: [tk, tn] bf16, scale/bias packed: [2, tn] f32.
#   f32 accumulation; epilogue fused into the final k step; bf16 output.
# --------------------------------------------------------------------------
def _matmul_fused_kernel(a_ref, b_ref, sb_ref, o_ref, acc_ref, *, activation):
    k = pl.program_id(2)

    @pl.when(k == 0)
    def _():
        acc_ref[...] = jnp.zeros_like(acc_ref)

    acc_ref[...] += jnp.dot(a_ref[...], b_ref[...],
                            preferred_element_type=jnp.float32)

    @pl.when(k == pl.num_programs(2) - 1)
    def _():
        sb = sb_ref[...]
        r = acc_ref[...] * sb[0:1, :] + sb[1:2, :]
        if activation == "leaky_relu":
            r = jnp.maximum(r, 0.2 * r)        # LeakyReLU(0.2)
        elif activation == "sigmoid":
            r = jax.nn.sigmoid(r)
        o_ref[...] = r.astype(o_ref.dtype)


def matmul_scale_bias_act(a, b_p, sb, n_out, *, tk, activation,
                          tm_max=512, tn=128):
    """a: [M, K] bf16 (unpadded), b_p: [Kp, Np] bf16 (pre-padded at init),
    sb: [2, Np] f32  ->  [M, n_out] bf16."""
    M, K = a.shape
    Kp, Np = b_p.shape

    Mp = _round_up(M, 16)          # bf16 vreg packs 16 sublanes
    tm = min(tm_max, Mp)
    Mp = _round_up(M, tm)
    a_p = jnp.pad(a, ((0, Mp - M), (0, Kp - K)))   # only A is touched per call

    kern = functools.partial(_matmul_fused_kernel, activation=activation)
    out = pl.pallas_call(
        kern,
        out_shape=jax.ShapeDtypeStruct((Mp, Np), jnp.bfloat16),
        grid_spec=pltpu.PrefetchScalarGridSpec(
            num_scalar_prefetch=0,
            grid=(Mp // tm, Np // tn, Kp // tk),
            in_specs=[
                pl.BlockSpec((tm, tk), lambda i, j, k: (i, k)),
                pl.BlockSpec((tk, tn), lambda i, j, k: (k, j)),
                pl.BlockSpec((2, tn), lambda i, j, k: (0, j)),
            ],
            out_specs=pl.BlockSpec((tm, tn), lambda i, j, k: (i, j)),
            scratch_shapes=[pltpu.VMEM((tm, tn), jnp.float32)]),
        compiler_params=pltpu.CompilerParams(
            dimension_semantics=("parallel", "parallel", "arbitrary"),
            vmem_limit_bytes=32 * 1024 * 1024),
    )(a_p, b_p, sb)
    return out[:M, :n_out]


# --------------------------------------------------------------------------
# Pallas VPU kernel for the final Cout=1 conv: out = act(sum_k A*w * s + b).
# Avoids streaming an N-padded 8192x128 fabricated MXU weight.
# --------------------------------------------------------------------------
def _rowdot_fused_kernel(a_ref, w_ref, sb_ref, o_ref, *, activation):
    a = a_ref[...].astype(jnp.float32)                 # [tm, Kp]
    w = w_ref[...].astype(jnp.float32)                 # [1, Kp]
    r = jnp.sum(a * w, axis=-1, keepdims=True)         # [tm, 1]
    r = r * sb_ref[0:1, :] + sb_ref[1:2, :]
    if activation == "leaky_relu":
        r = jnp.maximum(r, 0.2 * r)
    elif activation == "sigmoid":
        r = jax.nn.sigmoid(r)
    o_ref[...] = r.astype(o_ref.dtype)


def rowdot_scale_bias_act(a, w_row, sb, *, activation, tm_max=256):
    """a: [M, K] bf16, w_row: [1, Kp] bf16, sb: [2, 1] f32  ->  [M, 1] f32."""
    M, K = a.shape
    _, Kp = w_row.shape
    Mp = _round_up(M, 16)
    tm = min(tm_max, Mp)
    Mp = _round_up(M, tm)
    a_p = jnp.pad(a, ((0, Mp - M), (0, Kp - K)))

    kern = functools.partial(_rowdot_fused_kernel, activation=activation)
    out = pl.pallas_call(
        kern,
        out_shape=jax.ShapeDtypeStruct((Mp, 1), jnp.float32),
        grid_spec=pltpu.PrefetchScalarGridSpec(
            num_scalar_prefetch=0,
            grid=(Mp // tm,),
            in_specs=[
                pl.BlockSpec((tm, Kp), lambda i: (i, 0)),
                pl.BlockSpec((1, Kp), lambda i: (0, 0)),
                pl.BlockSpec((2, 1), lambda i: (0, 0)),
            ],
            out_specs=pl.BlockSpec((tm, 1), lambda i: (i, 0))),
        compiler_params=pltpu.CompilerParams(
            dimension_semantics=("parallel",),
            vmem_limit_bytes=32 * 1024 * 1024),
    )(a_p, w_row, sb)
    return out[:M, :]


# --------------------------------------------------------------------------
# NLayerDiscriminator: config (with static tiling plan), params, one-time
# parameter preparation, and forward.
# --------------------------------------------------------------------------
def build_config(input_nc, ndf=64, n_layers=3, use_sigmoid=False, tk_max=2048):
    """Mirrors NLayerDiscriminator.__init__ layer sequence + static tile plan."""
    kw = 4
    padw = math.ceil((kw - 1) / 2)   # = 2

    def layer(cin, cout, stride, use_bn, act):
        K = kw * kw * cin
        Kp = _round_up(K, 128)
        if Kp > tk_max:
            Kp = _round_up(Kp, tk_max)
            tk = tk_max
        else:
            tk = Kp                   # full-K tile -> single k step
        return dict(cin=cin, cout=cout, stride=stride, padding=padw,
                    use_bn=use_bn, act=act, K=K, Kp=Kp, tk=tk,
                    Np=_round_up(cout, 128),
                    kind="rowdot" if cout == 1 else "mxu")

    cfg = [layer(input_nc, ndf, 2, False, "leaky_relu")]
    nf_mult = 1
    for n in range(1, n_layers):
        nf_mult_prev, nf_mult = nf_mult, min(2 ** n, 8)
        cfg.append(layer(ndf * nf_mult_prev, ndf * nf_mult, 2, True,
                         "leaky_relu"))
    nf_mult_prev, nf_mult = nf_mult, min(2 ** n_layers, 8)
    cfg.append(layer(ndf * nf_mult_prev, ndf * nf_mult, 1, True, "leaky_relu"))
    cfg.append(layer(ndf * nf_mult, 1, 1, False,
                     "sigmoid" if use_sigmoid else "none"))
    return cfg


def init_params(key, cfg):
    """Weights stored [KH, KW, Cin, Cout] (PyTorch [Cout,Cin,KH,KW] -> (2,3,1,0))."""
    kw = 4
    params = []
    for layer in cfg:
        cin, cout = layer["cin"], layer["cout"]
        key, wk, bk = jax.random.split(key, 3)
        bound = 1.0 / math.sqrt(kw * kw * cin)
        p = {
            "w": jax.random.uniform(wk, (kw, kw, cin, cout), jnp.float32,
                                    -bound, bound),
            "b": jax.random.uniform(bk, (cout,), jnp.float32, -bound, bound),
        }
        if layer["use_bn"]:
            # PyTorch BatchNorm2d defaults: gamma=1, beta=0, mean=0, var=1.
            p["gamma"] = jnp.ones((cout,), jnp.float32)
            p["beta"] = jnp.zeros((cout,), jnp.float32)
            p["running_mean"] = jnp.zeros((cout,), jnp.float32)
            p["running_var"] = jnp.ones((cout,), jnp.float32)
        params.append(p)
    return params


def prepare_params(cfg, params, eps=1e-5):
    """One-time hoisted prep: fold eval-mode BN into per-channel scale/bias,
    reshape/pad/cast weights to bf16 matmul operands, pack [2, Np] scale/bias.
    The per-call forward never pads or casts weights again."""
    prepped = []
    for layer, p in zip(cfg, params):
        cout = layer["cout"]
        if layer["use_bn"]:
            s = p["gamma"] * jax.lax.rsqrt(p["running_var"] + eps)
            scale = s
            bias = s * (p["b"] - p["running_mean"]) + p["beta"]
        else:
            scale = jnp.ones_like(p["b"])
            bias = p["b"]
        K, Kp, Np = layer["K"], layer["Kp"], layer["Np"]
        w2d = p["w"].reshape(K, cout).astype(jnp.float32)
        if layer["kind"] == "rowdot":
            w_row = jnp.pad(w2d[:, 0], (0, Kp - K)).astype(jnp.bfloat16)[None, :]
            sb = jnp.stack([scale[:1], bias[:1]], axis=0).astype(jnp.float32)
            prepped.append({"w": w_row, "sb": sb})
        else:
            w_p = jnp.pad(w2d, ((0, Kp - K), (0, Np - cout))).astype(jnp.bfloat16)
            sb = jnp.stack([jnp.pad(scale.astype(jnp.float32), (0, Np - cout)),
                            jnp.pad(bias.astype(jnp.float32), (0, Np - cout))],
                           axis=0)
            prepped.append({"w": w_p, "sb": sb})
    return prepped


def make_forward(cfg):
    kw = 4

    def forward(prepped, x_nchw):
        # NCHW -> NHWC, bf16 activations end-to-end (f32 accumulation inside).
        h = jnp.transpose(x_nchw, (0, 2, 3, 1)).astype(jnp.bfloat16)
        for layer, p in zip(cfg, prepped):
            N, H, W, Cin = h.shape
            stride, padding = layer["stride"], layer["padding"]
            Ho = (H + 2 * padding - kw) // stride + 1
            Wo = (W + 2 * padding - kw) // stride + 1
            hp = jnp.pad(h, ((0, 0), (padding, padding),
                             (padding, padding), (0, 0)))
            # im2col glue: negligible at these spatial sizes.
            # TODO(synk): for large images fold (kh,kw) into the kernel's k
            # axis (no materialized patches tensor) and fuse adjacent layers.
            patches = jnp.concatenate(
                [hp[:, kh:kh + stride * Ho:stride,
                     kw_:kw_ + stride * Wo:stride, :]
                 for kh in range(kw) for kw_ in range(kw)], axis=-1)
            a = patches.reshape(N * Ho * Wo, kw * kw * Cin)
            if layer["kind"] == "mxu":
                out = matmul_scale_bias_act(a, p["w"], p["sb"], layer["cout"],
                                            tk=layer["tk"],
                                            activation=layer["act"])
            else:
                out = rowdot_scale_bias_act(a, p["w"], p["sb"],
                                            activation=layer["act"])
            h = out.reshape(N, Ho, Wo, layer["cout"])
        return jnp.transpose(h, (0, 3, 1, 2))   # NHWC -> NCHW (f32 output)

    return forward


if __name__ == "__main__":
    key = jax.random.PRNGKey(0)
    pkey, xkey = jax.random.split(key)

    input_nc, ndf, n_layers = 3, 64, 3
    cfg = build_config(input_nc, ndf=ndf, n_layers=n_layers, use_sigmoid=False)
    params = init_params(pkey, cfg)
    prepped = prepare_params(cfg, params)     # one-time weight prep (hoisted)

    x = jax.random.normal(xkey, (2, input_nc, 16, 16), jnp.float32)

    forward = jax.jit(make_forward(cfg))
    out = jax.block_until_ready(forward(prepped, x))

    # 16x16 input -> 9 -> 5 -> 3 -> 4 -> 5 spatial, 1 output channel.
    assert out.shape == (2, 1, 5, 5), out.shape
    assert bool(jnp.all(jnp.isfinite(out)))
    print("KERNEL_OK")
</pallas_src>

<mosaic_0001>
module attributes {stable_mosaic.version = 11 : i64} {
  func.func @_matmul_fused_kernel(%arg0: i32, %arg1: i32, %arg2: i32, %arg3: memref<176x128xbf16, #tpu.memory_space<vmem>>, %arg4: memref<128x128xbf16, #tpu.memory_space<vmem>>, %arg5: memref<2x128xf32, #tpu.memory_space<vmem>>, %arg6: memref<176x128xbf16, #tpu.memory_space<vmem>>, %arg7: memref<176x128xf32, #tpu.memory_space<vmem>>) attributes {dimension_semantics = [#tpu.dimension_semantics<parallel>, #tpu.dimension_semantics<parallel>, #tpu.dimension_semantics<arbitrary>], iteration_bounds = array<i64: 1, 1, 1>, scalar_prefetch = 0 : i64, scratch_operands = 1 : i64, tpu.core_type = #tpu.core_type<tc>, window_params = [{transform_indices = @transform_0, window_bounds = array<i64: 176, 128>}, {transform_indices = @transform_1, window_bounds = array<i64: 128, 128>}, {transform_indices = @transform_2, window_bounds = array<i64: 2, 128>}, {transform_indices = @transform_3, window_bounds = array<i64: 176, 128>}]} {
    %c0_i32 = arith.constant 0 : i32
    %0 = arith.cmpi eq, %arg2, %c0_i32 : i32
    %1 = arith.extui %0 : i1 to i32
    %c0_i32_0 = arith.constant 0 : i32
    %2 = arith.cmpi ne, %1, %c0_i32_0 : i32
    scf.if %2 {
      %cst_10 = arith.constant 0.000000e+00 : f32
      %12 = vector.broadcast %cst_10 : f32 to vector<176x128xf32>
      %c0_11 = arith.constant 0 : index
      %c0_12 = arith.constant 0 : index
      %13 = vector.load %arg7[%c0_11, %c0_12] : memref<176x128xf32, #tpu.memory_space<vmem>>, vector<176x128xf32>
      tpu.vector_store %arg7[%c0_11, %c0_12], %12 {strides = array<i32>} : memref<176x128xf32, #tpu.memory_space<vmem>>, vector<176x128xf32>,
    } else {
    }
    %c0 = arith.constant 0 : index
    %c0_1 = arith.constant 0 : index
    %3 = vector.load %arg7[%c0, %c0_1] : memref<176x128xf32, #tpu.memory_space<vmem>>, vector<176x128xf32>
    %c0_2 = arith.constant 0 : index
    %c0_3 = arith.constant 0 : index
    %4 = vector.load %arg3[%c0_2, %c0_3] : memref<176x128xbf16, #tpu.memory_space<vmem>>, vector<176x128xbf16>
    %c0_4 = arith.constant 0 : index
    %c0_5 = arith.constant 0 : index
    %5 = vector.load %arg4[%c0_4, %c0_5] : memref<128x128xbf16, #tpu.memory_space<vmem>>, vector<128x128xbf16>
    %cst = arith.constant dense<0.000000e+00> : vector<176x128xf32>
    %6 = tpu.matmul %4, %5, %cst {dimension_numbers = #tpu.dot_dimension_numbers<[1], [0], [0], [1], [0, 0, 1, 1], [], []>} : vector<176x128xbf16>, vector<128x128xbf16>, vector<176x128xf32> -> vector<176x128xf32>
    %7 = arith.addf %3, %6 : vector<176x128xf32>
    %c0_6 = arith.constant 0 : index
    %c0_7 = arith.constant 0 : index
    %8 = vector.load %arg7[%c0_6, %c0_7] : memref<176x128xf32, #tpu.memory_space<vmem>>, vector<176x128xf32>
    tpu.vector_store %arg7[%c0_6, %c0_7], %7 {strides = array<i32>} : memref<176x128xf32, #tpu.memory_space<vmem>>, vector<176x128xf32>,
    %c0_i32_8 = arith.constant 0 : i32
    %9 = arith.cmpi eq, %arg2, %c0_i32_8 : i32
    %10 = arith.extui %9 : i1 to i32
    %c0_i32_9 = arith.constant 0 : i32
    %11 = arith.cmpi ne, %10, %c0_i32_9 : i32
    scf.if %11 {
      %c0_10 = arith.constant 0 : index
      %c0_11 = arith.constant 0 : index
      %12 = vector.load %arg5[%c0_10, %c0_11] : memref<2x128xf32, #tpu.memory_space<vmem>>, vector<2x128xf32>
      %c0_12 = arith.constant 0 : index
      %c0_13 = arith.constant 0 : index
      %13 = vector.load %arg7[%c0_12, %c0_13] : memref<176x128xf32, #tpu.memory_space<vmem>>, vector<176x128xf32>
      %14 = vector.extract_strided_slice %12 {offsets = [0, 0], sizes = [1, 128], strides = [1, 1]} : vector<2x128xf32> to vector<1x128xf32>
      %15 = vector.broadcast %14 : vector<1x128xf32> to vector<176x128xf32>
      %16 = arith.mulf %13, %15 : vector<176x128xf32>
      %17 = vector.extract_strided_slice %12 {offsets = [1, 0], sizes = [1, 128], strides = [1, 1]} : vector<2x128xf32> to vector<1x128xf32>
      %18 = vector.broadcast %17 : vector<1x128xf32> to vector<176x128xf32>
      %19 = arith.addf %16, %18 : vector<176x128xf32>
      %cst_14 = arith.constant 2.000000e-01 : f32
      %20 = vector.broadcast %cst_14 : f32 to vector<176x128xf32>
      %21 = arith.mulf %20, %19 : vector<176x128xf32>
      %22 = arith.maximumf %19, %21 : vector<176x128xf32>
      %23 = arith.truncf %22 : vector<176x128xf32> to vector<176x128xbf16>
      %c0_15 = arith.constant 0 : index
      %c0_16 = arith.constant 0 : index
      %24 = vector.load %arg6[%c0_15, %c0_16] : memref<176x128xbf16, #tpu.memory_space<vmem>>, vector<176x128xbf16>
      tpu.vector_store %arg6[%c0_15, %c0_16], %23 {strides = array<i32>} : memref<176x128xbf16, #tpu.memory_space<vmem>>, vector<176x128xbf16>,
    } else {
    }
    return
  }
  func.func @transform_0(%arg0: i32, %arg1: i32, %arg2: i32) -> (i32, i32) {
    %c0_i32 = arith.constant 0 : i32
    return %arg0, %arg2 : i32, i32
  }
  func.func @transform_1(%arg0: i32, %arg1: i32, %arg2: i32) -> (i32, i32) {
    %c0_i32 = arith.constant 0 : i32
    return %arg2, %arg1 : i32, i32
  }
  func.func @transform_2(%arg0: i32, %arg1: i32, %arg2: i32) -> (i32, i32) {
    %c0_i32 = arith.constant 0 : i32
    %c0_i32_0 = arith.constant 0 : i32
    return %c0_i32, %arg1 : i32, i32
  }
  func.func @transform_3(%arg0: i32, %arg1: i32, %arg2: i32) -> (i32, i32) {
    %c0_i32 = arith.constant 0 : i32
    return %arg0, %arg1 : i32, i32
  }
}

module attributes {stable_mosaic.version = 11 : i64} {
  func.func @_matmul_fused_kernel(%arg0: i32, %arg1: i32, %arg2: i32, %arg3: memref<64x1024xbf16, #tpu.memory_space<vmem>>, %arg4: memref<1024x128xbf16, #tpu.memory_space<vmem>>, %arg5: memref<2x128xf32, #tpu.memory_space<vmem>>, %arg6: memref<64x128xbf16, #tpu.memory_space<vmem>>, %arg7: memref<64x128xf32, #tpu.memory_space<vmem>>) attributes {dimension_semantics = [#tpu.dimension_semantics<parallel>, #tpu.dimension_semantics<parallel>, #tpu.dimension_semantics<arbitrary>], iteration_bounds = array<i64: 1, 1, 1>, scalar_prefetch = 0 : i64, scratch_operands = 1 : i64, tpu.core_type = #tpu.core_type<tc>, window_params = [{transform_indices = @transform_0, window_bounds = array<i64: 64, 1024>}, {transform_indices = @transform_1, window_bounds = array<i64: 1024, 128>}, {transform_indices = @transform_2, window_bounds = array<i64: 2, 128>}, {transform_indices = @transform_3, window_bounds = array<i64: 64, 128>}]} {
    %c0_i32 = arith.constant 0 : i32
    %0 = arith.cmpi eq, %arg2, %c0_i32 : i32
    %1 = arith.extui %0 : i1 to i32
    %c0_i32_0 = arith.constant 0 : i32
    %2 = arith.cmpi ne, %1, %c0_i32_0 : i32
    scf.if %2 {
      %cst_10 = arith.constant 0.000000e+00 : f32
      %12 = vector.broadcast %cst_10 : f32 to vector<64x128xf32>
      %c0_11 = arith.constant 0 : index
      %c0_12 = arith.constant 0 : index
      %13 = vector.load %arg7[%c0_11, %c0_12] : memref<64x128xf32, #tpu.memory_space<vmem>>, vector<64x128xf32>
      tpu.vector_store %arg7[%c0_11, %c0_12], %12 {strides = array<i32>} : memref<64x128xf32, #tpu.memory_space<vmem>>, vector<64x128xf32>,
    } else {
    }
    %c0 = arith.constant 0 : index
    %c0_1 = arith.constant 0 : index
    %3 = vector.load %arg7[%c0, %c0_1] : memref<64x128xf32, #tpu.memory_space<vmem>>, vector<64x128xf32>
    %c0_2 = arith.constant 0 : index
    %c0_3 = arith.constant 0 : index
    %4 = vector.load %arg3[%c0_2, %c0_3] : memref<64x1024xbf16, #tpu.memory_space<vmem>>, vector<64x1024xbf16>
    %c0_4 = arith.constant 0 : index
    %c0_5 = arith.constant 0 : index
    %5 = vector.load %arg4[%c0_4, %c0_5] : memref<1024x128xbf16, #tpu.memory_space<vmem>>, vector<1024x128xbf16>
    %cst = arith.constant dense<0.000000e+00> : vector<64x128xf32>
    %6 = tpu.matmul %4, %5, %cst {dimension_numbers = #tpu.dot_dimension_numbers<[1], [0], [0], [1], [0, 0, 1, 1], [], []>} : vector<64x1024xbf16>, vector<1024x128xbf16>, vector<64x128xf32> -> vector<64x128xf32>
    %7 = arith.addf %3, %6 : vector<64x128xf32>
    %c0_6 = arith.constant 0 : index
    %c0_7 = arith.constant 0 : index
    %8 = vector.load %arg7[%c0_6, %c0_7] : memref<64x128xf32, #tpu.memory_space<vmem>>, vector<64x128xf32>
    tpu.vector_store %arg7[%c0_6, %c0_7], %7 {strides = array<i32>} : memref<64x128xf32, #tpu.memory_space<vmem>>, vector<64x128xf32>,
    %c0_i32_8 = arith.constant 0 : i32
    %9 = arith.cmpi eq, %arg2, %c0_i32_8 : i32
    %10 = arith.extui %9 : i1 to i32
    %c0_i32_9 = arith.constant 0 : i32
    %11 = arith.cmpi ne, %10, %c0_i32_9 : i32
    scf.if %11 {
      %c0_10 = arith.constant 0 : index
      %c0_11 = arith.constant 0 : index
      %12 = vector.load %arg5[%c0_10, %c0_11] : memref<2x128xf32, #tpu.memory_space<vmem>>, vector<2x128xf32>
      %c0_12 = arith.constant 0 : index
      %c0_13 = arith.constant 0 : index
      %13 = vector.load %arg7[%c0_12, %c0_13] : memref<64x128xf32, #tpu.memory_space<vmem>>, vector<64x128xf32>
      %14 = vector.extract_strided_slice %12 {offsets = [0, 0], sizes = [1, 128], strides = [1, 1]} : vector<2x128xf32> to vector<1x128xf32>
      %15 = vector.broadcast %14 : vector<1x128xf32> to vector<64x128xf32>
      %16 = arith.mulf %13, %15 : vector<64x128xf32>
      %17 = vector.extract_strided_slice %12 {offsets = [1, 0], sizes = [1, 128], strides = [1, 1]} : vector<2x128xf32> to vector<1x128xf32>
      %18 = vector.broadcast %17 : vector<1x128xf32> to vector<64x128xf32>
      %19 = arith.addf %16, %18 : vector<64x128xf32>
      %cst_14 = arith.constant 2.000000e-01 : f32
      %20 = vector.broadcast %cst_14 : f32 to vector<64x128xf32>
      %21 = arith.mulf %20, %19 : vector<64x128xf32>
      %22 = arith.maximumf %19, %21 : vector<64x128xf32>
      %23 = arith.truncf %22 : vector<64x128xf32> to vector<64x128xbf16>
      %c0_15 = arith.constant 0 : index
      %c0_16 = arith.constant 0 : index
      %24 = vector.load %arg6[%c0_15, %c0_16] : memref<64x128xbf16, #tpu.memory_space<vmem>>, vector<64x128xbf16>
      tpu.vector_store %arg6[%c0_15, %c0_16], %23 {strides = array<i32>} : memref<64x128xbf16, #tpu.memory_space<vmem>>, vector<64x128xbf16>,
    } else {
    }
    return
  }
  func.func @transform_0(%arg0: i32, %arg1: i32, %arg2: i32) -> (i32, i32) {
    %c0_i32 = arith.constant 0 : i32
    return %arg0, %arg2 : i32, i32
  }
  func.func @transform_1(%arg0: i32, %arg1: i32, %arg2: i32) -> (i32, i32) {
    %c0_i32 = arith.constant 0 : i32
    return %arg2, %arg1 : i32, i32
  }
  func.func @transform_2(%arg0: i32, %arg1: i32, %arg2: i32) -> (i32, i32) {
    %c0_i32 = arith.constant 0 : i32
    %c0_i32_0 = arith.constant 0 : i32
    return %c0_i32, %arg1 : i32, i32
  }
  func.func @transform_3(%arg0: i32, %arg1: i32, %arg2: i32) -> (i32, i32) {
    %c0_i32 = arith.constant 0 : i32
    return %arg0, %arg1 : i32, i32
  }
}

module attributes {stable_mosaic.version = 11 : i64} {
  func.func @_matmul_fused_kernel(%arg0: i32, %arg1: i32, %arg2: i32, %arg3: memref<32x2048xbf16, #tpu.memory_space<vmem>>, %arg4: memref<2048x128xbf16, #tpu.memory_space<vmem>>, %arg5: memref<2x128xf32, #tpu.memory_space<vmem>>, %arg6: memref<32x128xbf16, #tpu.memory_space<vmem>>, %arg7: memref<32x128xf32, #tpu.memory_space<vmem>>) attributes {dimension_semantics = [#tpu.dimension_semantics<parallel>, #tpu.dimension_semantics<parallel>, #tpu.dimension_semantics<arbitrary>], iteration_bounds = array<i64: 1, 2, 1>, scalar_prefetch = 0 : i64, scratch_operands = 1 : i64, tpu.core_type = #tpu.core_type<tc>, window_params = [{transform_indices = @transform_0, window_bounds = array<i64: 32, 2048>}, {transform_indices = @transform_1, window_bounds = array<i64: 2048, 128>}, {transform_indices = @transform_2, window_bounds = array<i64: 2, 128>}, {transform_indices = @transform_3, window_bounds = array<i64: 32, 128>}]} {
    %c0_i32 = arith.constant 0 : i32
    %0 = arith.cmpi eq, %arg2, %c0_i32 : i32
    %1 = arith.extui %0 : i1 to i32
    %c0_i32_0 = arith.constant 0 : i32
    %2 = arith.cmpi ne, %1, %c0_i32_0 : i32
    scf.if %2 {
      %cst_10 = arith.constant 0.000000e+00 : f32
      %12 = vector.broadcast %cst_10 : f32 to vector<32x128xf32>
      %c0_11 = arith.constant 0 : index
      %c0_12 = arith.constant 0 : index
      %13 = vector.load %arg7[%c0_11, %c0_12] : memref<32x128xf32, #tpu.memory_space<vmem>>, vector<32x128xf32>
      tpu.vector_store %arg7[%c0_11, %c0_12], %12 {strides = array<i32>} : memref<32x128xf32, #tpu.memory_space<vmem>>, vector<32x128xf32>,
    } else {
    }
    %c0 = arith.constant 0 : index
    %c0_1 = arith.constant 0 : index
    %3 = vector.load %arg7[%c0, %c0_1] : memref<32x128xf32, #tpu.memory_space<vmem>>, vector<32x128xf32>
    %c0_2 = arith.constant 0 : index
    %c0_3 = arith.constant 0 : index
    %4 = vector.load %arg3[%c0_2, %c0_3] : memref<32x2048xbf16, #tpu.memory_space<vmem>>, vector<32x2048xbf16>
    %c0_4 = arith.constant 0 : index
    %c0_5 = arith.constant 0 : index
    %5 = vector.load %arg4[%c0_4, %c0_5] : memref<2048x128xbf16, #tpu.memory_space<vmem>>, vector<2048x128xbf16>
    %cst = arith.constant dense<0.000000e+00> : vector<32x128xf32>
    %6 = tpu.matmul %4, %5, %cst {dimension_numbers = #tpu.dot_dimension_numbers<[1], [0], [0], [1], [0, 0, 1, 1], [], []>} : vector<32x2048xbf16>, vector<2048x128xbf16>, vector<32x128xf32> -> vector<32x128xf32>
    %7 = arith.addf %3, %6 : vector<32x128xf32>
    %c0_6 = arith.constant 0 : index
    %c0_7 = arith.constant 0 : index
    %8 = vector.load %arg7[%c0_6, %c0_7] : memref<32x128xf32, #tpu.memory_space<vmem>>, vector<32x128xf32>
    tpu.vector_store %arg7[%c0_6, %c0_7], %7 {strides = array<i32>} : memref<32x128xf32, #tpu.memory_space<vmem>>, vector<32x128xf32>,
    %c0_i32_8 = arith.constant 0 : i32
    %9 = arith.cmpi eq, %arg2, %c0_i32_8 : i32
    %10 = arith.extui %9 : i1 to i32
    %c0_i32_9 = arith.constant 0 : i32
    %11 = arith.cmpi ne, %10, %c0_i32_9 : i32
    scf.if %11 {
      %c0_10 = arith.constant 0 : index
      %c0_11 = arith.constant 0 : index
      %12 = vector.load %arg5[%c0_10, %c0_11] : memref<2x128xf32, #tpu.memory_space<vmem>>, vector<2x128xf32>
      %c0_12 = arith.constant 0 : index
      %c0_13 = arith.constant 0 : index
      %13 = vector.load %arg7[%c0_12, %c0_13] : memref<32x128xf32, #tpu.memory_space<vmem>>, vector<32x128xf32>
      %14 = vector.extract_strided_slice %12 {offsets = [0, 0], sizes = [1, 128], strides = [1, 1]} : vector<2x128xf32> to vector<1x128xf32>
      %15 = vector.broadcast %14 : vector<1x128xf32> to vector<32x128xf32>
      %16 = arith.mulf %13, %15 : vector<32x128xf32>
      %17 = vector.extract_strided_slice %12 {offsets = [1, 0], sizes = [1, 128], strides = [1, 1]} : vector<2x128xf32> to vector<1x128xf32>
      %18 = vector.broadcast %17 : vector<1x128xf32> to vector<32x128xf32>
      %19 = arith.addf %16, %18 : vector<32x128xf32>
      %cst_14 = arith.constant 2.000000e-01 : f32
      %20 = vector.broadcast %cst_14 : f32 to vector<32x128xf32>
      %21 = arith.mulf %20, %19 : vector<32x128xf32>
      %22 = arith.maximumf %19, %21 : vector<32x128xf32>
      %23 = arith.truncf %22 : vector<32x128xf32> to vector<32x128xbf16>
      %c0_15 = arith.constant 0 : index
      %c0_16 = arith.constant 0 : index
      %24 = vector.load %arg6[%c0_15, %c0_16] : memref<32x128xbf16, #tpu.memory_space<vmem>>, vector<32x128xbf16>
      tpu.vector_store %arg6[%c0_15, %c0_16], %23 {strides = array<i32>} : memref<32x128xbf16, #tpu.memory_space<vmem>>, vector<32x128xbf16>,
    } else {
    }
    return
  }
  func.func @transform_0(%arg0: i32, %arg1: i32, %arg2: i32) -> (i32, i32) {
    %c0_i32 = arith.constant 0 : i32
    return %arg0, %arg2 : i32, i32
  }
  func.func @transform_1(%arg0: i32, %arg1: i32, %arg2: i32) -> (i32, i32) {
    %c0_i32 = arith.constant 0 : i32
    return %arg2, %arg1 : i32, i32
  }
  func.func @transform_2(%arg0: i32, %arg1: i32, %arg2: i32) -> (i32, i32) {
    %c0_i32 = arith.constant 0 : i32
    %c0_i32_0 = arith.constant 0 : i32
    return %c0_i32, %arg1 : i32, i32
  }
  func.func @transform_3(%arg0: i32, %arg1: i32, %arg2: i32) -> (i32, i32) {
    %c0_i32 = arith.constant 0 : i32
    return %arg0, %arg1 : i32, i32
  }
}

module attributes {stable_mosaic.version = 11 : i64} {
  func.func @_matmul_fused_kernel(%arg0: i32, %arg1: i32, %arg2: i32, %arg3: memref<32x2048xbf16, #tpu.memory_space<vmem>>, %arg4: memref<2048x128xbf16, #tpu.memory_space<vmem>>, %arg5: memref<2x128xf32, #tpu.memory_space<vmem>>, %arg6: memref<32x128xbf16, #tpu.memory_space<vmem>>, %arg7: memref<32x128xf32, #tpu.memory_space<vmem>>) attributes {dimension_semantics = [#tpu.dimension_semantics<parallel>, #tpu.dimension_semantics<parallel>, #tpu.dimension_semantics<arbitrary>], iteration_bounds = array<i64: 1, 4, 2>, scalar_prefetch = 0 : i64, scratch_operands = 1 : i64, tpu.core_type = #tpu.core_type<tc>, window_params = [{transform_indices = @transform_0, window_bounds = array<i64: 32, 2048>}, {transform_indices = @transform_1, window_bounds = array<i64: 2048, 128>}, {transform_indices = @transform_2, window_bounds = array<i64: 2, 128>}, {transform_indices = @transform_3, window_bounds = array<i64: 32, 128>}]} {
    %c0_i32 = arith.constant 0 : i32
    %0 = arith.cmpi eq, %arg2, %c0_i32 : i32
    %1 = arith.extui %0 : i1 to i32
    %c0_i32_0 = arith.constant 0 : i32
    %2 = arith.cmpi ne, %1, %c0_i32_0 : i32
    scf.if %2 {
      %cst_9 = arith.constant 0.000000e+00 : f32
      %12 = vector.broadcast %cst_9 : f32 to vector<32x128xf32>
      %c0_10 = arith.constant 0 : index
      %c0_11 = arith.constant 0 : index
      %13 = vector.load %arg7[%c0_10, %c0_11] : memref<32x128xf32, #tpu.memory_space<vmem>>, vector<32x128xf32>
      tpu.vector_store %arg7[%c0_10, %c0_11], %12 {strides = array<i32>} : memref<32x128xf32, #tpu.memory_space<vmem>>, vector<32x128xf32>,
    } else {
    }
    %c0 = arith.constant 0 : index
    %c0_1 = arith.constant 0 : index
    %3 = vector.load %arg7[%c0, %c0_1] : memref<32x128xf32, #tpu.memory_space<vmem>>, vector<32x128xf32>
    %c0_2 = arith.constant 0 : index
    %c0_3 = arith.constant 0 : index
    %4 = vector.load %arg3[%c0_2, %c0_3] : memref<32x2048xbf16, #tpu.memory_space<vmem>>, vector<32x2048xbf16>
    %c0_4 = arith.constant 0 : index
    %c0_5 = arith.constant 0 : index
    %5 = vector.load %arg4[%c0_4, %c0_5] : memref<2048x128xbf16, #tpu.memory_space<vmem>>, vector<2048x128xbf16>
    %cst = arith.constant dense<0.000000e+00> : vector<32x128xf32>
    %6 = tpu.matmul %4, %5, %cst {dimension_numbers = #tpu.dot_dimension_numbers<[1], [0], [0], [1], [0, 0, 1, 1], [], []>} : vector<32x2048xbf16>, vector<2048x128xbf16>, vector<32x128xf32> -> vector<32x128xf32>
    %7 = arith.addf %3, %6 : vector<32x128xf32>
    %c0_6 = arith.constant 0 : index
    %c0_7 = arith.constant 0 : index
    %8 = vector.load %arg7[%c0_6, %c0_7] : memref<32x128xf32, #tpu.memory_space<vmem>>, vector<32x128xf32>
    tpu.vector_store %arg7[%c0_6, %c0_7], %7 {strides = array<i32>} : memref<32x128xf32, #tpu.memory_space<vmem>>, vector<32x128xf32>,
    %c1_i32 = arith.constant 1 : i32
    %9 = arith.cmpi eq, %arg2, %c1_i32 : i32
    %10 = arith.extui %9 : i1 to i32
    %c0_i32_8 = arith.constant 0 : i32
    %11 = arith.cmpi ne, %10, %c0_i32_8 : i32
    scf.if %11 {
      %c0_9 = arith.constant 0 : index
      %c0_10 = arith.constant 0 : index
      %12 = vector.load %arg5[%c0_9, %c0_10] : memref<2x128xf32, #tpu.memory_space<vmem>>, vector<2x128xf32>
      %c0_11 = arith.constant 0 : index
      %c0_12 = arith.constant 0 : index
      %13 = vector.load %arg7[%c0_11, %c0_12] : memref<32x128xf32, #tpu.memory_space<vmem>>, vector<32x128xf32>
      %14 = vector.extract_strided_slice %12 {offsets = [0, 0], sizes = [1, 128], strides = [1, 1]} : vector<2x128xf32> to vector<1x128xf32>
      %15 = vector.broadcast %14 : vector<1x128xf32> to vector<32x128xf32>
      %16 = arith.mulf %13, %15 : vector<32x128xf32>
      %17 = vector.extract_strided_slice %12 {offsets = [1, 0], sizes = [1, 128], strides = [1, 1]} : vector<2x128xf32> to vector<1x128xf32>
      %18 = vector.broadcast %17 : vector<1x128xf32> to vector<32x128xf32>
      %19 = arith.addf %16, %18 : vector<32x128xf32>
      %cst_13 = arith.constant 2.000000e-01 : f32
      %20 = vector.broadcast %cst_13 : f32 to vector<32x128xf32>
      %21 = arith.mulf %20, %19 : vector<32x128xf32>
      %22 = arith.maximumf %19, %21 : vector<32x128xf32>
      %23 = arith.truncf %22 : vector<32x128xf32> to vector<32x128xbf16>
      %c0_14 = arith.constant 0 : index
      %c0_15 = arith.constant 0 : index
      %24 = vector.load %arg6[%c0_14, %c0_15] : memref<32x128xbf16, #tpu.memory_space<vmem>>, vector<32x128xbf16>
      tpu.vector_store %arg6[%c0_14, %c0_15], %23 {strides = array<i32>} : memref<32x128xbf16, #tpu.memory_space<vmem>>, vector<32x128xbf16>,
    } else {
    }
    return
  }
  func.func @transform_0(%arg0: i32, %arg1: i32, %arg2: i32) -> (i32, i32) {
    %c0_i32 = arith.constant 0 : i32
    return %arg0, %arg2 : i32, i32
  }
  func.func @transform_1(%arg0: i32, %arg1: i32, %arg2: i32) -> (i32, i32) {
    %c0_i32 = arith.constant 0 : i32
    return %arg2, %arg1 : i32, i32
  }
  func.func @transform_2(%arg0: i32, %arg1: i32, %arg2: i32) -> (i32, i32) {
    %c0_i32 = arith.constant 0 : i32
    %c0_i32_0 = arith.constant 0 : i32
    return %c0_i32, %arg1 : i32, i32
  }
  func.func @transform_3(%arg0: i32, %arg1: i32, %arg2: i32) -> (i32, i32) {
    %c0_i32 = arith.constant 0 : i32
    return %arg0, %arg1 : i32, i32
  }
}

module attributes {stable_mosaic.version = 11 : i64} {
  func.func @_rowdot_fused_kernel(%arg0: i32, %arg1: memref<64x8192xbf16, #tpu.memory_space<vmem>>, %arg2: memref<1x8192xbf16, #tpu.memory_space<vmem>>, %arg3: memref<2x1xf32, #tpu.memory_space<vmem>>, %arg4: memref<64x1xf32, #tpu.memory_space<vmem>>) attributes {dimension_semantics = [#tpu.dimension_semantics<parallel>], iteration_bounds = array<i64: 1>, scalar_prefetch = 0 : i64, scratch_operands = 0 : i64, tpu.core_type = #tpu.core_type<tc>, window_params = [{transform_indices = @transform_0, window_bounds = array<i64: 64, 8192>}, {pipeline_mode = #tpu.pipeline_mode<synchronous>, transform_indices = @transform_1, window_bounds = array<i64: 1, 8192>}, {pipeline_mode = #tpu.pipeline_mode<synchronous>, transform_indices = @transform_2, window_bounds = array<i64: 2, 1>}, {transform_indices = @transform_3, window_bounds = array<i64: 64, 1>}]} {
    %c0 = arith.constant 0 : index
    %c0_0 = arith.constant 0 : index
    %0 = vector.load %arg1[%c0, %c0_0] : memref<64x8192xbf16, #tpu.memory_space<vmem>>, vector<64x8192xbf16>
    %1 = arith.extf %0 : vector<64x8192xbf16> to vector<64x8192xf32>
    %c0_1 = arith.constant 0 : index
    %c0_2 = arith.constant 0 : index
    %2 = vector.load %arg2[%c0_1, %c0_2] : memref<1x8192xbf16, #tpu.memory_space<vmem>>, vector<1x8192xbf16>
    %3 = arith.extf %2 : vector<1x8192xbf16> to vector<1x8192xf32>
    %4 = vector.broadcast %3 : vector<1x8192xf32> to vector<64x8192xf32>
    %5 = arith.mulf %1, %4 : vector<64x8192xf32>
    %cst = arith.constant dense<0.000000e+00> : vector<64xf32>
    %6 = vector.multi_reduction <add>, %5, %cst [1] : vector<64x8192xf32> to vector<64xf32>
    %7 = vector.shape_cast %6 : vector<64xf32> to vector<64x1xf32>
    %c0_3 = arith.constant 0 : index
    %c0_4 = arith.constant 0 : index
    %8 = vector.load %arg3[%c0_3, %c0_4] : memref<2x1xf32, #tpu.memory_space<vmem>>, vector<1x1xf32>
    %9 = vector.broadcast %8 : vector<1x1xf32> to vector<64x1xf32>
    %10 = arith.mulf %7, %9 : vector<64x1xf32>
    %c1 = arith.constant 1 : index
    %c0_5 = arith.constant 0 : index
    %11 = vector.load %arg3[%c1, %c0_5] : memref<2x1xf32, #tpu.memory_space<vmem>>, vector<1x1xf32>
    %12 = vector.broadcast %11 : vector<1x1xf32> to vector<64x1xf32>
    %13 = arith.addf %10, %12 : vector<64x1xf32>
    %c0_6 = arith.constant 0 : index
    %c0_7 = arith.constant 0 : index
    %14 = vector.load %arg4[%c0_6, %c0_7] : memref<64x1xf32, #tpu.memory_space<vmem>>, vector<64x1xf32>
    tpu.vector_store %arg4[%c0_6, %c0_7], %13 {strides = array<i32>} : memref<64x1xf32, #tpu.memory_space<vmem>>, vector<64x1xf32>,
    return
  }
  func.func @transform_0(%arg0: i32) -> (i32, i32) {
    %c0_i32 = arith.constant 0 : i32
    %c0_i32_0 = arith.constant 0 : i32
    return %arg0, %c0_i32 : i32, i32
  }
  func.func @transform_1(%arg0: i32) -> (i32, i32) {
    %c0_i32 = arith.constant 0 : i32
    %c0_i32_0 = arith.constant 0 : i32
    %c0_i32_1 = arith.constant 0 : i32
    return %c0_i32, %c0_i32_0 : i32, i32
  }
  func.func @transform_2(%arg0: i32) -> (i32, i32) {
    %c0_i32 = arith.constant 0 : i32
    %c0_i32_0 = arith.constant 0 : i32
    %c0_i32_1 = arith.constant 0 : i32
    return %c0_i32, %c0_i32_0 : i32, i32
  }
  func.func @transform_3(%arg0: i32) -> (i32, i32) {
    %c0_i32 = arith.constant 0 : i32
    %c0_i32_0 = arith.constant 0 : i32
    return %arg0, %c0_i32 : i32, i32
  }
}

</mosaic_0001>

<bundles_post_ra>
// kernel: forward.5
= control target key start
LH: loop header
LB: loop body
LE: loop exit
PB: predicated region body
PF: predicated region fallthrough
CT: control target
= control target key end

     0   :  { %v860_v0 = vmov 0.0   ;;  %vm861_vm0 = vmmov 0   ;;  %v406_v20 = vlaneseq  ;;  %s1061_s1 = inlined_call_operand.vmem [shape: bf16[128,128], index: 1, kind: input, shape index: {}]   ;;  %s1062_s0 = inlined_call_operand.vmem [shape: bf16[176,128], index: 0, kind: input, shape index: {}]   ;;  %s1063_s2 = inlined_call_operand.vmem [shape: f32[2,128], index: 2, kind: input, shape index: {}]   ;;  %s1064_s3 = inlined_call_operand.vmem [shape: bf16[176,128], index: 3, kind: output, shape index: {}]  }
   0x1   :  { %763 = vmatprep.subr.bf16.mxu0 %v860_v0  ;;  %v841_v1 = vld [vmem:[%s1061_s1] sm:$0xff]   ;;  %823 = vmatprep.subr.bf16.mxu1 %v860_v0  ;;  %v842_v2 = vld [vmem:[%s1061_s1 + $0x8] sm:$0xff]   ;;  %v843_v3 = vld [vmem:[%s1061_s1 + $0x10] sm:$0xff]  }
   0x2   :  { %779 = vmatprep.mubr.msk.bf16.mxu0 %vm861_vm0, %v860_v0  ;;  %803 = vmatprep.mubr.msk.bf16.mxu1 %vm861_vm0, %v860_v0  ;;  %v844_v4 = vld [vmem:[%s1061_s1 + $0x18] sm:$0xff]   ;;  %v845_v5 = vld [vmem:[%s1061_s1 + $0x20] sm:$0xff]   ;;  %v846_v6 = vld [vmem:[%s1061_s1 + $0x28] sm:$0xff]   ;;  %v407_v21 = vshrl.u32 %v406_v20, 7 }
   0x3   :  { %764 = vmatpush3.bf16.msra.mxu0 %v841_v1  ;;  %831 = vmatpush3.bf16.msra.mxu1 %v841_v1  ;;  %v847_v7 = vld [vmem:[%s1061_s1 + $0x30] sm:$0xff]   ;;  %v848_v8 = vld [vmem:[%s1061_s1 + $0x38] sm:$0xff]   ;;  %v849_v9 = vld [vmem:[%s1062_s0] sm:$0xff]  }
   0x4   :  { %765 = vmatprep.subr.bf16.mxu0 %v860_v0  ;;  %824 = vmatprep.subr.bf16.mxu1 %v860_v0  ;;  %v850_v10 = vld [vmem:[%s1062_s0 + $0x30] sm:$0xff]   ;;  %v851_v11 = vld [vmem:[%s1062_s0 + $0x8] sm:$0xff]   ;;  %v852_v12 = vld [vmem:[%s1062_s0 + $0x38] sm:$0xff]   ;;  %v408_v22 = vsub.s32 0, %v407_v21  ;;  %v434_v24 = vsub.s32 1, %v407_v21 }
   0x5   :  { %v853_v13 = vld [vmem:[%s1062_s0 + $0x10] sm:$0xff]   ;;  %v854_v14 = vld [vmem:[%s1062_s0 + $0x40] sm:$0xff]   ;;  %v855_v15 = vld [vmem:[%s1062_s0 + $0x18] sm:$0xff]  }
   0x6   :  { %v856_v16 = vld [vmem:[%s1062_s0 + $0x48] sm:$0xff]   ;;  %v857_v17 = vld [vmem:[%s1062_s0 + $0x20] sm:$0xff]   ;;  %v858_v18 = vld [vmem:[%s1062_s0 + $0x50] sm:$0xff]  }
   0x7   :  { %766 = vmatpush3.bf16.msra.mxu0 %v842_v2  ;;  %832 = vmatpush3.bf16.msra.mxu1 %v842_v2  ;;  %v859_v19 = vld [vmem:[%s1062_s0 + $0x28] sm:$0xff]   ;;  %v383_v23 = vld [vmem:[%s1063_s2] sm:$0x3] }
   0x8   :  { %767 = vmatprep.subr.bf16.mxu0 %v860_v0  ;;  %825 = vmatprep.subr.bf16.mxu1 %v860_v0  ;;  %v980_v25 = vrot.slane %v383_v23, %v408_v22  ;;  %v982_v26 = vrot.slane %v383_v23, %v434_v24 }
   0xb   :  { %768 = vmatpush3.bf16.msra.mxu0 %v843_v3  ;;  %833 = vmatpush3.bf16.msra.mxu1 %v843_v3 }
   0xc   :  { %769 = vmatprep.subr.bf16.mxu0 %v860_v0  ;;  %826 = vmatprep.subr.bf16.mxu1 %v860_v0 }
   0xf   :  { %770 = vmatpush3.bf16.msra.mxu0 %v844_v4  ;;  %834 = vmatpush3.bf16.msra.mxu1 %v844_v4 }
  0x10   :  { %771 = vmatprep.subr.bf16.mxu0 %v860_v0  ;;  %827 = vmatprep.subr.bf16.mxu1 %v860_v0 }
  0x13   :  { %772 = vmatpush3.bf16.msra.mxu0 %v845_v5  ;;  %835 = vmatpush3.bf16.msra.mxu1 %v845_v5 }
  0x14   :  { %773 = vmatprep.subr.bf16.mxu0 %v860_v0  ;;  %828 = vmatprep.subr.bf16.mxu1 %v860_v0 }
  0x17   :  { %774 = vmatpush3.bf16.msra.mxu0 %v846_v6  ;;  %836 = vmatpush3.bf16.msra.mxu1 %v846_v6 }
  0x18   :  { %775 = vmatprep.subr.bf16.mxu0 %v860_v0  ;;  %829 = vmatprep.subr.bf16.mxu1 %v860_v0 }
  0x1b   :  { %776 = vmatpush3.bf16.msra.mxu0 %v847_v7  ;;  %837 = vmatpush3.bf16.msra.mxu1 %v847_v7 }
  0x1c   :  { %777 = vmatprep.subr.bf16.mxu0 %v860_v0  ;;  %830 = vmatprep.subr.bf16.mxu1 %v860_v0 }
  0x1f   :  { %778 = vmatpush3.bf16.msra.mxu0 %v848_v8  ;;  %838 = vmatpush3.bf16.msra.mxu1 %v848_v8 }
  0x22   :  { %780 = vmatmul.mubr.bf16.vlgmr.msra.gmra.mrb[0].mxu0 %v849_v9  ;;  %804 = vmatmul.mubr.bf16.vlgmr.msra.gmra.mrb[0].mxu1 %v850_v10 }
  0x23   :  { %783 = vmatprep.mubr.msk.bf16.mxu0 %vm861_vm0, %v860_v0  ;;  %807 = vmatprep.mubr.msk.bf16.mxu1 %vm861_vm0, %v860_v0 }
  0x2a   :  { %784 = vmatmul.mubr.bf16.gmra.mrb[4].mxu0 %v851_v11  ;;  %808 = vmatmul.mubr.bf16.gmra.mrb[4].mxu1 %v852_v12 }
  0x2b   :  { %787 = vmatprep.mubr.msk.bf16.mxu0 %vm861_vm0, %v860_v0  ;;  %811 = vmatprep.mubr.msk.bf16.mxu1 %vm861_vm0, %v860_v0 }
  0x32   :  { %788 = vmatmul.mubr.bf16.gmra.mrb[8].mxu0 %v853_v13  ;;  %812 = vmatmul.mubr.bf16.gmra.mrb[8].mxu1 %v854_v14 }
  0x33   :  { %791 = vmatprep.mubr.msk.bf16.mxu0 %vm861_vm0, %v860_v0  ;;  %815 = vmatprep.mubr.msk.bf16.mxu1 %vm861_vm0, %v860_v0 }
  0x3a   :  { %792 = vmatmul.mubr.bf16.gmra.mrb[12].mxu0 %v855_v15  ;;  %816 = vmatmul.mubr.bf16.gmra.mrb[12].mxu1 %v856_v16 }
  0x3b   :  { %795 = vmatprep.mubr.msk.bf16.mxu0 %vm861_vm0, %v860_v0  ;;  %819 = vmatprep.mubr.msk.bf16.mxu1 %vm861_vm0, %v860_v0 }
  0x42   :  { %796 = vmatmul.mubr.bf16.gmra.mrb[16].mxu0 %v857_v17  ;;  %820 = vmatmul.mubr.bf16.gmra.mrb[16].mxu1 %v858_v18 }
  0x43   :  { %799 = vmatprep.mubr.msk.bf16.mxu0 %vm861_vm0, %v860_v0 }
  0x4a   :  { %800 = vmatmul.mubr.bf16.gmra.mrb[20].mxu0 %v859_v19 }
  0xf5   :  { %v249_v27 = vpop.f32.mrb[0].mxu0  ;;  %v297_v28 = vpop.f32.mrb[0].mxu1 }
  0xf6   :  { %v410_v29 = vmul.f32 %v980_v25, %v249_v27  ;;  %v781_v30 = vpop.f32.mrb[1].mxu0  ;;  %v422_v31 = vmul.f32 %v980_v25, %v297_v28  ;;  %v805_v32 = vpop.f32.mrb[1].mxu1 }
  0xf7   :  { %v252_v33 = vpop.f32.mrb[2].mxu0  ;;  %v300_v34 = vpop.f32.mrb[2].mxu1 }
  0xf8   :  { %v436_v35 = vadd.f32 %v982_v26, %v410_v29  ;;  %v411_v36 = vmul.f32 %v980_v25, %v252_v33  ;;  %v782_v37 = vpop.f32.mrb[3].mxu0  ;;  %v448_v38 = vadd.f32 %v982_v26, %v422_v31  ;;  %v423_v39 = vmul.f32 %v980_v25, %v300_v34  ;;  %v806_v40 = vpop.f32.mrb[3].mxu1 }
  0xfa   :  { %v458_v41 = vmul.f32 0.2, %v436_v35  ;;  %v437_v42 = vadd.f32 %v982_v26, %v411_v36  ;;  %v470_v43 = vmul.f32 0.2, %v448_v38  ;;  %v449_v44 = vadd.f32 %v982_v26, %v423_v39 }
  0xfc   :  { %v459_v45 = vmul.f32 0.2, %v437_v42  ;;  %v492_v46 = vmax.f32 %v448_v38, %v470_v43  ;;  %v471_v47 = vmul.f32 0.2, %v449_v44  ;;  %v480_v48 = vmax.f32 %v436_v35, %v458_v41 }
  0xfd   :  { %v257_v49 = vpop.f32.mrb[4].mxu0  ;;  %v305_v50 = vpop.f32.mrb[4].mxu1 }
  0xfe   :  { %v481_v51 = vmax.f32 %v437_v42, %v459_v45  ;;  %v493_v52 = vmax.f32 %v449_v44, %v471_v47  ;;  %v412_v53 = vmul.f32 %v980_v25, %v257_v49  ;;  %v785_v54 = vpop.f32.mrb[5].mxu0  ;;  %v424_v55 = vmul.f32 %v980_v25, %v305_v50  ;;  %v809_v56 = vpop.f32.mrb[5].mxu1 }
  0xff   :  { %v260_v57 = vpop.f32.mrb[6].mxu0  ;;  %v308_v58 = vpop.f32.mrb[6].mxu1 }
 0x100   :  { %v682_v59 = vpack.c.bf16 %v481_v51, %v480_v48  ;;  %v712_v60 = vpack.c.bf16 %v493_v52, %v492_v46  ;;  %v438_v61 = vadd.f32 %v982_v26, %v412_v53  ;;  %v413_v62 = vmul.f32 %v980_v25, %v260_v57  ;;  %v786_v63 = vpop.f32.mrb[7].mxu0  ;;  %v810_v0 = vpop.f32.mrb[7].mxu1 }
 0x101   :  { %v450_v1 = vadd.f32 %v982_v26, %v424_v55  ;;  %v425_v2 = vmul.f32 %v980_v25, %v308_v58 }
 0x102   :  { %683 = vst [vmem:[%s1064_s3] sm:$0xff] %v682_v59   ;;  %739 = vst [vmem:[%s1064_s3 + $0x30] sm:$0xff] %v712_v60   ;;  %v460_v3 = vmul.f32 0.2, %v438_v61  ;;  %v439_v4 = vadd.f32 %v982_v26, %v413_v62 }
 0x103   :  { %v472_v5 = vmul.f32 0.2, %v450_v1  ;;  %v451_v6 = vadd.f32 %v982_v26, %v425_v2 }
 0x104   :  { %v461_v7 = vmul.f32 0.2, %v439_v4  ;;  %v482_v12 = vmax.f32 %v438_v61, %v460_v3 }
 0x105   :  { %v494_v8 = vmax.f32 %v450_v1, %v472_v5  ;;  %v473_v9 = vmul.f32 0.2, %v451_v6  ;;  %v265_v10 = vpop.f32.mrb[8].mxu0  ;;  %v313_v11 = vpop.f32.mrb[8].mxu1 }
 0x106   :  { %v483_v13 = vmax.f32 %v439_v4, %v461_v7  ;;  %v414_v14 = vmul.f32 %v980_v25, %v265_v10  ;;  %v789_v15 = vpop.f32.mrb[9].mxu0  ;;  %v426_v16 = vmul.f32 %v980_v25, %v313_v11  ;;  %v813_v17 = vpop.f32.mrb[9].mxu1 }
 0x107   :  { %v495_v18 = vmax.f32 %v451_v6, %v473_v9  ;;  %v268_v19 = vpop.f32.mrb[10].mxu0  ;;  %v316_v20 = vpop.f32.mrb[10].mxu1 }
 0x108   :  { %v687_v21 = vpack.c.bf16 %v483_v13, %v482_v12  ;;  %v440_v22 = vadd.f32 %v982_v26, %v414_v14  ;;  %v415_v23 = vmul.f32 %v980_v25, %v268_v19  ;;  %v790_v24 = vpop.f32.mrb[11].mxu0  ;;  %v452_v27 = vadd.f32 %v982_v26, %v426_v16  ;;  %v814_v28 = vpop.f32.mrb[11].mxu1 }
 0x109   :  { %v717_v29 = vpack.c.bf16 %v495_v18, %v494_v8  ;;  %v427_v30 = vmul.f32 %v980_v25, %v316_v20 }
 0x10a   :  { %734 = vst [vmem:[%s1064_s3 + $0x8] sm:$0xff] %v687_v21   ;;  %v462_v31 = vmul.f32 0.2, %v440_v22  ;;  %v441_v32 = vadd.f32 %v982_v26, %v415_v23  ;;  %v474_v33 = vmul.f32 0.2, %v452_v27 }
 0x10b   :  { %740 = vst [vmem:[%s1064_s3 + $0x38] sm:$0xff] %v717_v29   ;;  %v453_v34 = vadd.f32 %v982_v26, %v427_v30 }
 0x10c   :  { %v463_v35 = vmul.f32 0.2, %v441_v32  ;;  %v496_v36 = vmax.f32 %v452_v27, %v474_v33  ;;  %v484_v40 = vmax.f32 %v440_v22, %v462_v31 }
 0x10d   :  { %v475_v37 = vmul.f32 0.2, %v453_v34  ;;  %v273_v38 = vpop.f32.mrb[12].mxu0  ;;  %v321_v39 = vpop.f32.mrb[12].mxu1 }
 0x10e   :  { %v485_v41 = vmax.f32 %v441_v32, %v463_v35  ;;  %v416_v42 = vmul.f32 %v980_v25, %v273_v38  ;;  %v793_v43 = vpop.f32.mrb[13].mxu0  ;;  %v428_v44 = vmul.f32 %v980_v25, %v321_v39  ;;  %v817_v45 = vpop.f32.mrb[13].mxu1 }
 0x10f   :  { %v497_v46 = vmax.f32 %v453_v34, %v475_v37  ;;  %v276_v47 = vpop.f32.mrb[14].mxu0  ;;  %v324_v48 = vpop.f32.mrb[14].mxu1 }
 0x110   :  { %v692_v49 = vpack.c.bf16 %v485_v41, %v484_v40  ;;  %v442_v50 = vadd.f32 %v982_v26, %v416_v42  ;;  %v417_v51 = vmul.f32 %v980_v25, %v276_v47  ;;  %v794_v52 = vpop.f32.mrb[15].mxu0  ;;  %v454_v53 = vadd.f32 %v982_v26, %v428_v44  ;;  %v818_v54 = vpop.f32.mrb[15].mxu1 }
 0x111   :  { %v722_v55 = vpack.c.bf16 %v497_v46, %v496_v36  ;;  %v429_v56 = vmul.f32 %v980_v25, %v324_v48 }
 0x112   :  { %735 = vst [vmem:[%s1064_s3 + $0x10] sm:$0xff] %v692_v49   ;;  %v464_v57 = vmul.f32 0.2, %v442_v50  ;;  %v443_v58 = vadd.f32 %v982_v26, %v417_v51  ;;  %v476_v59 = vmul.f32 0.2, %v454_v53 }
 0x113   :  { %741 = vst [vmem:[%s1064_s3 + $0x40] sm:$0xff] %v722_v55   ;;  %v455_v60 = vadd.f32 %v982_v26, %v429_v56 }
 0x114   :  { %v465_v61 = vmul.f32 0.2, %v443_v58  ;;  %v498_v62 = vmax.f32 %v454_v53, %v476_v59  ;;  %v486_v2 = vmax.f32 %v442_v50, %v464_v57 }
 0x115   :  { %v477_v63 = vmul.f32 0.2, %v455_v60  ;;  %v281_v0 = vpop.f32.mrb[16].mxu0  ;;  %v329_v1 = vpop.f32.mrb[16].mxu1 }
 0x116   :  { %v487_v3 = vmax.f32 %v443_v58, %v465_v61  ;;  %v418_v4 = vmul.f32 %v980_v25, %v281_v0  ;;  %v797_v5 = vpop.f32.mrb[17].mxu0  ;;  %v430_v6 = vmul.f32 %v980_v25, %v329_v1  ;;  %v821_v7 = vpop.f32.mrb[17].mxu1 }
 0x117   :  { %v499_v8 = vmax.f32 %v455_v60, %v477_v63  ;;  %v284_v9 = vpop.f32.mrb[18].mxu0  ;;  %v332_v10 = vpop.f32.mrb[18].mxu1 }
 0x118   :  { %v697_v11 = vpack.c.bf16 %v487_v3, %v486_v2  ;;  %v444_v12 = vadd.f32 %v982_v26, %v418_v4  ;;  %v419_v13 = vmul.f32 %v980_v25, %v284_v9  ;;  %v798_v14 = vpop.f32.mrb[19].mxu0  ;;  %v456_v15 = vadd.f32 %v982_v26, %v430_v6  ;;  %v822_v16 = vpop.f32.mrb[19].mxu1 }
 0x119   :  { %v727_v17 = vpack.c.bf16 %v499_v8, %v498_v62  ;;  %v431_v18 = vmul.f32 %v980_v25, %v332_v10 }
 0x11a   :  { %736 = vst [vmem:[%s1064_s3 + $0x18] sm:$0xff] %v697_v11   ;;  %v466_v19 = vmul.f32 0.2, %v444_v12  ;;  %v445_v20 = vadd.f32 %v982_v26, %v419_v13  ;;  %v478_v21 = vmul.f32 0.2, %v456_v15 }
 0x11b   :  { %742 = vst [vmem:[%s1064_s3 + $0x48] sm:$0xff] %v727_v17   ;;  %v457_v22 = vadd.f32 %v982_v26, %v431_v18 }
 0x11c   :  { %v467_v23 = vmul.f32 0.2, %v445_v20  ;;  %v500_v24 = vmax.f32 %v456_v15, %v478_v21  ;;  %v488_v29 = vmax.f32 %v444_v12, %v466_v19 }
 0x11d   :  { %v479_v27 = vmul.f32 0.2, %v457_v22  ;;  %v289_v28 = vpop.f32.mrb[20].mxu0 }
 0x11e   :  { %v489_v30 = vmax.f32 %v445_v20, %v467_v23  ;;  %v420_v31 = vmul.f32 %v980_v25, %v289_v28  ;;  %v801_v32 = vpop.f32.mrb[21].mxu0 }
 0x11f   :  { %v501_v33 = vmax.f32 %v457_v22, %v479_v27  ;;  %v292_v34 = vpop.f32.mrb[22].mxu0 }
 0x120   :  { %v702_v35 = vpack.c.bf16 %v489_v30, %v488_v29  ;;  %v446_v36 = vadd.f32 %v982_v26, %v420_v31  ;;  %v421_v37 = vmul.f32 %v980_v25, %v292_v34  ;;  %v802_v38 = vpop.f32.mrb[23].mxu0 }
 0x121   :  { %v732_v39 = vpack.c.bf16 %v501_v33, %v500_v24 }
 0x122   :  { %737 = vst [vmem:[%s1064_s3 + $0x20] sm:$0xff] %v702_v35   ;;  %v468_v40 = vmul.f32 0.2, %v446_v36  ;;  %v447_v41 = vadd.f32 %v982_v26, %v421_v37 }
 0x123   :  { %743 = vst [vmem:[%s1064_s3 + $0x50] sm:$0xff] %v732_v39  }
 0x124   :  { %v469_v42 = vmul.f32 0.2, %v447_v41  ;;  %v490_v43 = vmax.f32 %v446_v36, %v468_v40 }
 0x126   :  { %v491_v44 = vmax.f32 %v447_v41, %v469_v42 }
 0x128   :  { %v707_v45 = vpack.c.bf16 %v491_v44, %v490_v43 }
 0x12a   :  { %738 = vst [vmem:[%s1064_s3 + $0x28] sm:$0xff] %v707_v45  }

// kernel: forward.6
= control target key start
LH: loop header
LB: loop body
LE: loop exit
PB: predicated region body
PF: predicated region fallthrough
CT: control target
= control target key end

     0   :  { %s1834_s1 = inlined_call_operand.vmem [shape: bf16[1024,128], index: 1, kind: input, shape index: {}]   ;;  %s1835_s0 = inlined_call_operand.vmem [shape: bf16[64,1024], index: 0, kind: input, shape index: {}]   ;;  %s1836_s2 = inlined_call_operand.vmem [shape: f32[2,128], index: 2, kind: input, shape index: {}]   ;;  %s1837_s3 = inlined_call_operand.vmem [shape: bf16[64,128], index: 3, kind: output, shape index: {}]  }
   0x1   :  { %v1406_v0 = vld [vmem:[%s1834_s1 + $0x40] sm:$0xff]   ;;  %v1410_v4 = vld [vmem:[%s1834_s1 + $0x48] sm:$0xff]   ;;  %v1414_v8 = vld [vmem:[%s1834_s1 + $0x50] sm:$0xff]  }
   0x2   :  { %v1407_v1 = vld [vmem:[%s1834_s1 + $0xc0] sm:$0xff]   ;;  %1246 = vmatprep.subr.bf16.mxu0 %v1406_v0  ;;  %v1411_v5 = vld [vmem:[%s1834_s1 + $0xc8] sm:$0xff]   ;;  %v1415_v9 = vld [vmem:[%s1834_s1 + $0xd0] sm:$0xff]  }
   0x3   :  { %v1408_v2 = vld [vmem:[%s1834_s1] sm:$0xff]   ;;  %1286 = vmatprep.subr.bf16.mxu1 %v1407_v1  ;;  %v1412_v6 = vld [vmem:[%s1834_s1 + $0x8] sm:$0xff]   ;;  %v1416_v10 = vld [vmem:[%s1834_s1 + $0x10] sm:$0xff]  }
   0x4   :  { %v1409_v3 = vld [vmem:[%s1834_s1 + $0x80] sm:$0xff]   ;;  %1247 = vmatpush3.bf16.msra.mxu0 %v1408_v2  ;;  %v1413_v7 = vld [vmem:[%s1834_s1 + $0x88] sm:$0xff]   ;;  %v1417_v11 = vld [vmem:[%s1834_s1 + $0x90] sm:$0xff]  }
   0x5   :  { %1287 = vmatpush3.bf16.msra.mxu1 %v1409_v3  ;;  %1248 = vmatprep.subr.bf16.mxu0 %v1410_v4  ;;  %v1418_v12 = vld [vmem:[%s1834_s1 + $0x58] sm:$0xff]   ;;  %v1422_v16 = vld [vmem:[%s1834_s1 + $0x60] sm:$0xff]   ;;  %v1426_v20 = vld [vmem:[%s1834_s1 + $0x68] sm:$0xff]  }
   0x6   :  { %1288 = vmatprep.subr.bf16.mxu1 %v1411_v5  ;;  %v1419_v13 = vld [vmem:[%s1834_s1 + $0xd8] sm:$0xff]   ;;  %v1423_v17 = vld [vmem:[%s1834_s1 + $0xe0] sm:$0xff]   ;;  %v1427_v21 = vld [vmem:[%s1834_s1 + $0xe8] sm:$0xff]  }
   0x7   :  { %v1420_v14 = vld [vmem:[%s1834_s1 + $0x18] sm:$0xff]   ;;  %v1424_v18 = vld [vmem:[%s1834_s1 + $0x20] sm:$0xff]   ;;  %v1428_v22 = vld [vmem:[%s1834_s1 + $0x28] sm:$0xff]  }
   0x8   :  { %1249 = vmatpush3.bf16.msra.mxu0 %v1412_v6  ;;  %v1421_v15 = vld [vmem:[%s1834_s1 + $0x98] sm:$0xff]   ;;  %v1425_v19 = vld [vmem:[%s1834_s1 + $0xa0] sm:$0xff]   ;;  %v1429_v23 = vld [vmem:[%s1834_s1 + $0xa8] sm:$0xff]  }
   0x9   :  { %1289 = vmatpush3.bf16.msra.mxu1 %v1413_v7  ;;  %1250 = vmatprep.subr.bf16.mxu0 %v1414_v8  ;;  %v1430_v24 = vld [vmem:[%s1834_s1 + $0x70] sm:$0xff]   ;;  %v1434_v28 = vld [vmem:[%s1834_s1 + $0x78] sm:$0xff]   ;;  %v35_v32 = vld [vmem:[%s1835_s0] sm:$0xff] }
   0xa   :  { %1290 = vmatprep.subr.bf16.mxu1 %v1415_v9  ;;  %v1431_v25 = vld [vmem:[%s1834_s1 + $0xf0] sm:$0xff]   ;;  %v1435_v29 = vld [vmem:[%s1834_s1 + $0xf8] sm:$0xff]   ;;  %v39_v33 = vld [vmem:[%s1835_s0 + $0x20] sm:$0xff] }
   0xb   :  { %v1432_v26 = vld [vmem:[%s1834_s1 + $0x30] sm:$0xff]   ;;  %v1436_v30 = vld [vmem:[%s1834_s1 + $0x38] sm:$0xff]   ;;  %v36_v34 = vld [vmem:[%s1835_s0 + $0x8] sm:$0xff]  ;;  %v1111_v35 = vcombine.low %v35_v32, %v39_v33  ;;  %v1112_v36 = vcombine.high %v35_v32, %v39_v33 }
   0xc   :  { %1251 = vmatpush3.bf16.msra.mxu0 %v1416_v10  ;;  %v1433_v27 = vld [vmem:[%s1834_s1 + $0xb0] sm:$0xff]   ;;  %v1437_v31 = vld [vmem:[%s1834_s1 + $0xb8] sm:$0xff]   ;;  %v40_v37 = vld [vmem:[%s1835_s0 + $0x28] sm:$0xff] }
   0xd   :  { %1291 = vmatpush3.bf16.msra.mxu1 %v1417_v11  ;;  %1252 = vmatprep.subr.bf16.mxu0 %v1418_v12  ;;  %v1113_v38 = vcombine.low %v36_v34, %v40_v37  ;;  %v1114_v39 = vcombine.high %v36_v34, %v40_v37  ;;  %v1438_v40 = vld [vmem:[%s1834_s1 + $0x140] sm:$0xff]   ;;  %v1442_v44 = vld [vmem:[%s1834_s1 + $0x148] sm:$0xff]   ;;  %v1446_v56 = vld [vmem:[%s1834_s1 + $0x150] sm:$0xff]  }
   0xe   :  { %1292 = vmatprep.subr.bf16.mxu1 %v1419_v13  ;;  %771 = vmatprep.mubr.bf16.mxu0 %v1112_v36  ;;  %v1439_v41 = vld [vmem:[%s1834_s1 + $0x1c0] sm:$0xff]   ;;  %v1443_v45 = vld [vmem:[%s1834_s1 + $0x1c8] sm:$0xff]   ;;  %v1447_v57 = vld [vmem:[%s1834_s1 + $0x1d0] sm:$0xff]  }
   0xf   :  { %836 = vmatprep.mubr.bf16.mxu1 %v1114_v39  ;;  %v1440_v42 = vld [vmem:[%s1834_s1 + $0x100] sm:$0xff]   ;;  %v1444_v46 = vld [vmem:[%s1834_s1 + $0x108] sm:$0xff]   ;;  %v1448_v58 = vld [vmem:[%s1834_s1 + $0x110] sm:$0xff]  }
  0x10   :  { %1253 = vmatpush3.bf16.msra.mxu0 %v1420_v14  ;;  %v1441_v43 = vld [vmem:[%s1834_s1 + $0x180] sm:$0xff]   ;;  %v1445_v47 = vld [vmem:[%s1834_s1 + $0x188] sm:$0xff]   ;;  %v1449_v59 = vld [vmem:[%s1834_s1 + $0x190] sm:$0xff]  }
  0x11   :  { %1293 = vmatpush3.bf16.msra.mxu1 %v1421_v15  ;;  %1254 = vmatprep.subr.bf16.mxu0 %v1422_v16  ;;  %v43_v48 = vld [vmem:[%s1835_s0 + $0x40] sm:$0xff]  ;;  %v44_v51 = vld [vmem:[%s1835_s0 + $0x48] sm:$0xff]  ;;  %v1450_v60 = vld [vmem:[%s1834_s1 + $0x158] sm:$0xff]  }
  0x12   :  { %1294 = vmatprep.subr.bf16.mxu1 %v1423_v17  ;;  %v47_v49 = vld [vmem:[%s1835_s0 + $0x60] sm:$0xff]  ;;  %v48_v52 = vld [vmem:[%s1835_s0 + $0x68] sm:$0xff]  ;;  %v1451_v61 = vld [vmem:[%s1834_s1 + $0x1d8] sm:$0xff]  }
  0x13   :  { %v1120_v50 = vcombine.high %v43_v48, %v47_v49  ;;  %v1119_v53 = vcombine.low %v43_v48, %v47_v49  ;;  %v1122_v54 = vcombine.high %v44_v51, %v48_v52  ;;  %v1121_v55 = vcombine.low %v44_v51, %v48_v52  ;;  %v1452_v62 = vld [vmem:[%s1834_s1 + $0x118] sm:$0xff]   ;;  %v51_v0 = vld [vmem:[%s1835_s0 + $0x80] sm:$0xff]  ;;  %v52_v2 = vld [vmem:[%s1835_s0 + $0x88] sm:$0xff] }
  0x14   :  { %1255 = vmatpush3.bf16.msra.mxu0 %v1424_v18  ;;  %v1453_v63 = vld [vmem:[%s1834_s1 + $0x198] sm:$0xff]   ;;  %v55_v1 = vld [vmem:[%s1835_s0 + $0xa0] sm:$0xff]  ;;  %v56_v3 = vld [vmem:[%s1835_s0 + $0xa8] sm:$0xff] }
  0x15   :  { %1295 = vmatpush3.bf16.msra.mxu1 %v1425_v19  ;;  %1256 = vmatprep.subr.bf16.mxu0 %v1426_v20  ;;  %v1128_v4 = vcombine.high %v51_v0, %v55_v1  ;;  %v1130_v5 = vcombine.high %v52_v2, %v56_v3  ;;  %v1127_v6 = vcombine.low %v51_v0, %v55_v1  ;;  %v1454_v8 = vld [vmem:[%s1834_s1 + $0x160] sm:$0xff]   ;;  %v1458_v12 = vld [vmem:[%s1834_s1 + $0x168] sm:$0xff]   ;;  %v37_v32 = vld [vmem:[%s1835_s0 + $0x10] sm:$0xff] }
  0x16   :  { %1296 = vmatprep.subr.bf16.mxu1 %v1427_v21  ;;  %v1129_v7 = vcombine.low %v52_v2, %v56_v3  ;;  %v1455_v9 = vld [vmem:[%s1834_s1 + $0x1e0] sm:$0xff]   ;;  %v1459_v13 = vld [vmem:[%s1834_s1 + $0x1e8] sm:$0xff]   ;;  %v41_v33 = vld [vmem:[%s1835_s0 + $0x30] sm:$0xff] }
  0x17   :  { %v1456_v10 = vld [vmem:[%s1834_s1 + $0x120] sm:$0xff]   ;;  %v1460_v14 = vld [vmem:[%s1834_s1 + $0x128] sm:$0xff]   ;;  %v1115_v34 = vcombine.low %v37_v32, %v41_v33  ;;  %v38_v36 = vld [vmem:[%s1835_s0 + $0x18] sm:$0xff] }
  0x18   :  { %1257 = vmatpush3.bf16.msra.mxu0 %v1428_v22  ;;  %v1457_v11 = vld [vmem:[%s1834_s1 + $0x1a0] sm:$0xff]   ;;  %v1461_v15 = vld [vmem:[%s1834_s1 + $0x1a8] sm:$0xff]   ;;  %v42_v37 = vld [vmem:[%s1835_s0 + $0x38] sm:$0xff] }
  0x19   :  { %1297 = vmatpush3.bf16.msra.mxu1 %v1429_v23  ;;  %1258 = vmatprep.subr.bf16.mxu0 %v1430_v24  ;;  %v59_v16 = vld [vmem:[%s1835_s0 + $0xc0] sm:$0xff]  ;;  %v60_v18 = vld [vmem:[%s1835_s0 + $0xc8] sm:$0xff]  ;;  %v1462_v24 = vld [vmem:[%s1834_s1 + $0x170] sm:$0xff]   ;;  %v1117_v39 = vcombine.low %v38_v36, %v42_v37 }
  0x1a   :  { %1298 = vmatprep.subr.bf16.mxu1 %v1431_v25  ;;  %v63_v17 = vld [vmem:[%s1835_s0 + $0xe0] sm:$0xff]  ;;  %v64_v20 = vld [vmem:[%s1835_s0 + $0xe8] sm:$0xff]  ;;  %v1463_v25 = vld [vmem:[%s1834_s1 + $0x1f0] sm:$0xff]  }
  0x1b   :  { %v1136_v19 = vcombine.high %v59_v16, %v63_v17  ;;  %v1135_v21 = vcombine.low %v59_v16, %v63_v17  ;;  %v1138_v22 = vcombine.high %v60_v18, %v64_v20  ;;  %v1137_v23 = vcombine.low %v60_v18, %v64_v20  ;;  %v54_v48 = vld [vmem:[%s1835_s0 + $0x98] sm:$0xff] }
  0x1c   :  { %1259 = vmatpush3.bf16.msra.mxu0 %v1432_v26  ;;  %v1464_v26 = vld [vmem:[%s1834_s1 + $0x130] sm:$0xff]   ;;  %v58_v49 = vld [vmem:[%s1835_s0 + $0xb8] sm:$0xff] }
  0x1d   :  { %1299 = vmatpush3.bf16.msra.mxu1 %v1433_v27  ;;  %1260 = vmatprep.subr.bf16.mxu0 %v1434_v28  ;;  %v1465_v27 = vld [vmem:[%s1834_s1 + $0x1b0] sm:$0xff]   ;;  %v1466_v28 = vld [vmem:[%s1834_s1 + $0x178] sm:$0xff]  }
  0x1e   :  { %1300 = vmatprep.subr.bf16.mxu1 %v1435_v29  ;;  %v1467_v29 = vld [vmem:[%s1834_s1 + $0x1f8] sm:$0xff]  }
  0x20   :  { %1261 = vmatpush3.bf16.msra.mxu0 %v1436_v30  ;;  %v1468_v30 = vld [vmem:[%s1834_s1 + $0x138] sm:$0xff]  }
  0x21   :  { %1301 = vmatpush3.bf16.msra.mxu1 %v1437_v31  ;;  %1326 = vmatprep.subr.bf16.mxu0 %v1438_v40  ;;  %v1469_v31 = vld [vmem:[%s1834_s1 + $0x1b8] sm:$0xff]   ;;  %v1118_v40 = vcombine.high %v38_v36, %v42_v37 }
  0x22   :  { %1366 = vmatprep.subr.bf16.mxu1 %v1439_v41  ;;  %v49_v41 = vld [vmem:[%s1835_s0 + $0x70] sm:$0xff] }
  0x23   :  { %772 = vmatmul.mubr.bf16.vlgmr.msra.gmra.mrb[0].mxu0 %v1111_v35  ;;  %v1116_v35 = vcombine.high %v37_v32, %v41_v33 }
  0x24   :  { %837 = vmatmul.mubr.bf16.vlgmr.msra.gmra.mrb[0].mxu1 %v1113_v38  ;;  %1327 = vmatpush3.bf16.msra.mxu0 %v1440_v42  ;;  %v45_v38 = vld [vmem:[%s1835_s0 + $0x50] sm:$0xff]  ;;  %v46_v42 = vld [vmem:[%s1835_s0 + $0x58] sm:$0xff] }
  0x25   :  { %1367 = vmatpush3.bf16.msra.mxu1 %v1441_v43  ;;  %1328 = vmatprep.subr.bf16.mxu0 %v1442_v44  ;;  %v50_v43 = vld [vmem:[%s1835_s0 + $0x78] sm:$0xff]  ;;  %v1124_v44 = vcombine.high %v45_v38, %v49_v41 }
  0x26   :  { %1368 = vmatprep.subr.bf16.mxu1 %v1443_v45  ;;  %779 = vmatprep.mubr.bf16.mxu0 %v1120_v50  ;;  %v1126_v45 = vcombine.high %v46_v42, %v50_v43  ;;  %v1123_v50 = vcombine.low %v45_v38, %v49_v41  ;;  %v1125_v51 = vcombine.low %v46_v42, %v50_v43 }
  0x27   :  { %844 = vmatprep.mubr.bf16.mxu1 %v1122_v54  ;;  %v61_v54 = vld [vmem:[%s1835_s0 + $0xd0] sm:$0xff] }
  0x28   :  { %1329 = vmatpush3.bf16.msra.mxu0 %v1444_v46  ;;  %v53_v46 = vld [vmem:[%s1835_s0 + $0x90] sm:$0xff] }
  0x29   :  { %1369 = vmatpush3.bf16.msra.mxu1 %v1445_v47  ;;  %1330 = vmatprep.subr.bf16.mxu0 %v1446_v56  ;;  %v57_v47 = vld [vmem:[%s1835_s0 + $0xb0] sm:$0xff]  ;;  %v62_v56 = vld [vmem:[%s1835_s0 + $0xd8] sm:$0xff] }
  0x2a   :  { %1370 = vmatprep.subr.bf16.mxu1 %v1447_v57  ;;  %v1132_v52 = vcombine.high %v53_v46, %v57_v47  ;;  %v66_v57 = vld [vmem:[%s1835_s0 + $0xf8] sm:$0xff] }
  0x2b   :  { %780 = vmatmul.mubr.bf16.gmra.mrb[4].mxu0 %v1119_v53  ;;  %v1134_v53 = vcombine.high %v54_v48, %v58_v49 }
  0x2c   :  { %845 = vmatmul.mubr.bf16.gmra.mrb[4].mxu1 %v1121_v55  ;;  %1331 = vmatpush3.bf16.msra.mxu0 %v1448_v58  ;;  %v65_v55 = vld [vmem:[%s1835_s0 + $0xf0] sm:$0xff]  ;;  %v1131_v58 = vcombine.low %v53_v46, %v57_v47 }
  0x2d   :  { %1371 = vmatpush3.bf16.msra.mxu1 %v1449_v59  ;;  %1332 = vmatprep.subr.bf16.mxu0 %v1450_v60  ;;  %v1133_v59 = vcombine.low %v54_v48, %v58_v49  ;;  %v1140_v60 = vcombine.high %v61_v54, %v65_v55 }
  0x2e   :  { %1372 = vmatprep.subr.bf16.mxu1 %v1451_v61  ;;  %787 = vmatprep.mubr.bf16.mxu0 %v1128_v4  ;;  %v1142_v61 = vcombine.high %v62_v56, %v66_v57 }
  0x2f   :  { %852 = vmatprep.mubr.bf16.mxu1 %v1130_v5 }
  0x30   :  { %1333 = vmatpush3.bf16.msra.mxu0 %v1452_v62  ;;  %v1139_v62 = vcombine.low %v61_v54, %v65_v55 }
  0x31   :  { %1373 = vmatpush3.bf16.msra.mxu1 %v1453_v63  ;;  %1334 = vmatprep.subr.bf16.mxu0 %v1454_v8  ;;  %v1141_v63 = vcombine.low %v62_v56, %v66_v57 }
  0x32   :  { %1374 = vmatprep.subr.bf16.mxu1 %v1455_v9 }
  0x33   :  { %788 = vmatmul.mubr.bf16.gmra.mrb[8].mxu0 %v1127_v6 }
  0x34   :  { %853 = vmatmul.mubr.bf16.gmra.mrb[8].mxu1 %v1129_v7  ;;  %1335 = vmatpush3.bf16.msra.mxu0 %v1456_v10 }
  0x35   :  { %1375 = vmatpush3.bf16.msra.mxu1 %v1457_v11  ;;  %1336 = vmatprep.subr.bf16.mxu0 %v1458_v12 }
  0x36   :  { %1376 = vmatprep.subr.bf16.mxu1 %v1459_v13  ;;  %795 = vmatprep.mubr.bf16.mxu0 %v1136_v19 }
  0x37   :  { %860 = vmatprep.mubr.bf16.mxu1 %v1138_v22 }
  0x38   :  { %1337 = vmatpush3.bf16.msra.mxu0 %v1460_v14 }
  0x39   :  { %1377 = vmatpush3.bf16.msra.mxu1 %v1461_v15  ;;  %1338 = vmatprep.subr.bf16.mxu0 %v1462_v24 }
  0x3a   :  { %1378 = vmatprep.subr.bf16.mxu1 %v1463_v25 }
  0x3b   :  { %796 = vmatmul.mubr.bf16.gmra.mrb[12].mxu0 %v1135_v21 }
  0x3c   :  { %861 = vmatmul.mubr.bf16.gmra.mrb[12].mxu1 %v1137_v23  ;;  %1339 = vmatpush3.bf16.msra.mxu0 %v1464_v26 }
  0x3d   :  { %1379 = vmatpush3.bf16.msra.mxu1 %v1465_v27  ;;  %1340 = vmatprep.subr.bf16.mxu0 %v1466_v28 }
  0x3e   :  { %1380 = vmatprep.subr.bf16.mxu1 %v1467_v29  ;;  %901 = vmatprep.mubr.bf16.mxu0 %v1116_v35 }
  0x3f   :  { %966 = vmatprep.mubr.bf16.mxu1 %v1118_v40 }
  0x40   :  { %1341 = vmatpush3.bf16.msra.mxu0 %v1468_v30 }
  0x41   :  { %1381 = vmatpush3.bf16.msra.mxu1 %v1469_v31 }
  0x43   :  { %902 = vmatmul.mubr.bf16.vlgmr.msra.gmra.mrb[16].mxu0 %v1115_v34 }
  0x44   :  { %967 = vmatmul.mubr.bf16.vlgmr.msra.gmra.mrb[16].mxu1 %v1117_v39  ;;  %909 = vmatprep.mubr.bf16.mxu0 %v1124_v44 }
  0x45   :  { %974 = vmatprep.mubr.bf16.mxu1 %v1126_v45  ;;  %v1027_v45 = vlaneseq }
  0x47   :  { %v1028_v56 = vshrl.u32 %v1027_v45, 7 }
  0x4b   :  { %910 = vmatmul.mubr.bf16.gmra.mrb[20].mxu0 %v1123_v50 }
  0x4c   :  { %975 = vmatmul.mubr.bf16.gmra.mrb[20].mxu1 %v1125_v51  ;;  %917 = vmatprep.mubr.bf16.mxu0 %v1132_v52 }
  0x4d   :  { %982 = vmatprep.mubr.bf16.mxu1 %v1134_v53 }
  0x53   :  { %918 = vmatmul.mubr.bf16.gmra.mrb[24].mxu0 %v1131_v58 }
  0x54   :  { %983 = vmatmul.mubr.bf16.gmra.mrb[24].mxu1 %v1133_v59  ;;  %925 = vmatprep.mubr.bf16.mxu0 %v1140_v60  ;;  %v1029_v59 = vsub.s32 0, %v1028_v56 }
  0x55   :  { %990 = vmatprep.mubr.bf16.mxu1 %v1142_v61 }
  0x5b   :  { %926 = vmatmul.mubr.bf16.gmra.mrb[28].mxu0 %v1139_v62  ;;  %v1018_v62 = vld [vmem:[%s1836_s2] sm:$0x3] }
  0x5c   :  { %991 = vmatmul.mubr.bf16.gmra.mrb[28].mxu1 %v1141_v63 }
  0xf6   :  { %v1262_v0 = vpop.f32.mrb[0].mxu0 }
  0xf7   :  { %v1302_v1 = vpop.f32.mrb[0].mxu1  ;;  %v1263_v2 = vpop.f32.mrb[1].mxu0 }
  0xf8   :  { %v1264_v3 = vadd.f32 %v1263_v2, %v1262_v0  ;;  %v1303_v4 = vpop.f32.mrb[1].mxu1  ;;  %v1265_v5 = vpop.f32.mrb[2].mxu0 }
  0xf9   :  { %v1304_v6 = vadd.f32 %v1303_v4, %v1302_v1  ;;  %v1305_v7 = vpop.f32.mrb[2].mxu1  ;;  %v1266_v8 = vpop.f32.mrb[3].mxu0  ;;  %v1041_v1 = vsub.s32 1, %v1028_v56 }
  0xfa   :  { %v1267_v9 = vadd.f32 %v1266_v8, %v1265_v5  ;;  %v1306_v10 = vpop.f32.mrb[3].mxu1 }
  0xfb   :  { %v839_v11 = vadd.f32 %v1304_v6, %v1264_v3  ;;  %v1307_v12 = vadd.f32 %v1306_v10, %v1305_v7  ;;  %v1795_v7 = vrot.slane %v1018_v62, %v1029_v59 }
  0xfd   :  { %v1778_v13 = vadd.f32 %v1307_v12, %v1267_v9 }
  0xfe   :  { %v1268_v14 = vpop.f32.mrb[4].mxu0 }
  0xff   :  { %v1308_v15 = vpop.f32.mrb[4].mxu1  ;;  %v1269_v16 = vpop.f32.mrb[5].mxu0 }
 0x100   :  { %v1270_v17 = vadd.f32 %v1269_v16, %v1268_v14  ;;  %v1309_v18 = vpop.f32.mrb[5].mxu1  ;;  %v1271_v19 = vpop.f32.mrb[6].mxu0  ;;  %v1797_v14 = vrot.slane %v1018_v62, %v1041_v1 }
 0x101   :  { %v1310_v20 = vadd.f32 %v1309_v18, %v1308_v15  ;;  %v1311_v21 = vpop.f32.mrb[6].mxu1  ;;  %v1272_v22 = vpop.f32.mrb[7].mxu0 }
 0x102   :  { %v1273_v23 = vadd.f32 %v1272_v22, %v1271_v19  ;;  %v1312_v24 = vpop.f32.mrb[7].mxu1 }
 0x103   :  { %v1780_v25 = vadd.f32 %v1310_v20, %v1270_v17  ;;  %v1313_v26 = vadd.f32 %v1312_v24, %v1311_v21 }
 0x105   :  { %v1782_v27 = vadd.f32 %v1313_v26, %v1273_v23 }
 0x106   :  { %v1274_v28 = vpop.f32.mrb[8].mxu0 }
 0x107   :  { %v1314_v29 = vpop.f32.mrb[8].mxu1  ;;  %v1275_v30 = vpop.f32.mrb[9].mxu0 }
 0x108   :  { %v1315_v31 = vpop.f32.mrb[9].mxu1  ;;  %v1276_v32 = vadd.f32 %v1275_v30, %v1274_v28  ;;  %v1277_v34 = vpop.f32.mrb[10].mxu0 }
 0x109   :  { %v1316_v33 = vadd.f32 %v1315_v31, %v1314_v29  ;;  %v1317_v35 = vpop.f32.mrb[10].mxu1  ;;  %v1278_v36 = vpop.f32.mrb[11].mxu0 }
 0x10a   :  { %v1318_v37 = vpop.f32.mrb[11].mxu1  ;;  %v1279_v39 = vadd.f32 %v1278_v36, %v1277_v34 }
 0x10b   :  { %v1784_v38 = vadd.f32 %v1316_v33, %v1276_v32  ;;  %v1319_v40 = vadd.f32 %v1318_v37, %v1317_v35 }
 0x10d   :  { %v1786_v41 = vadd.f32 %v1319_v40, %v1279_v39 }
 0x10e   :  { %v1280_v42 = vpop.f32.mrb[12].mxu0 }
 0x10f   :  { %v1320_v43 = vpop.f32.mrb[12].mxu1  ;;  %v1281_v44 = vpop.f32.mrb[13].mxu0 }
 0x110   :  { %v1282_v46 = vadd.f32 %v1281_v44, %v1280_v42  ;;  %v1321_v47 = vpop.f32.mrb[13].mxu1  ;;  %v1283_v48 = vpop.f32.mrb[14].mxu0 }
 0x111   :  { %v1322_v49 = vadd.f32 %v1321_v47, %v1320_v43  ;;  %v1323_v50 = vpop.f32.mrb[14].mxu1  ;;  %v1284_v51 = vpop.f32.mrb[15].mxu0 }
 0x112   :  { %v1285_v52 = vadd.f32 %v1284_v51, %v1283_v48  ;;  %v1324_v53 = vpop.f32.mrb[15].mxu1 }
 0x113   :  { %v1788_v54 = vadd.f32 %v1322_v49, %v1282_v46  ;;  %v1325_v55 = vadd.f32 %v1324_v53, %v1323_v50 }
 0x115   :  { %v1790_v57 = vadd.f32 %v1325_v55, %v1285_v52 }
 0x116   :  { %v1342_v58 = vpop.f32.mrb[16].mxu0 }
 0x117   :  { %v1382_v60 = vpop.f32.mrb[16].mxu1  ;;  %v1343_v61 = vpop.f32.mrb[17].mxu0 }
 0x118   :  { %v1344_v63 = vadd.f32 %v1343_v61, %v1342_v58  ;;  %v1383_v0 = vpop.f32.mrb[17].mxu1  ;;  %v1345_v2 = vpop.f32.mrb[18].mxu0 }
 0x119   :  { %v1384_v3 = vadd.f32 %v1383_v0, %v1382_v60  ;;  %v1385_v4 = vpop.f32.mrb[18].mxu1  ;;  %v1346_v5 = vpop.f32.mrb[19].mxu0 }
 0x11a   :  { %v904_v6 = vadd.f32 %v1344_v63, %v839_v11  ;;  %v1347_v8 = vadd.f32 %v1346_v5, %v1345_v2  ;;  %v1386_v9 = vpop.f32.mrb[19].mxu1 }
 0x11b   :  { %v1387_v10 = vadd.f32 %v1386_v9, %v1385_v4 }
 0x11c   :  { %v969_v12 = vadd.f32 %v1384_v3, %v904_v6  ;;  %v907_v15 = vadd.f32 %v1347_v8, %v1778_v13 }
 0x11e   :  { %v1031_v16 = vmul.f32 %v1795_v7, %v969_v12  ;;  %v972_v17 = vadd.f32 %v1387_v10, %v907_v15  ;;  %v1348_v18 = vpop.f32.mrb[20].mxu0 }
 0x11f   :  { %v1388_v19 = vpop.f32.mrb[20].mxu1  ;;  %v1349_v20 = vpop.f32.mrb[21].mxu0 }
 0x120   :  { %v1043_v21 = vadd.f32 %v1797_v14, %v1031_v16  ;;  %v1032_v11 = vmul.f32 %v1795_v7, %v972_v17  ;;  %v1350_v22 = vadd.f32 %v1349_v20, %v1348_v18  ;;  %v1389_v23 = vpop.f32.mrb[21].mxu1  ;;  %v1351_v24 = vpop.f32.mrb[22].mxu0 }
 0x121   :  { %v1390_v26 = vadd.f32 %v1389_v23, %v1388_v19  ;;  %v1391_v28 = vpop.f32.mrb[22].mxu1  ;;  %v1352_v29 = vpop.f32.mrb[23].mxu0 }
 0x122   :  { %v1051_v30 = vmul.f32 0.2, %v1043_v21  ;;  %v1044_v31 = vadd.f32 %v1797_v14, %v1032_v11  ;;  %v912_v13 = vadd.f32 %v1350_v22, %v1780_v25  ;;  %v1353_v32 = vadd.f32 %v1352_v29, %v1351_v24  ;;  %v1392_v33 = vpop.f32.mrb[23].mxu1 }
 0x123   :  { %v1393_v34 = vadd.f32 %v1392_v33, %v1391_v28 }
 0x124   :  { %v1052_v35 = vmul.f32 0.2, %v1044_v31  ;;  %v977_v36 = vadd.f32 %v1390_v26, %v912_v13  ;;  %v915_v37 = vadd.f32 %v1353_v32, %v1782_v27  ;;  %v1059_v39 = vmax.f32 %v1043_v21, %v1051_v30 }
 0x126   :  { %v1060_v40 = vmax.f32 %v1044_v31, %v1052_v35  ;;  %v1033_v42 = vmul.f32 %v1795_v7, %v977_v36  ;;  %v980_v43 = vadd.f32 %v1393_v34, %v915_v37  ;;  %v1354_v44 = vpop.f32.mrb[24].mxu0 }
 0x127   :  { %v1394_v45 = vpop.f32.mrb[24].mxu1  ;;  %v1355_v46 = vpop.f32.mrb[25].mxu0 }
 0x128   :  { %v1226_v47 = vpack.c.bf16 %v1060_v40, %v1059_v39  ;;  %v1045_v48 = vadd.f32 %v1797_v14, %v1033_v42  ;;  %v1034_v25 = vmul.f32 %v1795_v7, %v980_v43  ;;  %v1356_v49 = vadd.f32 %v1355_v46, %v1354_v44  ;;  %v1395_v50 = vpop.f32.mrb[25].mxu1  ;;  %v1357_v51 = vpop.f32.mrb[26].mxu0 }
 0x129   :  { %v1396_v52 = vadd.f32 %v1395_v50, %v1394_v45  ;;  %v1397_v53 = vpop.f32.mrb[26].mxu1  ;;  %v1358_v55 = vpop.f32.mrb[27].mxu0 }
 0x12a   :  { %1227 = vst [vmem:[%s1837_s3] sm:$0xff] %v1226_v47   ;;  %v1053_v27 = vmul.f32 0.2, %v1045_v48  ;;  %v1046_v56 = vadd.f32 %v1797_v14, %v1034_v25  ;;  %v920_v58 = vadd.f32 %v1356_v49, %v1784_v38  ;;  %v1359_v59 = vadd.f32 %v1358_v55, %v1357_v51  ;;  %v1398_v60 = vpop.f32.mrb[27].mxu1 }
 0x12b   :  { %v1399_v61 = vadd.f32 %v1398_v60, %v1397_v53 }
 0x12c   :  { %v1054_v62 = vmul.f32 0.2, %v1046_v56  ;;  %v985_v63 = vadd.f32 %v1396_v52, %v920_v58  ;;  %v923_v0 = vadd.f32 %v1359_v59, %v1786_v41  ;;  %v1061_v1 = vmax.f32 %v1045_v48, %v1053_v27 }
 0x12e   :  { %v1062_v2 = vmax.f32 %v1046_v56, %v1054_v62  ;;  %v1035_v3 = vmul.f32 %v1795_v7, %v985_v63  ;;  %v988_v4 = vadd.f32 %v1399_v61, %v923_v0  ;;  %v1360_v5 = vpop.f32.mrb[28].mxu0 }
 0x12f   :  { %v1400_v6 = vpop.f32.mrb[28].mxu1  ;;  %v1361_v8 = vpop.f32.mrb[29].mxu0 }
 0x130   :  { %v1231_v9 = vpack.c.bf16 %v1062_v2, %v1061_v1  ;;  %v1047_v10 = vadd.f32 %v1797_v14, %v1035_v3  ;;  %v1036_v38 = vmul.f32 %v1795_v7, %v988_v4  ;;  %v1362_v12 = vadd.f32 %v1361_v8, %v1360_v5  ;;  %v1401_v15 = vpop.f32.mrb[29].mxu1  ;;  %v1363_v16 = vpop.f32.mrb[30].mxu0 }
 0x131   :  { %v1402_v17 = vadd.f32 %v1401_v15, %v1400_v6  ;;  %v1403_v18 = vpop.f32.mrb[30].mxu1  ;;  %v1364_v19 = vpop.f32.mrb[31].mxu0 }
 0x132   :  { %1243 = vst [vmem:[%s1837_s3 + $0x8] sm:$0xff] %v1231_v9   ;;  %v1055_v41 = vmul.f32 0.2, %v1047_v10  ;;  %v1048_v20 = vadd.f32 %v1797_v14, %v1036_v38  ;;  %v928_v21 = vadd.f32 %v1362_v12, %v1788_v54  ;;  %v1365_v11 = vadd.f32 %v1364_v19, %v1363_v16  ;;  %v1404_v22 = vpop.f32.mrb[31].mxu1 }
 0x133   :  { %v1405_v23 = vadd.f32 %v1404_v22, %v1403_v18 }
 0x134   :  { %v1056_v24 = vmul.f32 0.2, %v1048_v20  ;;  %v993_v26 = vadd.f32 %v1402_v17, %v928_v21  ;;  %v931_v28 = vadd.f32 %v1365_v11, %v1790_v57  ;;  %v1063_v29 = vmax.f32 %v1047_v10, %v1055_v41 }
 0x136   :  { %v1064_v30 = vmax.f32 %v1048_v20, %v1056_v24  ;;  %v1037_v31 = vmul.f32 %v1795_v7, %v993_v26  ;;  %v996_v13 = vadd.f32 %v1405_v23, %v931_v28 }
 0x138   :  { %v1236_v32 = vpack.c.bf16 %v1064_v30, %v1063_v29  ;;  %v1049_v33 = vadd.f32 %v1797_v14, %v1037_v31  ;;  %v1038_v34 = vmul.f32 %v1795_v7, %v996_v13 }
 0x13a   :  { %1244 = vst [vmem:[%s1837_s3 + $0x10] sm:$0xff] %v1236_v32   ;;  %v1057_v54 = vmul.f32 0.2, %v1049_v33  ;;  %v1050_v35 = vadd.f32 %v1797_v14, %v1038_v34 }
 0x13c   :  { %v1058_v36 = vmul.f32 0.2, %v1050_v35  ;;  %v1065_v37 = vmax.f32 %v1049_v33, %v1057_v54 }
 0x13e   :  { %v1066_v57 = vmax.f32 %v1050_v35, %v1058_v36 }
 0x140   :  { %v1241_v39 = vpack.c.bf16 %v1066_v57, %v1065_v37 }
 0x142   :  { %1245 = vst [vmem:[%s1837_s3 + $0x18] sm:$0xff] %v1241_v39  }

// kernel: forward.7
= control target key start
LH: loop header
LB: loop body
LE: loop exit
PB: predicated region body
PF: predicated region fallthrough
CT: control target
= control target key end

     0   :  { %s3807_s12 = smov 0   ;;  %s3809_s13 = smov 0   ;;  %s4646_s0 = inlined_call_operand.vmem [shape: bf16[32,2048], index: 0, kind: input, shape index: {}]   ;;  %s4647_s1 = inlined_call_operand.vmem [shape: bf16[2048,256], index: 1, kind: input, shape index: {}]   ;;  %s4648_s2 = inlined_call_operand.vmem [shape: f32[2,256], index: 2, kind: input, shape index: {}]   ;;  %s4649_s3 = inlined_call_operand.vmem [shape: bf16[32,256], index: 3, kind: output, shape index: {}]  }
   0x1   :  { %s3811_s14 = smov 0   ;;  %s3813_s15 = smov 0  }
   0x2   :  { %s3815_s16 = smov 0  }
   0x3 LB: > { %s28_s17 = sadd.s32 1, %s3781_s15  ;;  %s3161_s18 = sadd.s32 4294967295, %s3785_s16   ;;  %s3785_s16 = sphi %s3815_s16, %s13_s16   ;;  %s3781_s15 = sphi %s3813_s15, %s4654_s15   ;;  %s3777_s14 = sphi %s3811_s14, %s4653_s14   ;;  %s3773_s13 = sphi %s3809_s13, %s4652_s13   ;;  %s3769_s12 = sphi %s3807_s12, %s4651_s12  }
   0x4   : > { %p30_p0 = scmp.ge.s32.totalorder %s28_s17, 2  ;;  %p76_p1 = scmp.ne.s32.totalorder %s3773_s13, %s3769_s12 }
   0x5   : > { %p77_p2 = scmp.eq.s32.totalorder %s3785_s16, 0  ;;  %p134_p4 = scmp.eq.s32.totalorder %s3161_s18, 1 }
   0x6   : > { %s4656_s17 = smov (%p30_p0, %s28_s17), 0  ;;  %s69_s20 = sadd.s32 1, %s3773_s13 }
   0x7   : > { %p78_p3 = por %p77_p2, %p76_p1  ;;  %s65_s19 = ssub.s32 %s3781_s15, %s4656_s17 }
   0x8   : > { %p67_p5 = scmp.eq.s32.totalorder %s65_s19, 0  ;;  %p3842_p6 = por %p134_p4, %p76_p1 }
   0x9   : > { %p3165_p7 = scmp.ge.s32.totalorder %s3785_s16, 2 }
   0xa   : > { %s3847_s22 = scalar_select %p67_p5, %s3773_s13, %s69_s20  }
   0xb   : > { %171 = sbr.rel (%p3165_p7) target bundleno = 192 (0xc0), region = 20 }
  0x12   : > { %174 = sbr.rel (!%p78_p3) target bundleno = 192 (0xc0), region = 24  ;;  %s176_s23 = sand.u32 (%p78_p3), 1, %s3773_s13  }
  0x13   : > { %s3167_s24 = sshll.u32 (%p78_p3), %s3781_s15, 2  ;;  %s3166_s25 = sshll.u32 (%p78_p3), %s176_s23, 10 }
  0x14   : > { %s3855_s28 = scalar_lea.vmem (%p78_p3), %s4647_s1, %s3167_s24  ;;  %s3859_s29 = scalar_lea.vmem (%p78_p3), [#allocation3], %s3166_s25 }
  0x15   : > { %v199_v0 = vld [vmem:[%s3855_s28] sm:$0xf] (%p78_p3)  ;;  %v201_v1 = vld [vmem:[%s3855_s28 + $0x8] sm:$0xf] (%p78_p3)  ;;  %v203_v2 = vld [vmem:[%s3855_s28 + $0x10] sm:$0xf] (%p78_p3) }
  0x16   : > { %200 = vst [vmem:[%s3859_s29] sm:$0xf] (%p78_p3), %v199_v0  ;;  %202 = vst [vmem:[%s3859_s29 + $0x4] sm:$0xf] (%p78_p3), %v201_v1  ;;  %v205_v3 = vld [vmem:[%s3855_s28 + $0x18] sm:$0xf] (%p78_p3) }
  0x17   : > { %v207_v4 = vld [vmem:[%s3855_s28 + $0x20] sm:$0xf] (%p78_p3)  ;;  %204 = vst [vmem:[%s3859_s29 + $0x8] sm:$0xf] (%p78_p3), %v203_v2  ;;  %206 = vst [vmem:[%s3859_s29 + $0xc] sm:$0xf] (%p78_p3), %v205_v3 }
  0x18   : > { %208 = vst [vmem:[%s3859_s29 + $0x10] sm:$0xf] (%p78_p3), %v207_v4  ;;  %v209_v5 = vld [vmem:[%s3855_s28 + $0x28] sm:$0xf] (%p78_p3)  ;;  %v211_v6 = vld [vmem:[%s3855_s28 + $0x30] sm:$0xf] (%p78_p3) }
  0x19   : > { %v213_v7 = vld [vmem:[%s3855_s28 + $0x38] sm:$0xf]  ;;  %210 = vst [vmem:[%s3859_s29 + $0x14] sm:$0xf] %v209_v5  ;;  %212 = vst [vmem:[%s3859_s29 + $0x18] sm:$0xf] %v211_v6 }
  0x1a   : > { %214 = vst [vmem:[%s3859_s29 + $0x1c] sm:$0xf] %v213_v7  ;;  %v215_v8 = vld [vmem:[%s3855_s28 + $0x40] sm:$0xf]  ;;  %v217_v9 = vld [vmem:[%s3855_s28 + $0x48] sm:$0xf] }
  0x1b   : > { %v219_v10 = vld [vmem:[%s3855_s28 + $0x50] sm:$0xf]  ;;  %216 = vst [vmem:[%s3859_s29 + $0x20] sm:$0xf] %v215_v8  ;;  %218 = vst [vmem:[%s3859_s29 + $0x24] sm:$0xf] %v217_v9 }
  0x1c   : > { %220 = vst [vmem:[%s3859_s29 + $0x28] sm:$0xf] %v219_v10  ;;  %v221_v11 = vld [vmem:[%s3855_s28 + $0x58] sm:$0xf]  ;;  %v223_v12 = vld [vmem:[%s3855_s28 + $0x60] sm:$0xf] }
  0x1d   : > { %v225_v13 = vld [vmem:[%s3855_s28 + $0x68] sm:$0xf]  ;;  %222 = vst [vmem:[%s3859_s29 + $0x2c] sm:$0xf] %v221_v11  ;;  %224 = vst [vmem:[%s3859_s29 + $0x30] sm:$0xf] %v223_v12 }
  0x1e   : > { %226 = vst [vmem:[%s3859_s29 + $0x34] sm:$0xf] %v225_v13  ;;  %v227_v14 = vld [vmem:[%s3855_s28 + $0x70] sm:$0xf]  ;;  %v229_v15 = vld [vmem:[%s3855_s28 + $0x78] sm:$0xf] }
  0x1f   : > { %v231_v16 = vld [vmem:[%s3855_s28 + $0x80] sm:$0xf]  ;;  %228 = vst [vmem:[%s3859_s29 + $0x38] sm:$0xf] %v227_v14  ;;  %230 = vst [vmem:[%s3859_s29 + $0x3c] sm:$0xf] %v229_v15 }
  0x20   : > { %232 = vst [vmem:[%s3859_s29 + $0x40] sm:$0xf] %v231_v16  ;;  %v233_v17 = vld [vmem:[%s3855_s28 + $0x88] sm:$0xf]  ;;  %v235_v18 = vld [vmem:[%s3855_s28 + $0x90] sm:$0xf] }
  0x21   : > { %v237_v19 = vld [vmem:[%s3855_s28 + $0x98] sm:$0xf]  ;;  %234 = vst [vmem:[%s3859_s29 + $0x44] sm:$0xf] %v233_v17  ;;  %236 = vst [vmem:[%s3859_s29 + $0x48] sm:$0xf] %v235_v18 }
  0x22   : > { %238 = vst [vmem:[%s3859_s29 + $0x4c] sm:$0xf] %v237_v19  ;;  %v239_v20 = vld [vmem:[%s3855_s28 + $0xa0] sm:$0xf]  ;;  %v241_v21 = vld [vmem:[%s3855_s28 + $0xa8] sm:$0xf] }
  0x23   : > { %v243_v22 = vld [vmem:[%s3855_s28 + $0xb0] sm:$0xf]  ;;  %240 = vst [vmem:[%s3859_s29 + $0x50] sm:$0xf] %v239_v20  ;;  %242 = vst [vmem:[%s3859_s29 + $0x54] sm:$0xf] %v241_v21 }
  0x24   : > { %244 = vst [vmem:[%s3859_s29 + $0x58] sm:$0xf] %v243_v22  ;;  %v245_v23 = vld [vmem:[%s3855_s28 + $0xb8] sm:$0xf]  ;;  %v247_v24 = vld [vmem:[%s3855_s28 + $0xc0] sm:$0xf] }
  0x25   : > { %v249_v25 = vld [vmem:[%s3855_s28 + $0xc8] sm:$0xf]  ;;  %246 = vst [vmem:[%s3859_s29 + $0x5c] sm:$0xf] %v245_v23  ;;  %248 = vst [vmem:[%s3859_s29 + $0x60] sm:$0xf] %v247_v24 }
  0x26   : > { %250 = vst [vmem:[%s3859_s29 + $0x64] sm:$0xf] %v249_v25  ;;  %v251_v26 = vld [vmem:[%s3855_s28 + $0xd0] sm:$0xf]  ;;  %v253_v27 = vld [vmem:[%s3855_s28 + $0xd8] sm:$0xf] }
  0x27   : > { %v255_v28 = vld [vmem:[%s3855_s28 + $0xe0] sm:$0xf]  ;;  %252 = vst [vmem:[%s3859_s29 + $0x68] sm:$0xf] %v251_v26  ;;  %254 = vst [vmem:[%s3859_s29 + $0x6c] sm:$0xf] %v253_v27 }
  0x28   : > { %256 = vst [vmem:[%s3859_s29 + $0x70] sm:$0xf] %v255_v28  ;;  %v257_v29 = vld [vmem:[%s3855_s28 + $0xe8] sm:$0xf]  ;;  %v259_v30 = vld [vmem:[%s3855_s28 + $0xf0] sm:$0xf] }
  0x29   : > { %v261_v31 = vld [vmem:[%s3855_s28 + $0xf8] sm:$0xf]  ;;  %258 = vst [vmem:[%s3859_s29 + $0x74] sm:$0xf] %v257_v29  ;;  %260 = vst [vmem:[%s3859_s29 + $0x78] sm:$0xf] %v259_v30 }
  0x2a   : > { %262 = vst [vmem:[%s3859_s29 + $0x7c] sm:$0xf] %v261_v31  ;;  %v263_v32 = vld [vmem:[%s3855_s28 + $0x100] sm:$0xf]  ;;  %v265_v33 = vld [vmem:[%s3855_s28 + $0x108] sm:$0xf] }
  0x2b   : > { %v267_v34 = vld [vmem:[%s3855_s28 + $0x110] sm:$0xf]  ;;  %264 = vst [vmem:[%s3859_s29 + $0x80] sm:$0xf] %v263_v32  ;;  %266 = vst [vmem:[%s3859_s29 + $0x84] sm:$0xf] %v265_v33 }
  0x2c   : > { %268 = vst [vmem:[%s3859_s29 + $0x88] sm:$0xf] %v267_v34  ;;  %v269_v35 = vld [vmem:[%s3855_s28 + $0x118] sm:$0xf]  ;;  %v271_v36 = vld [vmem:[%s3855_s28 + $0x120] sm:$0xf] }
  0x2d   : > { %v273_v37 = vld [vmem:[%s3855_s28 + $0x128] sm:$0xf]  ;;  %270 = vst [vmem:[%s3859_s29 + $0x8c] sm:$0xf] %v269_v35  ;;  %272 = vst [vmem:[%s3859_s29 + $0x90] sm:$0xf] %v271_v36 }
  0x2e   : > { %274 = vst [vmem:[%s3859_s29 + $0x94] sm:$0xf] %v273_v37  ;;  %v275_v38 = vld [vmem:[%s3855_s28 + $0x130] sm:$0xf]  ;;  %v277_v39 = vld [vmem:[%s3855_s28 + $0x138] sm:$0xf] }
  0x2f   : > { %v279_v40 = vld [vmem:[%s3855_s28 + $0x140] sm:$0xf]  ;;  %276 = vst [vmem:[%s3859_s29 + $0x98] sm:$0xf] %v275_v38  ;;  %278 = vst [vmem:[%s3859_s29 + $0x9c] sm:$0xf] %v277_v39 }
  0x30   : > { %280 = vst [vmem:[%s3859_s29 + $0xa0] sm:$0xf] %v279_v40  ;;  %v281_v41 = vld [vmem:[%s3855_s28 + $0x148] sm:$0xf]  ;;  %v283_v42 = vld [vmem:[%s3855_s28 + $0x150] sm:$0xf] }
  0x31   : > { %v285_v43 = vld [vmem:[%s3855_s28 + $0x158] sm:$0xf]  ;;  %282 = vst [vmem:[%s3859_s29 + $0xa4] sm:$0xf] %v281_v41  ;;  %284 = vst [vmem:[%s3859_s29 + $0xa8] sm:$0xf] %v283_v42 }
  0x32   : > { %286 = vst [vmem:[%s3859_s29 + $0xac] sm:$0xf] %v285_v43  ;;  %v287_v44 = vld [vmem:[%s3855_s28 + $0x160] sm:$0xf]  ;;  %v289_v45 = vld [vmem:[%s3855_s28 + $0x168] sm:$0xf] }
  0x33   : > { %v291_v46 = vld [vmem:[%s3855_s28 + $0x170] sm:$0xf]  ;;  %288 = vst [vmem:[%s3859_s29 + $0xb0] sm:$0xf] %v287_v44  ;;  %290 = vst [vmem:[%s3859_s29 + $0xb4] sm:$0xf] %v289_v45 }
  0x34   : > { %292 = vst [vmem:[%s3859_s29 + $0xb8] sm:$0xf] %v291_v46  ;;  %v293_v47 = vld [vmem:[%s3855_s28 + $0x178] sm:$0xf]  ;;  %v295_v48 = vld [vmem:[%s3855_s28 + $0x180] sm:$0xf] }
  0x35   : > { %v297_v49 = vld [vmem:[%s3855_s28 + $0x188] sm:$0xf]  ;;  %294 = vst [vmem:[%s3859_s29 + $0xbc] sm:$0xf] %v293_v47  ;;  %296 = vst [vmem:[%s3859_s29 + $0xc0] sm:$0xf] %v295_v48 }
  0x36   : > { %298 = vst [vmem:[%s3859_s29 + $0xc4] sm:$0xf] %v297_v49  ;;  %v299_v50 = vld [vmem:[%s3855_s28 + $0x190] sm:$0xf]  ;;  %v301_v51 = vld [vmem:[%s3855_s28 + $0x198] sm:$0xf] }
  0x37   : > { %v303_v52 = vld [vmem:[%s3855_s28 + $0x1a0] sm:$0xf]  ;;  %300 = vst [vmem:[%s3859_s29 + $0xc8] sm:$0xf] %v299_v50  ;;  %302 = vst [vmem:[%s3859_s29 + $0xcc] sm:$0xf] %v301_v51 }
  0x38   : > { %304 = vst [vmem:[%s3859_s29 + $0xd0] sm:$0xf] %v303_v52  ;;  %v305_v53 = vld [vmem:[%s3855_s28 + $0x1a8] sm:$0xf]  ;;  %v307_v54 = vld [vmem:[%s3855_s28 + $0x1b0] sm:$0xf] }
  0x39   : > { %v309_v55 = vld [vmem:[%s3855_s28 + $0x1b8] sm:$0xf]  ;;  %306 = vst [vmem:[%s3859_s29 + $0xd4] sm:$0xf] %v305_v53  ;;  %308 = vst [vmem:[%s3859_s29 + $0xd8] sm:$0xf] %v307_v54 }
  0x3a   : > { %310 = vst [vmem:[%s3859_s29 + $0xdc] sm:$0xf] %v309_v55  ;;  %v311_v56 = vld [vmem:[%s3855_s28 + $0x1c0] sm:$0xf]  ;;  %v313_v57 = vld [vmem:[%s3855_s28 + $0x1c8] sm:$0xf] }
  0x3b   : > { %v315_v58 = vld [vmem:[%s3855_s28 + $0x1d0] sm:$0xf]  ;;  %312 = vst [vmem:[%s3859_s29 + $0xe0] sm:$0xf] %v311_v56  ;;  %314 = vst [vmem:[%s3859_s29 + $0xe4] sm:$0xf] %v313_v57 }
  0x3c   : > { %316 = vst [vmem:[%s3859_s29 + $0xe8] sm:$0xf] %v315_v58  ;;  %v317_v59 = vld [vmem:[%s3855_s28 + $0x1d8] sm:$0xf]  ;;  %v319_v60 = vld [vmem:[%s3855_s28 + $0x1e0] sm:$0xf] }
  0x3d   : > { %v321_v61 = vld [vmem:[%s3855_s28 + $0x1e8] sm:$0xf]  ;;  %318 = vst [vmem:[%s3859_s29 + $0xec] sm:$0xf] %v317_v59  ;;  %320 = vst [vmem:[%s3859_s29 + $0xf0] sm:$0xf] %v319_v60 }
  0x3e   : > { %322 = vst [vmem:[%s3859_s29 + $0xf4] sm:$0xf] %v321_v61  ;;  %v323_v62 = vld [vmem:[%s3855_s28 + $0x1f0] sm:$0xf]  ;;  %v325_v63 = vld [vmem:[%s3855_s28 + $0x1f8] sm:$0xf] }
  0x3f   : > { %v327_v0 = vld [vmem:[%s3855_s28 + $0x200] sm:$0xf]  ;;  %324 = vst [vmem:[%s3859_s29 + $0xf8] sm:$0xf] %v323_v62  ;;  %326 = vst [vmem:[%s3859_s29 + $0xfc] sm:$0xf] %v325_v63 }
  0x40   : > { %328 = vst [vmem:[%s3859_s29 + $0x100] sm:$0xf] %v327_v0  ;;  %v329_v1 = vld [vmem:[%s3855_s28 + $0x208] sm:$0xf]  ;;  %v331_v2 = vld [vmem:[%s3855_s28 + $0x210] sm:$0xf] }
  0x41   : > { %v333_v3 = vld [vmem:[%s3855_s28 + $0x218] sm:$0xf]  ;;  %330 = vst [vmem:[%s3859_s29 + $0x104] sm:$0xf] %v329_v1  ;;  %332 = vst [vmem:[%s3859_s29 + $0x108] sm:$0xf] %v331_v2 }
  0x42   : > { %334 = vst [vmem:[%s3859_s29 + $0x10c] sm:$0xf] %v333_v3  ;;  %v335_v4 = vld [vmem:[%s3855_s28 + $0x220] sm:$0xf]  ;;  %v337_v5 = vld [vmem:[%s3855_s28 + $0x228] sm:$0xf] }
  0x43   : > { %v339_v6 = vld [vmem:[%s3855_s28 + $0x230] sm:$0xf]  ;;  %336 = vst [vmem:[%s3859_s29 + $0x110] sm:$0xf] %v335_v4  ;;  %338 = vst [vmem:[%s3859_s29 + $0x114] sm:$0xf] %v337_v5 }
  0x44   : > { %340 = vst [vmem:[%s3859_s29 + $0x118] sm:$0xf] %v339_v6  ;;  %v341_v7 = vld [vmem:[%s3855_s28 + $0x238] sm:$0xf]  ;;  %v343_v8 = vld [vmem:[%s3855_s28 + $0x240] sm:$0xf] }
  0x45   : > { %v345_v9 = vld [vmem:[%s3855_s28 + $0x248] sm:$0xf]  ;;  %342 = vst [vmem:[%s3859_s29 + $0x11c] sm:$0xf] %v341_v7  ;;  %344 = vst [vmem:[%s3859_s29 + $0x120] sm:$0xf] %v343_v8 }
  0x46   : > { %346 = vst [vmem:[%s3859_s29 + $0x124] sm:$0xf] %v345_v9  ;;  %v347_v10 = vld [vmem:[%s3855_s28 + $0x250] sm:$0xf]  ;;  %v349_v11 = vld [vmem:[%s3855_s28 + $0x258] sm:$0xf] }
  0x47   : > { %v351_v12 = vld [vmem:[%s3855_s28 + $0x260] sm:$0xf]  ;;  %348 = vst [vmem:[%s3859_s29 + $0x128] sm:$0xf] %v347_v10  ;;  %350 = vst [vmem:[%s3859_s29 + $0x12c] sm:$0xf] %v349_v11 }
  0x48   : > { %352 = vst [vmem:[%s3859_s29 + $0x130] sm:$0xf] %v351_v12  ;;  %v353_v13 = vld [vmem:[%s3855_s28 + $0x268] sm:$0xf]  ;;  %v355_v14 = vld [vmem:[%s3855_s28 + $0x270] sm:$0xf] }
  0x49   : > { %v357_v15 = vld [vmem:[%s3855_s28 + $0x278] sm:$0xf]  ;;  %354 = vst [vmem:[%s3859_s29 + $0x134] sm:$0xf] %v353_v13  ;;  %356 = vst [vmem:[%s3859_s29 + $0x138] sm:$0xf] %v355_v14 }
  0x4a   : > { %358 = vst [vmem:[%s3859_s29 + $0x13c] sm:$0xf] %v357_v15  ;;  %v359_v16 = vld [vmem:[%s3855_s28 + $0x280] sm:$0xf]  ;;  %v361_v17 = vld [vmem:[%s3855_s28 + $0x288] sm:$0xf] }
  0x4b   : > { %v363_v18 = vld [vmem:[%s3855_s28 + $0x290] sm:$0xf]  ;;  %360 = vst [vmem:[%s3859_s29 + $0x140] sm:$0xf] %v359_v16  ;;  %362 = vst [vmem:[%s3859_s29 + $0x144] sm:$0xf] %v361_v17 }
  0x4c   : > { %364 = vst [vmem:[%s3859_s29 + $0x148] sm:$0xf] %v363_v18  ;;  %v365_v19 = vld [vmem:[%s3855_s28 + $0x298] sm:$0xf]  ;;  %v367_v20 = vld [vmem:[%s3855_s28 + $0x2a0] sm:$0xf] }
  0x4d   : > { %v369_v21 = vld [vmem:[%s3855_s28 + $0x2a8] sm:$0xf]  ;;  %366 = vst [vmem:[%s3859_s29 + $0x14c] sm:$0xf] %v365_v19  ;;  %368 = vst [vmem:[%s3859_s29 + $0x150] sm:$0xf] %v367_v20 }
  0x4e   : > { %370 = vst [vmem:[%s3859_s29 + $0x154] sm:$0xf] %v369_v21  ;;  %v371_v22 = vld [vmem:[%s3855_s28 + $0x2b0] sm:$0xf]  ;;  %v373_v23 = vld [vmem:[%s3855_s28 + $0x2b8] sm:$0xf] }
  0x4f   : > { %v375_v24 = vld [vmem:[%s3855_s28 + $0x2c0] sm:$0xf]  ;;  %372 = vst [vmem:[%s3859_s29 + $0x158] sm:$0xf] %v371_v22  ;;  %374 = vst [vmem:[%s3859_s29 + $0x15c] sm:$0xf] %v373_v23 }
  0x50   : > { %376 = vst [vmem:[%s3859_s29 + $0x160] sm:$0xf] %v375_v24  ;;  %v377_v25 = vld [vmem:[%s3855_s28 + $0x2c8] sm:$0xf]  ;;  %v379_v26 = vld [vmem:[%s3855_s28 + $0x2d0] sm:$0xf] }
  0x51   : > { %v381_v27 = vld [vmem:[%s3855_s28 + $0x2d8] sm:$0xf]  ;;  %378 = vst [vmem:[%s3859_s29 + $0x164] sm:$0xf] %v377_v25  ;;  %380 = vst [vmem:[%s3859_s29 + $0x168] sm:$0xf] %v379_v26 }
  0x52   : > { %382 = vst [vmem:[%s3859_s29 + $0x16c] sm:$0xf] %v381_v27  ;;  %v383_v28 = vld [vmem:[%s3855_s28 + $0x2e0] sm:$0xf]  ;;  %v385_v29 = vld [vmem:[%s3855_s28 + $0x2e8] sm:$0xf] }
  0x53   : > { %v387_v30 = vld [vmem:[%s3855_s28 + $0x2f0] sm:$0xf]  ;;  %384 = vst [vmem:[%s3859_s29 + $0x170] sm:$0xf] %v383_v28  ;;  %386 = vst [vmem:[%s3859_s29 + $0x174] sm:$0xf] %v385_v29 }
  0x54   : > { %388 = vst [vmem:[%s3859_s29 + $0x178] sm:$0xf] %v387_v30  ;;  %v389_v31 = vld [vmem:[%s3855_s28 + $0x2f8] sm:$0xf]  ;;  %v391_v32 = vld [vmem:[%s3855_s28 + $0x300] sm:$0xf] }
  0x55   : > { %v393_v33 = vld [vmem:[%s3855_s28 + $0x308] sm:$0xf]  ;;  %390 = vst [vmem:[%s3859_s29 + $0x17c] sm:$0xf] %v389_v31  ;;  %392 = vst [vmem:[%s3859_s29 + $0x180] sm:$0xf] %v391_v32 }
  0x56   : > { %394 = vst [vmem:[%s3859_s29 + $0x184] sm:$0xf] %v393_v33  ;;  %v395_v34 = vld [vmem:[%s3855_s28 + $0x310] sm:$0xf]  ;;  %v397_v35 = vld [vmem:[%s3855_s28 + $0x318] sm:$0xf] }
  0x57   : > { %v399_v36 = vld [vmem:[%s3855_s28 + $0x320] sm:$0xf]  ;;  %396 = vst [vmem:[%s3859_s29 + $0x188] sm:$0xf] %v395_v34  ;;  %398 = vst [vmem:[%s3859_s29 + $0x18c] sm:$0xf] %v397_v35 }
  0x58   : > { %400 = vst [vmem:[%s3859_s29 + $0x190] sm:$0xf] %v399_v36  ;;  %v401_v37 = vld [vmem:[%s3855_s28 + $0x328] sm:$0xf]  ;;  %v403_v38 = vld [vmem:[%s3855_s28 + $0x330] sm:$0xf] }
  0x59   : > { %v405_v39 = vld [vmem:[%s3855_s28 + $0x338] sm:$0xf]  ;;  %402 = vst [vmem:[%s3859_s29 + $0x194] sm:$0xf] %v401_v37  ;;  %404 = vst [vmem:[%s3859_s29 + $0x198] sm:$0xf] %v403_v38 }
  0x5a   : > { %406 = vst [vmem:[%s3859_s29 + $0x19c] sm:$0xf] %v405_v39  ;;  %v407_v40 = vld [vmem:[%s3855_s28 + $0x340] sm:$0xf]  ;;  %v409_v41 = vld [vmem:[%s3855_s28 + $0x348] sm:$0xf] }
  0x5b   : > { %v411_v42 = vld [vmem:[%s3855_s28 + $0x350] sm:$0xf]  ;;  %408 = vst [vmem:[%s3859_s29 + $0x1a0] sm:$0xf] %v407_v40  ;;  %410 = vst [vmem:[%s3859_s29 + $0x1a4] sm:$0xf] %v409_v41 }
  0x5c   : > { %412 = vst [vmem:[%s3859_s29 + $0x1a8] sm:$0xf] %v411_v42  ;;  %v413_v43 = vld [vmem:[%s3855_s28 + $0x358] sm:$0xf]  ;;  %v415_v44 = vld [vmem:[%s3855_s28 + $0x360] sm:$0xf] }
  0x5d   : > { %v417_v45 = vld [vmem:[%s3855_s28 + $0x368] sm:$0xf]  ;;  %414 = vst [vmem:[%s3859_s29 + $0x1ac] sm:$0xf] %v413_v43  ;;  %416 = vst [vmem:[%s3859_s29 + $0x1b0] sm:$0xf] %v415_v44 }
  0x5e   : > { %418 = vst [vmem:[%s3859_s29 + $0x1b4] sm:$0xf] %v417_v45  ;;  %v419_v46 = vld [vmem:[%s3855_s28 + $0x370] sm:$0xf]  ;;  %v421_v47 = vld [vmem:[%s3855_s28 + $0x378] sm:$0xf] }
  0x5f   : > { %v423_v48 = vld [vmem:[%s3855_s28 + $0x380] sm:$0xf]  ;;  %420 = vst [vmem:[%s3859_s29 + $0x1b8] sm:$0xf] %v419_v46  ;;  %422 = vst [vmem:[%s3859_s29 + $0x1bc] sm:$0xf] %v421_v47 }
  0x60   : > { %424 = vst [vmem:[%s3859_s29 + $0x1c0] sm:$0xf] %v423_v48  ;;  %v425_v49 = vld [vmem:[%s3855_s28 + $0x388] sm:$0xf]  ;;  %v427_v50 = vld [vmem:[%s3855_s28 + $0x390] sm:$0xf] }
  0x61   : > { %v429_v51 = vld [vmem:[%s3855_s28 + $0x398] sm:$0xf]  ;;  %426 = vst [vmem:[%s3859_s29 + $0x1c4] sm:$0xf] %v425_v49  ;;  %428 = vst [vmem:[%s3859_s29 + $0x1c8] sm:$0xf] %v427_v50 }
  0x62   : > { %430 = vst [vmem:[%s3859_s29 + $0x1cc] sm:$0xf] %v429_v51  ;;  %v431_v52 = vld [vmem:[%s3855_s28 + $0x3a0] sm:$0xf]  ;;  %v433_v53 = vld [vmem:[%s3855_s28 + $0x3a8] sm:$0xf] }
  0x63   : > { %v435_v54 = vld [vmem:[%s3855_s28 + $0x3b0] sm:$0xf]  ;;  %432 = vst [vmem:[%s3859_s29 + $0x1d0] sm:$0xf] %v431_v52  ;;  %434 = vst [vmem:[%s3859_s29 + $0x1d4] sm:$0xf] %v433_v53 }
  0x64   : > { %436 = vst [vmem:[%s3859_s29 + $0x1d8] sm:$0xf] %v435_v54  ;;  %v437_v55 = vld [vmem:[%s3855_s28 + $0x3b8] sm:$0xf]  ;;  %v439_v56 = vld [vmem:[%s3855_s28 + $0x3c0] sm:$0xf] }
  0x65   : > { %v441_v57 = vld [vmem:[%s3855_s28 + $0x3c8] sm:$0xf]  ;;  %438 = vst [vmem:[%s3859_s29 + $0x1dc] sm:$0xf] %v437_v55  ;;  %440 = vst [vmem:[%s3859_s29 + $0x1e0] sm:$0xf] %v439_v56 }
  0x66   : > { %442 = vst [vmem:[%s3859_s29 + $0x1e4] sm:$0xf] %v441_v57  ;;  %v443_v58 = vld [vmem:[%s3855_s28 + $0x3d0] sm:$0xf]  ;;  %v445_v59 = vld [vmem:[%s3855_s28 + $0x3d8] sm:$0xf] }
  0x67   : > { %v447_v60 = vld [vmem:[%s3855_s28 + $0x3e0] sm:$0xf]  ;;  %444 = vst [vmem:[%s3859_s29 + $0x1e8] sm:$0xf] %v443_v58  ;;  %446 = vst [vmem:[%s3859_s29 + $0x1ec] sm:$0xf] %v445_v59 }
  0x68   : > { %448 = vst [vmem:[%s3859_s29 + $0x1f0] sm:$0xf] %v447_v60  ;;  %v449_v61 = vld [vmem:[%s3855_s28 + $0x3e8] sm:$0xf]  ;;  %v451_v62 = vld [vmem:[%s3855_s28 + $0x3f0] sm:$0xf] }
  0x69   : > { %v453_v63 = vld [vmem:[%s3855_s28 + $0x3f8] sm:$0xf]  ;;  %450 = vst [vmem:[%s3859_s29 + $0x1f4] sm:$0xf] %v449_v61  ;;  %452 = vst [vmem:[%s3859_s29 + $0x1f8] sm:$0xf] %v451_v62 }
  0x6a   : > { %454 = vst [vmem:[%s3859_s29 + $0x1fc] sm:$0xf] %v453_v63  ;;  %v455_v0 = vld [vmem:[%s3855_s28 + $0x400] sm:$0xf]  ;;  %v457_v1 = vld [vmem:[%s3855_s28 + $0x408] sm:$0xf] }
  0x6b   : > { %v459_v2 = vld [vmem:[%s3855_s28 + $0x410] sm:$0xf]  ;;  %456 = vst [vmem:[%s3859_s29 + $0x200] sm:$0xf] %v455_v0  ;;  %458 = vst [vmem:[%s3859_s29 + $0x204] sm:$0xf] %v457_v1 }
  0x6c   : > { %460 = vst [vmem:[%s3859_s29 + $0x208] sm:$0xf] %v459_v2  ;;  %v461_v3 = vld [vmem:[%s3855_s28 + $0x418] sm:$0xf]  ;;  %v463_v4 = vld [vmem:[%s3855_s28 + $0x420] sm:$0xf] }
  0x6d   : > { %v465_v5 = vld [vmem:[%s3855_s28 + $0x428] sm:$0xf]  ;;  %462 = vst [vmem:[%s3859_s29 + $0x20c] sm:$0xf] %v461_v3  ;;  %464 = vst [vmem:[%s3859_s29 + $0x210] sm:$0xf] %v463_v4 }
  0x6e   : > { %466 = vst [vmem:[%s3859_s29 + $0x214] sm:$0xf] %v465_v5  ;;  %v467_v6 = vld [vmem:[%s3855_s28 + $0x430] sm:$0xf]  ;;  %v469_v7 = vld [vmem:[%s3855_s28 + $0x438] sm:$0xf] }
  0x6f   : > { %v471_v8 = vld [vmem:[%s3855_s28 + $0x440] sm:$0xf]  ;;  %468 = vst [vmem:[%s3859_s29 + $0x218] sm:$0xf] %v467_v6  ;;  %470 = vst [vmem:[%s3859_s29 + $0x21c] sm:$0xf] %v469_v7 }
  0x70   : > { %472 = vst [vmem:[%s3859_s29 + $0x220] sm:$0xf] %v471_v8  ;;  %v473_v9 = vld [vmem:[%s3855_s28 + $0x448] sm:$0xf]  ;;  %v475_v10 = vld [vmem:[%s3855_s28 + $0x450] sm:$0xf] }
  0x71   : > { %v477_v11 = vld [vmem:[%s3855_s28 + $0x458] sm:$0xf]  ;;  %474 = vst [vmem:[%s3859_s29 + $0x224] sm:$0xf] %v473_v9  ;;  %476 = vst [vmem:[%s3859_s29 + $0x228] sm:$0xf] %v475_v10 }
  0x72   : > { %478 = vst [vmem:[%s3859_s29 + $0x22c] sm:$0xf] %v477_v11  ;;  %v479_v12 = vld [vmem:[%s3855_s28 + $0x460] sm:$0xf]  ;;  %v481_v13 = vld [vmem:[%s3855_s28 + $0x468] sm:$0xf] }
  0x73   : > { %v483_v14 = vld [vmem:[%s3855_s28 + $0x470] sm:$0xf]  ;;  %480 = vst [vmem:[%s3859_s29 + $0x230] sm:$0xf] %v479_v12  ;;  %482 = vst [vmem:[%s3859_s29 + $0x234] sm:$0xf] %v481_v13 }
  0x74   : > { %484 = vst [vmem:[%s3859_s29 + $0x238] sm:$0xf] %v483_v14  ;;  %v485_v15 = vld [vmem:[%s3855_s28 + $0x478] sm:$0xf]  ;;  %v487_v16 = vld [vmem:[%s3855_s28 + $0x480] sm:$0xf] }
  0x75   : > { %v489_v17 = vld [vmem:[%s3855_s28 + $0x488] sm:$0xf]  ;;  %486 = vst [vmem:[%s3859_s29 + $0x23c] sm:$0xf] %v485_v15  ;;  %488 = vst [vmem:[%s3859_s29 + $0x240] sm:$0xf] %v487_v16 }
  0x76   : > { %490 = vst [vmem:[%s3859_s29 + $0x244] sm:$0xf] %v489_v17  ;;  %v491_v18 = vld [vmem:[%s3855_s28 + $0x490] sm:$0xf]  ;;  %v493_v19 = vld [vmem:[%s3855_s28 + $0x498] sm:$0xf] }
  0x77   : > { %v495_v20 = vld [vmem:[%s3855_s28 + $0x4a0] sm:$0xf]  ;;  %492 = vst [vmem:[%s3859_s29 + $0x248] sm:$0xf] %v491_v18  ;;  %494 = vst [vmem:[%s3859_s29 + $0x24c] sm:$0xf] %v493_v19 }
  0x78   : > { %496 = vst [vmem:[%s3859_s29 + $0x250] sm:$0xf] %v495_v20  ;;  %v497_v21 = vld [vmem:[%s3855_s28 + $0x4a8] sm:$0xf]  ;;  %v499_v22 = vld [vmem:[%s3855_s28 + $0x4b0] sm:$0xf] }
  0x79   : > { %v501_v23 = vld [vmem:[%s3855_s28 + $0x4b8] sm:$0xf]  ;;  %498 = vst [vmem:[%s3859_s29 + $0x254] sm:$0xf] %v497_v21  ;;  %500 = vst [vmem:[%s3859_s29 + $0x258] sm:$0xf] %v499_v22 }
  0x7a   : > { %502 = vst [vmem:[%s3859_s29 + $0x25c] sm:$0xf] %v501_v23  ;;  %v503_v24 = vld [vmem:[%s3855_s28 + $0x4c0] sm:$0xf]  ;;  %v505_v25 = vld [vmem:[%s3855_s28 + $0x4c8] sm:$0xf] }
  0x7b   : > { %v507_v26 = vld [vmem:[%s3855_s28 + $0x4d0] sm:$0xf]  ;;  %504 = vst [vmem:[%s3859_s29 + $0x260] sm:$0xf] %v503_v24  ;;  %506 = vst [vmem:[%s3859_s29 + $0x264] sm:$0xf] %v505_v25 }
  0x7c   : > { %508 = vst [vmem:[%s3859_s29 + $0x268] sm:$0xf] %v507_v26  ;;  %v509_v27 = vld [vmem:[%s3855_s28 + $0x4d8] sm:$0xf]  ;;  %v511_v28 = vld [vmem:[%s3855_s28 + $0x4e0] sm:$0xf] }
  0x7d   : > { %v513_v29 = vld [vmem:[%s3855_s28 + $0x4e8] sm:$0xf]  ;;  %510 = vst [vmem:[%s3859_s29 + $0x26c] sm:$0xf] %v509_v27  ;;  %512 = vst [vmem:[%s3859_s29 + $0x270] sm:$0xf] %v511_v28 }
  0x7e   : > { %514 = vst [vmem:[%s3859_s29 + $0x274] sm:$0xf] %v513_v29  ;;  %v515_v30 = vld [vmem:[%s3855_s28 + $0x4f0] sm:$0xf]  ;;  %v517_v31 = vld [vmem:[%s3855_s28 + $0x4f8] sm:$0xf] }
  0x7f   : > { %v519_v32 = vld [vmem:[%s3855_s28 + $0x500] sm:$0xf]  ;;  %516 = vst [vmem:[%s3859_s29 + $0x278] sm:$0xf] %v515_v30  ;;  %518 = vst [vmem:[%s3859_s29 + $0x27c] sm:$0xf] %v517_v31 }
  0x80   : > { %520 = vst [vmem:[%s3859_s29 + $0x280] sm:$0xf] %v519_v32  ;;  %v521_v33 = vld [vmem:[%s3855_s28 + $0x508] sm:$0xf]  ;;  %v523_v34 = vld [vmem:[%s3855_s28 + $0x510] sm:$0xf] }
  0x81   : > { %v525_v35 = vld [vmem:[%s3855_s28 + $0x518] sm:$0xf]  ;;  %522 = vst [vmem:[%s3859_s29 + $0x284] sm:$0xf] %v521_v33  ;;  %524 = vst [vmem:[%s3859_s29 + $0x288] sm:$0xf] %v523_v34 }
  0x82   : > { %526 = vst [vmem:[%s3859_s29 + $0x28c] sm:$0xf] %v525_v35  ;;  %v527_v36 = vld [vmem:[%s3855_s28 + $0x520] sm:$0xf]  ;;  %v529_v37 = vld [vmem:[%s3855_s28 + $0x528] sm:$0xf] }
  0x83   : > { %v531_v38 = vld [vmem:[%s3855_s28 + $0x530] sm:$0xf]  ;;  %528 = vst [vmem:[%s3859_s29 + $0x290] sm:$0xf] %v527_v36  ;;  %530 = vst [vmem:[%s3859_s29 + $0x294] sm:$0xf] %v529_v37 }
  0x84   : > { %532 = vst [vmem:[%s3859_s29 + $0x298] sm:$0xf] %v531_v38  ;;  %v533_v39 = vld [vmem:[%s3855_s28 + $0x538] sm:$0xf]  ;;  %v535_v40 = vld [vmem:[%s3855_s28 + $0x540] sm:$0xf] }
  0x85   : > { %v537_v41 = vld [vmem:[%s3855_s28 + $0x548] sm:$0xf]  ;;  %534 = vst [vmem:[%s3859_s29 + $0x29c] sm:$0xf] %v533_v39  ;;  %536 = vst [vmem:[%s3859_s29 + $0x2a0] sm:$0xf] %v535_v40 }
  0x86   : > { %538 = vst [vmem:[%s3859_s29 + $0x2a4] sm:$0xf] %v537_v41  ;;  %v539_v42 = vld [vmem:[%s3855_s28 + $0x550] sm:$0xf]  ;;  %v541_v43 = vld [vmem:[%s3855_s28 + $0x558] sm:$0xf] }
  0x87   : > { %v543_v44 = vld [vmem:[%s3855_s28 + $0x560] sm:$0xf]  ;;  %540 = vst [vmem:[%s3859_s29 + $0x2a8] sm:$0xf] %v539_v42  ;;  %542 = vst [vmem:[%s3859_s29 + $0x2ac] sm:$0xf] %v541_v43 }
  0x88   : > { %544 = vst [vmem:[%s3859_s29 + $0x2b0] sm:$0xf] %v543_v44  ;;  %v545_v45 = vld [vmem:[%s3855_s28 + $0x568] sm:$0xf]  ;;  %v547_v46 = vld [vmem:[%s3855_s28 + $0x570] sm:$0xf] }
  0x89   : > { %v549_v47 = vld [vmem:[%s3855_s28 + $0x578] sm:$0xf]  ;;  %546 = vst [vmem:[%s3859_s29 + $0x2b4] sm:$0xf] %v545_v45  ;;  %548 = vst [vmem:[%s3859_s29 + $0x2b8] sm:$0xf] %v547_v46 }
  0x8a   : > { %550 = vst [vmem:[%s3859_s29 + $0x2bc] sm:$0xf] %v549_v47  ;;  %v551_v48 = vld [vmem:[%s3855_s28 + $0x580] sm:$0xf]  ;;  %v553_v49 = vld [vmem:[%s3855_s28 + $0x588] sm:$0xf] }
  0x8b   : > { %v555_v50 = vld [vmem:[%s3855_s28 + $0x590] sm:$0xf]  ;;  %552 = vst [vmem:[%s3859_s29 + $0x2c0] sm:$0xf] %v551_v48  ;;  %554 = vst [vmem:[%s3859_s29 + $0x2c4] sm:$0xf] %v553_v49 }
  0x8c   : > { %556 = vst [vmem:[%s3859_s29 + $0x2c8] sm:$0xf] %v555_v50  ;;  %v557_v51 = vld [vmem:[%s3855_s28 + $0x598] sm:$0xf]  ;;  %v559_v52 = vld [vmem:[%s3855_s28 + $0x5a0] sm:$0xf] }
  0x8d   : > { %v561_v53 = vld [vmem:[%s3855_s28 + $0x5a8] sm:$0xf]  ;;  %558 = vst [vmem:[%s3859_s29 + $0x2cc] sm:$0xf] %v557_v51  ;;  %560 = vst [vmem:[%s3859_s29 + $0x2d0] sm:$0xf] %v559_v52 }
  0x8e   : > { %562 = vst [vmem:[%s3859_s29 + $0x2d4] sm:$0xf] %v561_v53  ;;  %v563_v54 = vld [vmem:[%s3855_s28 + $0x5b0] sm:$0xf]  ;;  %v565_v55 = vld [vmem:[%s3855_s28 + $0x5b8] sm:$0xf] }
  0x8f   : > { %v567_v56 = vld [vmem:[%s3855_s28 + $0x5c0] sm:$0xf]  ;;  %564 = vst [vmem:[%s3859_s29 + $0x2d8] sm:$0xf] %v563_v54  ;;  %566 = vst [vmem:[%s3859_s29 + $0x2dc] sm:$0xf] %v565_v55 }
  0x90   : > { %568 = vst [vmem:[%s3859_s29 + $0x2e0] sm:$0xf] %v567_v56  ;;  %v569_v57 = vld [vmem:[%s3855_s28 + $0x5c8] sm:$0xf]  ;;  %v571_v58 = vld [vmem:[%s3855_s28 + $0x5d0] sm:$0xf] }
  0x91   : > { %v573_v59 = vld [vmem:[%s3855_s28 + $0x5d8] sm:$0xf]  ;;  %570 = vst [vmem:[%s3859_s29 + $0x2e4] sm:$0xf] %v569_v57  ;;  %572 = vst [vmem:[%s3859_s29 + $0x2e8] sm:$0xf] %v571_v58 }
  0x92   : > { %574 = vst [vmem:[%s3859_s29 + $0x2ec] sm:$0xf] %v573_v59  ;;  %v575_v60 = vld [vmem:[%s3855_s28 + $0x5e0] sm:$0xf]  ;;  %v577_v61 = vld [vmem:[%s3855_s28 + $0x5e8] sm:$0xf] }
  0x93   : > { %v579_v62 = vld [vmem:[%s3855_s28 + $0x5f0] sm:$0xf]  ;;  %576 = vst [vmem:[%s3859_s29 + $0x2f0] sm:$0xf] %v575_v60  ;;  %578 = vst [vmem:[%s3859_s29 + $0x2f4] sm:$0xf] %v577_v61 }
  0x94   : > { %580 = vst [vmem:[%s3859_s29 + $0x2f8] sm:$0xf] %v579_v62  ;;  %v581_v63 = vld [vmem:[%s3855_s28 + $0x5f8] sm:$0xf]  ;;  %v583_v0 = vld [vmem:[%s3855_s28 + $0x600] sm:$0xf] }
  0x95   : > { %v585_v1 = vld [vmem:[%s3855_s28 + $0x608] sm:$0xf]  ;;  %582 = vst [vmem:[%s3859_s29 + $0x2fc] sm:$0xf] %v581_v63  ;;  %584 = vst [vmem:[%s3859_s29 + $0x300] sm:$0xf] %v583_v0 }
  0x96   : > { %586 = vst [vmem:[%s3859_s29 + $0x304] sm:$0xf] %v585_v1  ;;  %v587_v2 = vld [vmem:[%s3855_s28 + $0x610] sm:$0xf]  ;;  %v589_v3 = vld [vmem:[%s3855_s28 + $0x618] sm:$0xf] }
  0x97   : > { %v591_v4 = vld [vmem:[%s3855_s28 + $0x620] sm:$0xf]  ;;  %588 = vst [vmem:[%s3859_s29 + $0x308] sm:$0xf] %v587_v2  ;;  %590 = vst [vmem:[%s3859_s29 + $0x30c] sm:$0xf] %v589_v3 }
  0x98   : > { %592 = vst [vmem:[%s3859_s29 + $0x310] sm:$0xf] %v591_v4  ;;  %v593_v5 = vld [vmem:[%s3855_s28 + $0x628] sm:$0xf]  ;;  %v595_v6 = vld [vmem:[%s3855_s28 + $0x630] sm:$0xf] }
  0x99   : > { %v597_v7 = vld [vmem:[%s3855_s28 + $0x638] sm:$0xf]  ;;  %594 = vst [vmem:[%s3859_s29 + $0x314] sm:$0xf] %v593_v5  ;;  %596 = vst [vmem:[%s3859_s29 + $0x318] sm:$0xf] %v595_v6 }
  0x9a   : > { %598 = vst [vmem:[%s3859_s29 + $0x31c] sm:$0xf] %v597_v7  ;;  %v599_v8 = vld [vmem:[%s3855_s28 + $0x640] sm:$0xf]  ;;  %v601_v9 = vld [vmem:[%s3855_s28 + $0x648] sm:$0xf] }
  0x9b   : > { %v603_v10 = vld [vmem:[%s3855_s28 + $0x650] sm:$0xf]  ;;  %600 = vst [vmem:[%s3859_s29 + $0x320] sm:$0xf] %v599_v8  ;;  %602 = vst [vmem:[%s3859_s29 + $0x324] sm:$0xf] %v601_v9 }
  0x9c   : > { %604 = vst [vmem:[%s3859_s29 + $0x328] sm:$0xf] %v603_v10  ;;  %v605_v11 = vld [vmem:[%s3855_s28 + $0x658] sm:$0xf]  ;;  %v607_v12 = vld [vmem:[%s3855_s28 + $0x660] sm:$0xf] }
  0x9d   : > { %v609_v13 = vld [vmem:[%s3855_s28 + $0x668] sm:$0xf]  ;;  %606 = vst [vmem:[%s3859_s29 + $0x32c] sm:$0xf] %v605_v11  ;;  %608 = vst [vmem:[%s3859_s29 + $0x330] sm:$0xf] %v607_v12 }
  0x9e   : > { %610 = vst [vmem:[%s3859_s29 + $0x334] sm:$0xf] %v609_v13  ;;  %v611_v14 = vld [vmem:[%s3855_s28 + $0x670] sm:$0xf]  ;;  %v613_v15 = vld [vmem:[%s3855_s28 + $0x678] sm:$0xf] }
  0x9f   : > { %v615_v16 = vld [vmem:[%s3855_s28 + $0x680] sm:$0xf]  ;;  %612 = vst [vmem:[%s3859_s29 + $0x338] sm:$0xf] %v611_v14  ;;  %614 = vst [vmem:[%s3859_s29 + $0x33c] sm:$0xf] %v613_v15 }
  0xa0   : > { %616 = vst [vmem:[%s3859_s29 + $0x340] sm:$0xf] %v615_v16  ;;  %v617_v17 = vld [vmem:[%s3855_s28 + $0x688] sm:$0xf]  ;;  %v619_v18 = vld [vmem:[%s3855_s28 + $0x690] sm:$0xf] }
  0xa1   : > { %v621_v19 = vld [vmem:[%s3855_s28 + $0x698] sm:$0xf]  ;;  %618 = vst [vmem:[%s3859_s29 + $0x344] sm:$0xf] %v617_v17  ;;  %620 = vst [vmem:[%s3859_s29 + $0x348] sm:$0xf] %v619_v18 }
  0xa2   : > { %622 = vst [vmem:[%s3859_s29 + $0x34c] sm:$0xf] %v621_v19  ;;  %v623_v20 = vld [vmem:[%s3855_s28 + $0x6a0] sm:$0xf]  ;;  %v625_v21 = vld [vmem:[%s3855_s28 + $0x6a8] sm:$0xf] }
  0xa3   : > { %v627_v22 = vld [vmem:[%s3855_s28 + $0x6b0] sm:$0xf]  ;;  %624 = vst [vmem:[%s3859_s29 + $0x350] sm:$0xf] %v623_v20  ;;  %626 = vst [vmem:[%s3859_s29 + $0x354] sm:$0xf] %v625_v21 }
  0xa4   : > { %628 = vst [vmem:[%s3859_s29 + $0x358] sm:$0xf] %v627_v22  ;;  %v629_v23 = vld [vmem:[%s3855_s28 + $0x6b8] sm:$0xf]  ;;  %v631_v24 = vld [vmem:[%s3855_s28 + $0x6c0] sm:$0xf] }
  0xa5   : > { %v633_v25 = vld [vmem:[%s3855_s28 + $0x6c8] sm:$0xf]  ;;  %630 = vst [vmem:[%s3859_s29 + $0x35c] sm:$0xf] %v629_v23  ;;  %632 = vst [vmem:[%s3859_s29 + $0x360] sm:$0xf] %v631_v24 }
  0xa6   : > { %634 = vst [vmem:[%s3859_s29 + $0x364] sm:$0xf] %v633_v25  ;;  %v635_v26 = vld [vmem:[%s3855_s28 + $0x6d0] sm:$0xf]  ;;  %v637_v27 = vld [vmem:[%s3855_s28 + $0x6d8] sm:$0xf] }
  0xa7   : > { %v639_v28 = vld [vmem:[%s3855_s28 + $0x6e0] sm:$0xf]  ;;  %636 = vst [vmem:[%s3859_s29 + $0x368] sm:$0xf] %v635_v26  ;;  %638 = vst [vmem:[%s3859_s29 + $0x36c] sm:$0xf] %v637_v27 }
  0xa8   : > { %640 = vst [vmem:[%s3859_s29 + $0x370] sm:$0xf] %v639_v28  ;;  %v641_v29 = vld [vmem:[%s3855_s28 + $0x6e8] sm:$0xf]  ;;  %v643_v30 = vld [vmem:[%s3855_s28 + $0x6f0] sm:$0xf] }
  0xa9   : > { %v645_v31 = vld [vmem:[%s3855_s28 + $0x6f8] sm:$0xf]  ;;  %642 = vst [vmem:[%s3859_s29 + $0x374] sm:$0xf] %v641_v29  ;;  %644 = vst [vmem:[%s3859_s29 + $0x378] sm:$0xf] %v643_v30 }
  0xaa   : > { %646 = vst [vmem:[%s3859_s29 + $0x37c] sm:$0xf] %v645_v31  ;;  %v647_v32 = vld [vmem:[%s3855_s28 + $0x700] sm:$0xf]  ;;  %v649_v33 = vld [vmem:[%s3855_s28 + $0x708] sm:$0xf] }
  0xab   : > { %v651_v34 = vld [vmem:[%s3855_s28 + $0x710] sm:$0xf]  ;;  %648 = vst [vmem:[%s3859_s29 + $0x380] sm:$0xf] %v647_v32  ;;  %650 = vst [vmem:[%s3859_s29 + $0x384] sm:$0xf] %v649_v33 }
  0xac   : > { %652 = vst [vmem:[%s3859_s29 + $0x388] sm:$0xf] %v651_v34  ;;  %v653_v35 = vld [vmem:[%s3855_s28 + $0x718] sm:$0xf]  ;;  %v655_v36 = vld [vmem:[%s3855_s28 + $0x720] sm:$0xf] }
  0xad   : > { %v657_v37 = vld [vmem:[%s3855_s28 + $0x728] sm:$0xf]  ;;  %654 = vst [vmem:[%s3859_s29 + $0x38c] sm:$0xf] %v653_v35  ;;  %656 = vst [vmem:[%s3859_s29 + $0x390] sm:$0xf] %v655_v36 }
  0xae   : > { %658 = vst [vmem:[%s3859_s29 + $0x394] sm:$0xf] %v657_v37  ;;  %v659_v38 = vld [vmem:[%s3855_s28 + $0x730] sm:$0xf]  ;;  %v661_v39 = vld [vmem:[%s3855_s28 + $0x738] sm:$0xf] }
  0xaf   : > { %v663_v40 = vld [vmem:[%s3855_s28 + $0x740] sm:$0xf]  ;;  %660 = vst [vmem:[%s3859_s29 + $0x398] sm:$0xf] %v659_v38  ;;  %662 = vst [vmem:[%s3859_s29 + $0x39c] sm:$0xf] %v661_v39 }
  0xb0   : > { %664 = vst [vmem:[%s3859_s29 + $0x3a0] sm:$0xf] %v663_v40  ;;  %v665_v41 = vld [vmem:[%s3855_s28 + $0x748] sm:$0xf]  ;;  %v667_v42 = vld [vmem:[%s3855_s28 + $0x750] sm:$0xf] }
  0xb1   : > { %v669_v43 = vld [vmem:[%s3855_s28 + $0x758] sm:$0xf]  ;;  %666 = vst [vmem:[%s3859_s29 + $0x3a4] sm:$0xf] %v665_v41  ;;  %668 = vst [vmem:[%s3859_s29 + $0x3a8] sm:$0xf] %v667_v42 }
  0xb2   : > { %670 = vst [vmem:[%s3859_s29 + $0x3ac] sm:$0xf] %v669_v43  ;;  %v671_v44 = vld [vmem:[%s3855_s28 + $0x760] sm:$0xf]  ;;  %v673_v45 = vld [vmem:[%s3855_s28 + $0x768] sm:$0xf] }
  0xb3   : > { %v675_v46 = vld [vmem:[%s3855_s28 + $0x770] sm:$0xf]  ;;  %672 = vst [vmem:[%s3859_s29 + $0x3b0] sm:$0xf] %v671_v44  ;;  %674 = vst [vmem:[%s3859_s29 + $0x3b4] sm:$0xf] %v673_v45 }
  0xb4   : > { %676 = vst [vmem:[%s3859_s29 + $0x3b8] sm:$0xf] %v675_v46  ;;  %v677_v47 = vld [vmem:[%s3855_s28 + $0x778] sm:$0xf]  ;;  %v679_v48 = vld [vmem:[%s3855_s28 + $0x780] sm:$0xf] }
  0xb5   : > { %v681_v49 = vld [vmem:[%s3855_s28 + $0x788] sm:$0xf]  ;;  %678 = vst [vmem:[%s3859_s29 + $0x3bc] sm:$0xf] %v677_v47  ;;  %680 = vst [vmem:[%s3859_s29 + $0x3c0] sm:$0xf] %v679_v48 }
  0xb6   : > { %682 = vst [vmem:[%s3859_s29 + $0x3c4] sm:$0xf] %v681_v49  ;;  %v683_v50 = vld [vmem:[%s3855_s28 + $0x790] sm:$0xf]  ;;  %v685_v51 = vld [vmem:[%s3855_s28 + $0x798] sm:$0xf] }
  0xb7   : > { %v687_v52 = vld [vmem:[%s3855_s28 + $0x7a0] sm:$0xf]  ;;  %684 = vst [vmem:[%s3859_s29 + $0x3c8] sm:$0xf] %v683_v50  ;;  %686 = vst [vmem:[%s3859_s29 + $0x3cc] sm:$0xf] %v685_v51 }
  0xb8   : > { %688 = vst [vmem:[%s3859_s29 + $0x3d0] sm:$0xf] %v687_v52  ;;  %v689_v53 = vld [vmem:[%s3855_s28 + $0x7a8] sm:$0xf]  ;;  %v691_v54 = vld [vmem:[%s3855_s28 + $0x7b0] sm:$0xf] }
  0xb9   : > { %v693_v55 = vld [vmem:[%s3855_s28 + $0x7b8] sm:$0xf]  ;;  %690 = vst [vmem:[%s3859_s29 + $0x3d4] sm:$0xf] %v689_v53  ;;  %692 = vst [vmem:[%s3859_s29 + $0x3d8] sm:$0xf] %v691_v54 }
  0xba   : > { %694 = vst [vmem:[%s3859_s29 + $0x3dc] sm:$0xf] %v693_v55  ;;  %v695_v56 = vld [vmem:[%s3855_s28 + $0x7c0] sm:$0xf]  ;;  %v697_v57 = vld [vmem:[%s3855_s28 + $0x7c8] sm:$0xf] }
  0xbb   : > { %v699_v58 = vld [vmem:[%s3855_s28 + $0x7d0] sm:$0xf]  ;;  %696 = vst [vmem:[%s3859_s29 + $0x3e0] sm:$0xf] %v695_v56  ;;  %698 = vst [vmem:[%s3859_s29 + $0x3e4] sm:$0xf] %v697_v57 }
  0xbc   : > { %700 = vst [vmem:[%s3859_s29 + $0x3e8] sm:$0xf] %v699_v58  ;;  %v701_v59 = vld [vmem:[%s3855_s28 + $0x7d8] sm:$0xf]  ;;  %v703_v60 = vld [vmem:[%s3855_s28 + $0x7e0] sm:$0xf] }
  0xbd   : > { %v705_v61 = vld [vmem:[%s3855_s28 + $0x7e8] sm:$0xf]  ;;  %702 = vst [vmem:[%s3859_s29 + $0x3ec] sm:$0xf] %v701_v59  ;;  %704 = vst [vmem:[%s3859_s29 + $0x3f0] sm:$0xf] %v703_v60 }
  0xbe   : > { %706 = vst [vmem:[%s3859_s29 + $0x3f4] sm:$0xf] %v705_v61  ;;  %v707_v62 = vld [vmem:[%s3855_s28 + $0x7f0] sm:$0xf]  ;;  %v709_v63 = vld [vmem:[%s3855_s28 + $0x7f8] sm:$0xf] }
  0xbf   : > { %708 = vst [vmem:[%s3859_s29 + $0x3f8] sm:$0xf] %v707_v62  ;;  %710 = vst [vmem:[%s3859_s29 + $0x3fc] sm:$0xf] %v709_v63 }
  0xc0 PF: > { %p3168_p8 = scmp.ge.s32.totalorder %s3785_s16, 1  ;;  %p1251_p9 = scmp.lt.s32.totalorder %s3785_s16, 3 }
  0xc2   : > { %p1252_p10 = pnand %p3168_p8, %p1251_p9 }
  0xc3   : > { %s1258_s30 = sand.u32 (!%p1252_p10), 1, %s3769_s12   ;;  %v4377_v0 = vld [vmem:[%s4646_s0] sm:$0xff] (!%p1252_p10)  ;;  %v4387_v2 = vld [vmem:[%s4646_s0 + $0x8] sm:$0xff] (!%p1252_p10)  ;;  %p1307_p11 = scmp.lt.s32.totalorder (!%p1252_p10), %s3777_s14, 1 }
  0xc4   : > { %1255 = sbr.rel (%p1252_p10) target bundleno = 576 (0x240), region = 69  ;;  %v4382_v1 = vld [vmem:[%s4646_s0 + $0x40] sm:$0xff] (!%p1252_p10)  ;;  %s3169_s10 = sshll.u32 (!%p1252_p10), %s1258_s30, 10  ;;  %v4396_v4 = vld [vmem:[%s4646_s0 + $0x48] sm:$0xff] (!%p1252_p10) }
  0xc5   : > { %v3173_v3 = vcombine.high (!%p1252_p10), %v4377_v0, %v4382_v1  ;;  %v3175_v5 = vcombine.high (!%p1252_p10), %v4387_v2, %v4396_v4  ;;  %s4400_s19 = scalar_lea.vmem (!%p1252_p10), [#allocation3], %s3169_s10  ;;  %v1341_v35 = vld [vmem:[%s4646_s0 + $0x80] sm:$0xff] (!%p1252_p10)  ;;  %v1342_v38 = vld [vmem:[%s4646_s0 + $0x88] sm:$0xff] (!%p1252_p10)  ;;  %v3172_v42 = vcombine.low (!%p1252_p10), %v4377_v0, %v4382_v1  ;;  %v3174_v43 = vcombine.low (!%p1252_p10), %v4387_v2, %v4396_v4  ;;  %s3170_s5 = sshll.u32 (!%p1252_p10), %s1258_s30, 4 }
  0xc6   : > { %v3619_v6 = vld [vmem:[%s4400_s19 + $0x40] sm:$0xff] (!%p1252_p10)   ;;  %v3623_v10 = vld [vmem:[%s4400_s19 + $0x48] sm:$0xff] (!%p1252_p10)   ;;  %v3627_v14 = vld [vmem:[%s4400_s19 + $0x50] sm:$0xff] (!%p1252_p10)   ;;  %s1293_s6 = scalar_lea.vmem (!%p1252_p10), [#allocation4], %s3170_s5 }
  0xc7   : > { %2573 = vmatprep.mubr.bf16.mxu0 (!%p1252_p10), %v3173_v3  ;;  %v3620_v7 = vld [vmem:[%s4400_s19 + $0xc0] sm:$0xff] (!%p1252_p10)   ;;  %2622 = vmatprep.mubr.bf16.mxu1 (!%p1252_p10), %v3175_v5  ;;  %v3624_v11 = vld [vmem:[%s4400_s19 + $0xc8] sm:$0xff] (!%p1252_p10)   ;;  %v3628_v15 = vld [vmem:[%s4400_s19 + $0xd0] sm:$0xff] (!%p1252_p10)  }
  0xc8   : > { %3355 = vmatprep.subr.bf16.mxu0 (!%p1252_p10), %v3619_v6  ;;  %v3621_v8 = vld [vmem:[%s4400_s19] sm:$0xff] (!%p1252_p10)   ;;  %3383 = vmatprep.subr.bf16.mxu1 (!%p1252_p10), %v3620_v7  ;;  %v3625_v12 = vld [vmem:[%s4400_s19 + $0x8] sm:$0xff] (!%p1252_p10)   ;;  %v3629_v16 = vld [vmem:[%s4400_s19 + $0x10] sm:$0xff] (!%p1252_p10)  }
  0xc9   : > { %v3622_v9 = vld [vmem:[%s4400_s19 + $0x80] sm:$0xff] (!%p1252_p10)   ;;  %3356 = vmatpush3.bf16.msra.mxu0 (!%p1252_p10), %v3621_v8  ;;  %v3626_v13 = vld [vmem:[%s4400_s19 + $0x88] sm:$0xff] (!%p1252_p10)   ;;  %v3630_v17 = vld [vmem:[%s4400_s19 + $0x90] sm:$0xff] (!%p1252_p10)  }
  0xca   : > { %3384 = vmatpush3.bf16.msra.mxu1 (!%p1252_p10), %v3622_v9  ;;  %3357 = vmatprep.subr.bf16.mxu0 (!%p1252_p10), %v3623_v10  ;;  %v3631_v18 = vld [vmem:[%s4400_s19 + $0x58] sm:$0xff] (!%p1252_p10)   ;;  %v3635_v22 = vld [vmem:[%s4400_s19 + $0x60] sm:$0xff] (!%p1252_p10)   ;;  %v3639_v26 = vld [vmem:[%s4400_s19 + $0x68] sm:$0xff] (!%p1252_p10)  }
  0xcb   : > { %3385 = vmatprep.subr.bf16.mxu1 %v3624_v11  ;;  %v3632_v19 = vld [vmem:[%s4400_s19 + $0xd8] sm:$0xff]   ;;  %v3636_v23 = vld [vmem:[%s4400_s19 + $0xe0] sm:$0xff]   ;;  %v3640_v27 = vld [vmem:[%s4400_s19 + $0xe8] sm:$0xff]   ;;  %s1308_s26 = scalar_select %p1307_p11, %s3777_s14, 1 }
  0xcc   : > { %v3633_v20 = vld [vmem:[%s4400_s19 + $0x18] sm:$0xff]   ;;  %v3637_v24 = vld [vmem:[%s4400_s19 + $0x20] sm:$0xff]   ;;  %v3641_v28 = vld [vmem:[%s4400_s19 + $0x28] sm:$0xff]   ;;  %s3337_s12 = sshll.u32 (%p3842_p6), %s3777_s14, 2 }
  0xcd   : > { %3358 = vmatpush3.bf16.msra.mxu0 %v3625_v12  ;;  %v3634_v21 = vld [vmem:[%s4400_s19 + $0x98] sm:$0xff]   ;;  %v3638_v25 = vld [vmem:[%s4400_s19 + $0xa0] sm:$0xff]   ;;  %v3642_v29 = vld [vmem:[%s4400_s19 + $0xa8] sm:$0xff]   ;;  %s3171_s27 = sshll.u32 %s1308_s26, 1  ;;  %s3004_s8 = scalar_lea.vmem (%p3842_p6), %s4649_s3, %s3337_s12 }
  0xce   : > { %3386 = vmatpush3.bf16.msra.mxu1 %v3626_v13  ;;  %3359 = vmatprep.subr.bf16.mxu0 %v3627_v14  ;;  %v3643_v30 = vld [vmem:[%s4400_s19 + $0x70] sm:$0xff]   ;;  %v3647_v34 = vld [vmem:[%s4400_s19 + $0x78] sm:$0xff]   ;;  %v1349_v36 = vld [vmem:[%s4646_s0 + $0xc0] sm:$0xff]  ;;  %s1310_s4 = scalar_lea.vmem %s4648_s2, %s3171_s27 }
  0xcf   : > { %3387 = vmatprep.subr.bf16.mxu1 %v3628_v15  ;;  %v3644_v31 = vld [vmem:[%s4400_s19 + $0xf0] sm:$0xff]   ;;  %v3648_v37 = vld [vmem:[%s4400_s19 + $0xf8] sm:$0xff]   ;;  %v1350_v39 = vld [vmem:[%s4646_s0 + $0xc8] sm:$0xff]  ;;  %v3189_v46 = vcombine.high %v1341_v35, %v1349_v36  ;;  %v3188_v54 = vcombine.low %v1341_v35, %v1349_v36 }
  0xd0   : > { %v3645_v32 = vld [vmem:[%s4400_s19 + $0x30] sm:$0xff]   ;;  %v3649_v40 = vld [vmem:[%s4400_s19 + $0x38] sm:$0xff]   ;;  %v3651_v44 = vld [vmem:[%s4400_s19 + $0x140] sm:$0xff]   ;;  %v3191_v48 = vcombine.high %v1342_v38, %v1350_v39  ;;  %v3190_v56 = vcombine.low %v1342_v38, %v1350_v39 }
  0xd1   : > { %3360 = vmatpush3.bf16.msra.mxu0 %v3629_v16  ;;  %v3646_v33 = vld [vmem:[%s4400_s19 + $0xb0] sm:$0xff]   ;;  %v3650_v41 = vld [vmem:[%s4400_s19 + $0xb8] sm:$0xff]   ;;  %v3652_v45 = vld [vmem:[%s4400_s19 + $0x1c0] sm:$0xff]  }
  0xd2   : > { %3388 = vmatpush3.bf16.msra.mxu1 %v3630_v17  ;;  %3361 = vmatprep.subr.bf16.mxu0 %v3631_v18  ;;  %v3653_v47 = vld [vmem:[%s4400_s19 + $0x100] sm:$0xff]   ;;  %v3655_v50 = vld [vmem:[%s4400_s19 + $0x148] sm:$0xff]   ;;  %v3659_v55 = vld [vmem:[%s4400_s19 + $0x150] sm:$0xff]  }
  0xd3   : > { %3389 = vmatprep.subr.bf16.mxu1 %v3632_v19  ;;  %v3654_v49 = vld [vmem:[%s4400_s19 + $0x180] sm:$0xff]   ;;  %v3656_v51 = vld [vmem:[%s4400_s19 + $0x1c8] sm:$0xff]   ;;  %v3660_v57 = vld [vmem:[%s4400_s19 + $0x1d0] sm:$0xff]  }
  0xd4   : > { %v3657_v52 = vld [vmem:[%s4400_s19 + $0x108] sm:$0xff]   ;;  %v3661_v58 = vld [vmem:[%s4400_s19 + $0x110] sm:$0xff]   ;;  %v3663_v60 = vld [vmem:[%s4400_s19 + $0x158] sm:$0xff]  }
  0xd5   : > { %3362 = vmatpush3.bf16.msra.mxu0 %v3633_v20  ;;  %v3658_v53 = vld [vmem:[%s4400_s19 + $0x188] sm:$0xff]   ;;  %v3662_v59 = vld [vmem:[%s4400_s19 + $0x190] sm:$0xff]   ;;  %v3664_v61 = vld [vmem:[%s4400_s19 + $0x1d8] sm:$0xff]  }
  0xd6   : > { %3390 = vmatpush3.bf16.msra.mxu1 %v3634_v21  ;;  %3363 = vmatprep.subr.bf16.mxu0 %v3635_v22  ;;  %v3665_v62 = vld [vmem:[%s4400_s19 + $0x118] sm:$0xff]   ;;  %v3667_v0 = vld [vmem:[%s4400_s19 + $0x160] sm:$0xff]   ;;  %v3671_v4 = vld [vmem:[%s4400_s19 + $0x168] sm:$0xff]  }
  0xd7   : > { %3391 = vmatprep.subr.bf16.mxu1 %v3636_v23  ;;  %v3666_v63 = vld [vmem:[%s4400_s19 + $0x198] sm:$0xff]   ;;  %v3668_v1 = vld [vmem:[%s4400_s19 + $0x1e0] sm:$0xff]   ;;  %v3672_v5 = vld [vmem:[%s4400_s19 + $0x1e8] sm:$0xff]  }
  0xd8   : > { %v3669_v2 = vld [vmem:[%s4400_s19 + $0x120] sm:$0xff]   ;;  %v3673_v6 = vld [vmem:[%s4400_s19 + $0x128] sm:$0xff]   ;;  %v3675_v8 = vld [vmem:[%s4400_s19 + $0x170] sm:$0xff]  }
  0xd9   : > { %3364 = vmatpush3.bf16.msra.mxu0 %v3637_v24  ;;  %v3670_v3 = vld [vmem:[%s4400_s19 + $0x1a0] sm:$0xff]   ;;  %v3674_v7 = vld [vmem:[%s4400_s19 + $0x1a8] sm:$0xff]   ;;  %v3676_v9 = vld [vmem:[%s4400_s19 + $0x1f0] sm:$0xff]  }
  0xda   : > { %3392 = vmatpush3.bf16.msra.mxu1 %v3638_v25  ;;  %3365 = vmatprep.subr.bf16.mxu0 %v3639_v26  ;;  %v3677_v10 = vld [vmem:[%s4400_s19 + $0x130] sm:$0xff]   ;;  %v3679_v12 = vld [vmem:[%s4400_s19 + $0x178] sm:$0xff]   ;;  %v3683_v24 = vld [vmem:[%s4400_s19 + $0x240] sm:$0xff]  }
  0xdb   : > { %3393 = vmatprep.subr.bf16.mxu1 %v3640_v27  ;;  %v3678_v11 = vld [vmem:[%s4400_s19 + $0x1b0] sm:$0xff]   ;;  %v3680_v14 = vld [vmem:[%s4400_s19 + $0x1f8] sm:$0xff]   ;;  %v3684_v25 = vld [vmem:[%s4400_s19 + $0x2c0] sm:$0xff]  }
  0xdc   : > { %v1327_v13 = vld [vmem:[%s4646_s0 + $0x10] sm:$0xff]  ;;  %v3681_v15 = vld [vmem:[%s4400_s19 + $0x138] sm:$0xff]   ;;  %v3685_v26 = vld [vmem:[%s4400_s19 + $0x200] sm:$0xff]  }
  0xdd   : > { %3366 = vmatpush3.bf16.msra.mxu0 %v3641_v28  ;;  %v3682_v16 = vld [vmem:[%s4400_s19 + $0x1b8] sm:$0xff]   ;;  %v1335_v17 = vld [vmem:[%s4646_s0 + $0x50] sm:$0xff]  ;;  %v3686_v27 = vld [vmem:[%s4400_s19 + $0x280] sm:$0xff]  }
  0xde   : > { %3394 = vmatpush3.bf16.msra.mxu1 %v3642_v29  ;;  %3367 = vmatprep.subr.bf16.mxu0 %v3643_v30  ;;  %v1328_v18 = vld [vmem:[%s4646_s0 + $0x18] sm:$0xff]  ;;  %v3176_v20 = vcombine.low %v1327_v13, %v1335_v17  ;;  %v3177_v21 = vcombine.high %v1327_v13, %v1335_v17  ;;  %v3687_v28 = vld [vmem:[%s4400_s19 + $0x248] sm:$0xff]   ;;  %v3691_v36 = vld [vmem:[%s4400_s19 + $0x250] sm:$0xff]  }
  0xdf   : > { %3395 = vmatprep.subr.bf16.mxu1 %v3644_v31  ;;  %v1336_v19 = vld [vmem:[%s4646_s0 + $0x58] sm:$0xff]  ;;  %v3688_v29 = vld [vmem:[%s4400_s19 + $0x2c8] sm:$0xff]   ;;  %v1353_v17 = vld [vmem:[%s4646_s0 + $0xe0] sm:$0xff] }
  0xe0   : > { %v3178_v22 = vcombine.low %v1328_v18, %v1336_v19  ;;  %v3179_v23 = vcombine.high %v1328_v18, %v1336_v19  ;;  %v3689_v30 = vld [vmem:[%s4400_s19 + $0x208] sm:$0xff]   ;;  %v1344_v38 = vld [vmem:[%s4646_s0 + $0x98] sm:$0xff] }
  0xe1   : > { %3368 = vmatpush3.bf16.msra.mxu0 %v3645_v32  ;;  %v3690_v31 = vld [vmem:[%s4400_s19 + $0x288] sm:$0xff]   ;;  %v1343_v32 = vld [vmem:[%s4646_s0 + $0x90] sm:$0xff]  ;;  %v1352_v39 = vld [vmem:[%s4646_s0 + $0xd8] sm:$0xff] }
  0xe2   : > { %3396 = vmatpush3.bf16.msra.mxu1 %v3646_v33  ;;  %3369 = vmatprep.subr.bf16.mxu0 %v3647_v34  ;;  %v1351_v33 = vld [vmem:[%s4646_s0 + $0xd0] sm:$0xff]  ;;  %v3720_v13 = vld [vmem:[%s4400_s19 + $0x3c8] sm:$0xff]  }
  0xe3   : > { %3397 = vmatprep.subr.bf16.mxu1 %v3648_v37  ;;  %v3193_v34 = vcombine.high %v1343_v32, %v1351_v33  ;;  %v3192_v35 = vcombine.low %v1343_v32, %v1351_v33  ;;  %v3692_v37 = vld [vmem:[%s4400_s19 + $0x2d0] sm:$0xff]   ;;  %v3731_v32 = vld [vmem:[%s4400_s19 + $0x360] sm:$0xff]  }
  0xe4   : > { %v3732_v33 = vld [vmem:[%s4400_s19 + $0x3e0] sm:$0xff]  }
  0xe5   : > { %3370 = vmatpush3.bf16.msra.mxu0 %v3649_v40  ;;  %v3195_v40 = vcombine.high %v1344_v38, %v1352_v39 }
  0xe6   : > { %3398 = vmatpush3.bf16.msra.mxu1 %v3650_v41  ;;  %3411 = vmatprep.subr.bf16.mxu0 %v3651_v44  ;;  %v3693_v41 = vld [vmem:[%s4400_s19 + $0x210] sm:$0xff]   ;;  %v3695_v44 = vld [vmem:[%s4400_s19 + $0x258] sm:$0xff]  }
  0xe7   : > { %3439 = vmatprep.subr.bf16.mxu1 %v3652_v45  ;;  %v3696_v45 = vld [vmem:[%s4400_s19 + $0x2d8] sm:$0xff]  }
  0xe8   : > { %2574 = vmatmul.mubr.bf16.vlgmr.msra.gmra.mrb[0].mxu0 %v3172_v42  ;;  %v3194_v42 = vcombine.low %v1344_v38, %v1352_v39  ;;  %v3737_v38 = vld [vmem:[%s4400_s19 + $0x328] sm:$0xff]  }
  0xe9   : > { %2623 = vmatmul.mubr.bf16.vlgmr.msra.gmra.mrb[0].mxu1 %v3174_v43  ;;  %3412 = vmatpush3.bf16.msra.mxu0 %v3653_v47  ;;  %v3694_v43 = vld [vmem:[%s4400_s19 + $0x290] sm:$0xff]   ;;  %v3698_v47 = vld [vmem:[%s4400_s19 + $0x298] sm:$0xff]   ;;  %v3738_v39 = vld [vmem:[%s4400_s19 + $0x3a8] sm:$0xff]  }
  0xea   : > { %3440 = vmatpush3.bf16.msra.mxu1 %v3654_v49  ;;  %2581 = vmatprep.mubr.bf16.mxu0 %v3189_v46  ;;  %v3697_v46 = vld [vmem:[%s4400_s19 + $0x218] sm:$0xff]   ;;  %v3700_v49 = vld [vmem:[%s4400_s19 + $0x2e0] sm:$0xff]  }
  0xeb   : > { %3413 = vmatprep.subr.bf16.mxu0 %v3655_v50  ;;  %2630 = vmatprep.mubr.bf16.mxu1 %v3191_v48  ;;  %v3699_v48 = vld [vmem:[%s4400_s19 + $0x260] sm:$0xff]  }
  0xec   : > { %3441 = vmatprep.subr.bf16.mxu1 %v3656_v51  ;;  %v3701_v50 = vld [vmem:[%s4400_s19 + $0x220] sm:$0xff]  }
  0xed   : > { %3414 = vmatpush3.bf16.msra.mxu0 %v3657_v52  ;;  %v3702_v51 = vld [vmem:[%s4400_s19 + $0x2a0] sm:$0xff]   ;;  %v3703_v52 = vld [vmem:[%s4400_s19 + $0x268] sm:$0xff]  }
  0xee   : > { %3442 = vmatpush3.bf16.msra.mxu1 %v3658_v53  ;;  %3415 = vmatprep.subr.bf16.mxu0 %v3659_v55  ;;  %v3704_v53 = vld [vmem:[%s4400_s19 + $0x2e8] sm:$0xff]  }
  0xef   : > { %3443 = vmatprep.subr.bf16.mxu1 %v3660_v57  ;;  %v3706_v55 = vld [vmem:[%s4400_s19 + $0x2a8] sm:$0xff]   ;;  %v3708_v57 = vld [vmem:[%s4400_s19 + $0x2f0] sm:$0xff]  }
  0xf0   : > { %2582 = vmatmul.mubr.bf16.gmra.mrb[4].mxu0 %v3188_v54  ;;  %v3705_v54 = vld [vmem:[%s4400_s19 + $0x228] sm:$0xff]  }
  0xf1   : > { %3416 = vmatpush3.bf16.msra.mxu0 %v3661_v58  ;;  %2631 = vmatmul.mubr.bf16.gmra.mrb[4].mxu1 %v3190_v56  ;;  %v3707_v56 = vld [vmem:[%s4400_s19 + $0x270] sm:$0xff]  }
  0xf2   : > { %3444 = vmatpush3.bf16.msra.mxu1 %v3662_v59  ;;  %3417 = vmatprep.subr.bf16.mxu0 %v3663_v60  ;;  %v3709_v58 = vld [vmem:[%s4400_s19 + $0x230] sm:$0xff]   ;;  %v3711_v60 = vld [vmem:[%s4400_s19 + $0x278] sm:$0xff]  }
  0xf3   : > { %3445 = vmatprep.subr.bf16.mxu1 %v3664_v61  ;;  %2671 = vmatprep.mubr.bf16.mxu0 %v3177_v21  ;;  %v3710_v59 = vld [vmem:[%s4400_s19 + $0x2b0] sm:$0xff]   ;;  %v3712_v61 = vld [vmem:[%s4400_s19 + $0x2f8] sm:$0xff]  }
  0xf4   : > { %2720 = vmatprep.mubr.bf16.mxu1 %v3179_v23  ;;  %v3724_v21 = vld [vmem:[%s4400_s19 + $0x3d0] sm:$0xff]   ;;  %v1354_v23 = vld [vmem:[%s4646_s0 + $0xe8] sm:$0xff] }
  0xf5   : > { %3418 = vmatpush3.bf16.msra.mxu0 %v3665_v62  ;;  %v3713_v62 = vld [vmem:[%s4400_s19 + $0x238] sm:$0xff]  }
  0xf6   : > { %3446 = vmatpush3.bf16.msra.mxu1 %v3666_v63  ;;  %3419 = vmatprep.subr.bf16.mxu0 %v3667_v0  ;;  %v3714_v63 = vld [vmem:[%s4400_s19 + $0x2b8] sm:$0xff]   ;;  %v1329_v0 = vld [vmem:[%s4646_s0 + $0x20] sm:$0xff] }
  0xf7   : > { %3447 = vmatprep.subr.bf16.mxu1 %v3668_v1  ;;  %v1337_v1 = vld [vmem:[%s4646_s0 + $0x60] sm:$0xff] }
  0xf9   : > { %3420 = vmatpush3.bf16.msra.mxu0 %v3669_v2  ;;  %v3180_v2 = vcombine.low %v1329_v0, %v1337_v1 }
  0xfa   : > { %3448 = vmatpush3.bf16.msra.mxu1 %v3670_v3  ;;  %3421 = vmatprep.subr.bf16.mxu0 %v3671_v4  ;;  %v3181_v3 = vcombine.high %v1329_v0, %v1337_v1  ;;  %v1330_v4 = vld [vmem:[%s4646_s0 + $0x28] sm:$0xff] }
  0xfb   : > { %3449 = vmatprep.subr.bf16.mxu1 %v3672_v5  ;;  %v1338_v5 = vld [vmem:[%s4646_s0 + $0x68] sm:$0xff] }
  0xfd   : > { %3422 = vmatpush3.bf16.msra.mxu0 %v3673_v6  ;;  %v3182_v6 = vcombine.low %v1330_v4, %v1338_v5 }
  0xfe   : > { %3450 = vmatpush3.bf16.msra.mxu1 %v3674_v7  ;;  %3423 = vmatprep.subr.bf16.mxu0 %v3675_v8  ;;  %v3183_v7 = vcombine.high %v1330_v4, %v1338_v5  ;;  %v3715_v8 = vld [vmem:[%s4400_s19 + $0x340] sm:$0xff]  }
  0xff   : > { %3451 = vmatprep.subr.bf16.mxu1 %v3676_v9  ;;  %v3716_v9 = vld [vmem:[%s4400_s19 + $0x3c0] sm:$0xff]  }
 0x101   : > { %3424 = vmatpush3.bf16.msra.mxu0 %v3677_v10  ;;  %v3717_v10 = vld [vmem:[%s4400_s19 + $0x300] sm:$0xff]  }
 0x102   : > { %3452 = vmatpush3.bf16.msra.mxu1 %v3678_v11  ;;  %3425 = vmatprep.subr.bf16.mxu0 %v3679_v12  ;;  %v3718_v11 = vld [vmem:[%s4400_s19 + $0x380] sm:$0xff]   ;;  %v3719_v12 = vld [vmem:[%s4400_s19 + $0x348] sm:$0xff]  }
 0x103   : > { %3453 = vmatprep.subr.bf16.mxu1 %v3680_v14  ;;  %v3721_v14 = vld [vmem:[%s4400_s19 + $0x308] sm:$0xff]  }
 0x105   : > { %3426 = vmatpush3.bf16.msra.mxu0 %v3681_v15  ;;  %v3722_v15 = vld [vmem:[%s4400_s19 + $0x388] sm:$0xff]  }
 0x106   : > { %3454 = vmatpush3.bf16.msra.mxu1 %v3682_v16  ;;  %3467 = vmatprep.subr.bf16.mxu0 %v3683_v24  ;;  %v1345_v16 = vld [vmem:[%s4646_s0 + $0xa0] sm:$0xff] }
 0x107   : > { %3495 = vmatprep.subr.bf16.mxu1 %v3684_v25  ;;  %v3197_v18 = vcombine.high %v1345_v16, %v1353_v17  ;;  %v3196_v19 = vcombine.low %v1345_v16, %v1353_v17  ;;  %v3725_v25 = vld [vmem:[%s4400_s19 + $0x310] sm:$0xff]  }
 0x108   : > { %2672 = vmatmul.mubr.bf16.vlgmr.msra.gmra.mrb[8].mxu0 %v3176_v20  ;;  %v3723_v20 = vld [vmem:[%s4400_s19 + $0x350] sm:$0xff]  }
 0x109   : > { %2721 = vmatmul.mubr.bf16.vlgmr.msra.gmra.mrb[8].mxu1 %v3178_v22  ;;  %3468 = vmatpush3.bf16.msra.mxu0 %v3685_v26  ;;  %v1346_v22 = vld [vmem:[%s4646_s0 + $0xa8] sm:$0xff] }
 0x10a   : > { %3496 = vmatpush3.bf16.msra.mxu1 %v3686_v27  ;;  %3469 = vmatprep.subr.bf16.mxu0 %v3687_v28  ;;  %v3199_v24 = vcombine.high %v1346_v22, %v1354_v23  ;;  %v3198_v26 = vcombine.low %v1346_v22, %v1354_v23  ;;  %v3726_v27 = vld [vmem:[%s4400_s19 + $0x390] sm:$0xff]   ;;  %v3727_v28 = vld [vmem:[%s4400_s19 + $0x358] sm:$0xff]  }
 0x10b   : > { %3497 = vmatprep.subr.bf16.mxu1 %v3688_v29  ;;  %2679 = vmatprep.mubr.bf16.mxu0 %v3193_v34  ;;  %v3728_v29 = vld [vmem:[%s4400_s19 + $0x3d8] sm:$0xff]   ;;  %v3733_v34 = vld [vmem:[%s4400_s19 + $0x320] sm:$0xff]  }
 0x10c   : > { %2728 = vmatprep.mubr.bf16.mxu1 %v3195_v40  ;;  %v3739_v40 = vld [vmem:[%s4400_s19 + $0x370] sm:$0xff]  }
 0x10d   : > { %3470 = vmatpush3.bf16.msra.mxu0 %v3689_v30  ;;  %v3729_v30 = vld [vmem:[%s4400_s19 + $0x318] sm:$0xff]  }
 0x10e   : > { %3498 = vmatpush3.bf16.msra.mxu1 %v3690_v31  ;;  %3471 = vmatprep.subr.bf16.mxu0 %v3691_v36  ;;  %v3730_v31 = vld [vmem:[%s4400_s19 + $0x398] sm:$0xff]   ;;  %v3735_v36 = vld [vmem:[%s4400_s19 + $0x368] sm:$0xff]  }
 0x10f   : > { %3499 = vmatprep.subr.bf16.mxu1 %v3692_v37  ;;  %v3736_v37 = vld [vmem:[%s4400_s19 + $0x3e8] sm:$0xff]  }
 0x110   : > { %2680 = vmatmul.mubr.bf16.gmra.mrb[12].mxu0 %v3192_v35  ;;  %v3734_v35 = vld [vmem:[%s4400_s19 + $0x3a0] sm:$0xff]  }
 0x111   : > { %3472 = vmatpush3.bf16.msra.mxu0 %v3693_v41  ;;  %2729 = vmatmul.mubr.bf16.gmra.mrb[12].mxu1 %v3194_v42  ;;  %v3740_v41 = vld [vmem:[%s4400_s19 + $0x3f0] sm:$0xff]  }
 0x112   : > { %3500 = vmatpush3.bf16.msra.mxu1 %v3694_v43  ;;  %3473 = vmatprep.subr.bf16.mxu0 %v3695_v44  ;;  %v3741_v42 = vld [vmem:[%s4400_s19 + $0x330] sm:$0xff]   ;;  %v3743_v44 = vld [vmem:[%s4400_s19 + $0x378] sm:$0xff]  }
 0x113   : > { %3501 = vmatprep.subr.bf16.mxu1 %v3696_v45  ;;  %2769 = vmatprep.mubr.bf16.mxu0 %v3181_v3  ;;  %v3742_v43 = vld [vmem:[%s4400_s19 + $0x3b0] sm:$0xff]   ;;  %v3744_v45 = vld [vmem:[%s4400_s19 + $0x3f8] sm:$0xff]  }
 0x114   : > { %2818 = vmatprep.mubr.bf16.mxu1 %v3183_v7 }
 0x115   : > { %3474 = vmatpush3.bf16.msra.mxu0 %v3697_v46  ;;  %v3745_v46 = vld [vmem:[%s4400_s19 + $0x338] sm:$0xff]  }
 0x116   : > { %3502 = vmatpush3.bf16.msra.mxu1 %v3698_v47  ;;  %3475 = vmatprep.subr.bf16.mxu0 %v3699_v48  ;;  %v3746_v47 = vld [vmem:[%s4400_s19 + $0x3b8] sm:$0xff]   ;;  %v1331_v48 = vld [vmem:[%s4646_s0 + $0x30] sm:$0xff] }
 0x117   : > { %3503 = vmatprep.subr.bf16.mxu1 %v3700_v49  ;;  %v1339_v49 = vld [vmem:[%s4646_s0 + $0x70] sm:$0xff] }
 0x119   : > { %3476 = vmatpush3.bf16.msra.mxu0 %v3701_v50  ;;  %v1332_v50 = vld [vmem:[%s4646_s0 + $0x38] sm:$0xff] }
 0x11a   : > { %3504 = vmatpush3.bf16.msra.mxu1 %v3702_v51  ;;  %3477 = vmatprep.subr.bf16.mxu0 %v3703_v52  ;;  %v3184_v51 = vcombine.low %v1331_v48, %v1339_v49  ;;  %v3185_v52 = vcombine.high %v1331_v48, %v1339_v49 }
 0x11b   : > { %3505 = vmatprep.subr.bf16.mxu1 %v3704_v53  ;;  %v1340_v53 = vld [vmem:[%s4646_s0 + $0x78] sm:$0xff] }
 0x11d   : > { %3478 = vmatpush3.bf16.msra.mxu0 %v3705_v54  ;;  %v1347_v54 = vld [vmem:[%s4646_s0 + $0xb0] sm:$0xff] }
 0x11e   : > { %3506 = vmatpush3.bf16.msra.mxu1 %v3706_v55  ;;  %3479 = vmatprep.subr.bf16.mxu0 %v3707_v56  ;;  %v1355_v55 = vld [vmem:[%s4646_s0 + $0xf0] sm:$0xff]  ;;  %v3186_v56 = vcombine.low %v1332_v50, %v1340_v53 }
 0x11f   : > { %3507 = vmatprep.subr.bf16.mxu1 %v3708_v57  ;;  %v3187_v57 = vcombine.high %v1332_v50, %v1340_v53 }
 0x121   : > { %3480 = vmatpush3.bf16.msra.mxu0 %v3709_v58  ;;  %v3201_v58 = vcombine.high %v1347_v54, %v1355_v55 }
 0x122   : > { %3508 = vmatpush3.bf16.msra.mxu1 %v3710_v59  ;;  %3481 = vmatprep.subr.bf16.mxu0 %v3711_v60  ;;  %v1348_v59 = vld [vmem:[%s4646_s0 + $0xb8] sm:$0xff] }
 0x123   : > { %3509 = vmatprep.subr.bf16.mxu1 %v3712_v61  ;;  %v1356_v60 = vld [vmem:[%s4646_s0 + $0xf8] sm:$0xff] }
 0x124   : > { %v3203_v61 = vcombine.high %v1348_v59, %v1356_v60 }
 0x125   : > { %3482 = vmatpush3.bf16.msra.mxu0 %v3713_v62  ;;  %v3200_v62 = vcombine.low %v1347_v54, %v1355_v55 }
 0x126   : > { %3510 = vmatpush3.bf16.msra.mxu1 %v3714_v63  ;;  %3523 = vmatprep.subr.bf16.mxu0 %v3715_v8  ;;  %v3202_v63 = vcombine.low %v1348_v59, %v1356_v60 }
 0x127   : > { %3551 = vmatprep.subr.bf16.mxu1 %v3716_v9 }
 0x128   : > { %2770 = vmatmul.mubr.bf16.vlgmr.msra.gmra.mrb[16].mxu0 %v3180_v2 }
 0x129   : > { %2819 = vmatmul.mubr.bf16.vlgmr.msra.gmra.mrb[16].mxu1 %v3182_v6  ;;  %3524 = vmatpush3.bf16.msra.mxu0 %v3717_v10 }
 0x12a   : > { %3552 = vmatpush3.bf16.msra.mxu1 %v3718_v11  ;;  %3525 = vmatprep.subr.bf16.mxu0 %v3719_v12 }
 0x12b   : > { %3553 = vmatprep.subr.bf16.mxu1 %v3720_v13  ;;  %2777 = vmatprep.mubr.bf16.mxu0 %v3197_v18 }
 0x12c   : > { %2826 = vmatprep.mubr.bf16.mxu1 %v3199_v24 }
 0x12d   : > { %3526 = vmatpush3.bf16.msra.mxu0 %v3721_v14 }
 0x12e   : > { %3554 = vmatpush3.bf16.msra.mxu1 %v3722_v15  ;;  %3527 = vmatprep.subr.bf16.mxu0 %v3723_v20 }
 0x12f   : > { %3555 = vmatprep.subr.bf16.mxu1 %v3724_v21 }
 0x130   : > { %2778 = vmatmul.mubr.bf16.gmra.mrb[20].mxu0 %v3196_v19 }
 0x131   : > { %3528 = vmatpush3.bf16.msra.mxu0 %v3725_v25  ;;  %2827 = vmatmul.mubr.bf16.gmra.mrb[20].mxu1 %v3198_v26 }
 0x132   : > { %3556 = vmatpush3.bf16.msra.mxu1 %v3726_v27  ;;  %3529 = vmatprep.subr.bf16.mxu0 %v3727_v28 }
 0x133   : > { %3557 = vmatprep.subr.bf16.mxu1 %v3728_v29  ;;  %2867 = vmatprep.mubr.bf16.mxu0 %v3185_v52 }
 0x134   : > { %2916 = vmatprep.mubr.bf16.mxu1 %v3187_v57 }
 0x135   : > { %3530 = vmatpush3.bf16.msra.mxu0 %v3729_v30 }
 0x136   : > { %3558 = vmatpush3.bf16.msra.mxu1 %v3730_v31  ;;  %3531 = vmatprep.subr.bf16.mxu0 %v3731_v32 }
 0x137   : > { %3559 = vmatprep.subr.bf16.mxu1 %v3732_v33 }
 0x139   : > { %3532 = vmatpush3.bf16.msra.mxu0 %v3733_v34 }
 0x13a   : > { %3560 = vmatpush3.bf16.msra.mxu1 %v3734_v35  ;;  %3533 = vmatprep.subr.bf16.mxu0 %v3735_v36 }
 0x13b   : > { %3561 = vmatprep.subr.bf16.mxu1 %v3736_v37 }
 0x13d   : > { %3534 = vmatpush3.bf16.msra.mxu0 %v3737_v38 }
 0x13e   : > { %3562 = vmatpush3.bf16.msra.mxu1 %v3738_v39  ;;  %3535 = vmatprep.subr.bf16.mxu0 %v3739_v40 }
 0x13f   : > { %3563 = vmatprep.subr.bf16.mxu1 %v3740_v41 }
 0x141   : > { %3536 = vmatpush3.bf16.msra.mxu0 %v3741_v42 }
 0x142   : > { %3564 = vmatpush3.bf16.msra.mxu1 %v3742_v43  ;;  %3537 = vmatprep.subr.bf16.mxu0 %v3743_v44 }
 0x143   : > { %3565 = vmatprep.subr.bf16.mxu1 %v3744_v45 }
 0x145   : > { %3538 = vmatpush3.bf16.msra.mxu0 %v3745_v46 }
 0x146   : > { %3566 = vmatpush3.bf16.msra.mxu1 %v3746_v47 }
 0x148   : > { %2868 = vmatmul.mubr.bf16.vlgmr.msra.gmra.mrb[24].mxu0 %v3184_v51 }
 0x149   : > { %2917 = vmatmul.mubr.bf16.vlgmr.msra.gmra.mrb[24].mxu1 %v3186_v56  ;;  %2875 = vmatprep.mubr.bf16.mxu0 %v3201_v58 }
 0x14a   : > { %2924 = vmatprep.mubr.bf16.mxu1 %v3203_v61 }
 0x150   : > { %2876 = vmatmul.mubr.bf16.gmra.mrb[28].mxu0 %v3200_v62 }
 0x151   : > { %2925 = vmatmul.mubr.bf16.gmra.mrb[28].mxu1 %v3202_v63 }
 0x1bb   : > { %v3371_v0 = vpop.f32.mrb[0].mxu0 }
 0x1bc   : > { %v3399_v1 = vpop.f32.mrb[0].mxu1  ;;  %v3372_v2 = vpop.f32.mrb[1].mxu0 }
 0x1bd   : > { %v3373_v3 = vadd.f32 %v3372_v2, %v3371_v0  ;;  %v3400_v4 = vpop.f32.mrb[1].mxu1  ;;  %v3374_v5 = vpop.f32.mrb[2].mxu0 }
 0x1be   : > { %v3401_v6 = vadd.f32 %v3400_v4, %v3399_v1  ;;  %v3402_v7 = vpop.f32.mrb[2].mxu1  ;;  %v3375_v8 = vpop.f32.mrb[3].mxu0 }
 0x1bf   : > { %v3376_v9 = vadd.f32 %v3375_v8, %v3374_v5  ;;  %v3403_v10 = vpop.f32.mrb[3].mxu1 }
 0x1c0   : > { %v2625_v11 = vadd.f32 %v3401_v6, %v3373_v3  ;;  %v3404_v12 = vadd.f32 %v3403_v10, %v3402_v7 }
 0x1c2   : > { %v2628_v13 = vadd.f32 %v3404_v12, %v3376_v9 }
 0x1c3   : > { %v3377_v14 = vpop.f32.mrb[4].mxu0 }
 0x1c4   : > { %v3405_v15 = vpop.f32.mrb[4].mxu1  ;;  %v3378_v16 = vpop.f32.mrb[5].mxu0 }
 0x1c5   : > { %v3379_v17 = vadd.f32 %v3378_v16, %v3377_v14  ;;  %v3406_v18 = vpop.f32.mrb[5].mxu1  ;;  %v3380_v19 = vpop.f32.mrb[6].mxu0 }
 0x1c6   : > { %v3407_v20 = vadd.f32 %v3406_v18, %v3405_v15  ;;  %v3408_v21 = vpop.f32.mrb[6].mxu1  ;;  %v3381_v22 = vpop.f32.mrb[7].mxu0 }
 0x1c7   : > { %v3382_v23 = vadd.f32 %v3381_v22, %v3380_v19  ;;  %v3409_v24 = vpop.f32.mrb[7].mxu1 }
 0x1c8   : > { %v2633_v25 = vadd.f32 %v3407_v20, %v3379_v17  ;;  %v3410_v26 = vadd.f32 %v3409_v24, %v3408_v21 }
 0x1ca   : > { %v2636_v27 = vadd.f32 %v3410_v26, %v3382_v23 }
 0x1db   : > { %v3427_v28 = vpop.f32.mrb[8].mxu0 }
 0x1dc   : > { %v3455_v29 = vpop.f32.mrb[8].mxu1  ;;  %v3428_v30 = vpop.f32.mrb[9].mxu0 }
 0x1dd   : > { %v3456_v31 = vpop.f32.mrb[9].mxu1  ;;  %v3429_v32 = vadd.f32 %v3428_v30, %v3427_v28  ;;  %v3430_v34 = vpop.f32.mrb[10].mxu0  ;;  %v2949_v28 = vlaneseq }
 0x1de   : > { %v3457_v33 = vadd.f32 %v3456_v31, %v3455_v29  ;;  %v3458_v35 = vpop.f32.mrb[10].mxu1  ;;  %v3431_v36 = vpop.f32.mrb[11].mxu0 }
 0x1df   : > { %v3459_v37 = vpop.f32.mrb[11].mxu1  ;;  %v2674_v38 = vadd.f32 %v3429_v32, %v2625_v11  ;;  %v3432_v39 = vadd.f32 %v3431_v36, %v3430_v34  ;;  %v2950_v29 = vshrl.u32 %v2949_v28, 7  ;;  %v2944_v34 = vld [vmem:[%s1310_s4] sm:$0x3] }
 0x1e0   : > { %v3460_v40 = vadd.f32 %v3459_v37, %v3458_v35 }
 0x1e1   : > { %v2723_v41 = vadd.f32 %v3457_v33, %v2674_v38  ;;  %v2677_v42 = vadd.f32 %v3432_v39, %v2628_v13  ;;  %v2951_v31 = vsub.s32 0, %v2950_v29  ;;  %v2959_v37 = vsub.s32 1, %v2950_v29 }
 0x1e3   : > { %v2726_v43 = vadd.f32 %v3460_v40, %v2677_v42  ;;  %v3433_v44 = vpop.f32.mrb[12].mxu0 }
 0x1e4   : > { %v3434_v45 = vpop.f32.mrb[13].mxu0  ;;  %v3461_v50 = vpop.f32.mrb[12].mxu1 }
 0x1e5   : > { %v3435_v46 = vadd.f32 %v3434_v45, %v3433_v44  ;;  %v3436_v47 = vpop.f32.mrb[14].mxu0  ;;  %v3462_v52 = vpop.f32.mrb[13].mxu1 }
 0x1e6   : > { %v3437_v48 = vpop.f32.mrb[15].mxu0  ;;  %v3463_v54 = vadd.f32 %v3462_v52, %v3461_v50  ;;  %v3464_v55 = vpop.f32.mrb[14].mxu1 }
 0x1e7   : > { %v2682_v49 = vadd.f32 %v3435_v46, %v2633_v25  ;;  %v3438_v51 = vadd.f32 %v3437_v48, %v3436_v47  ;;  %v3465_v56 = vpop.f32.mrb[15].mxu1  ;;  %v2960_v48 = vrot.slane %v2944_v34, %v2959_v37 }
 0x1e8   : > { %v3466_v58 = vadd.f32 %v3465_v56, %v3464_v55 }
 0x1e9   : > { %v2685_v53 = vadd.f32 %v3438_v51, %v2636_v27  ;;  %v2731_v57 = vadd.f32 %v3463_v54, %v2682_v49 }
 0x1eb   : > { %v2734_v59 = vadd.f32 %v3466_v58, %v2685_v53 }
 0x1fb   : > { %v3483_v60 = vpop.f32.mrb[16].mxu0 }
 0x1fc   : > { %v3511_v61 = vpop.f32.mrb[16].mxu1  ;;  %v3484_v62 = vpop.f32.mrb[17].mxu0 }
 0x1fd   : > { %v3485_v63 = vadd.f32 %v3484_v62, %v3483_v60  ;;  %v3512_v0 = vpop.f32.mrb[17].mxu1  ;;  %v3486_v1 = vpop.f32.mrb[18].mxu0 }
 0x1fe   : > { %v3513_v2 = vadd.f32 %v3512_v0, %v3511_v61  ;;  %v3514_v3 = vpop.f32.mrb[18].mxu1  ;;  %v3487_v4 = vpop.f32.mrb[19].mxu0 }
 0x1ff   : > { %v2772_v5 = vadd.f32 %v3485_v63, %v2723_v41  ;;  %v3488_v6 = vadd.f32 %v3487_v4, %v3486_v1  ;;  %v3515_v7 = vpop.f32.mrb[19].mxu1 }
 0x200   : > { %v3516_v8 = vadd.f32 %v3515_v7, %v3514_v3 }
 0x201   : > { %v2821_v9 = vadd.f32 %v3513_v2, %v2772_v5  ;;  %v2775_v10 = vadd.f32 %v3488_v6, %v2726_v43  ;;  %v2952_v43 = vrot.slane %v2944_v34, %v2951_v31 }
 0x203   : > { %v2824_v11 = vadd.f32 %v3516_v8, %v2775_v10  ;;  %v3489_v12 = vpop.f32.mrb[20].mxu0 }
 0x204   : > { %v3490_v13 = vpop.f32.mrb[21].mxu0  ;;  %v3517_v16 = vpop.f32.mrb[20].mxu1 }
 0x205   : > { %v3491_v14 = vadd.f32 %v3490_v13, %v3489_v12  ;;  %v3492_v15 = vpop.f32.mrb[22].mxu0  ;;  %v3518_v20 = vpop.f32.mrb[21].mxu1 }
 0x206   : > { %v3493_v17 = vpop.f32.mrb[23].mxu0  ;;  %v3519_v21 = vadd.f32 %v3518_v20, %v3517_v16  ;;  %v3520_v22 = vpop.f32.mrb[22].mxu1 }
 0x207   : > { %v2780_v18 = vadd.f32 %v3491_v14, %v2731_v57  ;;  %v3494_v19 = vadd.f32 %v3493_v17, %v3492_v15  ;;  %v3521_v24 = vpop.f32.mrb[23].mxu1 }
 0x208   : > { %v3522_v26 = vadd.f32 %v3521_v24, %v3520_v22 }
 0x209   : > { %v2783_v23 = vadd.f32 %v3494_v19, %v2734_v59  ;;  %v2829_v25 = vadd.f32 %v3519_v21, %v2780_v18 }
 0x20b   : > { %v2832_v27 = vadd.f32 %v3522_v26, %v2783_v23 }
 0x21b   : > { %v3539_v30 = vpop.f32.mrb[24].mxu0 }
 0x21c   : > { %v3567_v32 = vpop.f32.mrb[24].mxu1  ;;  %v3540_v33 = vpop.f32.mrb[25].mxu0 }
 0x21d   : > { %v3541_v35 = vadd.f32 %v3540_v33, %v3539_v30  ;;  %v3568_v36 = vpop.f32.mrb[25].mxu1  ;;  %v3542_v38 = vpop.f32.mrb[26].mxu0 }
 0x21e   : > { %v3569_v39 = vadd.f32 %v3568_v36, %v3567_v32  ;;  %v3570_v40 = vpop.f32.mrb[26].mxu1  ;;  %v3543_v41 = vpop.f32.mrb[27].mxu0 }
 0x21f   : > { %v2870_v42 = vadd.f32 %v3541_v35, %v2821_v9  ;;  %v3544_v44 = vadd.f32 %v3543_v41, %v3542_v38  ;;  %v3571_v45 = vpop.f32.mrb[27].mxu1 }
 0x220   : > { %v3572_v46 = vadd.f32 %v3571_v45, %v3570_v40 }
 0x221   : > { %v2919_v47 = vadd.f32 %v3569_v39, %v2870_v42  ;;  %v2873_v49 = vadd.f32 %v3544_v44, %v2824_v11 }
 0x223   : > { %v2953_v50 = vmul.f32 %v2952_v43, %v2919_v47  ;;  %v2922_v51 = vadd.f32 %v3572_v46, %v2873_v49  ;;  %v3545_v52 = vpop.f32.mrb[28].mxu0 }
 0x224   : > { %v3573_v53 = vpop.f32.mrb[28].mxu1  ;;  %v3546_v54 = vpop.f32.mrb[29].mxu0 }
 0x225   : > { %v2961_v55 = vadd.f32 %v2960_v48, %v2953_v50  ;;  %v2954_v56 = vmul.f32 %v2952_v43, %v2922_v51  ;;  %v3547_v57 = vadd.f32 %v3546_v54, %v3545_v52  ;;  %v3574_v58 = vpop.f32.mrb[29].mxu1  ;;  %v3548_v59 = vpop.f32.mrb[30].mxu0 }
 0x226   : > { %v3575_v60 = vadd.f32 %v3574_v58, %v3573_v53  ;;  %v3576_v61 = vpop.f32.mrb[30].mxu1  ;;  %v3549_v62 = vpop.f32.mrb[31].mxu0 }
 0x227   : > { %v2965_v63 = vmul.f32 0.2, %v2961_v55  ;;  %v2962_v0 = vadd.f32 %v2960_v48, %v2954_v56  ;;  %v2878_v1 = vadd.f32 %v3547_v57, %v2829_v25  ;;  %v3550_v2 = vadd.f32 %v3549_v62, %v3548_v59  ;;  %v3577_v3 = vpop.f32.mrb[31].mxu1 }
 0x228   : > { %v3578_v4 = vadd.f32 %v3577_v3, %v3576_v61 }
 0x229   : > { %v2966_v5 = vmul.f32 0.2, %v2962_v0  ;;  %v2927_v6 = vadd.f32 %v3575_v60, %v2878_v1  ;;  %v2881_v7 = vadd.f32 %v3550_v2, %v2832_v27  ;;  %v2969_v8 = vmax.f32 %v2961_v55, %v2965_v63 }
 0x22b   : > { %v2970_v9 = vmax.f32 %v2962_v0, %v2966_v5  ;;  %v2955_v10 = vmul.f32 %v2952_v43, %v2927_v6  ;;  %v2930_v11 = vadd.f32 %v3578_v4, %v2881_v7 }
 0x22d   : > { %v3347_v12 = vpack.c.bf16 %v2970_v9, %v2969_v8  ;;  %v2963_v13 = vadd.f32 %v2960_v48, %v2955_v10  ;;  %v2956_v14 = vmul.f32 %v2952_v43, %v2930_v11 }
 0x22f   : > { %3348 = vst [vmem:[%s1293_s6] sm:$0xff] %v3347_v12   ;;  %v2967_v15 = vmul.f32 0.2, %v2963_v13  ;;  %v2964_v16 = vadd.f32 %v2960_v48, %v2956_v14 }
 0x231   : > { %v2968_v17 = vmul.f32 0.2, %v2964_v16  ;;  %v2971_v18 = vmax.f32 %v2963_v13, %v2967_v15  ;;  %2999 = sbr.rel (!%p3842_p6) target bundleno = 576 (0x240), region = 85 }
 0x233   : > { %v2972_v19 = vmax.f32 %v2964_v16, %v2968_v17 }
 0x235   : > { %v3352_v20 = vpack.c.bf16 %v2972_v19, %v2971_v18 }
 0x236   : > { %v3020_v21 = vld [vmem:[%s1293_s6] sm:$0xf] (%p3842_p6)  ;;  %v3022_v22 = vld [vmem:[%s1293_s6 + $0x4] sm:$0xf] (%p3842_p6) }
 0x237   : > { %3354 = vst [vmem:[%s1293_s6 + $0x8] sm:$0xff] %v3352_v20   ;;  %3021 = vst [vmem:[%s3004_s8] sm:$0xf] (%p3842_p6), %v3020_v21 }
 0x238   : > { %3023 = vst [vmem:[%s3004_s8 + $0x8] sm:$0xf] %v3022_v22 }
 0x23e   : > { %v3024_v23 = vld [vmem:[%s1293_s6 + $0x8] sm:$0xf]  ;;  %v3026_v24 = vld [vmem:[%s1293_s6 + $0xc] sm:$0xf] }
 0x23f   : > { %3025 = vst [vmem:[%s3004_s8 + $0x10] sm:$0xf] %v3024_v23  ;;  %3027 = vst [vmem:[%s3004_s8 + $0x18] sm:$0xf] %v3026_v24 }
 0x240 PF: > { %s13_s16 = sadd.s32 1, %s3785_s16   ;;  %s4651_s12 = smov %s3773_s13 }
 0x241   : > { %p10_p12 = scmp.ge.s32.totalorder %s13_s16, 4   ;;  %s4652_s13 = smov %s3847_s22 }
 0x242   : > { %s4653_s14 = smov %s3781_s15  ;;  %s4654_s15 = smov %s4656_s17 }
 0x243   :  { %12 = sbr.rel (!%p10_p12) target bundleno = 3 (0x3), region = 163 }

// kernel: forward.8
= control target key start
LH: loop header
LB: loop body
LE: loop exit
PB: predicated region body
PF: predicated region fallthrough
CT: control target
= control target key end

     0   :  { %s4910_s0 = inlined_call_operand.vmem [shape: bf16[32,4096], index: 0, kind: input, shape index: {}]   ;;  %s4911_s1 = inlined_call_operand.vmem [shape: bf16[4096,512], index: 1, kind: input, shape index: {}]   ;;  %s4912_s2 = inlined_call_operand.vmem [shape: f32[2,512], index: 2, kind: input, shape index: {}]   ;;  %s4913_s3 = inlined_call_operand.vmem [shape: bf16[32,512], index: 3, kind: output, shape index: {}]  }
   0x1   :  { %4916 = sst [smem:[#allocation8_spill]] %s4910_s0 }
   0x2   :  { %4917 = sst [smem:[#allocation9_spill]] %s4911_s1 }
   0x3   :  { %s3986_s12 = smov 0   ;;  %s3988_s13 = smov 0  }
   0x4   :  { %s3990_s14 = smov 0   ;;  %s3992_s15 = smov 0  }
   0x5   :  { %s3994_s16 = smov 0   ;;  %s3996_s17 = smov 0  }
   0x6   :  { %s3998_s18 = smov 0   ;;  %s4000_s19 = smov 0  }
   0x7   :  { %s4002_s20 = smov 0   ;;  %s4004_s21 = smov 0  }
   0x8   :  { %s4006_s22 = smov 0  }
   0x9 LB: > { %s3233_s23 = sadd.s32 4294967295, %s3963_s22   ;;  %s25_s24 = sadd.s32 1, %s3955_s20  ;;  %s3963_s22 = sphi %s4006_s22, %s13_s22   ;;  %s3959_s21 = sphi %s4004_s21, %s4936_s21   ;;  %s3955_s20 = sphi %s4002_s20, %s4935_s20   ;;  %s3951_s19 = sphi %s4000_s19, %s4934_s19   ;;  %s3947_s18 = sphi %s3998_s18, %s4933_s18   ;;  %s3943_s17 = sphi %s3996_s17, %s4932_s17   ;;  %s3939_s16 = sphi %s3994_s16, %s4931_s16   ;;  %s3935_s15 = sphi %s3992_s15, %s4930_s15   ;;  %s3931_s14 = sphi %s3990_s14, %s4929_s14   ;;  %s3927_s13 = sphi %s3988_s13, %s4928_s13   ;;  %s3923_s12 = sphi %s3986_s12, %s4927_s12  }
   0xa   : > { %p26_p0 = scmp.ge.s32.totalorder %s25_s24, 2  ;;  %s28_s25 = sadd.s32 1, %s3959_s21 }
   0xb   : > { %s41_s26 = sadd.s32 1, %s3943_s17  ;;  %p48_p1 = scmp.ne.s32.totalorder %s3943_s17, %s3939_s16 }
   0xc   : > { %s4938_s24 = smov (%p26_p0, %s25_s24), 0  ;;  %s4940_s25 = smov (!%p26_p0, %s28_s25), %s3959_s21 }
   0xd   : > { %4918 = sst [smem:[#allocation6_spill]] %s4938_s24  ;;  %s37_s27 = ssub.s32 %s3955_s20, %s4938_s24 }
   0xe   : > { %p49_p2 = scmp.eq.s32.totalorder %s3963_s22, 0  ;;  %p30_p3 = scmp.ge.s32.totalorder %s4940_s25, 4 }
   0xf   : > { %p39_p4 = scmp.eq.s32.totalorder %s37_s27, 0  ;;  %s69_s29 = sadd.s32 1, %s3935_s15 }
  0x10   : > { %p4053_p5 = por %p49_p2, %p48_p1  ;;  %s4942_s25 = smov (%p30_p3, %s4940_s25), 0 }
  0x11   : > { %4920 = sst [smem:[#allocation7_spill]] %s4942_s25  ;;  %s65_s4 = ssub.s32 %s3959_s21, %s4942_s25 }
  0x12   : > { %s4061_s30 = scalar_select %p39_p4, %s3943_s17, %s41_s26  }
  0x13   : > { %p76_p6 = scmp.ne.s32.totalorder %s3935_s15, %s3931_s14  ;;  %s66_s5 = sor.u32 %s65_s4, %s37_s27 }
  0x14   : > { %p121_p7 = scmp.eq.s32.totalorder %s65_s4, 0  ;;  %p67_p8 = scmp.eq.s32.totalorder %s66_s5, 0 }
  0x15   : > { %p4067_p9 = por %p76_p6, %p49_p2  ;;  %s123_s7 = sadd.s32 1, %s3927_s13 }
  0x16   : > { %p133_p10 = scmp.ne.s32.totalorder %s3927_s13, %s3923_s12  ;;  %p134_p11 = scmp.eq.s32.totalorder %s3233_s23, 7 }
  0x17   : > { %s4075_s8 = scalar_select %p67_p8, %s3935_s15, %s69_s29  }
  0x18   : > { %s4078_s9 = scalar_select %p121_p7, %s3927_s13, %s123_s7  }
  0x19   : > { %p4080_p12 = por %p134_p11, %p133_p10  ;;  %p3236_p13 = scmp.ge.s32.totalorder %s3963_s22, 8 }
  0x1b   : > { %156 = sbr.rel (%p3236_p13) target bundleno = 241 (0xf1), region = 16 }
  0x22   : > { %159 = sbr.rel (!%p4053_p5) target bundleno = 60 (0x3c), region = 20  ;;  %s161_s11 = sand.u32 (%p4053_p5), 1, %s3943_s17  }
  0x23   : > { %s3419_s26 = sshll.u32 (%p4053_p5), %s3955_s20, 6  ;;  %s3237_s27 = sshll.u32 (%p4053_p5), %s161_s11, 8 }
  0x24   : > { %s4923_s0 = sld [smem:[#allocation8_spill]] (%p4053_p5)  ;;  %s4097_s23 = scalar_lea.vmem (%p4053_p5), [#allocation3], %s3237_s27 }
  0x2a   : > { %s4092_s5 = scalar_lea.vmem %s4923_s0, %s3419_s26 }
  0x2b   : > { %v182_v0 = vld [vmem:[%s4092_s5] sm:$0xff]  ;;  %v184_v1 = vld [vmem:[%s4092_s5 + $0x8] sm:$0xff]  ;;  %v186_v2 = vld [vmem:[%s4092_s5 + $0x10] sm:$0xff] }
  0x2c   : > { %183 = vst [vmem:[%s4097_s23] sm:$0xff] %v182_v0  ;;  %185 = vst [vmem:[%s4097_s23 + $0x8] sm:$0xff] %v184_v1  ;;  %v188_v3 = vld [vmem:[%s4092_s5 + $0x18] sm:$0xff]  ;;  %v190_v4 = vld [vmem:[%s4092_s5 + $0x20] sm:$0xff] }
  0x2d   : > { %187 = vst [vmem:[%s4097_s23 + $0x10] sm:$0xff] %v186_v2  ;;  %v192_v5 = vld [vmem:[%s4092_s5 + $0x28] sm:$0xff]  ;;  %189 = vst [vmem:[%s4097_s23 + $0x18] sm:$0xff] %v188_v3  ;;  %v194_v6 = vld [vmem:[%s4092_s5 + $0x30] sm:$0xff] }
  0x2e   : > { %191 = vst [vmem:[%s4097_s23 + $0x20] sm:$0xff] %v190_v4  ;;  %193 = vst [vmem:[%s4097_s23 + $0x28] sm:$0xff] %v192_v5  ;;  %v196_v7 = vld [vmem:[%s4092_s5 + $0x38] sm:$0xff]  ;;  %v198_v8 = vld [vmem:[%s4092_s5 + $0x80] sm:$0xff] }
  0x2f   : > { %195 = vst [vmem:[%s4097_s23 + $0x30] sm:$0xff] %v194_v6  ;;  %197 = vst [vmem:[%s4097_s23 + $0x38] sm:$0xff] %v196_v7  ;;  %v200_v9 = vld [vmem:[%s4092_s5 + $0x88] sm:$0xff]  ;;  %v202_v10 = vld [vmem:[%s4092_s5 + $0x90] sm:$0xff] }
  0x30   : > { %199 = vst [vmem:[%s4097_s23 + $0x40] sm:$0xff] %v198_v8  ;;  %v204_v11 = vld [vmem:[%s4092_s5 + $0x98] sm:$0xff]  ;;  %201 = vst [vmem:[%s4097_s23 + $0x48] sm:$0xff] %v200_v9  ;;  %v206_v12 = vld [vmem:[%s4092_s5 + $0xa0] sm:$0xff] }
  0x31   : > { %203 = vst [vmem:[%s4097_s23 + $0x50] sm:$0xff] %v202_v10  ;;  %205 = vst [vmem:[%s4097_s23 + $0x58] sm:$0xff] %v204_v11  ;;  %v208_v13 = vld [vmem:[%s4092_s5 + $0xa8] sm:$0xff]  ;;  %v210_v14 = vld [vmem:[%s4092_s5 + $0xb0] sm:$0xff] }
  0x32   : > { %207 = vst [vmem:[%s4097_s23 + $0x60] sm:$0xff] %v206_v12  ;;  %209 = vst [vmem:[%s4097_s23 + $0x68] sm:$0xff] %v208_v13  ;;  %v212_v15 = vld [vmem:[%s4092_s5 + $0xb8] sm:$0xff]  ;;  %v214_v16 = vld [vmem:[%s4092_s5 + $0x100] sm:$0xff] }
  0x33   : > { %211 = vst [vmem:[%s4097_s23 + $0x70] sm:$0xff] %v210_v14  ;;  %v216_v17 = vld [vmem:[%s4092_s5 + $0x108] sm:$0xff]  ;;  %213 = vst [vmem:[%s4097_s23 + $0x78] sm:$0xff] %v212_v15  ;;  %v218_v18 = vld [vmem:[%s4092_s5 + $0x110] sm:$0xff] }
  0x34   : > { %215 = vst [vmem:[%s4097_s23 + $0x80] sm:$0xff] %v214_v16  ;;  %217 = vst [vmem:[%s4097_s23 + $0x88] sm:$0xff] %v216_v17  ;;  %v220_v19 = vld [vmem:[%s4092_s5 + $0x118] sm:$0xff]  ;;  %v222_v20 = vld [vmem:[%s4092_s5 + $0x120] sm:$0xff] }
  0x35   : > { %219 = vst [vmem:[%s4097_s23 + $0x90] sm:$0xff] %v218_v18  ;;  %221 = vst [vmem:[%s4097_s23 + $0x98] sm:$0xff] %v220_v19  ;;  %v224_v21 = vld [vmem:[%s4092_s5 + $0x128] sm:$0xff]  ;;  %v226_v22 = vld [vmem:[%s4092_s5 + $0x130] sm:$0xff] }
  0x36   : > { %223 = vst [vmem:[%s4097_s23 + $0xa0] sm:$0xff] %v222_v20  ;;  %v228_v23 = vld [vmem:[%s4092_s5 + $0x138] sm:$0xff]  ;;  %225 = vst [vmem:[%s4097_s23 + $0xa8] sm:$0xff] %v224_v21  ;;  %v230_v24 = vld [vmem:[%s4092_s5 + $0x180] sm:$0xff] }
  0x37   : > { %227 = vst [vmem:[%s4097_s23 + $0xb0] sm:$0xff] %v226_v22  ;;  %229 = vst [vmem:[%s4097_s23 + $0xb8] sm:$0xff] %v228_v23  ;;  %v232_v25 = vld [vmem:[%s4092_s5 + $0x188] sm:$0xff]  ;;  %v234_v26 = vld [vmem:[%s4092_s5 + $0x190] sm:$0xff] }
  0x38   : > { %231 = vst [vmem:[%s4097_s23 + $0xc0] sm:$0xff] %v230_v24  ;;  %233 = vst [vmem:[%s4097_s23 + $0xc8] sm:$0xff] %v232_v25  ;;  %v236_v27 = vld [vmem:[%s4092_s5 + $0x198] sm:$0xff]  ;;  %v238_v28 = vld [vmem:[%s4092_s5 + $0x1a0] sm:$0xff] }
  0x39   : > { %235 = vst [vmem:[%s4097_s23 + $0xd0] sm:$0xff] %v234_v26  ;;  %v240_v29 = vld [vmem:[%s4092_s5 + $0x1a8] sm:$0xff]  ;;  %237 = vst [vmem:[%s4097_s23 + $0xd8] sm:$0xff] %v236_v27  ;;  %v242_v30 = vld [vmem:[%s4092_s5 + $0x1b0] sm:$0xff] }
  0x3a   : > { %239 = vst [vmem:[%s4097_s23 + $0xe0] sm:$0xff] %v238_v28  ;;  %241 = vst [vmem:[%s4097_s23 + $0xe8] sm:$0xff] %v240_v29  ;;  %v244_v31 = vld [vmem:[%s4092_s5 + $0x1b8] sm:$0xff] }
  0x3b   : > { %243 = vst [vmem:[%s4097_s23 + $0xf0] sm:$0xff] %v242_v30  ;;  %245 = vst [vmem:[%s4097_s23 + $0xf8] sm:$0xff] %v244_v31 }
  0x3c PF: > { %251 = sbr.rel (!%p4067_p9) target bundleno = 241 (0xf1), region = 43  ;;  %s253_s28 = sand.u32 (%p4067_p9), 1, %s3935_s15  }
  0x3d   : > { %s3420_s7 = sshll.u32 (%p4067_p9), %s3955_s20, 10  ;;  %s3240_s11 = sshll.u32 (%p4067_p9), %s253_s28, 10 }
  0x3e   : > { %s258_s26 = sadd.s32 (%p4067_p9), %s3959_s21, %s3420_s7  ;;  %s4924_s1 = sld [smem:[#allocation9_spill]] (%p4067_p9) }
  0x3f   : > { %s3243_s27 = sshll.u32 (%p4067_p9), %s258_s26, 2  ;;  %s4173_s6 = scalar_lea.vmem (%p4067_p9), [#allocation4], %s3240_s11 }
  0x44   : > { %s4168_s0 = scalar_lea.vmem %s4924_s1, %s3243_s27 }
  0x45   : > { %v276_v32 = vld [vmem:[%s4168_s0] sm:$0xf]  ;;  %v278_v33 = vld [vmem:[%s4168_s0 + $0x10] sm:$0xf] }
  0x46   : > { %v280_v34 = vld [vmem:[%s4168_s0 + $0x20] sm:$0xf]  ;;  %277 = vst [vmem:[%s4173_s6] sm:$0xf] %v276_v32  ;;  %279 = vst [vmem:[%s4173_s6 + $0x4] sm:$0xf] %v278_v33 }
  0x47   : > { %281 = vst [vmem:[%s4173_s6 + $0x8] sm:$0xf] %v280_v34  ;;  %v282_v35 = vld [vmem:[%s4168_s0 + $0x30] sm:$0xf]  ;;  %v284_v36 = vld [vmem:[%s4168_s0 + $0x40] sm:$0xf] }
  0x48   : > { %v286_v37 = vld [vmem:[%s4168_s0 + $0x50] sm:$0xf]  ;;  %283 = vst [vmem:[%s4173_s6 + $0xc] sm:$0xf] %v282_v35  ;;  %285 = vst [vmem:[%s4173_s6 + $0x10] sm:$0xf] %v284_v36 }
  0x49   : > { %287 = vst [vmem:[%s4173_s6 + $0x14] sm:$0xf] %v286_v37  ;;  %v288_v38 = vld [vmem:[%s4168_s0 + $0x60] sm:$0xf]  ;;  %v290_v39 = vld [vmem:[%s4168_s0 + $0x70] sm:$0xf] }
  0x4a   : > { %v292_v40 = vld [vmem:[%s4168_s0 + $0x80] sm:$0xf]  ;;  %289 = vst [vmem:[%s4173_s6 + $0x18] sm:$0xf] %v288_v38  ;;  %291 = vst [vmem:[%s4173_s6 + $0x1c] sm:$0xf] %v290_v39 }
  0x4b   : > { %293 = vst [vmem:[%s4173_s6 + $0x20] sm:$0xf] %v292_v40  ;;  %v294_v41 = vld [vmem:[%s4168_s0 + $0x90] sm:$0xf]  ;;  %v296_v42 = vld [vmem:[%s4168_s0 + $0xa0] sm:$0xf] }
  0x4c   : > { %v298_v43 = vld [vmem:[%s4168_s0 + $0xb0] sm:$0xf]  ;;  %295 = vst [vmem:[%s4173_s6 + $0x24] sm:$0xf] %v294_v41  ;;  %297 = vst [vmem:[%s4173_s6 + $0x28] sm:$0xf] %v296_v42 }
  0x4d   : > { %299 = vst [vmem:[%s4173_s6 + $0x2c] sm:$0xf] %v298_v43  ;;  %v300_v44 = vld [vmem:[%s4168_s0 + $0xc0] sm:$0xf]  ;;  %v302_v45 = vld [vmem:[%s4168_s0 + $0xd0] sm:$0xf] }
  0x4e   : > { %v304_v46 = vld [vmem:[%s4168_s0 + $0xe0] sm:$0xf]  ;;  %301 = vst [vmem:[%s4173_s6 + $0x30] sm:$0xf] %v300_v44  ;;  %303 = vst [vmem:[%s4173_s6 + $0x34] sm:$0xf] %v302_v45 }
  0x4f   : > { %305 = vst [vmem:[%s4173_s6 + $0x38] sm:$0xf] %v304_v46  ;;  %v306_v47 = vld [vmem:[%s4168_s0 + $0xf0] sm:$0xf]  ;;  %v308_v48 = vld [vmem:[%s4168_s0 + $0x100] sm:$0xf] }
  0x50   : > { %v310_v49 = vld [vmem:[%s4168_s0 + $0x110] sm:$0xf]  ;;  %307 = vst [vmem:[%s4173_s6 + $0x3c] sm:$0xf] %v306_v47  ;;  %309 = vst [vmem:[%s4173_s6 + $0x40] sm:$0xf] %v308_v48 }
  0x51   : > { %311 = vst [vmem:[%s4173_s6 + $0x44] sm:$0xf] %v310_v49  ;;  %v312_v50 = vld [vmem:[%s4168_s0 + $0x120] sm:$0xf]  ;;  %v314_v51 = vld [vmem:[%s4168_s0 + $0x130] sm:$0xf] }
  0x52   : > { %v316_v52 = vld [vmem:[%s4168_s0 + $0x140] sm:$0xf]  ;;  %313 = vst [vmem:[%s4173_s6 + $0x48] sm:$0xf] %v312_v50  ;;  %315 = vst [vmem:[%s4173_s6 + $0x4c] sm:$0xf] %v314_v51 }
  0x53   : > { %317 = vst [vmem:[%s4173_s6 + $0x50] sm:$0xf] %v316_v52  ;;  %v318_v53 = vld [vmem:[%s4168_s0 + $0x150] sm:$0xf]  ;;  %v320_v54 = vld [vmem:[%s4168_s0 + $0x160] sm:$0xf] }
  0x54   : > { %v322_v55 = vld [vmem:[%s4168_s0 + $0x170] sm:$0xf]  ;;  %319 = vst [vmem:[%s4173_s6 + $0x54] sm:$0xf] %v318_v53  ;;  %321 = vst [vmem:[%s4173_s6 + $0x58] sm:$0xf] %v320_v54 }
  0x55   : > { %323 = vst [vmem:[%s4173_s6 + $0x5c] sm:$0xf] %v322_v55  ;;  %v324_v56 = vld [vmem:[%s4168_s0 + $0x180] sm:$0xf]  ;;  %v326_v57 = vld [vmem:[%s4168_s0 + $0x190] sm:$0xf] }
  0x56   : > { %v328_v58 = vld [vmem:[%s4168_s0 + $0x1a0] sm:$0xf]  ;;  %325 = vst [vmem:[%s4173_s6 + $0x60] sm:$0xf] %v324_v56  ;;  %327 = vst [vmem:[%s4173_s6 + $0x64] sm:$0xf] %v326_v57 }
  0x57   : > { %329 = vst [vmem:[%s4173_s6 + $0x68] sm:$0xf] %v328_v58  ;;  %v330_v59 = vld [vmem:[%s4168_s0 + $0x1b0] sm:$0xf]  ;;  %v332_v60 = vld [vmem:[%s4168_s0 + $0x1c0] sm:$0xf] }
  0x58   : > { %v334_v61 = vld [vmem:[%s4168_s0 + $0x1d0] sm:$0xf]  ;;  %331 = vst [vmem:[%s4173_s6 + $0x6c] sm:$0xf] %v330_v59  ;;  %333 = vst [vmem:[%s4173_s6 + $0x70] sm:$0xf] %v332_v60 }
  0x59   : > { %335 = vst [vmem:[%s4173_s6 + $0x74] sm:$0xf] %v334_v61  ;;  %v336_v62 = vld [vmem:[%s4168_s0 + $0x1e0] sm:$0xf]  ;;  %v338_v63 = vld [vmem:[%s4168_s0 + $0x1f0] sm:$0xf] }
  0x5a   : > { %v340_v0 = vld [vmem:[%s4168_s0 + $0x200] sm:$0xf]  ;;  %337 = vst [vmem:[%s4173_s6 + $0x78] sm:$0xf] %v336_v62  ;;  %339 = vst [vmem:[%s4173_s6 + $0x7c] sm:$0xf] %v338_v63 }
  0x5b   : > { %341 = vst [vmem:[%s4173_s6 + $0x80] sm:$0xf] %v340_v0  ;;  %v342_v1 = vld [vmem:[%s4168_s0 + $0x210] sm:$0xf]  ;;  %v344_v2 = vld [vmem:[%s4168_s0 + $0x220] sm:$0xf] }
  0x5c   : > { %v346_v3 = vld [vmem:[%s4168_s0 + $0x230] sm:$0xf]  ;;  %343 = vst [vmem:[%s4173_s6 + $0x84] sm:$0xf] %v342_v1  ;;  %345 = vst [vmem:[%s4173_s6 + $0x88] sm:$0xf] %v344_v2 }
  0x5d   : > { %347 = vst [vmem:[%s4173_s6 + $0x8c] sm:$0xf] %v346_v3  ;;  %v348_v4 = vld [vmem:[%s4168_s0 + $0x240] sm:$0xf]  ;;  %v350_v5 = vld [vmem:[%s4168_s0 + $0x250] sm:$0xf] }
  0x5e   : > { %v352_v6 = vld [vmem:[%s4168_s0 + $0x260] sm:$0xf]  ;;  %349 = vst [vmem:[%s4173_s6 + $0x90] sm:$0xf] %v348_v4  ;;  %351 = vst [vmem:[%s4173_s6 + $0x94] sm:$0xf] %v350_v5 }
  0x5f   : > { %353 = vst [vmem:[%s4173_s6 + $0x98] sm:$0xf] %v352_v6  ;;  %v354_v7 = vld [vmem:[%s4168_s0 + $0x270] sm:$0xf]  ;;  %v356_v8 = vld [vmem:[%s4168_s0 + $0x280] sm:$0xf] }
  0x60   : > { %v358_v9 = vld [vmem:[%s4168_s0 + $0x290] sm:$0xf]  ;;  %355 = vst [vmem:[%s4173_s6 + $0x9c] sm:$0xf] %v354_v7  ;;  %357 = vst [vmem:[%s4173_s6 + $0xa0] sm:$0xf] %v356_v8 }
  0x61   : > { %359 = vst [vmem:[%s4173_s6 + $0xa4] sm:$0xf] %v358_v9  ;;  %v360_v10 = vld [vmem:[%s4168_s0 + $0x2a0] sm:$0xf]  ;;  %v362_v11 = vld [vmem:[%s4168_s0 + $0x2b0] sm:$0xf] }
  0x62   : > { %v364_v12 = vld [vmem:[%s4168_s0 + $0x2c0] sm:$0xf]  ;;  %361 = vst [vmem:[%s4173_s6 + $0xa8] sm:$0xf] %v360_v10  ;;  %363 = vst [vmem:[%s4173_s6 + $0xac] sm:$0xf] %v362_v11 }
  0x63   : > { %365 = vst [vmem:[%s4173_s6 + $0xb0] sm:$0xf] %v364_v12  ;;  %v366_v13 = vld [vmem:[%s4168_s0 + $0x2d0] sm:$0xf]  ;;  %v368_v14 = vld [vmem:[%s4168_s0 + $0x2e0] sm:$0xf] }
  0x64   : > { %v370_v15 = vld [vmem:[%s4168_s0 + $0x2f0] sm:$0xf]  ;;  %367 = vst [vmem:[%s4173_s6 + $0xb4] sm:$0xf] %v366_v13  ;;  %369 = vst [vmem:[%s4173_s6 + $0xb8] sm:$0xf] %v368_v14 }
  0x65   : > { %371 = vst [vmem:[%s4173_s6 + $0xbc] sm:$0xf] %v370_v15  ;;  %v372_v16 = vld [vmem:[%s4168_s0 + $0x300] sm:$0xf]  ;;  %v374_v17 = vld [vmem:[%s4168_s0 + $0x310] sm:$0xf] }
  0x66   : > { %v376_v18 = vld [vmem:[%s4168_s0 + $0x320] sm:$0xf]  ;;  %373 = vst [vmem:[%s4173_s6 + $0xc0] sm:$0xf] %v372_v16  ;;  %375 = vst [vmem:[%s4173_s6 + $0xc4] sm:$0xf] %v374_v17 }
  0x67   : > { %377 = vst [vmem:[%s4173_s6 + $0xc8] sm:$0xf] %v376_v18  ;;  %v378_v19 = vld [vmem:[%s4168_s0 + $0x330] sm:$0xf]  ;;  %v380_v20 = vld [vmem:[%s4168_s0 + $0x340] sm:$0xf] }
  0x68   : > { %v382_v21 = vld [vmem:[%s4168_s0 + $0x350] sm:$0xf]  ;;  %379 = vst [vmem:[%s4173_s6 + $0xcc] sm:$0xf] %v378_v19  ;;  %381 = vst [vmem:[%s4173_s6 + $0xd0] sm:$0xf] %v380_v20 }
  0x69   : > { %383 = vst [vmem:[%s4173_s6 + $0xd4] sm:$0xf] %v382_v21  ;;  %v384_v22 = vld [vmem:[%s4168_s0 + $0x360] sm:$0xf]  ;;  %v386_v23 = vld [vmem:[%s4168_s0 + $0x370] sm:$0xf] }
  0x6a   : > { %v388_v24 = vld [vmem:[%s4168_s0 + $0x380] sm:$0xf]  ;;  %385 = vst [vmem:[%s4173_s6 + $0xd8] sm:$0xf] %v384_v22  ;;  %387 = vst [vmem:[%s4173_s6 + $0xdc] sm:$0xf] %v386_v23 }
  0x6b   : > { %389 = vst [vmem:[%s4173_s6 + $0xe0] sm:$0xf] %v388_v24  ;;  %v390_v25 = vld [vmem:[%s4168_s0 + $0x390] sm:$0xf]  ;;  %v392_v26 = vld [vmem:[%s4168_s0 + $0x3a0] sm:$0xf] }
  0x6c   : > { %v394_v27 = vld [vmem:[%s4168_s0 + $0x3b0] sm:$0xf]  ;;  %391 = vst [vmem:[%s4173_s6 + $0xe4] sm:$0xf] %v390_v25  ;;  %393 = vst [vmem:[%s4173_s6 + $0xe8] sm:$0xf] %v392_v26 }
  0x6d   : > { %395 = vst [vmem:[%s4173_s6 + $0xec] sm:$0xf] %v394_v27  ;;  %v396_v28 = vld [vmem:[%s4168_s0 + $0x3c0] sm:$0xf]  ;;  %v398_v29 = vld [vmem:[%s4168_s0 + $0x3d0] sm:$0xf] }
  0x6e   : > { %v400_v30 = vld [vmem:[%s4168_s0 + $0x3e0] sm:$0xf]  ;;  %397 = vst [vmem:[%s4173_s6 + $0xf0] sm:$0xf] %v396_v28  ;;  %399 = vst [vmem:[%s4173_s6 + $0xf4] sm:$0xf] %v398_v29 }
  0x6f   : > { %401 = vst [vmem:[%s4173_s6 + $0xf8] sm:$0xf] %v400_v30  ;;  %v402_v31 = vld [vmem:[%s4168_s0 + $0x3f0] sm:$0xf]  ;;  %v404_v32 = vld [vmem:[%s4168_s0 + $0x400] sm:$0xf] }
  0x70   : > { %v406_v33 = vld [vmem:[%s4168_s0 + $0x410] sm:$0xf]  ;;  %403 = vst [vmem:[%s4173_s6 + $0xfc] sm:$0xf] %v402_v31  ;;  %405 = vst [vmem:[%s4173_s6 + $0x100] sm:$0xf] %v404_v32 }
  0x71   : > { %407 = vst [vmem:[%s4173_s6 + $0x104] sm:$0xf] %v406_v33  ;;  %v408_v34 = vld [vmem:[%s4168_s0 + $0x420] sm:$0xf]  ;;  %v410_v35 = vld [vmem:[%s4168_s0 + $0x430] sm:$0xf] }
  0x72   : > { %v412_v36 = vld [vmem:[%s4168_s0 + $0x440] sm:$0xf]  ;;  %409 = vst [vmem:[%s4173_s6 + $0x108] sm:$0xf] %v408_v34  ;;  %411 = vst [vmem:[%s4173_s6 + $0x10c] sm:$0xf] %v410_v35 }
  0x73   : > { %413 = vst [vmem:[%s4173_s6 + $0x110] sm:$0xf] %v412_v36  ;;  %v414_v37 = vld [vmem:[%s4168_s0 + $0x450] sm:$0xf]  ;;  %v416_v38 = vld [vmem:[%s4168_s0 + $0x460] sm:$0xf] }
  0x74   : > { %v418_v39 = vld [vmem:[%s4168_s0 + $0x470] sm:$0xf]  ;;  %415 = vst [vmem:[%s4173_s6 + $0x114] sm:$0xf] %v414_v37  ;;  %417 = vst [vmem:[%s4173_s6 + $0x118] sm:$0xf] %v416_v38 }
  0x75   : > { %419 = vst [vmem:[%s4173_s6 + $0x11c] sm:$0xf] %v418_v39  ;;  %v420_v40 = vld [vmem:[%s4168_s0 + $0x480] sm:$0xf]  ;;  %v422_v41 = vld [vmem:[%s4168_s0 + $0x490] sm:$0xf] }
  0x76   : > { %v424_v42 = vld [vmem:[%s4168_s0 + $0x4a0] sm:$0xf]  ;;  %421 = vst [vmem:[%s4173_s6 + $0x120] sm:$0xf] %v420_v40  ;;  %423 = vst [vmem:[%s4173_s6 + $0x124] sm:$0xf] %v422_v41 }
  0x77   : > { %425 = vst [vmem:[%s4173_s6 + $0x128] sm:$0xf] %v424_v42  ;;  %v426_v43 = vld [vmem:[%s4168_s0 + $0x4b0] sm:$0xf]  ;;  %v428_v44 = vld [vmem:[%s4168_s0 + $0x4c0] sm:$0xf] }
  0x78   : > { %v430_v45 = vld [vmem:[%s4168_s0 + $0x4d0] sm:$0xf]  ;;  %427 = vst [vmem:[%s4173_s6 + $0x12c] sm:$0xf] %v426_v43  ;;  %429 = vst [vmem:[%s4173_s6 + $0x130] sm:$0xf] %v428_v44 }
  0x79   : > { %431 = vst [vmem:[%s4173_s6 + $0x134] sm:$0xf] %v430_v45  ;;  %v432_v46 = vld [vmem:[%s4168_s0 + $0x4e0] sm:$0xf]  ;;  %v434_v47 = vld [vmem:[%s4168_s0 + $0x4f0] sm:$0xf] }
  0x7a   : > { %v436_v48 = vld [vmem:[%s4168_s0 + $0x500] sm:$0xf]  ;;  %433 = vst [vmem:[%s4173_s6 + $0x138] sm:$0xf] %v432_v46  ;;  %435 = vst [vmem:[%s4173_s6 + $0x13c] sm:$0xf] %v434_v47 }
  0x7b   : > { %437 = vst [vmem:[%s4173_s6 + $0x140] sm:$0xf] %v436_v48  ;;  %v438_v49 = vld [vmem:[%s4168_s0 + $0x510] sm:$0xf]  ;;  %v440_v50 = vld [vmem:[%s4168_s0 + $0x520] sm:$0xf] }
  0x7c   : > { %v442_v51 = vld [vmem:[%s4168_s0 + $0x530] sm:$0xf]  ;;  %439 = vst [vmem:[%s4173_s6 + $0x144] sm:$0xf] %v438_v49  ;;  %441 = vst [vmem:[%s4173_s6 + $0x148] sm:$0xf] %v440_v50 }
  0x7d   : > { %443 = vst [vmem:[%s4173_s6 + $0x14c] sm:$0xf] %v442_v51  ;;  %v444_v52 = vld [vmem:[%s4168_s0 + $0x540] sm:$0xf]  ;;  %v446_v53 = vld [vmem:[%s4168_s0 + $0x550] sm:$0xf] }
  0x7e   : > { %v448_v54 = vld [vmem:[%s4168_s0 + $0x560] sm:$0xf]  ;;  %445 = vst [vmem:[%s4173_s6 + $0x150] sm:$0xf] %v444_v52  ;;  %447 = vst [vmem:[%s4173_s6 + $0x154] sm:$0xf] %v446_v53 }
  0x7f   : > { %449 = vst [vmem:[%s4173_s6 + $0x158] sm:$0xf] %v448_v54  ;;  %v450_v55 = vld [vmem:[%s4168_s0 + $0x570] sm:$0xf]  ;;  %v452_v56 = vld [vmem:[%s4168_s0 + $0x580] sm:$0xf] }
  0x80   : > { %v454_v57 = vld [vmem:[%s4168_s0 + $0x590] sm:$0xf]  ;;  %451 = vst [vmem:[%s4173_s6 + $0x15c] sm:$0xf] %v450_v55  ;;  %453 = vst [vmem:[%s4173_s6 + $0x160] sm:$0xf] %v452_v56 }
  0x81   : > { %455 = vst [vmem:[%s4173_s6 + $0x164] sm:$0xf] %v454_v57  ;;  %v456_v58 = vld [vmem:[%s4168_s0 + $0x5a0] sm:$0xf]  ;;  %v458_v59 = vld [vmem:[%s4168_s0 + $0x5b0] sm:$0xf] }
  0x82   : > { %v460_v60 = vld [vmem:[%s4168_s0 + $0x5c0] sm:$0xf]  ;;  %457 = vst [vmem:[%s4173_s6 + $0x168] sm:$0xf] %v456_v58  ;;  %459 = vst [vmem:[%s4173_s6 + $0x16c] sm:$0xf] %v458_v59 }
  0x83   : > { %461 = vst [vmem:[%s4173_s6 + $0x170] sm:$0xf] %v460_v60  ;;  %v462_v61 = vld [vmem:[%s4168_s0 + $0x5d0] sm:$0xf]  ;;  %v464_v62 = vld [vmem:[%s4168_s0 + $0x5e0] sm:$0xf] }
  0x84   : > { %v466_v63 = vld [vmem:[%s4168_s0 + $0x5f0] sm:$0xf]  ;;  %463 = vst [vmem:[%s4173_s6 + $0x174] sm:$0xf] %v462_v61  ;;  %465 = vst [vmem:[%s4173_s6 + $0x178] sm:$0xf] %v464_v62 }
  0x85   : > { %467 = vst [vmem:[%s4173_s6 + $0x17c] sm:$0xf] %v466_v63  ;;  %v468_v0 = vld [vmem:[%s4168_s0 + $0x600] sm:$0xf]  ;;  %v470_v1 = vld [vmem:[%s4168_s0 + $0x610] sm:$0xf] }
  0x86   : > { %v472_v2 = vld [vmem:[%s4168_s0 + $0x620] sm:$0xf]  ;;  %469 = vst [vmem:[%s4173_s6 + $0x180] sm:$0xf] %v468_v0  ;;  %471 = vst [vmem:[%s4173_s6 + $0x184] sm:$0xf] %v470_v1 }
  0x87   : > { %473 = vst [vmem:[%s4173_s6 + $0x188] sm:$0xf] %v472_v2  ;;  %v474_v3 = vld [vmem:[%s4168_s0 + $0x630] sm:$0xf]  ;;  %v476_v4 = vld [vmem:[%s4168_s0 + $0x640] sm:$0xf] }
  0x88   : > { %v478_v5 = vld [vmem:[%s4168_s0 + $0x650] sm:$0xf]  ;;  %475 = vst [vmem:[%s4173_s6 + $0x18c] sm:$0xf] %v474_v3  ;;  %477 = vst [vmem:[%s4173_s6 + $0x190] sm:$0xf] %v476_v4 }
  0x89   : > { %479 = vst [vmem:[%s4173_s6 + $0x194] sm:$0xf] %v478_v5  ;;  %v480_v6 = vld [vmem:[%s4168_s0 + $0x660] sm:$0xf]  ;;  %v482_v7 = vld [vmem:[%s4168_s0 + $0x670] sm:$0xf] }
  0x8a   : > { %v484_v8 = vld [vmem:[%s4168_s0 + $0x680] sm:$0xf]  ;;  %481 = vst [vmem:[%s4173_s6 + $0x198] sm:$0xf] %v480_v6  ;;  %483 = vst [vmem:[%s4173_s6 + $0x19c] sm:$0xf] %v482_v7 }
  0x8b   : > { %485 = vst [vmem:[%s4173_s6 + $0x1a0] sm:$0xf] %v484_v8  ;;  %v486_v9 = vld [vmem:[%s4168_s0 + $0x690] sm:$0xf]  ;;  %v488_v10 = vld [vmem:[%s4168_s0 + $0x6a0] sm:$0xf] }
  0x8c   : > { %v490_v11 = vld [vmem:[%s4168_s0 + $0x6b0] sm:$0xf]  ;;  %487 = vst [vmem:[%s4173_s6 + $0x1a4] sm:$0xf] %v486_v9  ;;  %489 = vst [vmem:[%s4173_s6 + $0x1a8] sm:$0xf] %v488_v10 }
  0x8d   : > { %491 = vst [vmem:[%s4173_s6 + $0x1ac] sm:$0xf] %v490_v11  ;;  %v492_v12 = vld [vmem:[%s4168_s0 + $0x6c0] sm:$0xf]  ;;  %v494_v13 = vld [vmem:[%s4168_s0 + $0x6d0] sm:$0xf] }
  0x8e   : > { %v496_v14 = vld [vmem:[%s4168_s0 + $0x6e0] sm:$0xf]  ;;  %493 = vst [vmem:[%s4173_s6 + $0x1b0] sm:$0xf] %v492_v12  ;;  %495 = vst [vmem:[%s4173_s6 + $0x1b4] sm:$0xf] %v494_v13 }
  0x8f   : > { %497 = vst [vmem:[%s4173_s6 + $0x1b8] sm:$0xf] %v496_v14  ;;  %v498_v15 = vld [vmem:[%s4168_s0 + $0x6f0] sm:$0xf]  ;;  %v500_v16 = vld [vmem:[%s4168_s0 + $0x700] sm:$0xf] }
  0x90   : > { %v502_v17 = vld [vmem:[%s4168_s0 + $0x710] sm:$0xf]  ;;  %499 = vst [vmem:[%s4173_s6 + $0x1bc] sm:$0xf] %v498_v15  ;;  %501 = vst [vmem:[%s4173_s6 + $0x1c0] sm:$0xf] %v500_v16 }
  0x91   : > { %503 = vst [vmem:[%s4173_s6 + $0x1c4] sm:$0xf] %v502_v17  ;;  %v504_v18 = vld [vmem:[%s4168_s0 + $0x720] sm:$0xf]  ;;  %v506_v19 = vld [vmem:[%s4168_s0 + $0x730] sm:$0xf] }
  0x92   : > { %v508_v20 = vld [vmem:[%s4168_s0 + $0x740] sm:$0xf]  ;;  %505 = vst [vmem:[%s4173_s6 + $0x1c8] sm:$0xf] %v504_v18  ;;  %507 = vst [vmem:[%s4173_s6 + $0x1cc] sm:$0xf] %v506_v19 }
  0x93   : > { %509 = vst [vmem:[%s4173_s6 + $0x1d0] sm:$0xf] %v508_v20  ;;  %v510_v21 = vld [vmem:[%s4168_s0 + $0x750] sm:$0xf]  ;;  %v512_v22 = vld [vmem:[%s4168_s0 + $0x760] sm:$0xf] }
  0x94   : > { %v514_v23 = vld [vmem:[%s4168_s0 + $0x770] sm:$0xf]  ;;  %511 = vst [vmem:[%s4173_s6 + $0x1d4] sm:$0xf] %v510_v21  ;;  %513 = vst [vmem:[%s4173_s6 + $0x1d8] sm:$0xf] %v512_v22 }
  0x95   : > { %515 = vst [vmem:[%s4173_s6 + $0x1dc] sm:$0xf] %v514_v23  ;;  %v516_v24 = vld [vmem:[%s4168_s0 + $0x780] sm:$0xf]  ;;  %v518_v25 = vld [vmem:[%s4168_s0 + $0x790] sm:$0xf] }
  0x96   : > { %v520_v26 = vld [vmem:[%s4168_s0 + $0x7a0] sm:$0xf]  ;;  %517 = vst [vmem:[%s4173_s6 + $0x1e0] sm:$0xf] %v516_v24  ;;  %519 = vst [vmem:[%s4173_s6 + $0x1e4] sm:$0xf] %v518_v25 }
  0x97   : > { %521 = vst [vmem:[%s4173_s6 + $0x1e8] sm:$0xf] %v520_v26  ;;  %v522_v27 = vld [vmem:[%s4168_s0 + $0x7b0] sm:$0xf]  ;;  %v524_v28 = vld [vmem:[%s4168_s0 + $0x7c0] sm:$0xf] }
  0x98   : > { %v526_v29 = vld [vmem:[%s4168_s0 + $0x7d0] sm:$0xf]  ;;  %523 = vst [vmem:[%s4173_s6 + $0x1ec] sm:$0xf] %v522_v27  ;;  %525 = vst [vmem:[%s4173_s6 + $0x1f0] sm:$0xf] %v524_v28 }
  0x99   : > { %527 = vst [vmem:[%s4173_s6 + $0x1f4] sm:$0xf] %v526_v29  ;;  %v528_v30 = vld [vmem:[%s4168_s0 + $0x7e0] sm:$0xf]  ;;  %v530_v31 = vld [vmem:[%s4168_s0 + $0x7f0] sm:$0xf] }
  0x9a   : > { %v532_v32 = vld [vmem:[%s4168_s0 + $0x800] sm:$0xf]  ;;  %529 = vst [vmem:[%s4173_s6 + $0x1f8] sm:$0xf] %v528_v30  ;;  %531 = vst [vmem:[%s4173_s6 + $0x1fc] sm:$0xf] %v530_v31 }
  0x9b   : > { %533 = vst [vmem:[%s4173_s6 + $0x200] sm:$0xf] %v532_v32  ;;  %v534_v33 = vld [vmem:[%s4168_s0 + $0x810] sm:$0xf]  ;;  %v536_v34 = vld [vmem:[%s4168_s0 + $0x820] sm:$0xf] }
  0x9c   : > { %v538_v35 = vld [vmem:[%s4168_s0 + $0x830] sm:$0xf]  ;;  %535 = vst [vmem:[%s4173_s6 + $0x204] sm:$0xf] %v534_v33  ;;  %537 = vst [vmem:[%s4173_s6 + $0x208] sm:$0xf] %v536_v34 }
  0x9d   : > { %539 = vst [vmem:[%s4173_s6 + $0x20c] sm:$0xf] %v538_v35  ;;  %v540_v36 = vld [vmem:[%s4168_s0 + $0x840] sm:$0xf]  ;;  %v542_v37 = vld [vmem:[%s4168_s0 + $0x850] sm:$0xf] }
  0x9e   : > { %v544_v38 = vld [vmem:[%s4168_s0 + $0x860] sm:$0xf]  ;;  %541 = vst [vmem:[%s4173_s6 + $0x210] sm:$0xf] %v540_v36  ;;  %543 = vst [vmem:[%s4173_s6 + $0x214] sm:$0xf] %v542_v37 }
  0x9f   : > { %545 = vst [vmem:[%s4173_s6 + $0x218] sm:$0xf] %v544_v38  ;;  %v546_v39 = vld [vmem:[%s4168_s0 + $0x870] sm:$0xf]  ;;  %v548_v40 = vld [vmem:[%s4168_s0 + $0x880] sm:$0xf] }
  0xa0   : > { %v550_v41 = vld [vmem:[%s4168_s0 + $0x890] sm:$0xf]  ;;  %547 = vst [vmem:[%s4173_s6 + $0x21c] sm:$0xf] %v546_v39  ;;  %549 = vst [vmem:[%s4173_s6 + $0x220] sm:$0xf] %v548_v40 }
  0xa1   : > { %551 = vst [vmem:[%s4173_s6 + $0x224] sm:$0xf] %v550_v41  ;;  %v552_v42 = vld [vmem:[%s4168_s0 + $0x8a0] sm:$0xf]  ;;  %v554_v43 = vld [vmem:[%s4168_s0 + $0x8b0] sm:$0xf] }
  0xa2   : > { %v556_v44 = vld [vmem:[%s4168_s0 + $0x8c0] sm:$0xf]  ;;  %553 = vst [vmem:[%s4173_s6 + $0x228] sm:$0xf] %v552_v42  ;;  %555 = vst [vmem:[%s4173_s6 + $0x22c] sm:$0xf] %v554_v43 }
  0xa3   : > { %557 = vst [vmem:[%s4173_s6 + $0x230] sm:$0xf] %v556_v44  ;;  %v558_v45 = vld [vmem:[%s4168_s0 + $0x8d0] sm:$0xf]  ;;  %v560_v46 = vld [vmem:[%s4168_s0 + $0x8e0] sm:$0xf] }
  0xa4   : > { %v562_v47 = vld [vmem:[%s4168_s0 + $0x8f0] sm:$0xf]  ;;  %559 = vst [vmem:[%s4173_s6 + $0x234] sm:$0xf] %v558_v45  ;;  %561 = vst [vmem:[%s4173_s6 + $0x238] sm:$0xf] %v560_v46 }
  0xa5   : > { %563 = vst [vmem:[%s4173_s6 + $0x23c] sm:$0xf] %v562_v47  ;;  %v564_v48 = vld [vmem:[%s4168_s0 + $0x900] sm:$0xf]  ;;  %v566_v49 = vld [vmem:[%s4168_s0 + $0x910] sm:$0xf] }
  0xa6   : > { %v568_v50 = vld [vmem:[%s4168_s0 + $0x920] sm:$0xf]  ;;  %565 = vst [vmem:[%s4173_s6 + $0x240] sm:$0xf] %v564_v48  ;;  %567 = vst [vmem:[%s4173_s6 + $0x244] sm:$0xf] %v566_v49 }
  0xa7   : > { %569 = vst [vmem:[%s4173_s6 + $0x248] sm:$0xf] %v568_v50  ;;  %v570_v51 = vld [vmem:[%s4168_s0 + $0x930] sm:$0xf]  ;;  %v572_v52 = vld [vmem:[%s4168_s0 + $0x940] sm:$0xf] }
  0xa8   : > { %v574_v53 = vld [vmem:[%s4168_s0 + $0x950] sm:$0xf]  ;;  %571 = vst [vmem:[%s4173_s6 + $0x24c] sm:$0xf] %v570_v51  ;;  %573 = vst [vmem:[%s4173_s6 + $0x250] sm:$0xf] %v572_v52 }
  0xa9   : > { %575 = vst [vmem:[%s4173_s6 + $0x254] sm:$0xf] %v574_v53  ;;  %v576_v54 = vld [vmem:[%s4168_s0 + $0x960] sm:$0xf]  ;;  %v578_v55 = vld [vmem:[%s4168_s0 + $0x970] sm:$0xf] }
  0xaa   : > { %v580_v56 = vld [vmem:[%s4168_s0 + $0x980] sm:$0xf]  ;;  %577 = vst [vmem:[%s4173_s6 + $0x258] sm:$0xf] %v576_v54  ;;  %579 = vst [vmem:[%s4173_s6 + $0x25c] sm:$0xf] %v578_v55 }
  0xab   : > { %581 = vst [vmem:[%s4173_s6 + $0x260] sm:$0xf] %v580_v56  ;;  %v582_v57 = vld [vmem:[%s4168_s0 + $0x990] sm:$0xf]  ;;  %v584_v58 = vld [vmem:[%s4168_s0 + $0x9a0] sm:$0xf] }
  0xac   : > { %v586_v59 = vld [vmem:[%s4168_s0 + $0x9b0] sm:$0xf]  ;;  %583 = vst [vmem:[%s4173_s6 + $0x264] sm:$0xf] %v582_v57  ;;  %585 = vst [vmem:[%s4173_s6 + $0x268] sm:$0xf] %v584_v58 }
  0xad   : > { %587 = vst [vmem:[%s4173_s6 + $0x26c] sm:$0xf] %v586_v59  ;;  %v588_v60 = vld [vmem:[%s4168_s0 + $0x9c0] sm:$0xf]  ;;  %v590_v61 = vld [vmem:[%s4168_s0 + $0x9d0] sm:$0xf] }
  0xae   : > { %v592_v62 = vld [vmem:[%s4168_s0 + $0x9e0] sm:$0xf]  ;;  %589 = vst [vmem:[%s4173_s6 + $0x270] sm:$0xf] %v588_v60  ;;  %591 = vst [vmem:[%s4173_s6 + $0x274] sm:$0xf] %v590_v61 }
  0xaf   : > { %593 = vst [vmem:[%s4173_s6 + $0x278] sm:$0xf] %v592_v62  ;;  %v594_v63 = vld [vmem:[%s4168_s0 + $0x9f0] sm:$0xf]  ;;  %v596_v0 = vld [vmem:[%s4168_s0 + $0xa00] sm:$0xf] }
  0xb0   : > { %v598_v1 = vld [vmem:[%s4168_s0 + $0xa10] sm:$0xf]  ;;  %595 = vst [vmem:[%s4173_s6 + $0x27c] sm:$0xf] %v594_v63  ;;  %597 = vst [vmem:[%s4173_s6 + $0x280] sm:$0xf] %v596_v0 }
  0xb1   : > { %599 = vst [vmem:[%s4173_s6 + $0x284] sm:$0xf] %v598_v1  ;;  %v600_v2 = vld [vmem:[%s4168_s0 + $0xa20] sm:$0xf]  ;;  %v602_v3 = vld [vmem:[%s4168_s0 + $0xa30] sm:$0xf] }
  0xb2   : > { %v604_v4 = vld [vmem:[%s4168_s0 + $0xa40] sm:$0xf]  ;;  %601 = vst [vmem:[%s4173_s6 + $0x288] sm:$0xf] %v600_v2  ;;  %603 = vst [vmem:[%s4173_s6 + $0x28c] sm:$0xf] %v602_v3 }
  0xb3   : > { %605 = vst [vmem:[%s4173_s6 + $0x290] sm:$0xf] %v604_v4  ;;  %v606_v5 = vld [vmem:[%s4168_s0 + $0xa50] sm:$0xf]  ;;  %v608_v6 = vld [vmem:[%s4168_s0 + $0xa60] sm:$0xf] }
  0xb4   : > { %v610_v7 = vld [vmem:[%s4168_s0 + $0xa70] sm:$0xf]  ;;  %607 = vst [vmem:[%s4173_s6 + $0x294] sm:$0xf] %v606_v5  ;;  %609 = vst [vmem:[%s4173_s6 + $0x298] sm:$0xf] %v608_v6 }
  0xb5   : > { %611 = vst [vmem:[%s4173_s6 + $0x29c] sm:$0xf] %v610_v7  ;;  %v612_v8 = vld [vmem:[%s4168_s0 + $0xa80] sm:$0xf]  ;;  %v614_v9 = vld [vmem:[%s4168_s0 + $0xa90] sm:$0xf] }
  0xb6   : > { %v616_v10 = vld [vmem:[%s4168_s0 + $0xaa0] sm:$0xf]  ;;  %613 = vst [vmem:[%s4173_s6 + $0x2a0] sm:$0xf] %v612_v8  ;;  %615 = vst [vmem:[%s4173_s6 + $0x2a4] sm:$0xf] %v614_v9 }
  0xb7   : > { %617 = vst [vmem:[%s4173_s6 + $0x2a8] sm:$0xf] %v616_v10  ;;  %v618_v11 = vld [vmem:[%s4168_s0 + $0xab0] sm:$0xf]  ;;  %v620_v12 = vld [vmem:[%s4168_s0 + $0xac0] sm:$0xf] }
  0xb8   : > { %v622_v13 = vld [vmem:[%s4168_s0 + $0xad0] sm:$0xf]  ;;  %619 = vst [vmem:[%s4173_s6 + $0x2ac] sm:$0xf] %v618_v11  ;;  %621 = vst [vmem:[%s4173_s6 + $0x2b0] sm:$0xf] %v620_v12 }
  0xb9   : > { %623 = vst [vmem:[%s4173_s6 + $0x2b4] sm:$0xf] %v622_v13  ;;  %v624_v14 = vld [vmem:[%s4168_s0 + $0xae0] sm:$0xf]  ;;  %v626_v15 = vld [vmem:[%s4168_s0 + $0xaf0] sm:$0xf] }
  0xba   : > { %v628_v16 = vld [vmem:[%s4168_s0 + $0xb00] sm:$0xf]  ;;  %625 = vst [vmem:[%s4173_s6 + $0x2b8] sm:$0xf] %v624_v14  ;;  %627 = vst [vmem:[%s4173_s6 + $0x2bc] sm:$0xf] %v626_v15 }
  0xbb   : > { %629 = vst [vmem:[%s4173_s6 + $0x2c0] sm:$0xf] %v628_v16  ;;  %v630_v17 = vld [vmem:[%s4168_s0 + $0xb10] sm:$0xf]  ;;  %v632_v18 = vld [vmem:[%s4168_s0 + $0xb20] sm:$0xf] }
  0xbc   : > { %v634_v19 = vld [vmem:[%s4168_s0 + $0xb30] sm:$0xf]  ;;  %631 = vst [vmem:[%s4173_s6 + $0x2c4] sm:$0xf] %v630_v17  ;;  %633 = vst [vmem:[%s4173_s6 + $0x2c8] sm:$0xf] %v632_v18 }
  0xbd   : > { %635 = vst [vmem:[%s4173_s6 + $0x2cc] sm:$0xf] %v634_v19  ;;  %v636_v20 = vld [vmem:[%s4168_s0 + $0xb40] sm:$0xf]  ;;  %v638_v21 = vld [vmem:[%s4168_s0 + $0xb50] sm:$0xf] }
  0xbe   : > { %v640_v22 = vld [vmem:[%s4168_s0 + $0xb60] sm:$0xf]  ;;  %637 = vst [vmem:[%s4173_s6 + $0x2d0] sm:$0xf] %v636_v20  ;;  %639 = vst [vmem:[%s4173_s6 + $0x2d4] sm:$0xf] %v638_v21 }
  0xbf   : > { %641 = vst [vmem:[%s4173_s6 + $0x2d8] sm:$0xf] %v640_v22  ;;  %v642_v23 = vld [vmem:[%s4168_s0 + $0xb70] sm:$0xf]  ;;  %v644_v24 = vld [vmem:[%s4168_s0 + $0xb80] sm:$0xf] }
  0xc0   : > { %v646_v25 = vld [vmem:[%s4168_s0 + $0xb90] sm:$0xf]  ;;  %643 = vst [vmem:[%s4173_s6 + $0x2dc] sm:$0xf] %v642_v23  ;;  %645 = vst [vmem:[%s4173_s6 + $0x2e0] sm:$0xf] %v644_v24 }
  0xc1   : > { %647 = vst [vmem:[%s4173_s6 + $0x2e4] sm:$0xf] %v646_v25  ;;  %v648_v26 = vld [vmem:[%s4168_s0 + $0xba0] sm:$0xf]  ;;  %v650_v27 = vld [vmem:[%s4168_s0 + $0xbb0] sm:$0xf] }
  0xc2   : > { %v652_v28 = vld [vmem:[%s4168_s0 + $0xbc0] sm:$0xf]  ;;  %649 = vst [vmem:[%s4173_s6 + $0x2e8] sm:$0xf] %v648_v26  ;;  %651 = vst [vmem:[%s4173_s6 + $0x2ec] sm:$0xf] %v650_v27 }
  0xc3   : > { %653 = vst [vmem:[%s4173_s6 + $0x2f0] sm:$0xf] %v652_v28  ;;  %v654_v29 = vld [vmem:[%s4168_s0 + $0xbd0] sm:$0xf]  ;;  %v656_v30 = vld [vmem:[%s4168_s0 + $0xbe0] sm:$0xf] }
  0xc4   : > { %v658_v31 = vld [vmem:[%s4168_s0 + $0xbf0] sm:$0xf]  ;;  %655 = vst [vmem:[%s4173_s6 + $0x2f4] sm:$0xf] %v654_v29  ;;  %657 = vst [vmem:[%s4173_s6 + $0x2f8] sm:$0xf] %v656_v30 }
  0xc5   : > { %659 = vst [vmem:[%s4173_s6 + $0x2fc] sm:$0xf] %v658_v31  ;;  %v660_v32 = vld [vmem:[%s4168_s0 + $0xc00] sm:$0xf]  ;;  %v662_v33 = vld [vmem:[%s4168_s0 + $0xc10] sm:$0xf] }
  0xc6   : > { %v664_v34 = vld [vmem:[%s4168_s0 + $0xc20] sm:$0xf]  ;;  %661 = vst [vmem:[%s4173_s6 + $0x300] sm:$0xf] %v660_v32  ;;  %663 = vst [vmem:[%s4173_s6 + $0x304] sm:$0xf] %v662_v33 }
  0xc7   : > { %665 = vst [vmem:[%s4173_s6 + $0x308] sm:$0xf] %v664_v34  ;;  %v666_v35 = vld [vmem:[%s4168_s0 + $0xc30] sm:$0xf]  ;;  %v668_v36 = vld [vmem:[%s4168_s0 + $0xc40] sm:$0xf] }
  0xc8   : > { %v670_v37 = vld [vmem:[%s4168_s0 + $0xc50] sm:$0xf]  ;;  %667 = vst [vmem:[%s4173_s6 + $0x30c] sm:$0xf] %v666_v35  ;;  %669 = vst [vmem:[%s4173_s6 + $0x310] sm:$0xf] %v668_v36 }
  0xc9   : > { %671 = vst [vmem:[%s4173_s6 + $0x314] sm:$0xf] %v670_v37  ;;  %v672_v38 = vld [vmem:[%s4168_s0 + $0xc60] sm:$0xf]  ;;  %v674_v39 = vld [vmem:[%s4168_s0 + $0xc70] sm:$0xf] }
  0xca   : > { %v676_v40 = vld [vmem:[%s4168_s0 + $0xc80] sm:$0xf]  ;;  %673 = vst [vmem:[%s4173_s6 + $0x318] sm:$0xf] %v672_v38  ;;  %675 = vst [vmem:[%s4173_s6 + $0x31c] sm:$0xf] %v674_v39 }
  0xcb   : > { %677 = vst [vmem:[%s4173_s6 + $0x320] sm:$0xf] %v676_v40  ;;  %v678_v41 = vld [vmem:[%s4168_s0 + $0xc90] sm:$0xf]  ;;  %v680_v42 = vld [vmem:[%s4168_s0 + $0xca0] sm:$0xf] }
  0xcc   : > { %v682_v43 = vld [vmem:[%s4168_s0 + $0xcb0] sm:$0xf]  ;;  %679 = vst [vmem:[%s4173_s6 + $0x324] sm:$0xf] %v678_v41  ;;  %681 = vst [vmem:[%s4173_s6 + $0x328] sm:$0xf] %v680_v42 }
  0xcd   : > { %683 = vst [vmem:[%s4173_s6 + $0x32c] sm:$0xf] %v682_v43  ;;  %v684_v44 = vld [vmem:[%s4168_s0 + $0xcc0] sm:$0xf]  ;;  %v686_v45 = vld [vmem:[%s4168_s0 + $0xcd0] sm:$0xf] }
  0xce   : > { %v688_v46 = vld [vmem:[%s4168_s0 + $0xce0] sm:$0xf]  ;;  %685 = vst [vmem:[%s4173_s6 + $0x330] sm:$0xf] %v684_v44  ;;  %687 = vst [vmem:[%s4173_s6 + $0x334] sm:$0xf] %v686_v45 }
  0xcf   : > { %689 = vst [vmem:[%s4173_s6 + $0x338] sm:$0xf] %v688_v46  ;;  %v690_v47 = vld [vmem:[%s4168_s0 + $0xcf0] sm:$0xf]  ;;  %v692_v48 = vld [vmem:[%s4168_s0 + $0xd00] sm:$0xf] }
  0xd0   : > { %v694_v49 = vld [vmem:[%s4168_s0 + $0xd10] sm:$0xf]  ;;  %691 = vst [vmem:[%s4173_s6 + $0x33c] sm:$0xf] %v690_v47  ;;  %693 = vst [vmem:[%s4173_s6 + $0x340] sm:$0xf] %v692_v48 }
  0xd1   : > { %695 = vst [vmem:[%s4173_s6 + $0x344] sm:$0xf] %v694_v49  ;;  %v696_v50 = vld [vmem:[%s4168_s0 + $0xd20] sm:$0xf]  ;;  %v698_v51 = vld [vmem:[%s4168_s0 + $0xd30] sm:$0xf] }
  0xd2   : > { %v700_v52 = vld [vmem:[%s4168_s0 + $0xd40] sm:$0xf]  ;;  %697 = vst [vmem:[%s4173_s6 + $0x348] sm:$0xf] %v696_v50  ;;  %699 = vst [vmem:[%s4173_s6 + $0x34c] sm:$0xf] %v698_v51 }
  0xd3   : > { %701 = vst [vmem:[%s4173_s6 + $0x350] sm:$0xf] %v700_v52  ;;  %v702_v53 = vld [vmem:[%s4168_s0 + $0xd50] sm:$0xf]  ;;  %v704_v54 = vld [vmem:[%s4168_s0 + $0xd60] sm:$0xf] }
  0xd4   : > { %v706_v55 = vld [vmem:[%s4168_s0 + $0xd70] sm:$0xf]  ;;  %703 = vst [vmem:[%s4173_s6 + $0x354] sm:$0xf] %v702_v53  ;;  %705 = vst [vmem:[%s4173_s6 + $0x358] sm:$0xf] %v704_v54 }
  0xd5   : > { %707 = vst [vmem:[%s4173_s6 + $0x35c] sm:$0xf] %v706_v55  ;;  %v708_v56 = vld [vmem:[%s4168_s0 + $0xd80] sm:$0xf]  ;;  %v710_v57 = vld [vmem:[%s4168_s0 + $0xd90] sm:$0xf] }
  0xd6   : > { %v712_v58 = vld [vmem:[%s4168_s0 + $0xda0] sm:$0xf]  ;;  %709 = vst [vmem:[%s4173_s6 + $0x360] sm:$0xf] %v708_v56  ;;  %711 = vst [vmem:[%s4173_s6 + $0x364] sm:$0xf] %v710_v57 }
  0xd7   : > { %713 = vst [vmem:[%s4173_s6 + $0x368] sm:$0xf] %v712_v58  ;;  %v714_v59 = vld [vmem:[%s4168_s0 + $0xdb0] sm:$0xf]  ;;  %v716_v60 = vld [vmem:[%s4168_s0 + $0xdc0] sm:$0xf] }
  0xd8   : > { %v718_v61 = vld [vmem:[%s4168_s0 + $0xdd0] sm:$0xf]  ;;  %715 = vst [vmem:[%s4173_s6 + $0x36c] sm:$0xf] %v714_v59  ;;  %717 = vst [vmem:[%s4173_s6 + $0x370] sm:$0xf] %v716_v60 }
  0xd9   : > { %719 = vst [vmem:[%s4173_s6 + $0x374] sm:$0xf] %v718_v61  ;;  %v720_v62 = vld [vmem:[%s4168_s0 + $0xde0] sm:$0xf]  ;;  %v722_v63 = vld [vmem:[%s4168_s0 + $0xdf0] sm:$0xf] }
  0xda   : > { %v724_v0 = vld [vmem:[%s4168_s0 + $0xe00] sm:$0xf]  ;;  %721 = vst [vmem:[%s4173_s6 + $0x378] sm:$0xf] %v720_v62  ;;  %723 = vst [vmem:[%s4173_s6 + $0x37c] sm:$0xf] %v722_v63 }
  0xdb   : > { %725 = vst [vmem:[%s4173_s6 + $0x380] sm:$0xf] %v724_v0  ;;  %v726_v1 = vld [vmem:[%s4168_s0 + $0xe10] sm:$0xf]  ;;  %v728_v2 = vld [vmem:[%s4168_s0 + $0xe20] sm:$0xf] }
  0xdc   : > { %v730_v3 = vld [vmem:[%s4168_s0 + $0xe30] sm:$0xf]  ;;  %727 = vst [vmem:[%s4173_s6 + $0x384] sm:$0xf] %v726_v1  ;;  %729 = vst [vmem:[%s4173_s6 + $0x388] sm:$0xf] %v728_v2 }
  0xdd   : > { %731 = vst [vmem:[%s4173_s6 + $0x38c] sm:$0xf] %v730_v3  ;;  %v732_v4 = vld [vmem:[%s4168_s0 + $0xe40] sm:$0xf]  ;;  %v734_v5 = vld [vmem:[%s4168_s0 + $0xe50] sm:$0xf] }
  0xde   : > { %v736_v6 = vld [vmem:[%s4168_s0 + $0xe60] sm:$0xf]  ;;  %733 = vst [vmem:[%s4173_s6 + $0x390] sm:$0xf] %v732_v4  ;;  %735 = vst [vmem:[%s4173_s6 + $0x394] sm:$0xf] %v734_v5 }
  0xdf   : > { %737 = vst [vmem:[%s4173_s6 + $0x398] sm:$0xf] %v736_v6  ;;  %v738_v7 = vld [vmem:[%s4168_s0 + $0xe70] sm:$0xf]  ;;  %v740_v8 = vld [vmem:[%s4168_s0 + $0xe80] sm:$0xf] }
  0xe0   : > { %v742_v9 = vld [vmem:[%s4168_s0 + $0xe90] sm:$0xf]  ;;  %739 = vst [vmem:[%s4173_s6 + $0x39c] sm:$0xf] %v738_v7  ;;  %741 = vst [vmem:[%s4173_s6 + $0x3a0] sm:$0xf] %v740_v8 }
  0xe1   : > { %743 = vst [vmem:[%s4173_s6 + $0x3a4] sm:$0xf] %v742_v9  ;;  %v744_v10 = vld [vmem:[%s4168_s0 + $0xea0] sm:$0xf]  ;;  %v746_v11 = vld [vmem:[%s4168_s0 + $0xeb0] sm:$0xf] }
  0xe2   : > { %v748_v12 = vld [vmem:[%s4168_s0 + $0xec0] sm:$0xf]  ;;  %745 = vst [vmem:[%s4173_s6 + $0x3a8] sm:$0xf] %v744_v10  ;;  %747 = vst [vmem:[%s4173_s6 + $0x3ac] sm:$0xf] %v746_v11 }
  0xe3   : > { %749 = vst [vmem:[%s4173_s6 + $0x3b0] sm:$0xf] %v748_v12  ;;  %v750_v13 = vld [vmem:[%s4168_s0 + $0xed0] sm:$0xf]  ;;  %v752_v14 = vld [vmem:[%s4168_s0 + $0xee0] sm:$0xf] }
  0xe4   : > { %v754_v15 = vld [vmem:[%s4168_s0 + $0xef0] sm:$0xf]  ;;  %751 = vst [vmem:[%s4173_s6 + $0x3b4] sm:$0xf] %v750_v13  ;;  %753 = vst [vmem:[%s4173_s6 + $0x3b8] sm:$0xf] %v752_v14 }
  0xe5   : > { %755 = vst [vmem:[%s4173_s6 + $0x3bc] sm:$0xf] %v754_v15  ;;  %v756_v16 = vld [vmem:[%s4168_s0 + $0xf00] sm:$0xf]  ;;  %v758_v17 = vld [vmem:[%s4168_s0 + $0xf10] sm:$0xf] }
  0xe6   : > { %v760_v18 = vld [vmem:[%s4168_s0 + $0xf20] sm:$0xf]  ;;  %757 = vst [vmem:[%s4173_s6 + $0x3c0] sm:$0xf] %v756_v16  ;;  %759 = vst [vmem:[%s4173_s6 + $0x3c4] sm:$0xf] %v758_v17 }
  0xe7   : > { %761 = vst [vmem:[%s4173_s6 + $0x3c8] sm:$0xf] %v760_v18  ;;  %v762_v19 = vld [vmem:[%s4168_s0 + $0xf30] sm:$0xf]  ;;  %v764_v20 = vld [vmem:[%s4168_s0 + $0xf40] sm:$0xf] }
  0xe8   : > { %v766_v21 = vld [vmem:[%s4168_s0 + $0xf50] sm:$0xf]  ;;  %763 = vst [vmem:[%s4173_s6 + $0x3cc] sm:$0xf] %v762_v19  ;;  %765 = vst [vmem:[%s4173_s6 + $0x3d0] sm:$0xf] %v764_v20 }
  0xe9   : > { %767 = vst [vmem:[%s4173_s6 + $0x3d4] sm:$0xf] %v766_v21  ;;  %v768_v22 = vld [vmem:[%s4168_s0 + $0xf60] sm:$0xf]  ;;  %v770_v23 = vld [vmem:[%s4168_s0 + $0xf70] sm:$0xf] }
  0xea   : > { %v772_v24 = vld [vmem:[%s4168_s0 + $0xf80] sm:$0xf]  ;;  %769 = vst [vmem:[%s4173_s6 + $0x3d8] sm:$0xf] %v768_v22  ;;  %771 = vst [vmem:[%s4173_s6 + $0x3dc] sm:$0xf] %v770_v23 }
  0xeb   : > { %773 = vst [vmem:[%s4173_s6 + $0x3e0] sm:$0xf] %v772_v24  ;;  %v774_v25 = vld [vmem:[%s4168_s0 + $0xf90] sm:$0xf]  ;;  %v776_v26 = vld [vmem:[%s4168_s0 + $0xfa0] sm:$0xf] }
  0xec   : > { %v778_v27 = vld [vmem:[%s4168_s0 + $0xfb0] sm:$0xf]  ;;  %775 = vst [vmem:[%s4173_s6 + $0x3e4] sm:$0xf] %v774_v25  ;;  %777 = vst [vmem:[%s4173_s6 + $0x3e8] sm:$0xf] %v776_v26 }
  0xed   : > { %779 = vst [vmem:[%s4173_s6 + $0x3ec] sm:$0xf] %v778_v27  ;;  %v780_v28 = vld [vmem:[%s4168_s0 + $0xfc0] sm:$0xf]  ;;  %v782_v29 = vld [vmem:[%s4168_s0 + $0xfd0] sm:$0xf] }
  0xee   : > { %v784_v30 = vld [vmem:[%s4168_s0 + $0xfe0] sm:$0xf]  ;;  %781 = vst [vmem:[%s4173_s6 + $0x3f0] sm:$0xf] %v780_v28  ;;  %783 = vst [vmem:[%s4173_s6 + $0x3f4] sm:$0xf] %v782_v29 }
  0xef   : > { %785 = vst [vmem:[%s4173_s6 + $0x3f8] sm:$0xf] %v784_v30  ;;  %v786_v31 = vld [vmem:[%s4168_s0 + $0xff0] sm:$0xf] }
  0xf0   : > { %787 = vst [vmem:[%s4173_s6 + $0x3fc] sm:$0xf] %v786_v31 }
  0xf1 PF: > { %p3244_p0 = scmp.ge.s32.totalorder %s3963_s22, 1  ;;  %p1328_p1 = scmp.lt.s32.totalorder %s3963_s22, 9 }
  0xf3   : > { %p1329_p2 = pnand %p3244_p0, %p1328_p1 }
  0xf4   : > { %s1335_s5 = sand.u32 (!%p1329_p2), 1, %s3939_s16   ;;  %s1342_s23 = sand.u32 (!%p1329_p2), 1, %s3931_s14  }
  0xf5   : > { %1332 = sbr.rel (%p1329_p2) target bundleno = 648 (0x288), region = 88  ;;  %s3245_s28 = sshll.u32 (!%p1329_p2), %s1335_s5, 8 }
  0xf6   : > { %s3246_s7 = sshll.u32 (!%p1329_p2), %s1342_s23, 10  ;;  %s1369_s11 = sand.u32 (!%p1329_p2), 1, %s3923_s12  }
  0xf7   : > { %p1375_p3 = scmp.lt.s32.totalorder (!%p1329_p2), %s3951_s19, 3  ;;  %s3247_s0 = sshll.u32 (!%p1329_p2), %s1369_s11, 4 }
  0xf8   : > { %s4696_s1 = scalar_lea.vmem (!%p1329_p2), [#allocation3], %s3245_s28  ;;  %s4698_s25 = scalar_lea.vmem (!%p1329_p2), [#allocation4], %s3246_s7 }
  0xf9   : > { %s4700_s24 = scalar_lea.vmem (!%p1329_p2), [#allocation5], %s3247_s0  ;;  %p3249_p4 = scmp.ne.s32.totalorder (!%p1329_p2), %s3947_s18, 0 }
  0xfc   : > { %s1376_s26 = scalar_select %p1375_p3, %s3951_s19, 3 }
  0xfd   : > { %1384 = sbr.rel (%p3249_p4) target bundleno = 260 (0x104), region = 100  ;;  %v3965_v32 = vmov (!%p3249_p4), 0.0  }
  0xfe   : > { %s3248_s27 = sshll.u32 %s1376_s26, 1  ;;  %1385 = vst [vmem:[#allocation2] sm:$0xff] (!%p3249_p4), %v3965_v32  ;;  %1386 = vst [vmem:[#allocation2 + $0x8] sm:$0xff] (!%p3249_p4), %v3965_v32 }
  0xff   : > { %s4694_s6 = scalar_lea.vmem %s4912_s2, %s3248_s27  ;;  %1387 = vst [vmem:[#allocation2 + $0x10] sm:$0xff] (!%p3249_p4), %v3965_v32  ;;  %1388 = vst [vmem:[#allocation2 + $0x18] sm:$0xff] (!%p3249_p4), %v3965_v32 }
 0x104 PF: > { %v3749_v33 = vld [vmem:[%s4698_s25 + $0x40] sm:$0xff]   ;;  %v3753_v37 = vld [vmem:[%s4698_s25 + $0x48] sm:$0xff]   ;;  %v3757_v41 = vld [vmem:[%s4698_s25 + $0x50] sm:$0xff]   ;;  %p3410_p5 = scmp.ne.s32.totalorder %s3947_s18, 1 }
 0x105   : > { %v3750_v34 = vld [vmem:[%s4698_s25 + $0xc0] sm:$0xff]   ;;  %3436 = vmatprep.subr.bf16.mxu0 %v3749_v33  ;;  %v3754_v38 = vld [vmem:[%s4698_s25 + $0xc8] sm:$0xff]   ;;  %v3758_v42 = vld [vmem:[%s4698_s25 + $0xd0] sm:$0xff]  }
 0x106   : > { %v3751_v35 = vld [vmem:[%s4698_s25] sm:$0xff]   ;;  %3464 = vmatprep.subr.bf16.mxu1 %v3750_v34  ;;  %v3755_v39 = vld [vmem:[%s4698_s25 + $0x8] sm:$0xff]   ;;  %v3759_v43 = vld [vmem:[%s4698_s25 + $0x10] sm:$0xff]  }
 0x107   : > { %v3752_v36 = vld [vmem:[%s4698_s25 + $0x80] sm:$0xff]   ;;  %3437 = vmatpush3.bf16.msra.mxu0 %v3751_v35  ;;  %v3756_v40 = vld [vmem:[%s4698_s25 + $0x88] sm:$0xff]   ;;  %v3760_v44 = vld [vmem:[%s4698_s25 + $0x90] sm:$0xff]  }
 0x108   : > { %3465 = vmatpush3.bf16.msra.mxu1 %v3752_v36  ;;  %3438 = vmatprep.subr.bf16.mxu0 %v3753_v37  ;;  %v3761_v45 = vld [vmem:[%s4698_s25 + $0x58] sm:$0xff]   ;;  %v3765_v49 = vld [vmem:[%s4698_s25 + $0x60] sm:$0xff]   ;;  %v3769_v53 = vld [vmem:[%s4698_s25 + $0x68] sm:$0xff]  }
 0x109   : > { %3466 = vmatprep.subr.bf16.mxu1 %v3754_v38  ;;  %v3762_v46 = vld [vmem:[%s4698_s25 + $0xd8] sm:$0xff]   ;;  %v3766_v50 = vld [vmem:[%s4698_s25 + $0xe0] sm:$0xff]   ;;  %v3770_v54 = vld [vmem:[%s4698_s25 + $0xe8] sm:$0xff]  }
 0x10a   : > { %v3763_v47 = vld [vmem:[%s4698_s25 + $0x18] sm:$0xff]   ;;  %v3767_v51 = vld [vmem:[%s4698_s25 + $0x20] sm:$0xff]   ;;  %v3771_v55 = vld [vmem:[%s4698_s25 + $0x28] sm:$0xff]  }
 0x10b   : > { %3439 = vmatpush3.bf16.msra.mxu0 %v3755_v39  ;;  %v3764_v48 = vld [vmem:[%s4698_s25 + $0x98] sm:$0xff]   ;;  %v3768_v52 = vld [vmem:[%s4698_s25 + $0xa0] sm:$0xff]   ;;  %v3772_v56 = vld [vmem:[%s4698_s25 + $0xa8] sm:$0xff]  }
 0x10c   : > { %3467 = vmatpush3.bf16.msra.mxu1 %v3756_v40  ;;  %3440 = vmatprep.subr.bf16.mxu0 %v3757_v41  ;;  %v3773_v57 = vld [vmem:[%s4698_s25 + $0x70] sm:$0xff]   ;;  %v3777_v61 = vld [vmem:[%s4698_s25 + $0x78] sm:$0xff]   ;;  %v1393_v1 = vld [vmem:[%s4696_s1] sm:$0xff] }
 0x10d   : > { %3468 = vmatprep.subr.bf16.mxu1 %v3758_v42  ;;  %v3774_v58 = vld [vmem:[%s4698_s25 + $0xf0] sm:$0xff]   ;;  %v3778_v62 = vld [vmem:[%s4698_s25 + $0xf8] sm:$0xff]   ;;  %v1401_v2 = vld [vmem:[%s4696_s1 + $0x40] sm:$0xff] }
 0x10e   : > { %v3775_v59 = vld [vmem:[%s4698_s25 + $0x30] sm:$0xff]   ;;  %v3779_v63 = vld [vmem:[%s4698_s25 + $0x38] sm:$0xff]   ;;  %v1394_v3 = vld [vmem:[%s4696_s1 + $0x8] sm:$0xff]  ;;  %v3250_v4 = vcombine.low %v1393_v1, %v1401_v2  ;;  %v3251_v5 = vcombine.high %v1393_v1, %v1401_v2 }
 0x10f   : > { %3441 = vmatpush3.bf16.msra.mxu0 %v3759_v43  ;;  %v3776_v60 = vld [vmem:[%s4698_s25 + $0xb0] sm:$0xff]   ;;  %v3780_v0 = vld [vmem:[%s4698_s25 + $0xb8] sm:$0xff]   ;;  %v1402_v6 = vld [vmem:[%s4696_s1 + $0x48] sm:$0xff] }
 0x110   : > { %3469 = vmatpush3.bf16.msra.mxu1 %v3760_v44  ;;  %3442 = vmatprep.subr.bf16.mxu0 %v3761_v45  ;;  %v3252_v7 = vcombine.low %v1394_v3, %v1402_v6  ;;  %v3253_v8 = vcombine.high %v1394_v3, %v1402_v6  ;;  %v3781_v9 = vld [vmem:[%s4698_s25 + $0x140] sm:$0xff]   ;;  %v3785_v13 = vld [vmem:[%s4698_s25 + $0x148] sm:$0xff]   ;;  %v3789_v17 = vld [vmem:[%s4698_s25 + $0x150] sm:$0xff]  }
 0x111   : > { %3470 = vmatprep.subr.bf16.mxu1 %v3762_v46  ;;  %2641 = vmatprep.mubr.bf16.mxu0 %v3251_v5  ;;  %v3782_v10 = vld [vmem:[%s4698_s25 + $0x1c0] sm:$0xff]   ;;  %v3786_v14 = vld [vmem:[%s4698_s25 + $0x1c8] sm:$0xff]   ;;  %v3790_v18 = vld [vmem:[%s4698_s25 + $0x1d0] sm:$0xff]  }
 0x112   : > { %2690 = vmatprep.mubr.bf16.mxu1 %v3253_v8  ;;  %v3783_v11 = vld [vmem:[%s4698_s25 + $0x100] sm:$0xff]   ;;  %v3787_v15 = vld [vmem:[%s4698_s25 + $0x108] sm:$0xff]   ;;  %v3791_v19 = vld [vmem:[%s4698_s25 + $0x110] sm:$0xff]  }
 0x113   : > { %3443 = vmatpush3.bf16.msra.mxu0 %v3763_v47  ;;  %v3784_v12 = vld [vmem:[%s4698_s25 + $0x180] sm:$0xff]   ;;  %v3788_v16 = vld [vmem:[%s4698_s25 + $0x188] sm:$0xff]   ;;  %v3792_v20 = vld [vmem:[%s4698_s25 + $0x190] sm:$0xff]  }
 0x114   : > { %3471 = vmatpush3.bf16.msra.mxu1 %v3764_v48  ;;  %3444 = vmatprep.subr.bf16.mxu0 %v3765_v49  ;;  %v3793_v21 = vld [vmem:[%s4698_s25 + $0x158] sm:$0xff]   ;;  %v3797_v25 = vld [vmem:[%s4698_s25 + $0x160] sm:$0xff]   ;;  %v3801_v29 = vld [vmem:[%s4698_s25 + $0x168] sm:$0xff]  }
 0x115   : > { %3472 = vmatprep.subr.bf16.mxu1 %v3766_v50  ;;  %v3794_v22 = vld [vmem:[%s4698_s25 + $0x1d8] sm:$0xff]   ;;  %v3798_v26 = vld [vmem:[%s4698_s25 + $0x1e0] sm:$0xff]   ;;  %v3802_v30 = vld [vmem:[%s4698_s25 + $0x1e8] sm:$0xff]  }
 0x116   : > { %v3795_v23 = vld [vmem:[%s4698_s25 + $0x118] sm:$0xff]   ;;  %v3799_v27 = vld [vmem:[%s4698_s25 + $0x120] sm:$0xff]   ;;  %v1410_v34 = vld [vmem:[%s4696_s1 + $0x88] sm:$0xff] }
 0x117   : > { %3445 = vmatpush3.bf16.msra.mxu0 %v3767_v51  ;;  %v3796_v24 = vld [vmem:[%s4698_s25 + $0x198] sm:$0xff]   ;;  %v3800_v28 = vld [vmem:[%s4698_s25 + $0x1a0] sm:$0xff]   ;;  %v1418_v35 = vld [vmem:[%s4696_s1 + $0xc8] sm:$0xff] }
 0x118   : > { %3473 = vmatpush3.bf16.msra.mxu1 %v3768_v52  ;;  %3446 = vmatprep.subr.bf16.mxu0 %v3769_v53  ;;  %v1409_v31 = vld [vmem:[%s4696_s1 + $0x80] sm:$0xff]  ;;  %v3269_v37 = vcombine.high %v1410_v34, %v1418_v35  ;;  %v3803_v38 = vld [vmem:[%s4698_s25 + $0x128] sm:$0xff]   ;;  %v3268_v39 = vcombine.low %v1410_v34, %v1418_v35  ;;  %v3805_v41 = vld [vmem:[%s4698_s25 + $0x170] sm:$0xff]  }
 0x119   : > { %3474 = vmatprep.subr.bf16.mxu1 %v3770_v54  ;;  %v1417_v32 = vld [vmem:[%s4696_s1 + $0xc0] sm:$0xff]  ;;  %v3804_v40 = vld [vmem:[%s4698_s25 + $0x1a8] sm:$0xff]   ;;  %v3806_v42 = vld [vmem:[%s4698_s25 + $0x1f0] sm:$0xff]  }
 0x11a   : > { %v3267_v33 = vcombine.high %v1409_v31, %v1417_v32  ;;  %v3266_v36 = vcombine.low %v1409_v31, %v1417_v32  ;;  %v3807_v43 = vld [vmem:[%s4698_s25 + $0x130] sm:$0xff]   ;;  %v3809_v45 = vld [vmem:[%s4698_s25 + $0x178] sm:$0xff]   ;;  %v1405_v34 = vld [vmem:[%s4696_s1 + $0x60] sm:$0xff] }
 0x11b   : > { %3447 = vmatpush3.bf16.msra.mxu0 %v3771_v55  ;;  %v3808_v44 = vld [vmem:[%s4698_s25 + $0x1b0] sm:$0xff]   ;;  %v3810_v46 = vld [vmem:[%s4698_s25 + $0x1f8] sm:$0xff]  }
 0x11c   : > { %3475 = vmatpush3.bf16.msra.mxu1 %v3772_v56  ;;  %3448 = vmatprep.subr.bf16.mxu0 %v3773_v57  ;;  %v3811_v47 = vld [vmem:[%s4698_s25 + $0x138] sm:$0xff]   ;;  %v1395_v49 = vld [vmem:[%s4696_s1 + $0x10] sm:$0xff]  ;;  %v3813_v57 = vld [vmem:[%s4698_s25 + $0x240] sm:$0xff]  }
 0x11d   : > { %3476 = vmatprep.subr.bf16.mxu1 %v3774_v58  ;;  %v3812_v48 = vld [vmem:[%s4698_s25 + $0x1b8] sm:$0xff]   ;;  %v1403_v50 = vld [vmem:[%s4696_s1 + $0x50] sm:$0xff]  ;;  %v3814_v58 = vld [vmem:[%s4698_s25 + $0x2c0] sm:$0xff]  }
 0x11e   : > { %v1396_v51 = vld [vmem:[%s4696_s1 + $0x18] sm:$0xff]  ;;  %v3254_v53 = vcombine.low %v1395_v49, %v1403_v50  ;;  %v3255_v54 = vcombine.high %v1395_v49, %v1403_v50  ;;  %v1411_v1 = vld [vmem:[%s4696_s1 + $0x90] sm:$0xff]  ;;  %v1413_v49 = vld [vmem:[%s4696_s1 + $0xa0] sm:$0xff] }
 0x11f   : > { %3449 = vmatpush3.bf16.msra.mxu0 %v3775_v59  ;;  %v1404_v52 = vld [vmem:[%s4696_s1 + $0x58] sm:$0xff]  ;;  %v3815_v59 = vld [vmem:[%s4698_s25 + $0x200] sm:$0xff]   ;;  %v1419_v2 = vld [vmem:[%s4696_s1 + $0xd0] sm:$0xff] }
 0x120   : > { %3477 = vmatpush3.bf16.msra.mxu1 %v3776_v60  ;;  %3450 = vmatprep.subr.bf16.mxu0 %v3777_v61  ;;  %v3256_v55 = vcombine.low %v1396_v51, %v1404_v52  ;;  %v3257_v56 = vcombine.high %v1396_v51, %v1404_v52  ;;  %v3816_v60 = vld [vmem:[%s4698_s25 + $0x280] sm:$0xff]   ;;  %v3817_v61 = vld [vmem:[%s4698_s25 + $0x248] sm:$0xff]   ;;  %v3271_v3 = vcombine.high %v1411_v1, %v1419_v2  ;;  %v3821_v5 = vld [vmem:[%s4698_s25 + $0x250] sm:$0xff]  }
 0x121   : > { %3478 = vmatprep.subr.bf16.mxu1 %v3778_v62  ;;  %v3818_v62 = vld [vmem:[%s4698_s25 + $0x2c8] sm:$0xff]   ;;  %v3822_v6 = vld [vmem:[%s4698_s25 + $0x2d0] sm:$0xff]   ;;  %v1420_v8 = vld [vmem:[%s4696_s1 + $0xd8] sm:$0xff] }
 0x122   : > { %v3843_v31 = vld [vmem:[%s4698_s25 + $0x238] sm:$0xff]   ;;  %v1421_v50 = vld [vmem:[%s4696_s1 + $0xe0] sm:$0xff] }
 0x123   : > { %3451 = vmatpush3.bf16.msra.mxu0 %v3779_v63  ;;  %v3819_v63 = vld [vmem:[%s4698_s25 + $0x208] sm:$0xff]   ;;  %v3844_v32 = vld [vmem:[%s4698_s25 + $0x2b8] sm:$0xff]   ;;  %v3275_v51 = vcombine.high %v1413_v49, %v1421_v50  ;;  %v3274_v52 = vcombine.low %v1413_v49, %v1421_v50 }
 0x124   : > { %3479 = vmatpush3.bf16.msra.mxu1 %v3780_v0  ;;  %3492 = vmatprep.subr.bf16.mxu0 %v3781_v9  ;;  %v3820_v0 = vld [vmem:[%s4698_s25 + $0x288] sm:$0xff]  }
 0x125   : > { %3520 = vmatprep.subr.bf16.mxu1 %v3782_v10  ;;  %v3823_v10 = vld [vmem:[%s4698_s25 + $0x210] sm:$0xff]  }
 0x126   : > { %2642 = vmatmul.mubr.bf16.vlgmr.msra.gmra.mrb[0].mxu0 %v3250_v4  ;;  %v3270_v4 = vcombine.low %v1411_v1, %v1419_v2  ;;  %v3861_v1 = vld [vmem:[%s4698_s25 + $0x360] sm:$0xff]  }
 0x127   : > { %2691 = vmatmul.mubr.bf16.vlgmr.msra.gmra.mrb[0].mxu1 %v3252_v7  ;;  %3493 = vmatpush3.bf16.msra.mxu0 %v3783_v11  ;;  %v1412_v7 = vld [vmem:[%s4696_s1 + $0x98] sm:$0xff]  ;;  %v3862_v2 = vld [vmem:[%s4698_s25 + $0x3e0] sm:$0xff]  }
 0x128   : > { %3521 = vmatpush3.bf16.msra.mxu1 %v3784_v12  ;;  %3494 = vmatprep.subr.bf16.mxu0 %v3785_v13  ;;  %v3273_v9 = vcombine.high %v1412_v7, %v1420_v8  ;;  %v3272_v11 = vcombine.low %v1412_v7, %v1420_v8  ;;  %v3824_v12 = vld [vmem:[%s4698_s25 + $0x290] sm:$0xff]   ;;  %v3825_v13 = vld [vmem:[%s4698_s25 + $0x258] sm:$0xff]   ;;  %v3867_v7 = vld [vmem:[%s4698_s25 + $0x328] sm:$0xff]  }
 0x129   : > { %3522 = vmatprep.subr.bf16.mxu1 %v3786_v14  ;;  %2649 = vmatprep.mubr.bf16.mxu0 %v3267_v33  ;;  %v3826_v14 = vld [vmem:[%s4698_s25 + $0x2d8] sm:$0xff]   ;;  %v1397_v33 = vld [vmem:[%s4696_s1 + $0x20] sm:$0xff]  ;;  %v3868_v8 = vld [vmem:[%s4698_s25 + $0x3a8] sm:$0xff]  }
 0x12a   : > { %2698 = vmatprep.mubr.bf16.mxu1 %v3269_v37  ;;  %v3258_v35 = vcombine.low %v1397_v33, %v1405_v34  ;;  %v1398_v37 = vld [vmem:[%s4696_s1 + $0x28] sm:$0xff] }
 0x12b   : > { %3495 = vmatpush3.bf16.msra.mxu0 %v3787_v15  ;;  %v3827_v15 = vld [vmem:[%s4698_s25 + $0x218] sm:$0xff]  }
 0x12c   : > { %3523 = vmatpush3.bf16.msra.mxu1 %v3788_v16  ;;  %3496 = vmatprep.subr.bf16.mxu0 %v3789_v17  ;;  %v3828_v16 = vld [vmem:[%s4698_s25 + $0x298] sm:$0xff]   ;;  %v3829_v17 = vld [vmem:[%s4698_s25 + $0x260] sm:$0xff]  }
 0x12d   : > { %3524 = vmatprep.subr.bf16.mxu1 %v3790_v18  ;;  %v3830_v18 = vld [vmem:[%s4698_s25 + $0x2e0] sm:$0xff]  }
 0x12e   : > { %2650 = vmatmul.mubr.bf16.gmra.mrb[4].mxu0 %v3266_v36  ;;  %v3259_v36 = vcombine.high %v1397_v33, %v1405_v34 }
 0x12f   : > { %3497 = vmatpush3.bf16.msra.mxu0 %v3791_v19  ;;  %2699 = vmatmul.mubr.bf16.gmra.mrb[4].mxu1 %v3268_v39  ;;  %v3831_v19 = vld [vmem:[%s4698_s25 + $0x220] sm:$0xff]  }
 0x130   : > { %3525 = vmatpush3.bf16.msra.mxu1 %v3792_v20  ;;  %3498 = vmatprep.subr.bf16.mxu0 %v3793_v21  ;;  %v3832_v20 = vld [vmem:[%s4698_s25 + $0x2a0] sm:$0xff]   ;;  %v3833_v21 = vld [vmem:[%s4698_s25 + $0x268] sm:$0xff]  }
 0x131   : > { %3526 = vmatprep.subr.bf16.mxu1 %v3794_v22  ;;  %2739 = vmatprep.mubr.bf16.mxu0 %v3255_v54  ;;  %v3834_v22 = vld [vmem:[%s4698_s25 + $0x2e8] sm:$0xff]   ;;  %v3854_v54 = vld [vmem:[%s4698_s25 + $0x3d0] sm:$0xff]  }
 0x132   : > { %2788 = vmatprep.mubr.bf16.mxu1 %v3257_v56  ;;  %v1422_v56 = vld [vmem:[%s4696_s1 + $0xe8] sm:$0xff] }
 0x133   : > { %3499 = vmatpush3.bf16.msra.mxu0 %v3795_v23  ;;  %v3835_v23 = vld [vmem:[%s4698_s25 + $0x228] sm:$0xff]  }
 0x134   : > { %3527 = vmatpush3.bf16.msra.mxu1 %v3796_v24  ;;  %3500 = vmatprep.subr.bf16.mxu0 %v3797_v25  ;;  %v3836_v24 = vld [vmem:[%s4698_s25 + $0x2a8] sm:$0xff]   ;;  %v3837_v25 = vld [vmem:[%s4698_s25 + $0x270] sm:$0xff]  }
 0x135   : > { %3528 = vmatprep.subr.bf16.mxu1 %v3798_v26  ;;  %v3838_v26 = vld [vmem:[%s4698_s25 + $0x2f0] sm:$0xff]  }
 0x137   : > { %3501 = vmatpush3.bf16.msra.mxu0 %v3799_v27  ;;  %v3839_v27 = vld [vmem:[%s4698_s25 + $0x230] sm:$0xff]  }
 0x138   : > { %3529 = vmatpush3.bf16.msra.mxu1 %v3800_v28  ;;  %3502 = vmatprep.subr.bf16.mxu0 %v3801_v29  ;;  %v3840_v28 = vld [vmem:[%s4698_s25 + $0x2b0] sm:$0xff]   ;;  %v3841_v29 = vld [vmem:[%s4698_s25 + $0x278] sm:$0xff]  }
 0x139   : > { %3530 = vmatprep.subr.bf16.mxu1 %v3802_v30  ;;  %v3842_v30 = vld [vmem:[%s4698_s25 + $0x2f8] sm:$0xff]  }
 0x13b   : > { %3503 = vmatpush3.bf16.msra.mxu0 %v3803_v38  ;;  %v1406_v38 = vld [vmem:[%s4696_s1 + $0x68] sm:$0xff] }
 0x13c   : > { %3531 = vmatpush3.bf16.msra.mxu1 %v3804_v40  ;;  %3504 = vmatprep.subr.bf16.mxu0 %v3805_v41  ;;  %v3260_v39 = vcombine.low %v1398_v37, %v1406_v38  ;;  %v3261_v40 = vcombine.high %v1398_v37, %v1406_v38  ;;  %v3845_v41 = vld [vmem:[%s4698_s25 + $0x340] sm:$0xff]  }
 0x13d   : > { %3532 = vmatprep.subr.bf16.mxu1 %v3806_v42  ;;  %v3846_v42 = vld [vmem:[%s4698_s25 + $0x3c0] sm:$0xff]  }
 0x13f   : > { %3505 = vmatpush3.bf16.msra.mxu0 %v3807_v43  ;;  %v3847_v43 = vld [vmem:[%s4698_s25 + $0x300] sm:$0xff]  }
 0x140   : > { %3533 = vmatpush3.bf16.msra.mxu1 %v3808_v44  ;;  %3506 = vmatprep.subr.bf16.mxu0 %v3809_v45  ;;  %v3848_v44 = vld [vmem:[%s4698_s25 + $0x380] sm:$0xff]   ;;  %v3849_v45 = vld [vmem:[%s4698_s25 + $0x348] sm:$0xff]  }
 0x141   : > { %3534 = vmatprep.subr.bf16.mxu1 %v3810_v46  ;;  %v3850_v46 = vld [vmem:[%s4698_s25 + $0x3c8] sm:$0xff]  }
 0x143   : > { %3507 = vmatpush3.bf16.msra.mxu0 %v3811_v47  ;;  %v3851_v47 = vld [vmem:[%s4698_s25 + $0x308] sm:$0xff]  }
 0x144   : > { %3535 = vmatpush3.bf16.msra.mxu1 %v3812_v48  ;;  %3548 = vmatprep.subr.bf16.mxu0 %v3813_v57  ;;  %v3852_v48 = vld [vmem:[%s4698_s25 + $0x388] sm:$0xff]  }
 0x145   : > { %3576 = vmatprep.subr.bf16.mxu1 %v3814_v58  ;;  %v3855_v58 = vld [vmem:[%s4698_s25 + $0x310] sm:$0xff]  }
 0x146   : > { %2740 = vmatmul.mubr.bf16.vlgmr.msra.gmra.mrb[8].mxu0 %v3254_v53  ;;  %v3853_v53 = vld [vmem:[%s4698_s25 + $0x350] sm:$0xff]  }
 0x147   : > { %2789 = vmatmul.mubr.bf16.vlgmr.msra.gmra.mrb[8].mxu1 %v3256_v55  ;;  %3549 = vmatpush3.bf16.msra.mxu0 %v3815_v59  ;;  %v1414_v55 = vld [vmem:[%s4696_s1 + $0xa8] sm:$0xff] }
 0x148   : > { %3577 = vmatpush3.bf16.msra.mxu1 %v3816_v60  ;;  %3550 = vmatprep.subr.bf16.mxu0 %v3817_v61  ;;  %v3277_v57 = vcombine.high %v1414_v55, %v1422_v56  ;;  %v3276_v59 = vcombine.low %v1414_v55, %v1422_v56  ;;  %v3856_v60 = vld [vmem:[%s4698_s25 + $0x390] sm:$0xff]   ;;  %v3857_v61 = vld [vmem:[%s4698_s25 + $0x358] sm:$0xff]  }
 0x149   : > { %3578 = vmatprep.subr.bf16.mxu1 %v3818_v62  ;;  %2747 = vmatprep.mubr.bf16.mxu0 %v3271_v3  ;;  %v3858_v62 = vld [vmem:[%s4698_s25 + $0x3d8] sm:$0xff]   ;;  %v3863_v3 = vld [vmem:[%s4698_s25 + $0x320] sm:$0xff]  }
 0x14a   : > { %2796 = vmatprep.mubr.bf16.mxu1 %v3273_v9  ;;  %v3869_v9 = vld [vmem:[%s4698_s25 + $0x370] sm:$0xff]  }
 0x14b   : > { %3551 = vmatpush3.bf16.msra.mxu0 %v3819_v63  ;;  %v3859_v63 = vld [vmem:[%s4698_s25 + $0x318] sm:$0xff]  }
 0x14c   : > { %3579 = vmatpush3.bf16.msra.mxu1 %v3820_v0  ;;  %3552 = vmatprep.subr.bf16.mxu0 %v3821_v5  ;;  %v3860_v0 = vld [vmem:[%s4698_s25 + $0x398] sm:$0xff]   ;;  %v3865_v5 = vld [vmem:[%s4698_s25 + $0x368] sm:$0xff]  }
 0x14d   : > { %3580 = vmatprep.subr.bf16.mxu1 %v3822_v6  ;;  %v3866_v6 = vld [vmem:[%s4698_s25 + $0x3e8] sm:$0xff]  }
 0x14e   : > { %2748 = vmatmul.mubr.bf16.gmra.mrb[12].mxu0 %v3270_v4  ;;  %v3864_v4 = vld [vmem:[%s4698_s25 + $0x3a0] sm:$0xff]  }
 0x14f   : > { %3553 = vmatpush3.bf16.msra.mxu0 %v3823_v10  ;;  %2797 = vmatmul.mubr.bf16.gmra.mrb[12].mxu1 %v3272_v11  ;;  %v3870_v10 = vld [vmem:[%s4698_s25 + $0x3f0] sm:$0xff]  }
 0x150   : > { %3581 = vmatpush3.bf16.msra.mxu1 %v3824_v12  ;;  %3554 = vmatprep.subr.bf16.mxu0 %v3825_v13  ;;  %v3871_v11 = vld [vmem:[%s4698_s25 + $0x330] sm:$0xff]   ;;  %v3873_v13 = vld [vmem:[%s4698_s25 + $0x378] sm:$0xff]  }
 0x151   : > { %3582 = vmatprep.subr.bf16.mxu1 %v3826_v14  ;;  %2837 = vmatprep.mubr.bf16.mxu0 %v3259_v36  ;;  %v3872_v12 = vld [vmem:[%s4698_s25 + $0x3b0] sm:$0xff]   ;;  %v3874_v14 = vld [vmem:[%s4698_s25 + $0x3f8] sm:$0xff]  }
 0x152   : > { %2886 = vmatprep.mubr.bf16.mxu1 %v3261_v40 }
 0x153   : > { %3555 = vmatpush3.bf16.msra.mxu0 %v3827_v15  ;;  %v3875_v15 = vld [vmem:[%s4698_s25 + $0x338] sm:$0xff]  }
 0x154   : > { %3583 = vmatpush3.bf16.msra.mxu1 %v3828_v16  ;;  %3556 = vmatprep.subr.bf16.mxu0 %v3829_v17  ;;  %v3876_v16 = vld [vmem:[%s4698_s25 + $0x3b8] sm:$0xff]   ;;  %v1399_v17 = vld [vmem:[%s4696_s1 + $0x30] sm:$0xff] }
 0x155   : > { %3584 = vmatprep.subr.bf16.mxu1 %v3830_v18  ;;  %v1407_v18 = vld [vmem:[%s4696_s1 + $0x70] sm:$0xff] }
 0x157   : > { %3557 = vmatpush3.bf16.msra.mxu0 %v3831_v19  ;;  %v1400_v19 = vld [vmem:[%s4696_s1 + $0x38] sm:$0xff] }
 0x158   : > { %3585 = vmatpush3.bf16.msra.mxu1 %v3832_v20  ;;  %3558 = vmatprep.subr.bf16.mxu0 %v3833_v21  ;;  %v3262_v20 = vcombine.low %v1399_v17, %v1407_v18  ;;  %v3263_v21 = vcombine.high %v1399_v17, %v1407_v18 }
 0x159   : > { %3586 = vmatprep.subr.bf16.mxu1 %v3834_v22  ;;  %v1408_v22 = vld [vmem:[%s4696_s1 + $0x78] sm:$0xff] }
 0x15b   : > { %3559 = vmatpush3.bf16.msra.mxu0 %v3835_v23  ;;  %v1415_v23 = vld [vmem:[%s4696_s1 + $0xb0] sm:$0xff] }
 0x15c   : > { %3587 = vmatpush3.bf16.msra.mxu1 %v3836_v24  ;;  %3560 = vmatprep.subr.bf16.mxu0 %v3837_v25  ;;  %v1423_v24 = vld [vmem:[%s4696_s1 + $0xf0] sm:$0xff]  ;;  %v3264_v25 = vcombine.low %v1400_v19, %v1408_v22 }
 0x15d   : > { %3588 = vmatprep.subr.bf16.mxu1 %v3838_v26  ;;  %v3265_v26 = vcombine.high %v1400_v19, %v1408_v22 }
 0x15f   : > { %3561 = vmatpush3.bf16.msra.mxu0 %v3839_v27  ;;  %v3279_v27 = vcombine.high %v1415_v23, %v1423_v24 }
 0x160   : > { %3589 = vmatpush3.bf16.msra.mxu1 %v3840_v28  ;;  %3562 = vmatprep.subr.bf16.mxu0 %v3841_v29  ;;  %v1416_v28 = vld [vmem:[%s4696_s1 + $0xb8] sm:$0xff] }
 0x161   : > { %3590 = vmatprep.subr.bf16.mxu1 %v3842_v30  ;;  %v1424_v29 = vld [vmem:[%s4696_s1 + $0xf8] sm:$0xff] }
 0x162   : > { %v3281_v30 = vcombine.high %v1416_v28, %v1424_v29 }
 0x163   : > { %3563 = vmatpush3.bf16.msra.mxu0 %v3843_v31  ;;  %v3278_v31 = vcombine.low %v1415_v23, %v1423_v24 }
 0x164   : > { %3591 = vmatpush3.bf16.msra.mxu1 %v3844_v32  ;;  %3604 = vmatprep.subr.bf16.mxu0 %v3845_v41  ;;  %v3280_v32 = vcombine.low %v1416_v28, %v1424_v29 }
 0x165   : > { %3632 = vmatprep.subr.bf16.mxu1 %v3846_v42 }
 0x166   : > { %2838 = vmatmul.mubr.bf16.vlgmr.msra.gmra.mrb[16].mxu0 %v3258_v35 }
 0x167   : > { %2887 = vmatmul.mubr.bf16.vlgmr.msra.gmra.mrb[16].mxu1 %v3260_v39  ;;  %3605 = vmatpush3.bf16.msra.mxu0 %v3847_v43 }
 0x168   : > { %3633 = vmatpush3.bf16.msra.mxu1 %v3848_v44  ;;  %3606 = vmatprep.subr.bf16.mxu0 %v3849_v45 }
 0x169   : > { %3634 = vmatprep.subr.bf16.mxu1 %v3850_v46  ;;  %2845 = vmatprep.mubr.bf16.mxu0 %v3275_v51 }
 0x16a   : > { %2894 = vmatprep.mubr.bf16.mxu1 %v3277_v57 }
 0x16b   : > { %3607 = vmatpush3.bf16.msra.mxu0 %v3851_v47 }
 0x16c   : > { %3635 = vmatpush3.bf16.msra.mxu1 %v3852_v48  ;;  %3608 = vmatprep.subr.bf16.mxu0 %v3853_v53 }
 0x16d   : > { %3636 = vmatprep.subr.bf16.mxu1 %v3854_v54 }
 0x16e   : > { %2846 = vmatmul.mubr.bf16.gmra.mrb[20].mxu0 %v3274_v52 }
 0x16f   : > { %3609 = vmatpush3.bf16.msra.mxu0 %v3855_v58  ;;  %2895 = vmatmul.mubr.bf16.gmra.mrb[20].mxu1 %v3276_v59 }
 0x170   : > { %3637 = vmatpush3.bf16.msra.mxu1 %v3856_v60  ;;  %3610 = vmatprep.subr.bf16.mxu0 %v3857_v61 }
 0x171   : > { %3638 = vmatprep.subr.bf16.mxu1 %v3858_v62  ;;  %2935 = vmatprep.mubr.bf16.mxu0 %v3263_v21 }
 0x172   : > { %2984 = vmatprep.mubr.bf16.mxu1 %v3265_v26 }
 0x173   : > { %3611 = vmatpush3.bf16.msra.mxu0 %v3859_v63 }
 0x174   : > { %3639 = vmatpush3.bf16.msra.mxu1 %v3860_v0  ;;  %3612 = vmatprep.subr.bf16.mxu0 %v3861_v1 }
 0x175   : > { %3640 = vmatprep.subr.bf16.mxu1 %v3862_v2 }
 0x177   : > { %3613 = vmatpush3.bf16.msra.mxu0 %v3863_v3 }
 0x178   : > { %3641 = vmatpush3.bf16.msra.mxu1 %v3864_v4  ;;  %3614 = vmatprep.subr.bf16.mxu0 %v3865_v5 }
 0x179   : > { %3642 = vmatprep.subr.bf16.mxu1 %v3866_v6 }
 0x17b   : > { %3615 = vmatpush3.bf16.msra.mxu0 %v3867_v7 }
 0x17c   : > { %3643 = vmatpush3.bf16.msra.mxu1 %v3868_v8  ;;  %3616 = vmatprep.subr.bf16.mxu0 %v3869_v9 }
 0x17d   : > { %3644 = vmatprep.subr.bf16.mxu1 %v3870_v10 }
 0x17f   : > { %3617 = vmatpush3.bf16.msra.mxu0 %v3871_v11 }
 0x180   : > { %3645 = vmatpush3.bf16.msra.mxu1 %v3872_v12  ;;  %3618 = vmatprep.subr.bf16.mxu0 %v3873_v13 }
 0x181   : > { %3646 = vmatprep.subr.bf16.mxu1 %v3874_v14 }
 0x183   : > { %3619 = vmatpush3.bf16.msra.mxu0 %v3875_v15 }
 0x184   : > { %3647 = vmatpush3.bf16.msra.mxu1 %v3876_v16 }
 0x186   : > { %2936 = vmatmul.mubr.bf16.vlgmr.msra.gmra.mrb[24].mxu0 %v3262_v20 }
 0x187   : > { %2985 = vmatmul.mubr.bf16.vlgmr.msra.gmra.mrb[24].mxu1 %v3264_v25  ;;  %2943 = vmatprep.mubr.bf16.mxu0 %v3279_v27 }
 0x188   : > { %2992 = vmatprep.mubr.bf16.mxu1 %v3281_v30 }
 0x18e   : > { %2944 = vmatmul.mubr.bf16.gmra.mrb[28].mxu0 %v3278_v31 }
 0x18f   : > { %2993 = vmatmul.mubr.bf16.gmra.mrb[28].mxu1 %v3280_v32 }
 0x1f9   : > { %v3452_v33 = vpop.f32.mrb[0].mxu0 }
 0x1fa   : > { %v3480_v34 = vpop.f32.mrb[0].mxu1  ;;  %v3453_v35 = vpop.f32.mrb[1].mxu0 }
 0x1fb   : > { %v3454_v36 = vadd.f32 %v3453_v35, %v3452_v33  ;;  %v3481_v37 = vpop.f32.mrb[1].mxu1  ;;  %v3455_v38 = vpop.f32.mrb[2].mxu0 }
 0x1fc   : > { %v3482_v39 = vadd.f32 %v3481_v37, %v3480_v34  ;;  %v3483_v40 = vpop.f32.mrb[2].mxu1  ;;  %v3456_v41 = vpop.f32.mrb[3].mxu0 }
 0x1fd   : > { %v3457_v42 = vadd.f32 %v3456_v41, %v3455_v38  ;;  %v3484_v43 = vpop.f32.mrb[3].mxu1 }
 0x1fe   : > { %v2693_v44 = vadd.f32 %v3482_v39, %v3454_v36  ;;  %v3485_v45 = vadd.f32 %v3484_v43, %v3483_v40 }
 0x200   : > { %v2696_v46 = vadd.f32 %v3485_v45, %v3457_v42 }
 0x201   : > { %v3458_v47 = vpop.f32.mrb[4].mxu0 }
 0x202   : > { %v3486_v48 = vpop.f32.mrb[4].mxu1  ;;  %v3459_v49 = vpop.f32.mrb[5].mxu0 }
 0x203   : > { %v3460_v50 = vadd.f32 %v3459_v49, %v3458_v47  ;;  %v3487_v51 = vpop.f32.mrb[5].mxu1  ;;  %v3461_v52 = vpop.f32.mrb[6].mxu0 }
 0x204   : > { %v3488_v53 = vadd.f32 %v3487_v51, %v3486_v48  ;;  %v3489_v54 = vpop.f32.mrb[6].mxu1  ;;  %v3462_v55 = vpop.f32.mrb[7].mxu0 }
 0x205   : > { %v3463_v56 = vadd.f32 %v3462_v55, %v3461_v52  ;;  %v3490_v57 = vpop.f32.mrb[7].mxu1 }
 0x206   : > { %v2701_v58 = vadd.f32 %v3488_v53, %v3460_v50  ;;  %v3491_v59 = vadd.f32 %v3490_v57, %v3489_v54 }
 0x208   : > { %v2704_v60 = vadd.f32 %v3491_v59, %v3463_v56 }
 0x219   : > { %v3508_v61 = vpop.f32.mrb[8].mxu0 }
 0x21a   : > { %v3536_v62 = vpop.f32.mrb[8].mxu1  ;;  %v3509_v63 = vpop.f32.mrb[9].mxu0 }
 0x21b   : > { %v3537_v0 = vpop.f32.mrb[9].mxu1  ;;  %v3510_v1 = vadd.f32 %v3509_v63, %v3508_v61  ;;  %v3511_v3 = vpop.f32.mrb[10].mxu0 }
 0x21c   : > { %v3538_v2 = vadd.f32 %v3537_v0, %v3536_v62  ;;  %v3539_v4 = vpop.f32.mrb[10].mxu1  ;;  %v3512_v5 = vpop.f32.mrb[11].mxu0 }
 0x21d   : > { %v3540_v6 = vpop.f32.mrb[11].mxu1  ;;  %v2742_v7 = vadd.f32 %v3510_v1, %v2693_v44  ;;  %v3513_v8 = vadd.f32 %v3512_v5, %v3511_v3 }
 0x21e   : > { %v3541_v9 = vadd.f32 %v3540_v6, %v3539_v4 }
 0x21f   : > { %v2791_v10 = vadd.f32 %v3538_v2, %v2742_v7  ;;  %v2745_v11 = vadd.f32 %v3513_v8, %v2696_v46 }
 0x221   : > { %v2794_v12 = vadd.f32 %v3541_v9, %v2745_v11  ;;  %v3514_v13 = vpop.f32.mrb[12].mxu0  ;;  %v1389_v9 = vld [vmem:[#allocation2] sm:$0xff] }
 0x222   : > { %v3515_v14 = vpop.f32.mrb[13].mxu0  ;;  %v3542_v19 = vpop.f32.mrb[12].mxu1 }
 0x223   : > { %v3516_v15 = vadd.f32 %v3515_v14, %v3514_v13  ;;  %v3517_v16 = vpop.f32.mrb[14].mxu0  ;;  %v3543_v21 = vpop.f32.mrb[13].mxu1  ;;  %v1390_v13 = vld [vmem:[#allocation2 + $0x8] sm:$0xff] }
 0x224   : > { %v3518_v17 = vpop.f32.mrb[15].mxu0  ;;  %v3544_v23 = vadd.f32 %v3543_v21, %v3542_v19  ;;  %v3545_v24 = vpop.f32.mrb[14].mxu1 }
 0x225   : > { %v2750_v18 = vadd.f32 %v3516_v15, %v2701_v58  ;;  %v3519_v20 = vadd.f32 %v3518_v17, %v3517_v16  ;;  %v3546_v25 = vpop.f32.mrb[15].mxu1 }
 0x226   : > { %v3547_v27 = vadd.f32 %v3546_v25, %v3545_v24 }
 0x227   : > { %v2753_v22 = vadd.f32 %v3519_v20, %v2704_v60  ;;  %v2799_v26 = vadd.f32 %v3544_v23, %v2750_v18 }
 0x229   : > { %v2802_v28 = vadd.f32 %v3547_v27, %v2753_v22 }
 0x239   : > { %v3564_v29 = vpop.f32.mrb[16].mxu0 }
 0x23a   : > { %v3592_v30 = vpop.f32.mrb[16].mxu1  ;;  %v3565_v31 = vpop.f32.mrb[17].mxu0 }
 0x23b   : > { %v3566_v32 = vadd.f32 %v3565_v31, %v3564_v29  ;;  %v3593_v33 = vpop.f32.mrb[17].mxu1  ;;  %v3567_v34 = vpop.f32.mrb[18].mxu0  ;;  %v1391_v29 = vld [vmem:[#allocation2 + $0x10] sm:$0xff] }
 0x23c   : > { %v3594_v35 = vadd.f32 %v3593_v33, %v3592_v30  ;;  %v3595_v36 = vpop.f32.mrb[18].mxu1  ;;  %v3568_v37 = vpop.f32.mrb[19].mxu0  ;;  %v1392_v33 = vld [vmem:[#allocation2 + $0x18] sm:$0xff] }
 0x23d   : > { %v2840_v38 = vadd.f32 %v3566_v32, %v2791_v10  ;;  %v3569_v39 = vadd.f32 %v3568_v37, %v3567_v34  ;;  %v3596_v40 = vpop.f32.mrb[19].mxu1  ;;  %v3018_v37 = vlaneseq (!%p3410_p5) }
 0x23e   : > { %v3597_v41 = vadd.f32 %v3596_v40, %v3595_v36 }
 0x23f   : > { %v2889_v42 = vadd.f32 %v3594_v35, %v2840_v38  ;;  %v2843_v43 = vadd.f32 %v3569_v39, %v2794_v12  ;;  %v3019_v38 = vshrl.u32 (!%p3410_p5), %v3018_v37, 7  ;;  %v3013_v39 = vld [vmem:[%s4694_s6] sm:$0x3] (!%p3410_p5) }
 0x241   : > { %v2892_v44 = vadd.f32 %v3597_v41, %v2843_v43  ;;  %v3570_v45 = vpop.f32.mrb[20].mxu0  ;;  %v3020_v41 = vsub.s32 (!%p3410_p5), 0, %v3019_v38 }
 0x242   : > { %v3571_v46 = vpop.f32.mrb[21].mxu0  ;;  %v3598_v49 = vpop.f32.mrb[20].mxu1 }
 0x243   : > { %v3572_v47 = vadd.f32 %v3571_v46, %v3570_v45  ;;  %v3573_v48 = vpop.f32.mrb[22].mxu0  ;;  %v3599_v53 = vpop.f32.mrb[21].mxu1  ;;  %v3021_v46 = vrot.slane (!%p3410_p5), %v3013_v39, %v3020_v41 }
 0x244   : > { %v3574_v50 = vpop.f32.mrb[23].mxu0  ;;  %v3600_v54 = vadd.f32 %v3599_v53, %v3598_v49  ;;  %v3601_v55 = vpop.f32.mrb[22].mxu1 }
 0x245   : > { %v2848_v51 = vadd.f32 %v3572_v47, %v2799_v26  ;;  %v3575_v52 = vadd.f32 %v3574_v50, %v3573_v48  ;;  %v3602_v57 = vpop.f32.mrb[23].mxu1 }
 0x246   : > { %v3603_v59 = vadd.f32 %v3602_v57, %v3601_v55 }
 0x247   : > { %v2851_v56 = vadd.f32 %v3575_v52, %v2802_v28  ;;  %v2897_v58 = vadd.f32 %v3600_v54, %v2848_v51 }
 0x249   : > { %v2900_v60 = vadd.f32 %v3603_v59, %v2851_v56 }
 0x259   : > { %v3620_v61 = vpop.f32.mrb[24].mxu0 }
 0x25a   : > { %v3648_v62 = vpop.f32.mrb[24].mxu1  ;;  %v3621_v63 = vpop.f32.mrb[25].mxu0 }
 0x25b   : > { %v3622_v0 = vadd.f32 %v3621_v63, %v3620_v61  ;;  %v3649_v1 = vpop.f32.mrb[25].mxu1  ;;  %v3623_v2 = vpop.f32.mrb[26].mxu0 }
 0x25c   : > { %v3650_v3 = vadd.f32 %v3649_v1, %v3648_v62  ;;  %v3651_v4 = vpop.f32.mrb[26].mxu1  ;;  %v3624_v5 = vpop.f32.mrb[27].mxu0 }
 0x25d   : > { %v2938_v6 = vadd.f32 %v3622_v0, %v2889_v42  ;;  %v3625_v7 = vadd.f32 %v3624_v5, %v3623_v2  ;;  %v3652_v8 = vpop.f32.mrb[27].mxu1  ;;  %v3028_v42 = vsub.s32 (!%p3410_p5), 1, %v3019_v38 }
 0x25e   : > { %v3653_v10 = vadd.f32 %v3652_v8, %v3651_v4 }
 0x25f   : > { %v2987_v11 = vadd.f32 %v3650_v3, %v2938_v6  ;;  %v2941_v12 = vadd.f32 %v3625_v7, %v2892_v44  ;;  %v3029_v47 = vrot.slane (!%p3410_p5), %v3013_v39, %v3028_v42 }
 0x261   : > { %v3001_v14 = vadd.f32 %v2987_v11, %v1389_v9  ;;  %v2990_v15 = vadd.f32 %v3653_v10, %v2941_v12  ;;  %v3626_v16 = vpop.f32.mrb[28].mxu0 }
 0x262   : > { %v3654_v17 = vpop.f32.mrb[28].mxu1  ;;  %v3627_v18 = vpop.f32.mrb[29].mxu0 }
 0x263   : > { %3005 = vst [vmem:[#allocation2] sm:$0xff] %v3001_v14  ;;  %v3002_v19 = vadd.f32 %v2990_v15, %v1390_v13  ;;  %v3628_v20 = vadd.f32 %v3627_v18, %v3626_v16  ;;  %v3655_v21 = vpop.f32.mrb[29].mxu1  ;;  %v3629_v22 = vpop.f32.mrb[30].mxu0 }
 0x264   : > { %v3656_v23 = vadd.f32 %v3655_v21, %v3654_v17  ;;  %v3657_v24 = vpop.f32.mrb[30].mxu1  ;;  %v3630_v25 = vpop.f32.mrb[31].mxu0 }
 0x265   : > { %3006 = vst [vmem:[#allocation2 + $0x8] sm:$0xff] %v3002_v19  ;;  %v2946_v26 = vadd.f32 %v3628_v20, %v2897_v58  ;;  %v3631_v27 = vadd.f32 %v3630_v25, %v3629_v22  ;;  %v3658_v28 = vpop.f32.mrb[31].mxu1 }
 0x266   : > { %v3659_v30 = vadd.f32 %v3658_v28, %v3657_v24 }
 0x267   : > { %v2995_v31 = vadd.f32 %v3656_v23, %v2946_v26  ;;  %v2949_v32 = vadd.f32 %v3631_v27, %v2900_v60  ;;  %3012 = sbr.rel (%p3410_p5) target bundleno = 640 (0x280), region = 104 }
 0x269   : > { %v3003_v34 = vadd.f32 %v2995_v31, %v1391_v29  ;;  %v2998_v35 = vadd.f32 %v3659_v30, %v2949_v32 }
 0x26a   : > { %v3014_v40 = vld [vmem:[#allocation2] sm:$0xff] (!%p3410_p5) }
 0x26b   : > { %3007 = vst [vmem:[#allocation2 + $0x10] sm:$0xff] %v3003_v34  ;;  %v3004_v36 = vadd.f32 %v2998_v35, %v1392_v33  ;;  %v3022_v48 = vmul.f32 (!%p3410_p5), %v3021_v46, %v3014_v40 }
 0x26c   : > { %v3015_v43 = vld [vmem:[#allocation2 + $0x8] sm:$0xff] (!%p3410_p5) }
 0x26d   : > { %3008 = vst [vmem:[#allocation2 + $0x18] sm:$0xff] %v3004_v36  ;;  %v3023_v49 = vmul.f32 (!%p3410_p5), %v3021_v46, %v3015_v43  ;;  %v3030_v52 = vadd.f32 (!%p3410_p5), %v3029_v47, %v3022_v48 }
 0x26f   : > { %v3031_v53 = vadd.f32 %v3029_v47, %v3023_v49  ;;  %v3034_v56 = vmul.f32 0.2, %v3030_v52 }
 0x271   : > { %v3035_v57 = vmul.f32 0.2, %v3031_v53  ;;  %v3038_v60 = vmax.f32 %v3030_v52, %v3034_v56 }
 0x272   : > { %v3016_v44 = vld [vmem:[#allocation2 + $0x10] sm:$0xff] }
 0x273   : > { %v3024_v50 = vmul.f32 %v3021_v46, %v3016_v44  ;;  %v3039_v61 = vmax.f32 %v3031_v53, %v3035_v57 }
 0x274   : > { %v3017_v45 = vld [vmem:[#allocation2 + $0x18] sm:$0xff] }
 0x275   : > { %v3025_v51 = vmul.f32 %v3021_v46, %v3017_v45  ;;  %v3032_v54 = vadd.f32 %v3029_v47, %v3024_v50  ;;  %v3428_v0 = vpack.c.bf16 %v3039_v61, %v3038_v60 }
 0x277   : > { %v3033_v55 = vadd.f32 %v3029_v47, %v3025_v51  ;;  %v3036_v58 = vmul.f32 0.2, %v3032_v54  ;;  %3429 = vst [vmem:[%s4700_s24] sm:$0xff] %v3428_v0  }
 0x279   : > { %v3037_v59 = vmul.f32 0.2, %v3033_v55  ;;  %v3040_v62 = vmax.f32 %v3032_v54, %v3036_v58 }
 0x27b   : > { %v3041_v63 = vmax.f32 %v3033_v55, %v3037_v59 }
 0x27d   : > { %v3433_v1 = vpack.c.bf16 %v3041_v63, %v3040_v62 }
 0x27f   : > { %3435 = vst [vmem:[%s4700_s24 + $0x8] sm:$0xff] %v3433_v1  }
 0x280 PF: > { %3068 = sbr.rel (!%p4080_p12) target bundleno = 648 (0x288), region = 108  ;;  %s3416_s1 = sshll.u32 (%p4080_p12), %s3951_s19, 2  ;;  %v3089_v2 = vld [vmem:[%s4700_s24] sm:$0xf] (%p4080_p12)  ;;  %v3091_v3 = vld [vmem:[%s4700_s24 + $0x4] sm:$0xf] (%p4080_p12) }
 0x281   : > { %s3073_s16 = scalar_lea.vmem (%p4080_p12), %s4913_s3, %s3416_s1 }
 0x282   : > { %3090 = vst [vmem:[%s3073_s16] sm:$0xf] (%p4080_p12), %v3089_v2  ;;  %3092 = vst [vmem:[%s3073_s16 + $0x10] sm:$0xf] (%p4080_p12), %v3091_v3 }
 0x286   : > { %v3093_v4 = vld [vmem:[%s4700_s24 + $0x8] sm:$0xf] (%p4080_p12)  ;;  %v3095_v5 = vld [vmem:[%s4700_s24 + $0xc] sm:$0xf] (%p4080_p12) }
 0x287   : > { %3094 = vst [vmem:[%s3073_s16 + $0x20] sm:$0xf] %v3093_v4  ;;  %3096 = vst [vmem:[%s3073_s16 + $0x30] sm:$0xf] %v3095_v5 }
 0x288 PF: > { %s13_s22 = sadd.s32 1, %s3963_s22   ;;  %s4925_s25 = sld [smem:[#allocation6_spill]] }
 0x289   : > { %p10_p6 = scmp.ge.s32.totalorder %s13_s22, 10   ;;  %s4926_s10 = sld [smem:[#allocation7_spill]] }
 0x28a   : > { %s4927_s12 = smov %s3927_s13  ;;  %s4928_s13 = smov %s4078_s9 }
 0x28b   : > { %s4929_s14 = smov %s3935_s15  ;;  %s4930_s15 = smov %s4075_s8 }
 0x28c   : > { %s4931_s16 = smov %s3943_s17  ;;  %s4932_s17 = smov %s4061_s30 }
 0x28d   : > { %s4933_s18 = smov %s3955_s20  ;;  %s4934_s19 = smov %s3959_s21 }
 0x28e   : > { %s4935_s20 = smov %s4925_s25  ;;  %12 = sbr.rel (!%p10_p6) target bundleno = 9 (0x9), region = 191 }
 0x28f   : > { %s4936_s21 = smov %s4926_s10 }

// kernel: forward.9
= control target key start
LH: loop header
LB: loop body
LE: loop exit
PB: predicated region body
PF: predicated region fallthrough
CT: control target
= control target key end

     0   :  { %v822_v0 = vlaneseq  ;;  %vm2456_vm0 = vcmask 7168   ;;  %s4780_s1 = inlined_call_operand.vmem [shape: bf16[1,8192], index: 1, kind: input, shape index: {}]   ;;  %s4781_s0 = inlined_call_operand.vmem [shape: bf16[64,8192], index: 0, kind: input, shape index: {}]   ;;  %s4782_s2 = inlined_call_operand.vmem [shape: f32[2,1], index: 2, kind: input, shape index: {}]   ;;  %s4783_s3 = inlined_call_operand.vmem [shape: f32[64,1], index: 3, kind: output, shape index: {}]  }
   0x1   :  { %v787_v1 = vld [vmem:[%s4780_s1 + $0x28] sm:$0xff]  ;;  %v788_v2 = vld [vmem:[%s4780_s1 + $0x30] sm:$0xff]  ;;  %v789_v4 = vld [vmem:[%s4780_s1 + $0x38] sm:$0xff] }
   0x2   :  { %v823_v3 = vshrl.u32 %v822_v0, 7  ;;  %v800_v5 = vunpack.c.l.bf16 %v787_v1  ;;  %v801_v6 = vunpack.c.h.bf16 %v787_v1  ;;  %v802_v7 = vunpack.c.l.bf16 %v788_v2  ;;  %v786_v35 = vld [vmem:[%s4780_s1 + $0x20] sm:$0xff] }
   0x3   :  { %v803_v12 = vunpack.c.h.bf16 %v788_v2  ;;  %v804_v13 = vunpack.c.l.bf16 %v789_v4  ;;  %v2508_v14 = vunpack.c.h.bf16 %v789_v4  ;;  %v2541_v40 = vunpack.c.l.bf16 %v786_v35  ;;  %v782_v2 = vld [vmem:[%s4780_s1] sm:$0xff] }
   0x4   :  { %v2500_v8 = vsub.s32 0, %v823_v3  ;;  %v2502_v9 = vsub.s32 2, %v823_v3  ;;  %v2504_v10 = vsub.s32 4, %v823_v3  ;;  %v2506_v11 = vsub.s32 6, %v823_v3 }
   0x5   :  { %v2543_v41 = vunpack.c.h.bf16 %v786_v35 }
   0x6   :  { %v985_v15 = vrot.slane %v800_v5, %v2500_v8  ;;  %v989_v16 = vrot.slane %v800_v5, %v2502_v9  ;;  %v993_v17 = vrot.slane %v800_v5, %v2504_v10  ;;  %v997_v18 = vrot.slane %v800_v5, %v2506_v11 }
   0x7   :  { %v1001_v19 = vrot.slane %v801_v6, %v2500_v8  ;;  %v1005_v20 = vrot.slane %v801_v6, %v2502_v9  ;;  %v1009_v21 = vrot.slane %v801_v6, %v2504_v10  ;;  %v1013_v22 = vrot.slane %v801_v6, %v2506_v11 }
   0x8   :  { %v1017_v23 = vrot.slane %v802_v7, %v2500_v8  ;;  %v1021_v24 = vrot.slane %v802_v7, %v2502_v9  ;;  %v1025_v25 = vrot.slane %v802_v7, %v2504_v10  ;;  %v1029_v26 = vrot.slane %v802_v7, %v2506_v11 }
   0x9   :  { %v1033_v27 = vrot.slane %v803_v12, %v2500_v8  ;;  %v1037_v28 = vrot.slane %v803_v12, %v2502_v9  ;;  %v1041_v29 = vrot.slane %v803_v12, %v2504_v10  ;;  %v1045_v30 = vrot.slane %v803_v12, %v2506_v11 }
   0xa   :  { %v1049_v31 = vrot.slane %v804_v13, %v2500_v8  ;;  %v1053_v32 = vrot.slane %v804_v13, %v2502_v9  ;;  %v1057_v33 = vrot.slane %v804_v13, %v2504_v10  ;;  %v1061_v34 = vrot.slane %v804_v13, %v2506_v11 }
   0xb   :  { %v1065_v36 = vrot.slane %v2508_v14, %v2500_v8  ;;  %v1069_v37 = vrot.slane %v2508_v14, %v2502_v9  ;;  %v1073_v38 = vrot.slane %v2508_v14, %v2504_v10  ;;  %v1077_v39 = vrot.slane %v2508_v14, %v2506_v11 }
   0xc   :  { %v957_v42 = vrot.slane %v2541_v40, %v2502_v9  ;;  %v961_v43 = vrot.slane %v2541_v40, %v2504_v10  ;;  %v965_v44 = vrot.slane %v2541_v40, %v2506_v11  ;;  %v973_v45 = vrot.slane %v2543_v41, %v2502_v9 }
   0xd   :  { %v977_v46 = vrot.slane %v2543_v41, %v2504_v10  ;;  %v981_v47 = vrot.slane %v2543_v41, %v2506_v11  ;;  %v2576_v54 = vrot.slane %v985_v15, %v2500_v8  ;;  %v2579_v55 = vrot.slane %v989_v16, %v2500_v8 }
   0xe   :  { %v2558_v48 = vrot.slane %v957_v42, %v2500_v8  ;;  %v2561_v49 = vrot.slane %v961_v43, %v2500_v8  ;;  %v2564_v50 = vrot.slane %v965_v44, %v2500_v8  ;;  %v2567_v51 = vrot.slane %v973_v45, %v2500_v8  ;;  %v81_v44 = vld [vmem:[%s4781_s0 + $0x218] sm:$0xff] }
   0xf   :  { %v2570_v52 = vrot.slane %v977_v46, %v2500_v8  ;;  %v2573_v53 = vrot.slane %v981_v47, %v2500_v8  ;;  %4926 = vst [vmem:[#allocation8_spill] sm:$0xff] %v2576_v54  ;;  %4927 = vst [vmem:[#allocation9_spill] sm:$0xff] %v2579_v55  ;;  %v2582_v56 = vrot.slane %v993_v17, %v2500_v8 }
  0x10   :  { %4920 = vst [vmem:[#allocation2_spill] sm:$0xff] %v2558_v48  ;;  %4921 = vst [vmem:[#allocation3_spill] sm:$0xff] %v2561_v49  ;;  %v2585_v57 = vrot.slane %v997_v18, %v2500_v8  ;;  %v2588_v58 = vrot.slane %v1001_v19, %v2500_v8  ;;  %v2591_v59 = vrot.slane %v1005_v20, %v2500_v8  ;;  %v790_v19 = vunpack.c.l.bf16 %v782_v2  ;;  %v78_v20 = vld [vmem:[%s4781_s0 + $0x200] sm:$0xff] }
  0x11   :  { %4922 = vst [vmem:[#allocation4_spill] sm:$0xff] %v2564_v50  ;;  %4923 = vst [vmem:[#allocation5_spill] sm:$0xff] %v2567_v51  ;;  %v2594_v60 = vrot.slane %v1009_v21, %v2500_v8  ;;  %v2597_v61 = vrot.slane %v1013_v22, %v2500_v8  ;;  %v2600_v62 = vrot.slane %v1017_v23, %v2500_v8  ;;  %v791_v23 = vunpack.c.h.bf16 %v782_v2 }
  0x12   :  { %4924 = vst [vmem:[#allocation6_spill] sm:$0xff] %v2570_v52  ;;  %4925 = vst [vmem:[#allocation7_spill] sm:$0xff] %v2573_v53  ;;  %v2603_v63 = vrot.slane %v1021_v24, %v2500_v8  ;;  %v2606_v0 = vrot.slane %v1025_v25, %v2500_v8  ;;  %v2609_v1 = vrot.slane %v1029_v26, %v2500_v8  ;;  %v79_v25 = vld [vmem:[%s4781_s0 + $0x208] sm:$0xff]  ;;  %v398_v26 = vunpack.c.l.bf16 %v78_v20 }
  0x13   :  { %4928 = vst [vmem:[#allocation10_spill] sm:$0xff] %v2582_v56  ;;  %4929 = vst [vmem:[#allocation11_spill] sm:$0xff] %v2585_v57  ;;  %v2615_v3 = vrot.slane %v1033_v27, %v2500_v8  ;;  %v2618_v4 = vrot.slane %v1037_v28, %v2500_v8  ;;  %v2621_v5 = vrot.slane %v1041_v29, %v2500_v8  ;;  %v399_v27 = vunpack.c.h.bf16 %v78_v20 }
  0x14   :  { %4930 = vst [vmem:[#allocation12_spill] sm:$0xff] %v2588_v58  ;;  %4931 = vst [vmem:[#allocation13_spill] sm:$0xff] %v2591_v59  ;;  %v2624_v6 = vrot.slane %v1045_v30, %v2500_v8  ;;  %v2627_v7 = vrot.slane %v1049_v31, %v2500_v8  ;;  %v2630_v12 = vrot.slane %v1053_v32, %v2500_v8  ;;  %v80_v31 = vld [vmem:[%s4781_s0 + $0x210] sm:$0xff]  ;;  %v400_v32 = vunpack.c.l.bf16 %v79_v25 }
  0x15   :  { %4932 = vst [vmem:[#allocation14_spill] sm:$0xff] %v2594_v60  ;;  %4933 = vst [vmem:[#allocation15_spill] sm:$0xff] %v2597_v61  ;;  %v2633_v13 = vrot.slane %v1057_v33, %v2500_v8  ;;  %v2636_v14 = vrot.slane %v1061_v34, %v2500_v8  ;;  %v2639_v15 = vrot.slane %v1065_v36, %v2500_v8  ;;  %v401_v35 = vunpack.c.h.bf16 %v79_v25  ;;  %v783_v36 = vld [vmem:[%s4780_s1 + $0x8] sm:$0xff] }
  0x16   :  { %4934 = vst [vmem:[#allocation16_spill] sm:$0xff] %v2600_v62  ;;  %4935 = vst [vmem:[#allocation17_spill] sm:$0xff] %v2603_v63  ;;  %v2642_v16 = vrot.slane %v1069_v37, %v2500_v8  ;;  %v2645_v17 = vrot.slane %v1073_v38, %v2500_v8  ;;  %v2648_v18 = vrot.slane %v1077_v39, %v2500_v8  ;;  %v402_v43 = vunpack.c.l.bf16 %v80_v31  ;;  %v2834_v62 = vld [vmem:[%s4781_s0 + $0x290] sm:$0xff]  ;;  %v2870_v60 = vld [vmem:[%s4781_s0 + $0x2a8] sm:$0xff] }
  0x17   :  { %4936 = vst [vmem:[#allocation18_spill] sm:$0xff] %v2606_v0  ;;  %4937 = vst [vmem:[#allocation19_spill] sm:$0xff] %v2609_v1  ;;  %v825_v21 = vrot.slane %v790_v19, %v2500_v8  ;;  %v829_v22 = vrot.slane %v790_v19, %v2502_v9  ;;  %v833_v24 = vrot.slane %v790_v19, %v2504_v10  ;;  %v792_v45 = vunpack.c.l.bf16 %v783_v36  ;;  %v2814_v0 = vld [vmem:[%s4781_s0 + $0x280] sm:$0xff]  ;;  %v2849_v1 = vld [vmem:[%s4781_s0 + $0x298] sm:$0xff] }
  0x18   :  { %4938 = vst [vmem:[#allocation20_spill] sm:$0xff] %v2615_v3  ;;  %4939 = vst [vmem:[#allocation21_spill] sm:$0xff] %v2618_v4  ;;  %v837_v28 = vrot.slane %v790_v19, %v2506_v11  ;;  %v841_v33 = vrot.slane %v791_v23, %v2500_v8  ;;  %v845_v37 = vrot.slane %v791_v23, %v2502_v9  ;;  %v403_v19 = vunpack.c.h.bf16 %v80_v31  ;;  %v2794_v4 = vld [vmem:[%s4781_s0 + $0x270] sm:$0xff] }
  0x19   :  { %4940 = vst [vmem:[#allocation22_spill] sm:$0xff] %v2621_v5  ;;  %4941 = vst [vmem:[#allocation23_spill] sm:$0xff] %v2624_v6  ;;  %v2661_v29 = vrot.slane %v825_v21, %v2500_v8  ;;  %v2664_v30 = vrot.slane %v829_v22, %v2500_v8  ;;  %v2671_v34 = vrot.slane %v833_v24, %v2500_v8  ;;  %v404_v25 = vunpack.c.l.bf16 %v81_v44  ;;  %v2773_v6 = vld [vmem:[%s4781_s0 + $0x260] sm:$0xff] }
  0x1a   :  { %4942 = vst [vmem:[#allocation24_spill] sm:$0xff] %v2627_v7  ;;  %4943 = vst [vmem:[#allocation25_spill] sm:$0xff] %v2630_v12  ;;  %v2678_v38 = vrot.slane %v837_v28, %v2500_v8  ;;  %v849_v46 = vrot.slane %v791_v23, %v2504_v10  ;;  %v2687_v47 = vrot.slane %v841_v33, %v2500_v8  ;;  %v83_v33 = vld [vmem:[%s4781_s0 + $0x228] sm:$0xff] }
  0x1b   :  { %4944 = vst [vmem:[#allocation26_spill] sm:$0xff] %v2633_v13  ;;  %4945 = vst [vmem:[#allocation27_spill] sm:$0xff] %v2636_v14  ;;  %v1526_v39 = vmul.f32 %v2661_v29, %v398_v26  ;;  %v1527_v42 = vmul.f32 %v2664_v30, %v399_v27  ;;  %v1528_v2 = vmul.f32 %v2671_v34, %v400_v32  ;;  %v82_v26 = vld [vmem:[%s4781_s0 + $0x220] sm:$0xff]  ;;  %v2750_v13 = vld [vmem:[%s4781_s0 + $0x250] sm:$0xff] }
  0x1c   :  { %4946 = vst [vmem:[#allocation28_spill] sm:$0xff] %v2639_v15  ;;  %4947 = vst [vmem:[#allocation29_spill] sm:$0xff] %v2642_v16  ;;  %v853_v20 = vrot.slane %v791_v23, %v2506_v11  ;;  %v2692_v21 = vrot.slane %v845_v37, %v2500_v8  ;;  %v1529_v22 = vmul.f32 %v2678_v38, %v401_v35  ;;  %v405_v23 = vunpack.c.h.bf16 %v81_v44  ;;  %v2721_v44 = vld [vmem:[%s4781_s0 + $0x238] sm:$0xff]  ;;  %v2736_v16 = vld [vmem:[%s4781_s0 + $0x248] sm:$0xff] }
  0x1d   :  { %4948 = vst [vmem:[#allocation30_spill] sm:$0xff] %v2645_v17  ;;  %4949 = vst [vmem:[#allocation31_spill] sm:$0xff] %v2648_v18  ;;  %v2040_v24 = vadd.f32 %v1527_v42, %v1526_v39  ;;  %v857_v27 = vrot.slane %v792_v45, %v2500_v8  ;;  %v2700_v28 = vrot.slane %v849_v46, %v2500_v8  ;;  %v406_v18 = vunpack.c.l.bf16 %v82_v26 }
  0x1e   :  { %4950 = vst [vmem:[#allocation32_spill] sm:$0xff] %v2661_v29  ;;  %4951 = vst [vmem:[#allocation33_spill] sm:$0xff] %v2664_v30  ;;  %v1530_v31 = vmul.f32 %v2687_v47, %v402_v43  ;;  %v861_v35 = vrot.slane %v792_v45, %v2502_v9  ;;  %v2708_v37 = vrot.slane %v853_v20, %v2500_v8  ;;  %v2711_v17 = vunpack.c.h.bf16 %v783_v36  ;;  %v2716_v43 = vld [vmem:[%s4781_s0 + $0x230] sm:$0xff] }
  0x1f   :  { %4952 = vst [vmem:[#allocation34_spill] sm:$0xff] %v2671_v34  ;;  %4953 = vst [vmem:[#allocation35_spill] sm:$0xff] %v2678_v38  ;;  %v2041_v32 = vadd.f32 %v2040_v24, %v1528_v2  ;;  %v1531_v39 = vmul.f32 %v2692_v21, %v403_v19  ;;  %v865_v46 = vrot.slane %v792_v45, %v2504_v10  ;;  %v407_v36 = vunpack.c.h.bf16 %v82_v26 }
  0x20   :  { %4954 = vst [vmem:[#allocation36_spill] sm:$0xff] %v2687_v47  ;;  %4955 = vst [vmem:[#allocation37_spill] sm:$0xff] %v2692_v21  ;;  %v2725_v2 = vrot.slane %v857_v27, %v2500_v8  ;;  %v1532_v19 = vmul.f32 %v2700_v28, %v404_v25  ;;  %v409_v24 = vunpack.c.h.bf16 %v83_v33  ;;  %v869_v15 = vrot.slane %v792_v45, %v2506_v11  ;;  %v2755_v45 = vld [vmem:[%s4781_s0 + $0x258] sm:$0xff] }
  0x21   :  { %4956 = vst [vmem:[#allocation38_spill] sm:$0xff] %v2708_v37  ;;  %v2042_v42 = vadd.f32 %v2041_v32, %v1529_v22  ;;  %v408_v22 = vunpack.c.l.bf16 %v83_v33  ;;  %v2731_v32 = vld [vmem:[%s4781_s0 + $0x240] sm:$0xff]  ;;  %v2740_v27 = vrot.slane %v861_v35, %v2500_v8  ;;  %v1533_v25 = vmul.f32 %v2708_v37, %v405_v23  ;;  %v784_v23 = vld [vmem:[%s4780_s1 + $0x10] sm:$0xff]  ;;  %4963 = vst [vmem:[#allocation45_spill] sm:$0xff] %v2849_v1 }
  0x22   :  { %v411_v33 = vunpack.c.h.bf16 %v2716_v43  ;;  %v873_v35 = vrot.slane %v2711_v17, %v2500_v8  ;;  %v2789_v5 = vunpack.c.l.bf16 %v784_v23  ;;  %v2865_v61 = vunpack.c.h.bf16 %v784_v23  ;;  %4966 = vst [vmem:[#allocation48_spill] sm:$0xff] %v2870_v60  ;;  %v14_v23 = vld [vmem:[%s4781_s0] sm:$0xff] }
  0x23   :  { %v2043_v20 = vadd.f32 %v2042_v42, %v1530_v31  ;;  %4957 = vst [vmem:[#allocation39_spill] sm:$0xff] %v2740_v27  ;;  %v410_v31 = vunpack.c.l.bf16 %v2716_v43  ;;  %v1534_v43 = vmul.f32 %v2725_v2, %v406_v18  ;;  %v877_v18 = vrot.slane %v2711_v17, %v2502_v9 }
  0x24   :  { %v4971_v7 = vunpack.c.h.bf16 %v2721_v44  ;;  %v270_v55 = vunpack.c.l.bf16 %v14_v23  ;;  %v271_v54 = vunpack.c.h.bf16 %v14_v23  ;;  %v16_v23 = vld [vmem:[%s4781_s0 + $0x10] sm:$0xff] }
  0x25   :  { %v2044_v26 = vadd.f32 %v2043_v20, %v1531_v39  ;;  %v2763_v39 = vrot.slane %v865_v46, %v2500_v8  ;;  %v2778_v46 = vld [vmem:[%s4781_s0 + $0x268] sm:$0xff] }
  0x26   :  { %v1399_v52 = vmul.f32 %v2664_v30, %v271_v54  ;;  %v2958_v54 = vld [vmem:[%s4781_s0 + $0x2c8] sm:$0xff] }
  0x27   :  { %4958 = vst [vmem:[#allocation40_spill] sm:$0xff] %v2763_v39  ;;  %v2045_v20 = vadd.f32 %v2044_v26, %v1532_v19  ;;  %v2783_v19 = vrot.slane %v869_v15, %v2500_v8  ;;  %v1535_v26 = vmul.f32 %v2740_v27, %v407_v36  ;;  %v2799_v15 = vld [vmem:[%s4781_s0 + $0x278] sm:$0xff]  ;;  %v881_v36 = vrot.slane %v2711_v17, %v2504_v10 }
  0x29   :  { %4959 = vst [vmem:[#allocation41_spill] sm:$0xff] %v2783_v19  ;;  %v2046_v12 = vadd.f32 %v2045_v20, %v1533_v25  ;;  %v2804_v25 = vrot.slane %v873_v35, %v2500_v8  ;;  %v1536_v20 = vmul.f32 %v2763_v39, %v408_v22  ;;  %v2819_v35 = vld [vmem:[%s4781_s0 + $0x288] sm:$0xff]  ;;  %v2824_v22 = vrot.slane %v877_v18, %v2500_v8 }
  0x2a   :  { %v2839_v18 = vrot.slane %v881_v36, %v2500_v8  ;;  %v2854_v36 = vld [vmem:[%s4781_s0 + $0x2a0] sm:$0xff] }
  0x2b   :  { %4960 = vst [vmem:[#allocation42_spill] sm:$0xff] %v2804_v25  ;;  %v2047_v14 = vadd.f32 %v2046_v12, %v1534_v43  ;;  %v885_v12 = vrot.slane %v2711_v17, %v2506_v11  ;;  %4961 = vst [vmem:[#allocation43_spill] sm:$0xff] %v2824_v22  ;;  %v1537_v43 = vmul.f32 %v2783_v19, %v409_v24 }
  0x2c   :  { %v889_v17 = vrot.slane %v2789_v5, %v2500_v8  ;;  %4962 = vst [vmem:[#allocation44_spill] sm:$0xff] %v2839_v18  ;;  %4964 = vst [vmem:[#allocation46_spill] sm:$0xff] %v2854_v36  ;;  %v2927_v36 = vld [vmem:[%s4781_s0 + $0x2c0] sm:$0xff] }
  0x2d   :  { %v2048_v3 = vadd.f32 %v2047_v14, %v1535_v26  ;;  %v1538_v14 = vmul.f32 %v2804_v25, %v410_v31  ;;  %v2859_v31 = vrot.slane %v885_v12, %v2500_v8  ;;  %v897_v12 = vrot.slane %v2789_v5, %v2504_v10  ;;  %v15_v26 = vld [vmem:[%s4781_s0 + $0x8] sm:$0xff] }
  0x2e   :  { %v2875_v59 = vrot.slane %v889_v17, %v2500_v8  ;;  %v2890_v17 = vld [vmem:[%s4781_s0 + $0x2b0] sm:$0xff]  ;;  %v272_v60 = vunpack.c.l.bf16 %v15_v26  ;;  %v273_v57 = vunpack.c.h.bf16 %v15_v26  ;;  %v274_v26 = vunpack.c.l.bf16 %v16_v23 }
  0x2f   :  { %v2049_v24 = vadd.f32 %v2048_v3, %v1536_v20  ;;  %v893_v3 = vrot.slane %v2789_v5, %v2502_v9  ;;  %4965 = vst [vmem:[#allocation47_spill] sm:$0xff] %v2859_v31  ;;  %v1539_v20 = vmul.f32 %v2824_v22, %v411_v33  ;;  %v4968_v33 = vunpack.c.l.bf16 %v2721_v44  ;;  %4969 = vst [vmem:[#allocation50_spill] sm:$0xff] %v2890_v17 }
  0x30   :  { %4967 = vst [vmem:[#allocation49_spill] sm:$0xff] %v2875_v59  ;;  %v1541_v58 = vmul.f32 %v2859_v31, %v4971_v7  ;;  %v905_v44 = vrot.slane %v2865_v61, %v2500_v8  ;;  %v2916_v7 = vrot.slane %v897_v12, %v2500_v8  ;;  %v909_v12 = vrot.slane %v2865_v61, %v2502_v9 }
  0x31   :  { %v2050_v63 = vadd.f32 %v2049_v24, %v1537_v43  ;;  %v1540_v43 = vmul.f32 %v2839_v18, %v4968_v33  ;;  %v2900_v33 = vrot.slane %v893_v3, %v2500_v8  ;;  %v4973_v3 = vunpack.c.l.bf16 %v2731_v32 }
  0x32   :  { %4972 = vst [vmem:[#allocation52_spill] sm:$0xff] %v2916_v7  ;;  %v1398_v17 = vmul.f32 %v2661_v29, %v270_v55  ;;  %v2947_v1 = vrot.slane %v905_v44, %v2500_v8  ;;  %v1400_v55 = vmul.f32 %v2671_v34, %v272_v60  ;;  %v917_v44 = vrot.slane %v2865_v61, %v2506_v11  ;;  %v17_v60 = vld [vmem:[%s4781_s0 + $0x18] sm:$0xff] }
  0x33   :  { %v2051_v24 = vadd.f32 %v2050_v63, %v1538_v14  ;;  %v2895_v63 = vld [vmem:[%s4781_s0 + $0x2b8] sm:$0xff]  ;;  %v901_v14 = vrot.slane %v2789_v5, %v2506_v11  ;;  %4970 = vst [vmem:[#allocation51_spill] sm:$0xff] %v2900_v33  ;;  %v2963_v30 = vrot.slane %v909_v12, %v2500_v8  ;;  %v1401_v34 = vmul.f32 %v2678_v38, %v273_v57 }
  0x34   :  { %v785_v5 = vld [vmem:[%s4780_s1 + $0x18] sm:$0xff]  ;;  %4976 = vst [vmem:[#allocation54_spill] sm:$0xff] %v2947_v1  ;;  %v1910_v29 = vadd.f32 %v1399_v52, %v1398_v17  ;;  %v2986_v57 = vrot.slane %v917_v44, %v2500_v8  ;;  %v4983_v17 = vunpack.c.h.bf16 %v2750_v13 }
  0x35   :  { %v2052_v42 = vadd.f32 %v2051_v24, %v1539_v20  ;;  %v1542_v20 = vmul.f32 %v2875_v59, %v4973_v3  ;;  %v2932_v53 = vrot.slane %v901_v14, %v2500_v8  ;;  %v2940_v56 = vunpack.c.l.bf16 %v785_v5  ;;  %4978 = vst [vmem:[#allocation55_spill] sm:$0xff] %v2963_v30 }
  0x36   :  { %v913_v14 = vrot.slane %v2865_v61, %v2504_v10  ;;  %4982 = vst [vmem:[#allocation57_spill] sm:$0xff] %v2986_v57 }
  0x37   :  { %v2053_v24 = vadd.f32 %v2052_v42, %v1540_v43  ;;  %4974 = vst [vmem:[#allocation53_spill] sm:$0xff] %v2932_v53  ;;  %v4975_v42 = vunpack.c.h.bf16 %v2731_v32  ;;  %v4977_v32 = vunpack.c.l.bf16 %v2736_v16  ;;  %v921_v61 = vrot.slane %v2940_v56, %v2500_v8 }
  0x38   :  { %v2976_v12 = vrot.slane %v913_v14, %v2500_v8  ;;  %v925_v52 = vrot.slane %v2940_v56, %v2502_v9  ;;  %v1547_v14 = vmul.f32 %v2963_v30, %v4983_v17  ;;  %v933_v17 = vrot.slane %v2940_v56, %v2506_v11 }
  0x39   :  { %v1543_v43 = vmul.f32 %v2900_v33, %v4975_v42  ;;  %v2054_v3 = vadd.f32 %v2053_v24, %v1541_v58  ;;  %v1544_v58 = vmul.f32 %v2916_v7, %v4977_v32  ;;  %v275_v42 = vunpack.c.h.bf16 %v16_v23 }
  0x3a   :  { %4980 = vst [vmem:[#allocation56_spill] sm:$0xff] %v2976_v12  ;;  %v1402_v33 = vmul.f32 %v2687_v47, %v274_v26  ;;  %v1911_v23 = vadd.f32 %v1910_v29, %v1400_v55  ;;  %v3000_v55 = vld [vmem:[%s4781_s0 + $0x2d0] sm:$0xff]  ;;  %v3005_v44 = vrot.slane %v921_v61, %v2500_v8  ;;  %v4987_v61 = vunpack.c.h.bf16 %v2755_v45 }
  0x3b   :  { %v2055_v24 = vadd.f32 %v2054_v3, %v1542_v20  ;;  %v4979_v20 = vunpack.c.h.bf16 %v2736_v16  ;;  %v4981_v16 = vunpack.c.l.bf16 %v2750_v13  ;;  %v1403_v29 = vmul.f32 %v2692_v21, %v275_v42 }
  0x3c   :  { %v1912_v26 = vadd.f32 %v1911_v23, %v1401_v34  ;;  %v929_v13 = vrot.slane %v2940_v56, %v2504_v10  ;;  %4984 = vst [vmem:[#allocation58_spill] sm:$0xff] %v3005_v44  ;;  %v1549_v21 = vmul.f32 %v2986_v57, %v4987_v61  ;;  %v3028_v56 = vld [vmem:[%s4781_s0 + $0x2d8] sm:$0xff] }
  0x3d   :  { %v1545_v3 = vmul.f32 %v2932_v53, %v4979_v20  ;;  %v2056_v32 = vadd.f32 %v2055_v24, %v1543_v43  ;;  %v1546_v43 = vmul.f32 %v2947_v1, %v4981_v16  ;;  %v276_v53 = vunpack.c.l.bf16 %v17_v60 }
  0x3e   :  { %v277_v16 = vunpack.c.h.bf16 %v17_v60  ;;  %v1913_v23 = vadd.f32 %v1912_v26, %v1402_v33  ;;  %v3015_v20 = vrot.slane %v925_v52, %v2500_v8  ;;  %v3033_v52 = vrot.slane %v929_v13, %v2500_v8 }
  0x3f   :  { %v2057_v24 = vadd.f32 %v2056_v32, %v1544_v58  ;;  %v18_v58 = vld [vmem:[%s4781_s0 + $0x20] sm:$0xff]  ;;  %v2994_v32 = vunpack.c.h.bf16 %v785_v5  ;;  %v1404_v34 = vmul.f32 %v2700_v28, %v276_v53  ;;  %v4991_v13 = vunpack.c.h.bf16 %v2773_v6 }
  0x40   :  { %v278_v42 = vunpack.c.l.bf16 %v18_v58  ;;  %4986 = vst [vmem:[#allocation59_spill] sm:$0xff] %v3015_v20  ;;  %v1405_v53 = vmul.f32 %v2708_v37, %v277_v16  ;;  %v1914_v33 = vadd.f32 %v1913_v23, %v1403_v29  ;;  %4988 = vst [vmem:[#allocation60_spill] sm:$0xff] %v3033_v52 }
  0x41   :  { %v2058_v38 = vadd.f32 %v2057_v24, %v1545_v3  ;;  %v4985_v3 = vunpack.c.l.bf16 %v2755_v45  ;;  %v937_v45 = vrot.slane %v2994_v32, %v2500_v8  ;;  %v941_v61 = vrot.slane %v2994_v32, %v2502_v9  ;;  %v3056_v9 = vld [vmem:[%s4781_s0 + $0x2e0] sm:$0xff] }
  0x42   :  { %v1406_v29 = vmul.f32 %v2725_v2, %v278_v42  ;;  %v1915_v23 = vadd.f32 %v1914_v33, %v1404_v34  ;;  %v1551_v60 = vmul.f32 %v3015_v20, %v4991_v13  ;;  %v949_v13 = vrot.slane %v2994_v32, %v2506_v11  ;;  %v3084_v11 = vld [vmem:[%s4781_s0 + $0x2e8] sm:$0xff] }
  0x43   :  { %v1548_v5 = vmul.f32 %v2976_v12, %v4985_v3  ;;  %v2059_v24 = vadd.f32 %v2058_v38, %v1546_v43  ;;  %v19_v38 = vld [vmem:[%s4781_s0 + $0x28] sm:$0xff]  ;;  %v279_v3 = vunpack.c.h.bf16 %v18_v58  ;;  %v3043_v43 = vrot.slane %v933_v17, %v2500_v8 }
  0x44   :  { %v280_v16 = vunpack.c.l.bf16 %v19_v38  ;;  %v1916_v34 = vadd.f32 %v1915_v23, %v1405_v53  ;;  %v4993_v17 = vunpack.c.l.bf16 %v2778_v46 }
  0x45   :  { %v2060_v47 = vadd.f32 %v2059_v24, %v1547_v14  ;;  %v4989_v14 = vunpack.c.l.bf16 %v2773_v6  ;;  %4990 = vst [vmem:[#allocation61_spill] sm:$0xff] %v3043_v43  ;;  %v1407_v42 = vmul.f32 %v2740_v27, %v279_v3  ;;  %v945_v6 = vrot.slane %v2994_v32, %v2504_v10 }
  0x46   :  { %v1552_v33 = vmul.f32 %v3033_v52, %v4993_v17  ;;  %v1408_v53 = vmul.f32 %v2763_v39, %v280_v16  ;;  %v1917_v23 = vadd.f32 %v1916_v34, %v1406_v29  ;;  %v4994_v10 = vunpack.c.h.bf16 %v2778_v46 }
  0x47   :  { %v1550_v26 = vmul.f32 %v3005_v44, %v4989_v14  ;;  %v2061_v24 = vadd.f32 %v2060_v47, %v1548_v5  ;;  %v20_v47 = vld [vmem:[%s4781_s0 + $0x30] sm:$0xff]  ;;  %v281_v14 = vunpack.c.h.bf16 %v19_v38  ;;  %v3071_v5 = vrot.slane %v941_v61, %v2500_v8 }
  0x48   :  { %v282_v3 = vunpack.c.l.bf16 %v20_v47  ;;  %v283_v17 = vunpack.c.h.bf16 %v20_v47  ;;  %v1918_v29 = vadd.f32 %v1917_v23, %v1407_v42  ;;  %v953_v46 = vrot.slane %v2541_v40, %v2500_v8  ;;  %v3099_v23 = vld [vmem:[%s4781_s0 + $0x2f0] sm:$0xff] }
  0x49   :  { %v2062_v37 = vadd.f32 %v2061_v24, %v1549_v21  ;;  %v3061_v21 = vrot.slane %v937_v45, %v2500_v8  ;;  %v1553_v45 = vmul.f32 %v3043_v43, %v4994_v10  ;;  %v1409_v16 = vmul.f32 %v2783_v19, %v281_v14 }
  0x4a   :  { %v3089_v32 = vrot.slane %v945_v6, %v2500_v8  ;;  %v1410_v42 = vmul.f32 %v2804_v25, %v282_v3  ;;  %v969_v40 = vrot.slane %v2543_v41, %v2500_v8  ;;  %v3104_v6 = vrot.slane %v949_v13, %v2500_v8  ;;  %v22_v3 = vld [vmem:[%s4781_s0 + $0x40] sm:$0xff]  ;;  %v3117_v41 = vld [vmem:[%s4781_s0 + $0x2f8] sm:$0xff] }
  0x4b   :  { %4992 = vst [vmem:[#allocation62_spill] sm:$0xff] %v3061_v21  ;;  %v2063_v24 = vadd.f32 %v2062_v37, %v1550_v26  ;;  %v21_v37 = vld [vmem:[%s4781_s0 + $0x38] sm:$0xff]  ;;  %v4997_v10 = vunpack.c.h.bf16 %v2794_v4  ;;  %v3121_v13 = vrot.slane %v953_v46, %v2500_v8 }
  0x4c   :  { %4995 = vst [vmem:[#allocation63_spill] sm:$0xff] %v3089_v32  ;;  %v284_v14 = vunpack.c.l.bf16 %v21_v37  ;;  %v3130_v26 = vrot.slane %v969_v40, %v2500_v8  ;;  %v5002_v8 = vunpack.c.l.bf16 %v2814_v0 }
  0x4d   :  { %v2064_v58 = vadd.f32 %v2063_v24, %v1551_v60  ;;  %v4996_v60 = vunpack.c.l.bf16 %v2794_v4  ;;  %v1919_v24 = vadd.f32 %v1918_v29, %v1408_v53  ;;  %v285_v29 = vunpack.c.h.bf16 %v21_v37  ;;  %4998 = vst [vmem:[#allocation64_spill] sm:$0xff] %v3121_v13  ;;  %v5011_v37 = vld [vmem:[#allocation51_spill] sm:$0xff] }
  0x4e   :  { %v286_v53 = vunpack.c.l.bf16 %v22_v3  ;;  %5000 = vst [vmem:[#allocation65_spill] sm:$0xff] %v3130_v26  ;;  %v5001_v4 = vunpack.c.h.bf16 %v2799_v15  ;;  %v1558_v40 = vmul.f32 %v3121_v13, %v5002_v8 }
  0x4f   :  { %v1554_v61 = vmul.f32 %v3061_v21, %v4996_v60  ;;  %v2065_v34 = vadd.f32 %v2064_v58, %v1552_v33  ;;  %v1555_v58 = vmul.f32 %v3071_v5, %v4997_v10  ;;  %v1411_v60 = vmul.f32 %v2824_v22, %v283_v17  ;;  %v5026_v22 = vld [vmem:[#allocation12_spill] sm:$0xff] }
  0x50   :  { %v1920_v47 = vadd.f32 %v1919_v24, %v1409_v16  ;;  %v1412_v17 = vmul.f32 %v2839_v18, %v284_v14  ;;  %v1557_v46 = vmul.f32 %v3104_v6, %v5001_v4  ;;  %v1413_v14 = vmul.f32 %v2859_v31, %v285_v29  ;;  %v5018_v18 = vld [vmem:[#allocation9_spill] sm:$0xff] }
  0x51   :  { %v2066_v33 = vadd.f32 %v2065_v34, %v1553_v45  ;;  %v4999_v45 = vunpack.c.l.bf16 %v2799_v15  ;;  %v5003_v15 = vunpack.c.h.bf16 %v2814_v0  ;;  %v5007_v0 = vunpack.c.h.bf16 %v2834_v62 }
  0x52   :  { %v1921_v16 = vadd.f32 %v1920_v47, %v1410_v42  ;;  %v5006_v42 = vunpack.c.l.bf16 %v2834_v62  ;;  %v5014_v62 = vld [vmem:[#allocation46_spill] sm:$0xff] }
  0x53   :  { %v1556_v34 = vmul.f32 %v3089_v32, %v4999_v45  ;;  %v2067_v10 = vadd.f32 %v2066_v33, %v1554_v61  ;;  %v23_v61 = vld [vmem:[%s4781_s0 + $0x48] sm:$0xff]  ;;  %v287_v45 = vunpack.c.h.bf16 %v22_v3  ;;  %v1414_v3 = vmul.f32 %v2875_v59, %v286_v53 }
  0x54   :  { %v1922_v47 = vadd.f32 %v1921_v16, %v1411_v60  ;;  %v288_v33 = vunpack.c.l.bf16 %v23_v61  ;;  %v5005_v60 = vunpack.c.h.bf16 %v2819_v35  ;;  %v1562_v8 = vmul.f32 %v3130_v26, %v5006_v42  ;;  %v5013_v42 = vld [vmem:[#allocation7_spill] sm:$0xff] }
  0x55   :  { %v2068_v38 = vadd.f32 %v2067_v10, %v1555_v58  ;;  %v1559_v58 = vmul.f32 %v2558_v48, %v5003_v15  ;;  %v5004_v10 = vunpack.c.l.bf16 %v2819_v35  ;;  %v24_v15 = vld [vmem:[%s4781_s0 + $0x50] sm:$0xff]  ;;  %v289_v35 = vunpack.c.h.bf16 %v23_v61 }
  0x56   :  { %v1923_v29 = vadd.f32 %v1922_v47, %v1412_v17  ;;  %v1561_v16 = vmul.f32 %v2564_v50, %v5005_v60  ;;  %v5010_v17 = vld [vmem:[#allocation6_spill] sm:$0xff]  ;;  %v1415_v60 = vmul.f32 %v5011_v37, %v287_v45  ;;  %v5019_v61 = vld [vmem:[#allocation48_spill] sm:$0xff]  ;;  %v5023_v37 = vld [vmem:[#allocation11_spill] sm:$0xff] }
  0x57   :  { %v2069_v4 = vadd.f32 %v2068_v38, %v1556_v34  ;;  %v1560_v24 = vmul.f32 %v2561_v49, %v5004_v10  ;;  %v1563_v38 = vmul.f32 %v2567_v51, %v5007_v0  ;;  %v5008_v10 = vld [vmem:[#allocation45_spill] sm:$0xff]  ;;  %v5015_v0 = vunpack.c.l.bf16 %v5014_v62  ;;  %v5021_v45 = vld [vmem:[#allocation10_spill] sm:$0xff] }
  0x58   :  { %v5009_v53 = vunpack.c.l.bf16 %v5008_v10  ;;  %v1924_v59 = vadd.f32 %v1923_v29, %v1413_v14  ;;  %v5012_v31 = vunpack.c.h.bf16 %v5008_v10  ;;  %v5017_v51 = vunpack.c.h.bf16 %v5014_v62 }
  0x59   :  { %v2070_v34 = vadd.f32 %v2069_v4, %v1557_v46  ;;  %v5016_v46 = vld [vmem:[#allocation8_spill] sm:$0xff]  ;;  %v290_v29 = vunpack.c.l.bf16 %v24_v15 }
  0x5a   :  { %v1564_v47 = vmul.f32 %v5010_v17, %v5009_v53  ;;  %v3170_v26 = vmul.f32 %v5013_v42, %v5012_v31  ;;  %v3175_v4 = vmul.f32 %v5016_v46, %v5015_v0  ;;  %v3180_v50 = vmul.f32 %v5018_v18, %v5017_v51  ;;  %v5024_v46 = vld [vmem:[#allocation50_spill] sm:$0xff] }
  0x5b   :  { %v2071_v53 = vadd.f32 %v2070_v34, %v1558_v40  ;;  %v5020_v17 = vunpack.c.l.bf16 %v5019_v61  ;;  %v1416_v31 = vmul.f32 %v2916_v7, %v288_v33  ;;  %v1925_v10 = vadd.f32 %v1924_v59, %v1414_v3  ;;  %v5028_v34 = vld [vmem:[#allocation13_spill] sm:$0xff]  ;;  %v5030_v3 = vld [vmem:[#allocation14_spill] sm:$0xff] }
  0x5c   :  { %v5022_v42 = vunpack.c.h.bf16 %v5019_v61  ;;  %v5025_v62 = vunpack.c.l.bf16 %v5024_v46  ;;  %v5027_v40 = vunpack.c.h.bf16 %v5024_v46  ;;  %v25_v59 = vld [vmem:[%s4781_s0 + $0x58] sm:$0xff]  ;;  %v5029_v33 = vunpack.c.l.bf16 %v2895_v63  ;;  %v110_v46 = vld [vmem:[%s4781_s0 + $0x300] sm:$0xff] }
  0x5d   :  { %v3185_v14 = vmul.f32 %v5021_v45, %v5020_v17  ;;  %v2072_v17 = vadd.f32 %v2071_v53, %v1559_v58  ;;  %v291_v61 = vunpack.c.h.bf16 %v24_v15  ;;  %v5033_v58 = vld [vmem:[#allocation15_spill] sm:$0xff]  ;;  %v5037_v15 = vld [vmem:[#allocation17_spill] sm:$0xff] }
  0x5e   :  { %v3191_v0 = vmul.f32 %v5023_v37, %v5022_v42  ;;  %v3196_v51 = vmul.f32 %v5026_v22, %v5025_v62  ;;  %v3201_v18 = vmul.f32 %v5028_v34, %v5027_v40  ;;  %v3209_v42 = vmul.f32 %v5030_v3, %v5029_v33  ;;  %v5031_v37 = vld [vmem:[#allocation53_spill] sm:$0xff]  ;;  %v5035_v22 = vld [vmem:[#allocation16_spill] sm:$0xff] }
  0x5f   :  { %v1417_v45 = vmul.f32 %v5031_v37, %v289_v35  ;;  %v1926_v62 = vadd.f32 %v1925_v10, %v1415_v60  ;;  %v5032_v40 = vunpack.c.h.bf16 %v2895_v63  ;;  %v5034_v34 = vunpack.c.l.bf16 %v2927_v36  ;;  %v5040_v10 = vld [vmem:[#allocation18_spill] sm:$0xff] }
  0x60   :  { %v5036_v33 = vunpack.c.h.bf16 %v2927_v36  ;;  %v2073_v35 = vadd.f32 %v2072_v17, %v1560_v24  ;;  %v5039_v60 = vunpack.c.l.bf16 %v2958_v54  ;;  %v292_v63 = vunpack.c.l.bf16 %v25_v59  ;;  %v5043_v36 = vld [vmem:[#allocation19_spill] sm:$0xff]  ;;  %v26_v24 = vld [vmem:[%s4781_s0 + $0x60] sm:$0xff] }
  0x61   :  { %v3218_v53 = vmul.f32 %v5033_v58, %v5032_v40  ;;  %v3223_v7 = vmul.f32 %v5035_v22, %v5034_v34  ;;  %v1418_v40 = vmul.f32 %v2947_v1, %v290_v29  ;;  %v1927_v58 = vadd.f32 %v1926_v62, %v1416_v31  ;;  %v111_v34 = vld [vmem:[%s4781_s0 + $0x308] sm:$0xff]  ;;  %v5046_v29 = vld [vmem:[#allocation20_spill] sm:$0xff] }
  0x62   :  { %v3228_v3 = vmul.f32 %v5037_v15, %v5036_v33  ;;  %v3233_v37 = vmul.f32 %v5040_v10, %v5039_v60  ;;  %v5042_v22 = vunpack.c.h.bf16 %v2958_v54  ;;  %v2074_v33 = vadd.f32 %v2073_v35, %v1561_v16  ;;  %v5050_v35 = vld [vmem:[#allocation22_spill] sm:$0xff] }
  0x63   :  { %v462_v17 = vunpack.c.l.bf16 %v110_v46  ;;  %v463_v60 = vunpack.c.h.bf16 %v110_v46  ;;  %v5045_v10 = vunpack.c.l.bf16 %v3000_v55  ;;  %v293_v62 = vunpack.c.h.bf16 %v25_v59 }
  0x64   :  { %5038 = vst [vmem:[#allocation45_spill] sm:$0xff] %v3228_v3  ;;  %5041 = vst [vmem:[#allocation46_spill] sm:$0xff] %v3233_v37  ;;  %v3242_v49 = vmul.f32 %v5043_v36, %v5042_v22  ;;  %v1419_v15 = vmul.f32 %v2963_v30, %v291_v61  ;;  %v1928_v1 = vadd.f32 %v1927_v58, %v1417_v45  ;;  %v5047_v54 = vunpack.c.h.bf16 %v3000_v55  ;;  %v5048_v22 = vld [vmem:[#allocation21_spill] sm:$0xff]  ;;  %v112_v55 = vld [vmem:[%s4781_s0 + $0x310] sm:$0xff] }
  0x65   :  { %v3250_v31 = vmul.f32 %v5046_v29, %v5045_v10  ;;  %v5049_v16 = vunpack.c.l.bf16 %v3028_v56  ;;  %v2075_v46 = vadd.f32 %v2074_v33, %v1562_v8  ;;  %v464_v37 = vunpack.c.l.bf16 %v111_v34  ;;  %v5052_v10 = vld [vmem:[#allocation23_spill] sm:$0xff]  ;;  %v5054_v33 = vld [vmem:[#allocation32_spill] sm:$0xff] }
  0x66   :  { %5044 = vst [vmem:[#allocation48_spill] sm:$0xff] %v3242_v49  ;;  %v3256_v36 = vmul.f32 %v5048_v22, %v5047_v54  ;;  %v5051_v3 = vunpack.c.h.bf16 %v3028_v56  ;;  %v294_v59 = vunpack.c.l.bf16 %v26_v24  ;;  %v1420_v45 = vmul.f32 %v2976_v12, %v292_v63  ;;  %v27_v54 = vld [vmem:[%s4781_s0 + $0x68] sm:$0xff]  ;;  %v5055_v56 = vld [vmem:[#allocation33_spill] sm:$0xff] }
  0x67   :  { %v3261_v49 = vmul.f32 %v5050_v35, %v5049_v16  ;;  %v1929_v61 = vadd.f32 %v1928_v1, %v1418_v40  ;;  %v2076_v58 = vadd.f32 %v2075_v46, %v1563_v38  ;;  %v465_v8 = vunpack.c.h.bf16 %v111_v34  ;;  %v5059_v46 = vld [vmem:[#allocation25_spill] sm:$0xff] }
  0x68   :  { %v3266_v29 = vmul.f32 %v5052_v10, %v5051_v3  ;;  %v1590_v16 = vmul.f32 %v5054_v33, %v462_v17  ;;  %v1591_v35 = vmul.f32 %v5055_v56, %v463_v60  ;;  %v5056_v3 = vunpack.c.l.bf16 %v3056_v9  ;;  %v5057_v10 = vld [vmem:[#allocation24_spill] sm:$0xff]  ;;  %v5062_v56 = vld [vmem:[#allocation26_spill] sm:$0xff] }
  0x69   :  { %v295_v1 = vunpack.c.h.bf16 %v26_v24  ;;  %v1421_v63 = vmul.f32 %v2986_v57, %v293_v62  ;;  %v1930_v40 = vadd.f32 %v1929_v61, %v1419_v15  ;;  %v5058_v38 = vunpack.c.h.bf16 %v3056_v9  ;;  %v113_v9 = vld [vmem:[%s4781_s0 + $0x318] sm:$0xff]  ;;  %v5063_v62 = vld [vmem:[#allocation35_spill] sm:$0xff]  ;;  %v5068_v57 = vld [vmem:[#allocation28_spill] sm:$0xff] }
  0x6a   :  { %5053 = vst [vmem:[#allocation50_spill] sm:$0xff] %v3266_v29  ;;  %v3280_v22 = vmul.f32 %v5057_v10, %v5056_v3  ;;  %v2077_v30 = vadd.f32 %v2076_v58, %v1564_v47  ;;  %v466_v34 = vunpack.c.l.bf16 %v112_v55  ;;  %v5060_v29 = vld [vmem:[#allocation34_spill] sm:$0xff]  ;;  %v5061_v60 = vunpack.c.l.bf16 %v3084_v11  ;;  %v28_v47 = vld [vmem:[%s4781_s0 + $0x70] sm:$0xff] }
  0x6b   :  { %v3286_v12 = vmul.f32 %v5059_v46, %v5058_v38  ;;  %v1592_v17 = vmul.f32 %v5060_v29, %v464_v37  ;;  %v296_v3 = vunpack.c.l.bf16 %v27_v54  ;;  %v1422_v24 = vmul.f32 %v3005_v44, %v294_v59 }
  0x6c   :  { %v3292_v33 = vmul.f32 %v5062_v56, %v5061_v60  ;;  %v1931_v10 = vadd.f32 %v1930_v40, %v1420_v45  ;;  %v2078_v15 = vadd.f32 %v2077_v30, %v3170_v26  ;;  %v467_v37 = vunpack.c.h.bf16 %v112_v55  ;;  %v5065_v60 = vld [vmem:[#allocation27_spill] sm:$0xff]  ;;  %v5066_v26 = vld [vmem:[#allocation36_spill] sm:$0xff] }
  0x6d   :  { %v1593_v61 = vmul.f32 %v5063_v62, %v465_v8  ;;  %v2105_v58 = vadd.f32 %v1591_v35, %v1590_v16  ;;  %v5064_v38 = vunpack.c.h.bf16 %v3084_v11  ;;  %v297_v59 = vunpack.c.h.bf16 %v27_v54  ;;  %v114_v54 = vld [vmem:[%s4781_s0 + $0x320] sm:$0xff] }
  0x6e   :  { %v1423_v45 = vmul.f32 %v3015_v20, %v295_v1  ;;  %v1932_v40 = vadd.f32 %v1931_v10, %v1421_v63  ;;  %v2079_v46 = vadd.f32 %v2078_v15, %v3175_v4  ;;  %v468_v30 = vunpack.c.l.bf16 %v113_v9  ;;  %v29_v4 = vld [vmem:[%s4781_s0 + $0x78] sm:$0xff] }
  0x6f   :  { %v3306_v56 = vmul.f32 %v5065_v60, %v5064_v38  ;;  %v1594_v29 = vmul.f32 %v5066_v26, %v466_v34  ;;  %v2106_v44 = vadd.f32 %v2105_v58, %v1592_v17  ;;  %v5067_v55 = vunpack.c.l.bf16 %v3099_v23  ;;  %v5069_v63 = vld [vmem:[#allocation37_spill] sm:$0xff]  ;;  %v5073_v60 = vld [vmem:[#allocation30_spill] sm:$0xff] }
  0x70   :  { %v298_v35 = vunpack.c.l.bf16 %v28_v47  ;;  %v1424_v11 = vmul.f32 %v3033_v52, %v296_v3  ;;  %v1933_v16 = vadd.f32 %v1932_v40, %v1422_v24  ;;  %v2080_v10 = vadd.f32 %v2079_v46, %v3180_v50  ;;  %v5071_v58 = vld [vmem:[#allocation29_spill] sm:$0xff] }
  0x71   :  { %v3314_v8 = vmul.f32 %v5068_v57, %v5067_v55  ;;  %v469_v1 = vunpack.c.h.bf16 %v113_v9  ;;  %v1595_v34 = vmul.f32 %v5069_v63, %v467_v37  ;;  %v2107_v17 = vadd.f32 %v2106_v44, %v1593_v61 }
  0x72   :  { %v5070_v15 = vunpack.c.h.bf16 %v3099_v23  ;;  %v299_v3 = vunpack.c.h.bf16 %v28_v47  ;;  %v1425_v24 = vmul.f32 %v3043_v43, %v297_v59  ;;  %v1934_v40 = vadd.f32 %v1933_v16, %v1423_v45  ;;  %v115_v47 = vld [vmem:[%s4781_s0 + $0x328] sm:$0xff]  ;;  %v5074_v45 = vld [vmem:[#allocation38_spill] sm:$0xff] }
  0x73   :  { %v2081_v55 = vadd.f32 %v2080_v10, %v3185_v14  ;;  %v470_v50 = vunpack.c.l.bf16 %v114_v54  ;;  %v1596_v46 = vmul.f32 %v2700_v28, %v468_v30  ;;  %v2108_v57 = vadd.f32 %v2107_v17, %v1594_v29  ;;  %v30_v14 = vld [vmem:[%s4781_s0 + $0x80] sm:$0xff]  ;;  %v5076_v17 = vld [vmem:[#allocation31_spill] sm:$0xff] }
  0x74   :  { %v3328_v38 = vmul.f32 %v5071_v58, %v5070_v15  ;;  %v5072_v9 = vunpack.c.l.bf16 %v3117_v41  ;;  %v300_v44 = vunpack.c.l.bf16 %v29_v4  ;;  %v1426_v23 = vmul.f32 %v3061_v21, %v298_v35 }
  0x75   :  { %v1935_v61 = vadd.f32 %v1934_v40, %v1424_v11  ;;  %v2082_v59 = vadd.f32 %v2081_v55, %v3191_v0  ;;  %v471_v29 = vunpack.c.h.bf16 %v114_v54  ;;  %v1597_v30 = vmul.f32 %v5074_v45, %v469_v1  ;;  %v31_v0 = vld [vmem:[%s4781_s0 + $0x88] sm:$0xff] }
  0x76   :  { %v3336_v37 = vmul.f32 %v5073_v60, %v5072_v9  ;;  %v2109_v16 = vadd.f32 %v2108_v57, %v1595_v34  ;;  %v5075_v10 = vunpack.c.h.bf16 %v3117_v41  ;;  %v301_v35 = vunpack.c.h.bf16 %v29_v4  ;;  %v116_v4 = vld [vmem:[%s4781_s0 + $0x330] sm:$0xff]  ;;  %v5081_v60 = vld [vmem:[#allocation46_spill] sm:$0xff] }
  0x77   :  { %v1427_v11 = vmul.f32 %v3071_v5, %v299_v3  ;;  %v1936_v40 = vadd.f32 %v1935_v61, %v1425_v24  ;;  %v2083_v9 = vadd.f32 %v2082_v59, %v3196_v51  ;;  %v472_v55 = vunpack.c.l.bf16 %v115_v47  ;;  %v3366_v51 = vld [vmem:[%s4781_s0 + $0x90] sm:$0xff] }
  0x78   :  { %v3350_v15 = vmul.f32 %v5076_v17, %v5075_v10  ;;  %v1598_v54 = vmul.f32 %v2725_v2, %v470_v50  ;;  %v2110_v1 = vadd.f32 %v2109_v16, %v1596_v46  ;;  %v302_v57 = vunpack.c.l.bf16 %v30_v14 }
  0x79   :  { %v303_v34 = vunpack.c.h.bf16 %v30_v14  ;;  %v1428_v41 = vmul.f32 %v3089_v32, %v300_v44  ;;  %v1937_v10 = vadd.f32 %v1936_v40, %v1426_v23  ;;  %v2084_v3 = vadd.f32 %v2083_v9, %v3201_v18  ;;  %v3374_v18 = vld [vmem:[%s4781_s0 + $0x98] sm:$0xff] }
  0x7a   :  { %v473_v24 = vunpack.c.h.bf16 %v115_v47  ;;  %v1599_v50 = vmul.f32 %v2740_v27, %v471_v29  ;;  %v2111_v46 = vadd.f32 %v2110_v1, %v1597_v30  ;;  %v304_v61 = vunpack.c.l.bf16 %v31_v0 }
  0x7b   :  { %v305_v59 = vunpack.c.h.bf16 %v31_v0  ;;  %v1429_v44 = vmul.f32 %v3104_v6, %v301_v35  ;;  %v1938_v23 = vadd.f32 %v1937_v10, %v1427_v11  ;;  %v2085_v14 = vadd.f32 %v2084_v3, %v3209_v42  ;;  %v117_v42 = vld [vmem:[%s4781_s0 + $0x338] sm:$0xff]  ;;  %v3387_v11 = vld [vmem:[%s4781_s0 + $0xa0] sm:$0xff] }
  0x7c   :  { %v474_v16 = vunpack.c.l.bf16 %v116_v4  ;;  %v1600_v40 = vmul.f32 %v2763_v39, %v472_v55  ;;  %v2112_v9 = vadd.f32 %v2111_v46, %v1598_v54  ;;  %v306_v47 = vunpack.c.l.bf16 %v3366_v51 }
  0x7d   :  { %v307_v29 = vunpack.c.h.bf16 %v3366_v51  ;;  %v1430_v30 = vmul.f32 %v3121_v13, %v302_v57  ;;  %v1939_v0 = vadd.f32 %v1938_v23, %v1428_v41  ;;  %v2086_v35 = vadd.f32 %v2085_v14, %v3218_v53  ;;  %v3397_v53 = vld [vmem:[%s4781_s0 + $0xa8] sm:$0xff] }
  0x7e   :  { %v475_v55 = vunpack.c.h.bf16 %v116_v4  ;;  %v1601_v54 = vmul.f32 %v2783_v19, %v473_v24  ;;  %v2113_v1 = vadd.f32 %v2112_v9, %v1599_v50  ;;  %v308_v10 = vunpack.c.l.bf16 %v3374_v18  ;;  %v5077_v14 = vld [vmem:[#allocation3_spill] sm:$0xff] }
  0x7f   :  { %v309_v57 = vunpack.c.h.bf16 %v3374_v18  ;;  %v1431_v41 = vmul.f32 %v2558_v48, %v303_v34  ;;  %v1940_v3 = vadd.f32 %v1939_v0, %v1429_v44  ;;  %v2087_v51 = vadd.f32 %v2086_v35, %v3223_v7  ;;  %v118_v7 = vld [vmem:[%s4781_s0 + $0x340] sm:$0xff]  ;;  %v5078_v34 = vld [vmem:[#allocation45_spill] sm:$0xff]  ;;  %v3410_v0 = vld [vmem:[%s4781_s0 + $0xb0] sm:$0xff] }
  0x80   :  { %v476_v46 = vunpack.c.l.bf16 %v117_v42  ;;  %v1602_v4 = vmul.f32 %v2804_v25, %v474_v16  ;;  %v2114_v23 = vadd.f32 %v2113_v1, %v1600_v40  ;;  %v310_v24 = vunpack.c.l.bf16 %v3387_v11  ;;  %v5079_v40 = vld [vmem:[#allocation43_spill] sm:$0xff]  ;;  %v5082_v25 = vld [vmem:[#allocation44_spill] sm:$0xff] }
  0x81   :  { %v1432_v18 = vmul.f32 %v5077_v14, %v304_v61  ;;  %v1941_v9 = vadd.f32 %v1940_v3, %v1430_v30  ;;  %v2088_v44 = vadd.f32 %v2087_v51, %v5078_v34  ;;  %v477_v16 = vunpack.c.h.bf16 %v117_v42  ;;  %v5080_v30 = vld [vmem:[#allocation4_spill] sm:$0xff]  ;;  %v3420_v51 = vld [vmem:[%s4781_s0 + $0xb8] sm:$0xff] }
  0x82   :  { %v1603_v35 = vmul.f32 %v5079_v40, %v475_v55  ;;  %v2115_v1 = vadd.f32 %v2114_v23, %v1601_v54  ;;  %v1433_v3 = vmul.f32 %v5080_v30, %v305_v59  ;;  %v478_v34 = vunpack.c.l.bf16 %v118_v7  ;;  %v5083_v23 = vld [vmem:[#allocation65_spill] sm:$0xff]  ;;  %v5084_v59 = vld [vmem:[#allocation48_spill] sm:$0xff] }
  0x83   :  { %v1942_v17 = vadd.f32 %v1941_v9, %v1431_v41  ;;  %v2089_v58 = vadd.f32 %v2088_v44, %v5081_v60  ;;  %v1604_v42 = vmul.f32 %v5082_v25, %v476_v46  ;;  %v1434_v61 = vmul.f32 %v5083_v23, %v306_v47  ;;  %v119_v60 = vld [vmem:[%s4781_s0 + $0x348] sm:$0xff]  ;;  %v3433_v9 = vld [vmem:[%s4781_s0 + $0xc0] sm:$0xff]  ;;  %v5087_v40 = vld [vmem:[#allocation49_spill] sm:$0xff] }
  0x84   :  { %v2116_v19 = vadd.f32 %v2115_v1, %v1602_v4  ;;  %v479_v46 = vunpack.c.h.bf16 %v118_v7  ;;  %v5085_v4 = vld [vmem:[#allocation47_spill] sm:$0xff]  ;;  %v1606_v7 = vmul.f32 %v5087_v40, %v478_v34  ;;  %v5091_v40 = vld [vmem:[#allocation52_spill] sm:$0xff] }
  0x85   :  { %v1943_v50 = vadd.f32 %v1942_v17, %v1432_v18  ;;  %v2090_v41 = vadd.f32 %v2089_v58, %v5084_v59  ;;  %v1605_v44 = vmul.f32 %v5085_v4, %v477_v16  ;;  %v5086_v17 = vld [vmem:[#allocation5_spill] sm:$0xff]  ;;  %v3443_v58 = vld [vmem:[%s4781_s0 + $0xc8] sm:$0xff]  ;;  %v480_v59 = vunpack.c.l.bf16 %v119_v60 }
  0x86   :  { %v2117_v1 = vadd.f32 %v2116_v19, %v1603_v35  ;;  %v1435_v18 = vmul.f32 %v5086_v17, %v307_v29  ;;  %v5088_v35 = vld [vmem:[#allocation6_spill] sm:$0xff]  ;;  %v5089_v34 = vld [vmem:[#allocation51_spill] sm:$0xff] }
  0x87   :  { %v1944_v55 = vadd.f32 %v1943_v50, %v1433_v3  ;;  %v2091_v25 = vadd.f32 %v2090_v41, %v3250_v31  ;;  %v1436_v47 = vmul.f32 %v5088_v35, %v308_v10  ;;  %v120_v31 = vld [vmem:[%s4781_s0 + $0x350] sm:$0xff]  ;;  %v481_v3 = vunpack.c.h.bf16 %v119_v60 }
  0x88   :  { %v2118_v23 = vadd.f32 %v2117_v1, %v1604_v42  ;;  %v3456_v50 = vld [vmem:[%s4781_s0 + $0xd0] sm:$0xff]  ;;  %v1607_v42 = vmul.f32 %v5089_v34, %v479_v46  ;;  %v1608_v60 = vmul.f32 %v5091_v40, %v480_v59  ;;  %v483_v59 = vunpack.c.h.bf16 %v120_v31  ;;  %v5097_v34 = vld [vmem:[#allocation54_spill] sm:$0xff] }
  0x89   :  { %v1945_v54 = vadd.f32 %v1944_v55, %v1434_v61  ;;  %v2092_v29 = vadd.f32 %v2091_v25, %v3256_v36  ;;  %v5090_v61 = vld [vmem:[#allocation7_spill] sm:$0xff]  ;;  %v3466_v25 = vld [vmem:[%s4781_s0 + $0xd8] sm:$0xff]  ;;  %v482_v36 = vunpack.c.l.bf16 %v120_v31  ;;  %v5099_v46 = vld [vmem:[#allocation10_spill] sm:$0xff] }
  0x8a   :  { %v2119_v41 = vadd.f32 %v2118_v23, %v1605_v44  ;;  %v1437_v55 = vmul.f32 %v5090_v61, %v309_v57  ;;  %v5092_v44 = vld [vmem:[#allocation8_spill] sm:$0xff]  ;;  %v5093_v57 = vld [vmem:[#allocation50_spill] sm:$0xff] }
  0x8b   :  { %v1946_v16 = vadd.f32 %v1945_v54, %v1435_v18  ;;  %v2093_v19 = vadd.f32 %v2092_v29, %v3261_v49  ;;  %v1438_v10 = vmul.f32 %v5092_v44, %v310_v24  ;;  %v121_v49 = vld [vmem:[%s4781_s0 + $0x358] sm:$0xff]  ;;  %v3479_v18 = vld [vmem:[%s4781_s0 + $0xe0] sm:$0xff] }
  0x8c   :  { %v2120_v4 = vadd.f32 %v2119_v41, %v1606_v7  ;;  %v5094_v7 = vld [vmem:[#allocation53_spill] sm:$0xff]  ;;  %v484_v31 = vunpack.c.l.bf16 %v121_v49 }
  0x8d   :  { %v1947_v1 = vadd.f32 %v1946_v16, %v1436_v47  ;;  %v2094_v54 = vadd.f32 %v2093_v19, %v5093_v57  ;;  %v1609_v29 = vmul.f32 %v5094_v7, %v481_v3  ;;  %v5095_v47 = vunpack.c.h.bf16 %v3387_v11  ;;  %v5096_v16 = vld [vmem:[#allocation9_spill] sm:$0xff]  ;;  %v3491_v57 = vld [vmem:[%s4781_s0 + $0xe8] sm:$0xff] }
  0x8e   :  { %v2121_v41 = vadd.f32 %v2120_v4, %v1607_v42  ;;  %v1610_v3 = vmul.f32 %v5097_v34, %v482_v36  ;;  %v5098_v11 = vunpack.c.l.bf16 %v3397_v53  ;;  %v3506_v36 = vld [vmem:[%s4781_s0 + $0xf0] sm:$0xff] }
  0x8f   :  { %v1439_v23 = vmul.f32 %v5096_v16, %v5095_v47  ;;  %v1948_v40 = vadd.f32 %v1947_v1, %v1437_v55  ;;  %v2095_v19 = vadd.f32 %v2094_v54, %v3280_v22  ;;  %v122_v22 = vld [vmem:[%s4781_s0 + $0x360] sm:$0xff]  ;;  %v5100_v54 = vld [vmem:[#allocation55_spill] sm:$0xff]  ;;  %v5105_v42 = vld [vmem:[#allocation12_spill] sm:$0xff] }
  0x90   :  { %v2122_v4 = vadd.f32 %v2121_v41, %v1608_v60  ;;  %v1440_v47 = vmul.f32 %v5099_v46, %v5098_v11  ;;  %v485_v60 = vunpack.c.h.bf16 %v121_v49  ;;  %v1611_v41 = vmul.f32 %v5100_v54, %v483_v59  ;;  %v5103_v46 = vld [vmem:[#allocation56_spill] sm:$0xff]  ;;  %v5106_v54 = vld [vmem:[#allocation57_spill] sm:$0xff] }
  0x91   :  { %v1949_v1 = vadd.f32 %v1948_v40, %v1438_v10  ;;  %v2096_v55 = vadd.f32 %v2095_v19, %v3286_v12  ;;  %v5101_v40 = vunpack.c.h.bf16 %v3397_v53  ;;  %v5102_v10 = vld [vmem:[#allocation11_spill] sm:$0xff]  ;;  %v3518_v19 = vld [vmem:[%s4781_s0 + $0xf8] sm:$0xff]  ;;  %v486_v49 = vunpack.c.l.bf16 %v122_v22 }
  0x92   :  { %v2123_v24 = vadd.f32 %v2122_v4, %v1609_v29  ;;  %v1612_v59 = vmul.f32 %v5103_v46, %v484_v31  ;;  %v5104_v53 = vunpack.c.l.bf16 %v3410_v0 }
  0x93   :  { %v1441_v34 = vmul.f32 %v5102_v10, %v5101_v40  ;;  %v1950_v7 = vadd.f32 %v1949_v1, %v1439_v23  ;;  %v2097_v12 = vadd.f32 %v2096_v55, %v3292_v33  ;;  %v123_v33 = vld [vmem:[%s4781_s0 + $0x368] sm:$0xff]  ;;  %v487_v55 = vunpack.c.h.bf16 %v122_v22  ;;  %v5109_v22 = vld [vmem:[#allocation58_spill] sm:$0xff] }
  0x94   :  { %v2124_v29 = vadd.f32 %v2123_v24, %v1610_v3  ;;  %v1442_v40 = vmul.f32 %v5105_v42, %v5104_v53  ;;  %v1613_v10 = vmul.f32 %v5106_v54, %v485_v60  ;;  %v46_v24 = vld [vmem:[%s4781_s0 + $0x100] sm:$0xff] }
  0x95   :  { %v1951_v23 = vadd.f32 %v1950_v7, %v1440_v47  ;;  %v2098_v1 = vadd.f32 %v2097_v12, %v3306_v56  ;;  %v5107_v7 = vunpack.c.h.bf16 %v3410_v0  ;;  %v5108_v47 = vld [vmem:[#allocation13_spill] sm:$0xff]  ;;  %v488_v56 = vunpack.c.l.bf16 %v123_v33  ;;  %v5111_v3 = vld [vmem:[#allocation14_spill] sm:$0xff]  ;;  %v124_v0 = vld [vmem:[%s4781_s0 + $0x370] sm:$0xff] }
  0x96   :  { %v2125_v31 = vadd.f32 %v2124_v29, %v1611_v41  ;;  %v1614_v12 = vmul.f32 %v5109_v22, %v486_v49  ;;  %v47_v41 = vld [vmem:[%s4781_s0 + $0x108] sm:$0xff]  ;;  %v5110_v29 = vunpack.c.l.bf16 %v3420_v51  ;;  %v1615_v49 = vmul.f32 %v3015_v20, %v487_v55  ;;  %v5116_v55 = vld [vmem:[#allocation32_spill] sm:$0xff] }
  0x97   :  { %v1443_v53 = vmul.f32 %v5108_v47, %v5107_v7  ;;  %v1952_v4 = vadd.f32 %v1951_v23, %v1441_v34  ;;  %v2099_v46 = vadd.f32 %v2098_v1, %v3314_v8  ;;  %v334_v34 = vunpack.c.l.bf16 %v46_v24  ;;  %v5113_v7 = vld [vmem:[#allocation15_spill] sm:$0xff] }
  0x98   :  { %v2126_v60 = vadd.f32 %v2125_v31, %v1612_v59  ;;  %v1444_v54 = vmul.f32 %v5111_v3, %v5110_v29  ;;  %v335_v23 = vunpack.c.h.bf16 %v46_v24  ;;  %v489_v1 = vunpack.c.h.bf16 %v123_v33  ;;  %v5115_v29 = vld [vmem:[#allocation16_spill] sm:$0xff] }
  0x99   :  { %v1953_v11 = vadd.f32 %v1952_v4, %v1442_v40  ;;  %v2100_v8 = vadd.f32 %v2099_v46, %v3328_v38  ;;  %v5112_v31 = vunpack.c.h.bf16 %v3420_v51  ;;  %v5114_v47 = vunpack.c.l.bf16 %v3433_v9  ;;  %v48_v46 = vld [vmem:[%s4781_s0 + $0x110] sm:$0xff]  ;;  %v125_v51 = vld [vmem:[%s4781_s0 + $0x378] sm:$0xff] }
  0x9a   :  { %v2127_v59 = vadd.f32 %v2126_v60, %v1613_v10  ;;  %v336_v3 = vunpack.c.l.bf16 %v47_v41  ;;  %v490_v16 = vunpack.c.l.bf16 %v124_v0  ;;  %v1616_v24 = vmul.f32 %v3033_v52, %v488_v56  ;;  %v5120_v52 = vld [vmem:[#allocation34_spill] sm:$0xff] }
  0x9b   :  { %v1445_v22 = vmul.f32 %v5113_v7, %v5112_v31  ;;  %v1446_v4 = vmul.f32 %v5115_v29, %v5114_v47  ;;  %v1954_v40 = vadd.f32 %v1953_v11, %v1443_v53  ;;  %v2101_v42 = vadd.f32 %v2100_v8, %v3336_v37  ;;  %v5117_v11 = vld [vmem:[#allocation33_spill] sm:$0xff] }
  0x9c   :  { %v2128_v38 = vadd.f32 %v2127_v59, %v1614_v12  ;;  %v337_v33 = vunpack.c.h.bf16 %v47_v41  ;;  %v1462_v47 = vmul.f32 %v5116_v55, %v334_v34  ;;  %v1463_v53 = vmul.f32 %v5117_v11, %v335_v23  ;;  %v5119_v59 = vld [vmem:[#allocation17_spill] sm:$0xff]  ;;  %v5122_v34 = vld [vmem:[#allocation18_spill] sm:$0xff] }
  0x9d   :  { %v1955_v10 = vadd.f32 %v1954_v40, %v1444_v54  ;;  %v2102_v37 = vadd.f32 %v2101_v42, %v3350_v15  ;;  %v491_v60 = vunpack.c.h.bf16 %v124_v0  ;;  %v1617_v56 = vmul.f32 %v3043_v43, %v489_v1  ;;  %v49_v0 = vld [vmem:[%s4781_s0 + $0x118] sm:$0xff]  ;;  %v5126_v43 = vld [vmem:[#allocation20_spill] sm:$0xff] }
  0x9e   :  { %v2129_v12 = vadd.f32 %v2128_v38, %v1615_v49  ;;  %v5118_v8 = vunpack.c.h.bf16 %v3433_v9  ;;  %v338_v40 = vunpack.c.l.bf16 %v48_v46  ;;  %v1464_v20 = vmul.f32 %v5120_v52, %v336_v3 }
  0x9f   :  { %v1956_v54 = vadd.f32 %v1955_v10, %v1445_v22  ;;  %2103 = vadd.xlane.f32.xlu1 %v2102_v37  ;;  %v5121_v41 = vunpack.c.l.bf16 %v3443_v58  ;;  %v492_v23 = vunpack.c.l.bf16 %v125_v51  ;;  %v1618_v15 = vmul.f32 %v3061_v21, %v490_v16  ;;  %v126_v22 = vld [vmem:[%s4781_s0 + $0x380] sm:$0xff]  ;;  %v5124_v10 = vld [vmem:[#allocation19_spill] sm:$0xff] }
  0xa0   :  { %v1447_v31 = vmul.f32 %v5119_v59, %v5118_v8  ;;  %v2130_v42 = vadd.f32 %v2129_v12, %v1616_v24  ;;  %v339_v1 = vunpack.c.h.bf16 %v48_v46  ;;  %v1465_v3 = vmul.f32 %v5063_v62, %v337_v33 }
  0xa1   :  { %v1448_v55 = vmul.f32 %v5122_v34, %v5121_v41  ;;  %v1957_v9 = vadd.f32 %v1956_v54, %v1446_v4  ;;  %v1975_v49 = vadd.f32 %v1463_v53, %v1462_v47  ;;  %v5123_v38 = vunpack.c.h.bf16 %v3443_v58  ;;  %v50_v58 = vld [vmem:[%s4781_s0 + $0x120] sm:$0xff]  ;;  %v127_v53 = vld [vmem:[%s4781_s0 + $0x388] sm:$0xff] }
  0xa2   :  { %v493_v8 = vunpack.c.h.bf16 %v125_v51  ;;  %v1619_v16 = vmul.f32 %v3071_v5, %v491_v60  ;;  %v2131_v24 = vadd.f32 %v2130_v42, %v1617_v56  ;;  %v340_v41 = vunpack.c.l.bf16 %v49_v0 }
  0xa3   :  { %v1449_v37 = vmul.f32 %v5124_v10, %v5123_v38  ;;  %v1958_v12 = vadd.f32 %v1957_v9, %v1447_v31  ;;  %v1466_v4 = vmul.f32 %v5066_v26, %v338_v40  ;;  %v1976_v54 = vadd.f32 %v1975_v49, %v1464_v20 }
  0xa4   :  { %v5125_v21 = vunpack.c.l.bf16 %v3456_v50  ;;  %v494_v52 = vunpack.c.l.bf16 %v126_v22  ;;  %v1620_v33 = vmul.f32 %v3089_v32, %v492_v23  ;;  %v2132_v47 = vadd.f32 %v2131_v24, %v1618_v15 }
  0xa5   :  { %v1959_v51 = vadd.f32 %v1958_v12, %v1448_v55  ;;  %v341_v60 = vunpack.c.h.bf16 %v49_v0  ;;  %v1467_v20 = vmul.f32 %v5069_v63, %v339_v1  ;;  %v1977_v56 = vadd.f32 %v1976_v54, %v1465_v3  ;;  %v5130_v12 = vld [vmem:[#allocation22_spill] sm:$0xff]  ;;  %v5132_v54 = vld [vmem:[#allocation23_spill] sm:$0xff] }
  0xa6   :  { %v1450_v46 = vmul.f32 %v5126_v43, %v5125_v21  ;;  %v5127_v31 = vunpack.c.h.bf16 %v3456_v50  ;;  %v5128_v21 = vld [vmem:[#allocation21_spill] sm:$0xff]  ;;  %v495_v42 = vunpack.c.h.bf16 %v126_v22  ;;  %v1621_v23 = vmul.f32 %v3104_v6, %v493_v8  ;;  %v51_v50 = vld [vmem:[%s4781_s0 + $0x128] sm:$0xff] }
  0xa7   :  { %v2133_v15 = vadd.f32 %v2132_v47, %v1619_v16  ;;  %v1960_v9 = vadd.f32 %v1959_v51, %v1449_v37  ;;  %v342_v49 = vunpack.c.l.bf16 %v50_v58  ;;  %v1468_v55 = vmul.f32 %v2700_v28, %v340_v41  ;;  %v128_v37 = vld [vmem:[%s4781_s0 + $0x390] sm:$0xff] }
  0xa8   :  { %v1451_v40 = vmul.f32 %v5128_v21, %v5127_v31  ;;  %v1978_v38 = vadd.f32 %v1977_v56, %v1466_v4  ;;  %v5129_v24 = vunpack.c.l.bf16 %v3466_v25  ;;  %v496_v32 = vunpack.c.l.bf16 %v127_v53 }
  0xa9   :  { %v1622_v1 = vmul.f32 %v3121_v13, %v494_v52  ;;  %v2134_v3 = vadd.f32 %v2133_v15, %v1620_v33  ;;  %v1961_v22 = vadd.f32 %v1960_v9, %v1450_v46  ;;  %v343_v8 = vunpack.c.h.bf16 %v50_v58 }
  0xaa   :  { %v1452_v0 = vmul.f32 %v5130_v12, %v5129_v24  ;;  %v1469_v16 = vmul.f32 %v5074_v45, %v341_v60  ;;  %v1979_v41 = vadd.f32 %v1978_v38, %v1467_v20  ;;  %v5131_v4 = vunpack.c.h.bf16 %v3466_v25  ;;  %v5134_v24 = vld [vmem:[#allocation24_spill] sm:$0xff]  ;;  %v5136_v38 = vld [vmem:[#allocation25_spill] sm:$0xff] }
  0xab   :  { %v497_v51 = vunpack.c.h.bf16 %v127_v53  ;;  %v1623_v52 = vmul.f32 %v2558_v48, %v495_v42  ;;  %v2135_v33 = vadd.f32 %v2134_v3, %v1621_v23  ;;  %v1962_v56 = vadd.f32 %v1961_v22, %v1451_v40  ;;  %v52_v25 = vld [vmem:[%s4781_s0 + $0x130] sm:$0xff]  ;;  %v129_v40 = vld [vmem:[%s4781_s0 + $0x398] sm:$0xff] }
  0xac   :  { %v1453_v47 = vmul.f32 %v5132_v54, %v5131_v4  ;;  %v344_v31 = vunpack.c.l.bf16 %v51_v50  ;;  %v1470_v46 = vmul.f32 %v2725_v2, %v342_v49  ;;  %v1980_v15 = vadd.f32 %v1979_v41, %v1468_v55 }
  0xad   :  { %v5133_v9 = vunpack.c.l.bf16 %v3479_v18  ;;  %v498_v13 = vunpack.c.l.bf16 %v128_v37  ;;  %v1624_v60 = vmul.f32 %v5077_v14, %v496_v32  ;;  %v2136_v20 = vadd.f32 %v2135_v33, %v1622_v1 }
  0xae   :  { %v1963_v53 = vadd.f32 %v1962_v56, %v1452_v0  ;;  %v345_v42 = vunpack.c.h.bf16 %v51_v50  ;;  %v1471_v23 = vmul.f32 %v2740_v27, %v343_v8  ;;  %v1981_v49 = vadd.f32 %v1980_v15, %v1469_v16  ;;  %v5139_v8 = vld [vmem:[#allocation65_spill] sm:$0xff] }
  0xaf   :  { %v1454_v58 = vmul.f32 %v5134_v24, %v5133_v9  ;;  %v5135_v55 = vunpack.c.h.bf16 %v3479_v18  ;;  %v499_v22 = vunpack.c.h.bf16 %v128_v37  ;;  %v1625_v32 = vmul.f32 %v5080_v30, %v497_v51  ;;  %v5138_v9 = vld [vmem:[#allocation26_spill] sm:$0xff]  ;;  %v53_v18 = vld [vmem:[%s4781_s0 + $0x138] sm:$0xff] }
  0xb0   :  { %v2137_v1 = vadd.f32 %v2136_v20, %v1623_v52  ;;  %v1964_v41 = vadd.f32 %v1963_v53, %v1453_v47  ;;  %v346_v4 = vunpack.c.l.bf16 %v52_v25  ;;  %v1472_v0 = vmul.f32 %v2763_v39, %v344_v31  ;;  %v130_v47 = vld [vmem:[%s4781_s0 + $0x3a0] sm:$0xff]  ;;  %v5140_v52 = vld [vmem:[#allocation41_spill] sm:$0xff]  ;;  %v5142_v53 = vld [vmem:[#allocation27_spill] sm:$0xff] }
  0xb1   :  { %v1455_v3 = vmul.f32 %v5136_v38, %v5135_v55  ;;  %v1982_v33 = vadd.f32 %v1981_v49, %v1470_v46  ;;  %v5137_v56 = vunpack.c.l.bf16 %v3491_v57  ;;  %v500_v14 = vunpack.c.l.bf16 %v129_v40  ;;  %v5145_v39 = vld [vmem:[#allocation28_spill] sm:$0xff] }
  0xb2   :  { %v1626_v16 = vmul.f32 %v5139_v8, %v498_v13  ;;  %v2138_v15 = vadd.f32 %v2137_v1, %v1624_v60  ;;  %v1965_v37 = vadd.f32 %v1964_v41, %v1454_v58  ;;  %v347_v51 = vunpack.c.h.bf16 %v52_v25  ;;  %v5143_v8 = vld [vmem:[#allocation42_spill] sm:$0xff] }
  0xb3   :  { %v1456_v50 = vmul.f32 %v5138_v9, %v5137_v56  ;;  %v1473_v31 = vmul.f32 %v5140_v52, %v345_v42  ;;  %v1983_v46 = vadd.f32 %v1982_v33, %v1471_v23  ;;  %v5141_v20 = vunpack.c.h.bf16 %v3491_v57  ;;  %v54_v57 = vld [vmem:[%s4781_s0 + $0x140] sm:$0xff] }
  0xb4   :  { %v501_v55 = vunpack.c.h.bf16 %v129_v40  ;;  %v1627_v13 = vmul.f32 %v5086_v17, %v499_v22  ;;  %v2139_v60 = vadd.f32 %v2138_v15, %v1625_v32  ;;  %v1966_v1 = vadd.f32 %v1965_v37, %v1455_v3  ;;  %v131_v3 = vld [vmem:[%s4781_s0 + $0x3a8] sm:$0xff]  ;;  %v5151_v17 = vld [vmem:[#allocation30_spill] sm:$0xff] }
  0xb5   :  { %v1457_v49 = vmul.f32 %v5142_v53, %v5141_v20  ;;  %v348_v56 = vunpack.c.l.bf16 %v53_v18  ;;  %v1474_v58 = vmul.f32 %v5143_v8, %v346_v4  ;;  %v1984_v41 = vadd.f32 %v1983_v46, %v1472_v0  ;;  %v5146_v32 = vld [vmem:[#allocation43_spill] sm:$0xff] }
  0xb6   :  { %v5144_v30 = vunpack.c.l.bf16 %v3506_v36  ;;  %v502_v27 = vunpack.c.l.bf16 %v130_v47  ;;  %v1628_v42 = vmul.f32 %v5088_v35, %v500_v14  ;;  %v2140_v23 = vadd.f32 %v2139_v60, %v1626_v16  ;;  %v5149_v60 = vld [vmem:[#allocation44_spill] sm:$0xff] }
  0xb7   :  { %v1967_v40 = vadd.f32 %v1966_v1, %v1456_v50  ;;  %v349_v22 = vunpack.c.h.bf16 %v53_v18  ;;  %v1475_v4 = vmul.f32 %v5146_v32, %v347_v51  ;;  %v1985_v0 = vadd.f32 %v1984_v41, %v1473_v31 }
  0xb8   :  { %v1458_v25 = vmul.f32 %v5145_v39, %v5144_v30  ;;  %v5147_v33 = vunpack.c.h.bf16 %v3506_v36  ;;  %v5148_v30 = vld [vmem:[#allocation29_spill] sm:$0xff]  ;;  %v503_v37 = vunpack.c.h.bf16 %v130_v47  ;;  %v1629_v14 = vmul.f32 %v5090_v61, %v501_v55  ;;  %v55_v36 = vld [vmem:[%s4781_s0 + $0x148] sm:$0xff] }
  0xb9   :  { %v2141_v16 = vadd.f32 %v2140_v23, %v1627_v13  ;;  %v1968_v46 = vadd.f32 %v1967_v40, %v1457_v49  ;;  %v350_v20 = vunpack.c.l.bf16 %v54_v57  ;;  %v1476_v50 = vmul.f32 %v5149_v60, %v348_v56  ;;  %v132_v49 = vld [vmem:[%s4781_s0 + $0x3b0] sm:$0xff]  ;;  %v5152_v13 = vld [vmem:[#allocation47_spill] sm:$0xff] }
  0xba   :  { %v1459_v15 = vmul.f32 %v5148_v30, %v5147_v33  ;;  %v1986_v1 = vadd.f32 %v1985_v0, %v1474_v58  ;;  %v5150_v35 = vunpack.c.l.bf16 %v3518_v19  ;;  %v504_v8 = vunpack.c.l.bf16 %v131_v3 }
  0xbb   :  { %v1630_v51 = vmul.f32 %v5092_v44, %v502_v27  ;;  %v2142_v31 = vadd.f32 %v2141_v16, %v1628_v42  ;;  %v1969_v47 = vadd.f32 %v1968_v46, %v1458_v25  ;;  %v351_v55 = vunpack.c.h.bf16 %v54_v57  ;;  %v5155_v27 = vld [vmem:[#allocation9_spill] sm:$0xff] }
  0xbc   :  { %v1460_v18 = vmul.f32 %v5151_v17, %v5150_v35  ;;  %v1477_v56 = vmul.f32 %v5152_v13, %v349_v22  ;;  %v1987_v58 = vadd.f32 %v1986_v1, %v1475_v4  ;;  %v5153_v41 = vunpack.c.h.bf16 %v3518_v19  ;;  %v5154_v35 = vld [vmem:[#allocation31_spill] sm:$0xff]  ;;  %v133_v25 = vld [vmem:[%s4781_s0 + $0x3b8] sm:$0xff]  ;;  %v5157_v4 = vld [vmem:[#allocation10_spill] sm:$0xff] }
  0xbd   :  { %v505_v40 = vunpack.c.h.bf16 %v131_v3  ;;  %v1631_v42 = vmul.f32 %v5155_v27, %v503_v37  ;;  %v2143_v0 = vadd.f32 %v2142_v31, %v1629_v14  ;;  %v1970_v33 = vadd.f32 %v1969_v47, %v1459_v15  ;;  %v5156_v46 = vld [vmem:[#allocation49_spill] sm:$0xff]  ;;  %v56_v3 = vld [vmem:[%s4781_s0 + $0x150] sm:$0xff]  ;;  %v3696_v15 = vld [vmem:[%s4781_s0 + $0x3c0] sm:$0xff] }
  0xbe   :  { %v1461_v23 = vmul.f32 %v5154_v35, %v5153_v41  ;;  %v352_v16 = vunpack.c.l.bf16 %v55_v36  ;;  %v1478_v44 = vmul.f32 %v5156_v46, %v350_v20  ;;  %v1988_v57 = vadd.f32 %v1987_v58, %v1476_v50  ;;  %v5158_v31 = vld [vmem:[#allocation51_spill] sm:$0xff] }
  0xbf   :  { %v506_v61 = vunpack.c.l.bf16 %v132_v49  ;;  %v507_v22 = vunpack.c.h.bf16 %v132_v49  ;;  %v1632_v1 = vmul.f32 %v5157_v4, %v504_v8  ;;  %v2144_v19 = vadd.f32 %v2143_v0, %v1630_v51  ;;  %v3702_v50 = vld [vmem:[%s4781_s0 + $0x3c8] sm:$0xff]  ;;  %v3708_v0 = vld [vmem:[%s4781_s0 + $0x3d0] sm:$0xff] }
  0xc0   :  { %v1971_v37 = vadd.f32 %v1970_v33, %v1460_v18  ;;  %v353_v14 = vunpack.c.h.bf16 %v55_v36  ;;  %v1479_v47 = vmul.f32 %v5158_v31, %v351_v55  ;;  %v1989_v20 = vadd.f32 %v1988_v57, %v1477_v56  ;;  %v5159_v49 = vld [vmem:[#allocation11_spill] sm:$0xff]  ;;  %v5160_v33 = vld [vmem:[#allocation52_spill] sm:$0xff] }
  0xc1   :  { %v508_v8 = vunpack.c.l.bf16 %v133_v25  ;;  %v509_v51 = vunpack.c.h.bf16 %v133_v25  ;;  %v1633_v58 = vmul.f32 %v5159_v49, %v505_v40  ;;  %v2145_v41 = vadd.f32 %v2144_v19, %v1631_v42  ;;  %v5161_v31 = vld [vmem:[#allocation12_spill] sm:$0xff]  ;;  %v3720_v40 = vld [vmem:[%s4781_s0 + $0x3d8] sm:$0xff] }
  0xc2   :  { %v1972_v18 = vadd.f32 %v1971_v37, %v1461_v23  ;;  %v354_v36 = vunpack.c.l.bf16 %v56_v3  ;;  %v1480_v55 = vmul.f32 %v5160_v33, %v352_v16  ;;  %v1990_v56 = vadd.f32 %v1989_v20, %v1478_v44  ;;  %v57_v23 = vld [vmem:[%s4781_s0 + $0x158] sm:$0xff]  ;;  %v5165_v33 = vld [vmem:[#allocation14_spill] sm:$0xff] }
  0xc3   :  { %v510_v57 = vunpack.c.l.bf16 %v3696_v15  ;;  %v511_v4 = vunpack.c.h.bf16 %v3696_v15  ;;  %v1634_v27 = vmul.f32 %v5161_v31, %v506_v61  ;;  %v2146_v25 = vadd.f32 %v2145_v41, %v1632_v1  ;;  %v5162_v16 = vld [vmem:[#allocation53_spill] sm:$0xff]  ;;  %v3727_v61 = vld [vmem:[%s4781_s0 + $0x3e0] sm:$0xff]  ;;  %v3735_v31 = vld [vmem:[%s4781_s0 + $0x3e8] sm:$0xff] }
  0xc4   :  { %1973 = vadd.xlane.f32.xlu0 %v1972_v18  ;;  %v512_v42 = vunpack.c.l.bf16 %v3702_v50  ;;  %v355_v44 = vunpack.c.h.bf16 %v56_v3  ;;  %v1481_v19 = vmul.f32 %v5162_v16, %v353_v14  ;;  %v1991_v37 = vadd.f32 %v1990_v56, %v1479_v47  ;;  %v5163_v20 = vld [vmem:[#allocation13_spill] sm:$0xff]  ;;  %v5164_v47 = vld [vmem:[#allocation54_spill] sm:$0xff] }
  0xc5   :  { %v513_v1 = vunpack.c.h.bf16 %v3702_v50  ;;  %v1635_v41 = vmul.f32 %v5163_v20, %v507_v22  ;;  %v2147_v18 = vadd.f32 %v2146_v25, %v1633_v58  ;;  %v356_v14 = vunpack.c.l.bf16 %v57_v23  ;;  %v58_v22 = vld [vmem:[%s4781_s0 + $0x160] sm:$0xff]  ;;  %v3748_v58 = vld [vmem:[%s4781_s0 + $0x3f0] sm:$0xff] }
  0xc6   :  { %v1482_v56 = vmul.f32 %v5164_v47, %v354_v36  ;;  %v1992_v16 = vadd.f32 %v1991_v37, %v1480_v55  ;;  %v1636_v15 = vmul.f32 %v5165_v33, %v508_v8  ;;  %v357_v36 = vunpack.c.h.bf16 %v57_v23  ;;  %v5166_v55 = vld [vmem:[#allocation55_spill] sm:$0xff]  ;;  %v174_v3 = vld [vmem:[%s4781_s0 + $0x500] sm:$0xff]  ;;  %v3761_v33 = vld [vmem:[%s4781_s0 + $0x3f8] sm:$0xff] }
  0xc7   :  { %v2148_v46 = vadd.f32 %v2147_v18, %v1634_v27  ;;  %v1483_v37 = vmul.f32 %v5166_v55, %v355_v44  ;;  %v1637_v27 = vmul.f32 %v5113_v7, %v509_v51  ;;  %v358_v44 = vunpack.c.l.bf16 %v58_v22  ;;  %v175_v7 = vld [vmem:[%s4781_s0 + $0x508] sm:$0xff]  ;;  %v5168_v55 = vld [vmem:[#allocation57_spill] sm:$0xff]  ;;  %v5169_v8 = vld [vmem:[#allocation58_spill] sm:$0xff] }
  0xc8   :  { %v1993_v49 = vadd.f32 %v1992_v16, %v1481_v19  ;;  %v5167_v16 = vld [vmem:[#allocation56_spill] sm:$0xff]  ;;  %v1638_v51 = vmul.f32 %v5115_v29, %v510_v57  ;;  %v359_v25 = vunpack.c.h.bf16 %v58_v22  ;;  %v1485_v23 = vmul.f32 %v5168_v55, %v357_v36 }
  0xc9   :  { %v2149_v18 = vadd.f32 %v2148_v46, %v1635_v41  ;;  %v1484_v19 = vmul.f32 %v5167_v16, %v356_v14  ;;  %v59_v41 = vld [vmem:[%s4781_s0 + $0x168] sm:$0xff]  ;;  %v590_v47 = vunpack.c.l.bf16 %v174_v3  ;;  %v591_v14 = vunpack.c.h.bf16 %v174_v3  ;;  %v60_v22 = vld [vmem:[%s4781_s0 + $0x170] sm:$0xff] }
  0xca   :  { %v1994_v50 = vadd.f32 %v1993_v49, %v1482_v56  ;;  %v1639_v57 = vmul.f32 %v5119_v59, %v511_v4  ;;  %v1486_v29 = vmul.f32 %v5169_v8, %v358_v44  ;;  %v592_v13 = vunpack.c.l.bf16 %v175_v7  ;;  %v176_v4 = vld [vmem:[%s4781_s0 + $0x510] sm:$0xff] }
  0xcb   :  { %v2150_v46 = vadd.f32 %v2149_v18, %v1636_v15  ;;  %v360_v18 = vunpack.c.l.bf16 %v59_v41  ;;  %v361_v3 = vunpack.c.h.bf16 %v59_v41  ;;  %v5171_v56 = vld [vmem:[#allocation32_spill] sm:$0xff]  ;;  %v1719_v55 = vmul.f32 %v5117_v11, %v591_v14  ;;  %v5175_v11 = vld [vmem:[#allocation61_spill] sm:$0xff] }
  0xcc   :  { %v1995_v20 = vadd.f32 %v1994_v50, %v1483_v37  ;;  %v1640_v50 = vmul.f32 %v5122_v34, %v512_v42  ;;  %v5170_v37 = vld [vmem:[#allocation59_spill] sm:$0xff]  ;;  %v1718_v59 = vmul.f32 %v5171_v56, %v590_v47  ;;  %v362_v42 = vunpack.c.l.bf16 %v60_v22 }
  0xcd   :  { %v2151_v15 = vadd.f32 %v2150_v46, %v1637_v27  ;;  %v1487_v49 = vmul.f32 %v5170_v37, %v359_v25  ;;  %v593_v46 = vunpack.c.h.bf16 %v175_v7  ;;  %v61_v25 = vld [vmem:[%s4781_s0 + $0x178] sm:$0xff]  ;;  %v594_v37 = vunpack.c.l.bf16 %v176_v4 }
  0xce   :  { %v1996_v16 = vadd.f32 %v1995_v20, %v1484_v19  ;;  %v1641_v20 = vmul.f32 %v5124_v10, %v513_v1  ;;  %v5174_v47 = vunpack.c.l.bf16 %v3708_v0  ;;  %v363_v44 = vunpack.c.h.bf16 %v60_v22  ;;  %v62_v22 = vld [vmem:[%s4781_s0 + $0x180] sm:$0xff] }
  0xcf   :  { %v2152_v36 = vadd.f32 %v2151_v15, %v1638_v51  ;;  %v5172_v51 = vld [vmem:[#allocation60_spill] sm:$0xff]  ;;  %v1489_v1 = vmul.f32 %v5175_v11, %v361_v3  ;;  %v595_v10 = vunpack.c.h.bf16 %v176_v4 }
  0xd0   :  { %v1997_v27 = vadd.f32 %v1996_v16, %v1485_v23  ;;  %v1488_v41 = vmul.f32 %v5172_v51, %v360_v18  ;;  %v5173_v23 = vld [vmem:[#allocation34_spill] sm:$0xff]  ;;  %v1642_v16 = vmul.f32 %v5126_v43, %v5174_v47  ;;  %v1721_v18 = vmul.f32 %v5063_v62, %v593_v46 }
  0xd1   :  { %v2153_v19 = vadd.f32 %v2152_v36, %v1639_v57  ;;  %v1720_v7 = vmul.f32 %v5173_v23, %v592_v13  ;;  %v177_v57 = vld [vmem:[%s4781_s0 + $0x518] sm:$0xff]  ;;  %v364_v23 = vunpack.c.l.bf16 %v61_v25  ;;  %v5177_v47 = vld [vmem:[#allocation62_spill] sm:$0xff]  ;;  %v5178_v46 = vunpack.c.l.bf16 %v3720_v40 }
  0xd2   :  { %v1998_v15 = vadd.f32 %v1997_v27, %v1486_v29  ;;  %v2235_v29 = vadd.f32 %v1719_v55, %v1718_v59  ;;  %v5176_v27 = vunpack.c.h.bf16 %v3708_v0  ;;  %v365_v55 = vunpack.c.h.bf16 %v61_v25 }
  0xd3   :  { %v2154_v14 = vadd.f32 %v2153_v19, %v1640_v50  ;;  %v1490_v50 = vmul.f32 %v5177_v47, %v362_v42  ;;  %v596_v19 = vunpack.c.l.bf16 %v177_v57  ;;  %v1644_v59 = vmul.f32 %v5130_v12, %v5178_v46  ;;  %v178_v42 = vld [vmem:[%s4781_s0 + $0x520] sm:$0xff]  ;;  %v5180_v46 = vld [vmem:[#allocation63_spill] sm:$0xff] }
  0xd4   :  { %v1999_v36 = vadd.f32 %v1998_v15, %v1487_v49  ;;  %v1643_v13 = vmul.f32 %v5128_v21, %v5176_v27  ;;  %v1722_v49 = vmul.f32 %v5066_v26, %v594_v37  ;;  %v2236_v4 = vadd.f32 %v2235_v29, %v1720_v7 }
  0xd5   :  { %v2155_v51 = vadd.f32 %v2154_v14, %v1641_v20  ;;  %v1491_v20 = vmul.f32 %v3071_v5, %v363_v44  ;;  %v597_v14 = vunpack.c.h.bf16 %v177_v57  ;;  %v5179_v37 = vunpack.c.h.bf16 %v3720_v40  ;;  %v63_v44 = vld [vmem:[%s4781_s0 + $0x188] sm:$0xff] }
  0xd6   :  { %v2000_v3 = vadd.f32 %v1999_v36, %v1488_v41  ;;  %v1723_v41 = vmul.f32 %v5069_v63, %v595_v10  ;;  %v2237_v36 = vadd.f32 %v2236_v4, %v1721_v18  ;;  %v366_v27 = vunpack.c.l.bf16 %v62_v22 }
  0xd7   :  { %v2156_v0 = vadd.f32 %v2155_v51, %v1642_v16  ;;  %v1645_v7 = vmul.f32 %v5132_v54, %v5179_v37  ;;  %v1492_v51 = vmul.f32 %v5180_v46, %v364_v23  ;;  %v598_v16 = vunpack.c.l.bf16 %v178_v42  ;;  %v179_v23 = vld [vmem:[%s4781_s0 + $0x528] sm:$0xff] }
  0xd8   :  { %v2001_v15 = vadd.f32 %v2000_v3, %v1489_v1  ;;  %v1724_v1 = vmul.f32 %v2700_v28, %v596_v19  ;;  %v2238_v57 = vadd.f32 %v2237_v36, %v1722_v49  ;;  %v5181_v10 = vunpack.c.l.bf16 %v3727_v61 }
  0xd9   :  { %v2157_v29 = vadd.f32 %v2156_v0, %v1643_v13  ;;  %v367_v3 = vunpack.c.h.bf16 %v62_v22  ;;  %v1493_v13 = vmul.f32 %v3104_v6, %v365_v55  ;;  %v599_v0 = vunpack.c.h.bf16 %v178_v42  ;;  %v64_v22 = vld [vmem:[%s4781_s0 + $0x190] sm:$0xff] }
  0xda   :  { %v2002_v25 = vadd.f32 %v2001_v15, %v1490_v50  ;;  %v1646_v18 = vmul.f32 %v5134_v24, %v5181_v10  ;;  %v1725_v50 = vmul.f32 %v5074_v45, %v597_v14  ;;  %v2239_v15 = vadd.f32 %v2238_v57, %v1723_v41  ;;  %v5183_v10 = vld [vmem:[#allocation64_spill] sm:$0xff] }
  0xdb   :  { %v2158_v40 = vadd.f32 %v2157_v29, %v1644_v59  ;;  %v5182_v19 = vunpack.c.h.bf16 %v3727_v61  ;;  %v368_v37 = vunpack.c.l.bf16 %v63_v44  ;;  %v1494_v59 = vmul.f32 %v5183_v10, %v366_v27  ;;  %v180_v27 = vld [vmem:[%s4781_s0 + $0x530] sm:$0xff] }
  0xdc   :  { %v2003_v4 = vadd.f32 %v2002_v25, %v1491_v20  ;;  %v600_v29 = vunpack.c.l.bf16 %v179_v23  ;;  %v1726_v20 = vmul.f32 %v2725_v2, %v598_v16  ;;  %v2240_v42 = vadd.f32 %v2239_v15, %v1724_v1 }
  0xdd   :  { %v1647_v49 = vmul.f32 %v5136_v38, %v5182_v19  ;;  %v2159_v36 = vadd.f32 %v2158_v40, %v1645_v7  ;;  %v5184_v14 = vunpack.c.l.bf16 %v3735_v31  ;;  %v369_v25 = vunpack.c.h.bf16 %v63_v44  ;;  %v5185_v19 = vld [vmem:[#allocation39_spill] sm:$0xff]  ;;  %v65_v44 = vld [vmem:[%s4781_s0 + $0x198] sm:$0xff] }
  0xde   :  { %v2004_v55 = vadd.f32 %v2003_v4, %v1492_v51  ;;  %v1495_v7 = vmul.f32 %v2558_v48, %v367_v3  ;;  %v601_v40 = vunpack.c.h.bf16 %v179_v23  ;;  %v1727_v51 = vmul.f32 %v5185_v19, %v599_v0  ;;  %v5188_v48 = vld [vmem:[#allocation40_spill] sm:$0xff] }
  0xdf   :  { %v1648_v41 = vmul.f32 %v5138_v9, %v5184_v14  ;;  %v2160_v61 = vadd.f32 %v2159_v36, %v1646_v18  ;;  %v2241_v4 = vadd.f32 %v2240_v42, %v1725_v50  ;;  %v5186_v16 = vunpack.c.h.bf16 %v3735_v31  ;;  %v5187_v14 = vld [vmem:[#allocation3_spill] sm:$0xff]  ;;  %v5190_v42 = vld [vmem:[#allocation4_spill] sm:$0xff] }
  0xe0   :  { %v2005_v57 = vadd.f32 %v2004_v55, %v1493_v13  ;;  %v370_v10 = vunpack.c.l.bf16 %v64_v22  ;;  %v1496_v18 = vmul.f32 %v5187_v14, %v368_v37  ;;  %v602_v36 = vunpack.c.l.bf16 %v180_v27  ;;  %v181_v37 = vld [vmem:[%s4781_s0 + $0x538] sm:$0xff] }
  0xe1   :  { %v1649_v1 = vmul.f32 %v5142_v53, %v5186_v16  ;;  %v2161_v15 = vadd.f32 %v2160_v61, %v1647_v49  ;;  %v1728_v13 = vmul.f32 %v5188_v48, %v600_v29  ;;  %v2242_v23 = vadd.f32 %v2241_v4, %v1726_v20 }
  0xe2   :  { %v2006_v3 = vadd.f32 %v2005_v57, %v1494_v59  ;;  %v5189_v0 = vunpack.c.l.bf16 %v3748_v58  ;;  %v371_v55 = vunpack.c.h.bf16 %v64_v22  ;;  %v1497_v49 = vmul.f32 %v5190_v42, %v369_v25  ;;  %v66_v22 = vld [vmem:[%s4781_s0 + $0x1a0] sm:$0xff] }
  0xe3   :  { %v2162_v31 = vadd.f32 %v2161_v15, %v1648_v41  ;;  %v603_v16 = vunpack.c.h.bf16 %v180_v27  ;;  %v1729_v59 = vmul.f32 %v5140_v52, %v601_v40  ;;  %v2243_v57 = vadd.f32 %v2242_v23, %v1727_v51  ;;  %v5193_v42 = vld [vmem:[#allocation42_spill] sm:$0xff]  ;;  %v5195_v23 = vld [vmem:[#allocation5_spill] sm:$0xff] }
  0xe4   :  { %v1650_v50 = vmul.f32 %v5145_v39, %v5189_v0  ;;  %v2007_v61 = vadd.f32 %v2006_v3, %v1495_v7  ;;  %v5191_v29 = vunpack.c.h.bf16 %v3748_v58  ;;  %v372_v14 = vunpack.c.l.bf16 %v65_v44  ;;  %v5192_v0 = vld [vmem:[#allocation65_spill] sm:$0xff] }
  0xe5   :  { %v2163_v4 = vadd.f32 %v2162_v31, %v1649_v1  ;;  %v1498_v41 = vmul.f32 %v5192_v0, %v370_v10  ;;  %v604_v15 = vunpack.c.l.bf16 %v181_v37  ;;  %v1730_v7 = vmul.f32 %v5193_v42, %v602_v36  ;;  %v182_v10 = vld [vmem:[%s4781_s0 + $0x540] sm:$0xff] }
  0xe6   :  { %v1651_v20 = vmul.f32 %v5148_v30, %v5191_v29  ;;  %v2008_v25 = vadd.f32 %v2007_v61, %v1496_v18  ;;  %v2244_v27 = vadd.f32 %v2243_v57, %v1728_v13  ;;  %v5194_v40 = vunpack.c.l.bf16 %v3761_v33 }
  0xe7   :  { %v2164_v58 = vadd.f32 %v2163_v4, %v1650_v50  ;;  %v373_v3 = vunpack.c.h.bf16 %v65_v44  ;;  %v1499_v1 = vmul.f32 %v5195_v23, %v371_v55  ;;  %v605_v29 = vunpack.c.h.bf16 %v181_v37  ;;  %v67_v44 = vld [vmem:[%s4781_s0 + $0x1a8] sm:$0xff] }
  0xe8   :  { %v1652_v51 = vmul.f32 %v5151_v17, %v5194_v40  ;;  %v2009_v31 = vadd.f32 %v2008_v25, %v1497_v49  ;;  %v1731_v18 = vmul.f32 %v5146_v32, %v603_v16  ;;  %v2245_v61 = vadd.f32 %v2244_v27, %v1729_v59  ;;  %v5197_v40 = vld [vmem:[#allocation6_spill] sm:$0xff]  ;;  %v5198_v59 = vld [vmem:[#allocation7_spill] sm:$0xff]  ;;  %v5213_v17 = vld [vmem:[#allocation56_spill] sm:$0xff] }
  0xe9   :  { %v5196_v36 = vunpack.c.h.bf16 %v3761_v33  ;;  %v2165_v57 = vadd.f32 %v2164_v58, %v1651_v20  ;;  %v374_v0 = vunpack.c.l.bf16 %v66_v22  ;;  %v1500_v50 = vmul.f32 %v5197_v40, %v372_v14  ;;  %v183_v33 = vld [vmem:[%s4781_s0 + $0x548] sm:$0xff]  ;;  %v68_v14 = vld [vmem:[%s4781_s0 + $0x1b0] sm:$0xff]  ;;  %v3901_v20 = vld [vmem:[%s4781_s0 + $0x1b8] sm:$0xff] }
  0xea   :  { %v2010_v55 = vadd.f32 %v2009_v31, %v1498_v41  ;;  %v606_v4 = vunpack.c.l.bf16 %v182_v10  ;;  %v1732_v49 = vmul.f32 %v5149_v60, %v604_v15  ;;  %v2246_v37 = vadd.f32 %v2245_v61, %v1730_v7  ;;  %v5199_v7 = vld [vmem:[#allocation47_spill] sm:$0xff]  ;;  %v5200_v61 = vld [vmem:[#allocation8_spill] sm:$0xff]  ;;  %v5201_v60 = vld [vmem:[#allocation49_spill] sm:$0xff] }
  0xeb   :  { %v1653_v13 = vmul.f32 %v5154_v35, %v5196_v36  ;;  %v2166_v25 = vadd.f32 %v2165_v57, %v1652_v51  ;;  %v375_v16 = vunpack.c.h.bf16 %v66_v22  ;;  %v1501_v27 = vmul.f32 %v5198_v59, %v373_v3  ;;  %v3908_v57 = vld [vmem:[%s4781_s0 + $0x1c0] sm:$0xff] }
  0xec   :  { %v2011_v41 = vadd.f32 %v2010_v55, %v1499_v1  ;;  %v607_v15 = vunpack.c.h.bf16 %v182_v10  ;;  %v1733_v51 = vmul.f32 %v5199_v7, %v605_v29  ;;  %v2247_v22 = vadd.f32 %v2246_v37, %v1731_v18  ;;  %v5202_v18 = vld [vmem:[#allocation9_spill] sm:$0xff]  ;;  %v3962_v7 = vld [vmem:[%s4781_s0 + $0x1f0] sm:$0xff] }
  0xed   :  { %v2167_v58 = vadd.f32 %v2166_v25, %v1653_v13  ;;  %v376_v3 = vunpack.c.l.bf16 %v67_v44  ;;  %v377_v31 = vunpack.c.h.bf16 %v67_v44  ;;  %v1502_v36 = vmul.f32 %v5200_v61, %v374_v0  ;;  %v184_v0 = vld [vmem:[%s4781_s0 + $0x550] sm:$0xff]  ;;  %v3919_v44 = vld [vmem:[%s4781_s0 + $0x1c8] sm:$0xff] }
  0xee   :  { %v2012_v59 = vadd.f32 %v2011_v41, %v1500_v50  ;;  %v608_v40 = vunpack.c.l.bf16 %v183_v33  ;;  %v1734_v23 = vmul.f32 %v5201_v60, %v606_v4  ;;  %v2248_v32 = vadd.f32 %v2247_v22, %v1732_v49  ;;  %v3924_v50 = vld [vmem:[%s4781_s0 + $0x1d0] sm:$0xff]  ;;  %v5203_v49 = vld [vmem:[#allocation51_spill] sm:$0xff]  ;;  %v5204_v22 = vld [vmem:[#allocation10_spill] sm:$0xff] }
  0xef   :  { %2168 = vadd.xlane.f32.xlu1 %v2167_v58  ;;  %v378_v1 = vunpack.c.l.bf16 %v68_v14  ;;  %v379_v10 = vunpack.c.h.bf16 %v68_v14  ;;  %v380_v29 = vunpack.c.l.bf16 %v3901_v20  ;;  %v1503_v13 = vmul.f32 %v5202_v18, %v375_v16  ;;  %v3934_v18 = vld [vmem:[%s4781_s0 + $0x1d8] sm:$0xff] }
  0xf0   :  { %v2013_v55 = vadd.f32 %v2012_v59, %v1501_v27  ;;  %v609_v4 = vunpack.c.h.bf16 %v183_v33  ;;  %v1735_v37 = vmul.f32 %v5203_v49, %v607_v15  ;;  %v2249_v25 = vadd.f32 %v2248_v32, %v1733_v51  ;;  %v5205_v59 = vld [vmem:[#allocation52_spill] sm:$0xff]  ;;  %v5206_v51 = vld [vmem:[#allocation11_spill] sm:$0xff] }
  0xf1   :  { %v381_v16 = vunpack.c.h.bf16 %v3901_v20  ;;  %v382_v14 = vunpack.c.l.bf16 %v3908_v57  ;;  %v383_v41 = vunpack.c.h.bf16 %v3908_v57  ;;  %v1504_v58 = vmul.f32 %v5204_v22, %v376_v3  ;;  %v185_v3 = vld [vmem:[%s4781_s0 + $0x558] sm:$0xff] }
  0xf2   :  { %v2014_v61 = vadd.f32 %v2013_v55, %v1502_v36  ;;  %v610_v60 = vunpack.c.l.bf16 %v184_v0  ;;  %v1736_v27 = vmul.f32 %v5205_v59, %v608_v40  ;;  %v2250_v33 = vadd.f32 %v2249_v25, %v1734_v23  ;;  %v3947_v36 = vld [vmem:[%s4781_s0 + $0x1e0] sm:$0xff]  ;;  %v3952_v23 = vld [vmem:[%s4781_s0 + $0x1e8] sm:$0xff]  ;;  %v5207_v25 = vld [vmem:[#allocation53_spill] sm:$0xff] }
  0xf3   :  { %v384_v32 = vunpack.c.l.bf16 %v3919_v44  ;;  %v1505_v57 = vmul.f32 %v5206_v51, %v377_v31  ;;  %v611_v55 = vunpack.c.h.bf16 %v184_v0  ;;  %v1737_v15 = vmul.f32 %v5207_v25, %v609_v4  ;;  %v5208_v59 = vld [vmem:[#allocation12_spill] sm:$0xff]  ;;  %v5210_v51 = vld [vmem:[#allocation13_spill] sm:$0xff] }
  0xf4   :  { %v2015_v40 = vadd.f32 %v2014_v61, %v1503_v13  ;;  %v2251_v20 = vadd.f32 %v2250_v33, %v1735_v37  ;;  %v1506_v49 = vmul.f32 %v5208_v59, %v378_v1  ;;  %v612_v42 = vunpack.c.l.bf16 %v185_v3  ;;  %v5209_v61 = vld [vmem:[#allocation54_spill] sm:$0xff]  ;;  %v187_v37 = vld [vmem:[%s4781_s0 + $0x568] sm:$0xff] }
  0xf5   :  { %v1738_v13 = vmul.f32 %v5209_v61, %v610_v60  ;;  %v1507_v22 = vmul.f32 %v5210_v51, %v379_v10  ;;  %v186_v1 = vld [vmem:[%s4781_s0 + $0x560] sm:$0xff]  ;;  %v613_v60 = vunpack.c.h.bf16 %v185_v3 }
  0xf6   :  { %v2016_v35 = vadd.f32 %v2015_v40, %v1504_v58  ;;  %v2252_v0 = vadd.f32 %v2251_v20, %v1736_v27  ;;  %v3975_v58 = vld [vmem:[%s4781_s0 + $0x1f8] sm:$0xff]  ;;  %v5211_v27 = vld [vmem:[#allocation55_spill] sm:$0xff]  ;;  %v142_v33 = vld [vmem:[%s4781_s0 + $0x400] sm:$0xff]  ;;  %v614_v25 = vunpack.c.l.bf16 %v186_v1 }
  0xf7   :  { %v1739_v20 = vmul.f32 %v5211_v27, %v611_v55  ;;  %v5212_v51 = vld [vmem:[#allocation14_spill] sm:$0xff]  ;;  %v5214_v55 = vld [vmem:[#allocation15_spill] sm:$0xff]  ;;  %v526_v31 = vunpack.c.l.bf16 %v142_v33  ;;  %v527_v10 = vunpack.c.h.bf16 %v142_v33  ;;  %v5217_v27 = vld [vmem:[#allocation17_spill] sm:$0xff] }
  0xf8   :  { %v2017_v40 = vadd.f32 %v2016_v35, %v1505_v57  ;;  %v2253_v4 = vadd.f32 %v2252_v0, %v1737_v15  ;;  %v1508_v59 = vmul.f32 %v5212_v51, %v380_v29  ;;  %v1740_v35 = vmul.f32 %v5213_v17, %v612_v42  ;;  %v143_v15 = vld [vmem:[%s4781_s0 + $0x408] sm:$0xff]  ;;  %v188_v33 = vld [vmem:[%s4781_s0 + $0x570] sm:$0xff] }
  0xf9   :  { %v1509_v0 = vmul.f32 %v5214_v55, %v381_v16  ;;  %v1511_v52 = vmul.f32 %v5217_v27, %v383_v41  ;;  %v528_v3 = vunpack.c.l.bf16 %v143_v15  ;;  %v616_v16 = vunpack.c.l.bf16 %v187_v37  ;;  %v5218_v41 = vld [vmem:[#allocation33_spill] sm:$0xff] }
  0xfa   :  { %v2018_v61 = vadd.f32 %v2017_v40, %v1506_v49  ;;  %v2254_v57 = vadd.f32 %v2253_v4, %v1738_v13  ;;  %v615_v49 = vunpack.c.h.bf16 %v186_v1  ;;  %v5215_v40 = vld [vmem:[#allocation57_spill] sm:$0xff]  ;;  %v5216_v4 = vld [vmem:[#allocation16_spill] sm:$0xff]  ;;  %v1742_v55 = vmul.f32 %v5169_v8, %v614_v25 }
  0xfb   :  { %v1741_v51 = vmul.f32 %v5215_v40, %v613_v60  ;;  %v1510_v17 = vmul.f32 %v5216_v4, %v382_v14  ;;  %v529_v1 = vunpack.c.h.bf16 %v143_v15  ;;  %v1654_v14 = vmul.f32 %v5171_v56, %v526_v31  ;;  %v5223_v4 = vld [vmem:[#allocation34_spill] sm:$0xff]  ;;  %v5224_v56 = vld [vmem:[#allocation60_spill] sm:$0xff] }
  0xfc   :  { %v2019_v29 = vadd.f32 %v2018_v61, %v1507_v22  ;;  %v2255_v42 = vadd.f32 %v2254_v57, %v1739_v20  ;;  %v144_v22 = vld [vmem:[%s4781_s0 + $0x410] sm:$0xff]  ;;  %v1512_v61 = vmul.f32 %v5122_v34, %v384_v32  ;;  %v1655_v60 = vmul.f32 %v5218_v41, %v527_v10  ;;  %v5219_v57 = vld [vmem:[#allocation59_spill] sm:$0xff] }
  0xfd   :  { %v617_v20 = vunpack.c.h.bf16 %v187_v37  ;;  %v1743_v25 = vmul.f32 %v5219_v57, %v615_v49  ;;  %v5222_v32 = vunpack.c.l.bf16 %v3924_v50  ;;  %v530_v27 = vunpack.c.l.bf16 %v144_v22  ;;  %v189_v37 = vld [vmem:[%s4781_s0 + $0x578] sm:$0xff] }
  0xfe   :  { %v2020_v30 = vadd.f32 %v2019_v29, %v1508_v59  ;;  %v2256_v48 = vadd.f32 %v2255_v42, %v1740_v35  ;;  %v5220_v29 = vunpack.c.h.bf16 %v3919_v44  ;;  %v5221_v42 = vld [vmem:[#allocation19_spill] sm:$0xff]  ;;  %v1656_v15 = vmul.f32 %v5223_v4, %v528_v3 }
  0xff   :  { %v1514_v34 = vmul.f32 %v5126_v43, %v5222_v32  ;;  %v618_v31 = vunpack.c.l.bf16 %v188_v33  ;;  %v1744_v10 = vmul.f32 %v5224_v56, %v616_v16  ;;  %v5225_v44 = vunpack.c.h.bf16 %v3924_v50 }
 0x100   :  { %v2021_v59 = vadd.f32 %v2020_v30, %v1509_v0  ;;  %v2257_v35 = vadd.f32 %v2256_v48, %v1741_v51  ;;  %v1513_v13 = vmul.f32 %v5221_v42, %v5220_v29  ;;  %v145_v48 = vld [vmem:[%s4781_s0 + $0x418] sm:$0xff]  ;;  %v531_v0 = vunpack.c.h.bf16 %v144_v22 }
 0x101   :  { %v1515_v51 = vmul.f32 %v5128_v21, %v5225_v44  ;;  %v1657_v3 = vmul.f32 %v5063_v62, %v529_v1  ;;  %v532_v50 = vunpack.c.l.bf16 %v145_v48  ;;  %v1658_v32 = vmul.f32 %v5066_v26, %v530_v27  ;;  %v190_v1 = vld [vmem:[%s4781_s0 + $0x580] sm:$0xff] }
 0x102   :  { %v2022_v8 = vadd.f32 %v2021_v59, %v1510_v17  ;;  %v2258_v30 = vadd.f32 %v2257_v35, %v1742_v55  ;;  %v2170_v17 = vadd.f32 %v1655_v60, %v1654_v14  ;;  %v619_v59 = vunpack.c.h.bf16 %v188_v33 }
 0x103   :  { %v1745_v55 = vmul.f32 %v5175_v11, %v617_v20  ;;  %v5226_v35 = vunpack.c.l.bf16 %v3934_v18  ;;  %v620_v43 = vunpack.c.l.bf16 %v189_v37  ;;  %v1746_v22 = vmul.f32 %v5177_v47, %v618_v31 }
 0x104   :  { %v2023_v49 = vadd.f32 %v2022_v8, %v1511_v52  ;;  %v2259_v16 = vadd.f32 %v2258_v30, %v1743_v25  ;;  %v2171_v44 = vadd.f32 %v2170_v17, %v1656_v15  ;;  %v146_v52 = vld [vmem:[%s4781_s0 + $0x420] sm:$0xff]  ;;  %v5227_v8 = vunpack.c.h.bf16 %v3934_v18 }
 0x105   :  { %v1516_v29 = vmul.f32 %v5130_v12, %v5226_v35  ;;  %v533_v14 = vunpack.c.h.bf16 %v145_v48  ;;  %v1659_v27 = vmul.f32 %v5069_v63, %v531_v0  ;;  %v621_v20 = vunpack.c.h.bf16 %v189_v37  ;;  %v191_v37 = vld [vmem:[%s4781_s0 + $0x588] sm:$0xff] }
 0x106   :  { %v2024_v21 = vadd.f32 %v2023_v49, %v1512_v61  ;;  %v2260_v42 = vadd.f32 %v2259_v16, %v1744_v10  ;;  %v1517_v33 = vmul.f32 %v5132_v54, %v5227_v8  ;;  %v2172_v61 = vadd.f32 %v2171_v44, %v1657_v3 }
 0x107   :  { %v1747_v25 = vmul.f32 %v3071_v5, %v619_v59  ;;  %v5228_v31 = vunpack.c.l.bf16 %v3947_v36  ;;  %v534_v18 = vunpack.c.l.bf16 %v146_v52  ;;  %v1660_v30 = vmul.f32 %v2700_v28, %v532_v50 }
 0x108   :  { %v2025_v60 = vadd.f32 %v2024_v21, %v1513_v13  ;;  %v2261_v15 = vadd.f32 %v2260_v42, %v1745_v55  ;;  %v2173_v17 = vadd.f32 %v2172_v61, %v1658_v32  ;;  %v622_v16 = vunpack.c.l.bf16 %v190_v1  ;;  %v147_v21 = vld [vmem:[%s4781_s0 + $0x428] sm:$0xff] }
 0x109   :  { %v1518_v10 = vmul.f32 %v5134_v24, %v5228_v31  ;;  %v1748_v48 = vmul.f32 %v5180_v46, %v620_v43  ;;  %v5229_v13 = vunpack.c.h.bf16 %v3947_v36  ;;  %v535_v0 = vunpack.c.h.bf16 %v146_v52 }
 0x10a   :  { %v2026_v49 = vadd.f32 %v2025_v60, %v1514_v34  ;;  %v2262_v35 = vadd.f32 %v2261_v15, %v1746_v22  ;;  %v1661_v3 = vmul.f32 %v5074_v45, %v533_v14  ;;  %v2174_v34 = vadd.f32 %v2173_v17, %v1659_v27  ;;  %v5231_v15 = vld [vmem:[#allocation64_spill] sm:$0xff]  ;;  %v5233_v17 = vld [vmem:[#allocation2_spill] sm:$0xff] }
 0x10b   :  { %v1519_v42 = vmul.f32 %v5136_v38, %v5229_v13  ;;  %v623_v55 = vunpack.c.h.bf16 %v190_v1  ;;  %v1749_v43 = vmul.f32 %v3104_v6, %v621_v20  ;;  %v5230_v32 = vunpack.c.l.bf16 %v3952_v23  ;;  %v192_v27 = vld [vmem:[%s4781_s0 + $0x590] sm:$0xff] }
 0x10c   :  { %v2027_v59 = vadd.f32 %v2026_v49, %v1515_v51  ;;  %v2263_v50 = vadd.f32 %v2262_v35, %v1747_v25  ;;  %v536_v36 = vunpack.c.l.bf16 %v147_v21  ;;  %v1662_v22 = vmul.f32 %v2725_v2, %v534_v18  ;;  %v148_v51 = vld [vmem:[%s4781_s0 + $0x430] sm:$0xff] }
 0x10d   :  { %v1520_v44 = vmul.f32 %v5138_v9, %v5230_v32  ;;  %v2175_v8 = vadd.f32 %v2174_v34, %v1660_v30  ;;  %v624_v60 = vunpack.c.l.bf16 %v191_v37  ;;  %v1750_v52 = vmul.f32 %v5231_v15, %v622_v16  ;;  %v5235_v13 = vld [vmem:[#allocation40_spill] sm:$0xff] }
 0x10e   :  { %v2028_v61 = vadd.f32 %v2027_v59, %v1516_v29  ;;  %v2264_v31 = vadd.f32 %v2263_v50, %v1748_v48  ;;  %v5232_v1 = vunpack.c.h.bf16 %v3952_v23  ;;  %v537_v20 = vunpack.c.h.bf16 %v147_v21 }
 0x10f   :  { %v1663_v25 = vmul.f32 %v5185_v19, %v535_v0  ;;  %v2176_v29 = vadd.f32 %v2175_v8, %v1661_v3  ;;  %v625_v30 = vunpack.c.h.bf16 %v191_v37  ;;  %v1751_v49 = vmul.f32 %v5233_v17, %v623_v55  ;;  %v5238_v0 = vld [vmem:[#allocation29_spill] sm:$0xff] }
 0x110   :  { %v1521_v14 = vmul.f32 %v5142_v53, %v5232_v1  ;;  %v2029_v18 = vadd.f32 %v2028_v61, %v1517_v33  ;;  %v2265_v16 = vadd.f32 %v2264_v31, %v1749_v43  ;;  %v5234_v48 = vunpack.c.l.bf16 %v3962_v7  ;;  %v5236_v1 = vld [vmem:[#allocation3_spill] sm:$0xff]  ;;  %v149_v33 = vld [vmem:[%s4781_s0 + $0x438] sm:$0xff] }
 0x111   :  { %v538_v23 = vunpack.c.l.bf16 %v148_v51  ;;  %v1664_v34 = vmul.f32 %v5235_v13, %v536_v36  ;;  %v2177_v59 = vadd.f32 %v2176_v29, %v1662_v22  ;;  %v626_v32 = vunpack.c.l.bf16 %v192_v27  ;;  %v193_v55 = vld [vmem:[%s4781_s0 + $0x598] sm:$0xff] }
 0x112   :  { %v1522_v35 = vmul.f32 %v5145_v39, %v5234_v48  ;;  %v2030_v50 = vadd.f32 %v2029_v18, %v1518_v10  ;;  %v1752_v21 = vmul.f32 %v5236_v1, %v624_v60  ;;  %v2266_v53 = vadd.f32 %v2265_v16, %v1750_v52  ;;  %v5239_v36 = vld [vmem:[#allocation41_spill] sm:$0xff]  ;;  %v5240_v60 = vld [vmem:[#allocation4_spill] sm:$0xff]  ;;  %v5242_v18 = vld [vmem:[#allocation30_spill] sm:$0xff] }
 0x113   :  { %v5237_v37 = vunpack.c.h.bf16 %v3962_v7  ;;  %v539_v43 = vunpack.c.h.bf16 %v148_v51  ;;  %v1665_v22 = vmul.f32 %v5239_v36, %v537_v20  ;;  %v2178_v10 = vadd.f32 %v2177_v59, %v1663_v25  ;;  %v5243_v48 = vld [vmem:[#allocation42_spill] sm:$0xff]  ;;  %v5244_v25 = vld [vmem:[#allocation65_spill] sm:$0xff] }
 0x114   :  { %v2031_v8 = vadd.f32 %v2030_v50, %v1519_v42  ;;  %v627_v61 = vunpack.c.h.bf16 %v192_v27  ;;  %v1753_v52 = vmul.f32 %v5240_v60, %v625_v30  ;;  %v2267_v31 = vadd.f32 %v2266_v53, %v1751_v49  ;;  %v194_v51 = vld [vmem:[%s4781_s0 + $0x5a0] sm:$0xff]  ;;  %v5246_v49 = vld [vmem:[#allocation31_spill] sm:$0xff] }
 0x115   :  { %v1523_v3 = vmul.f32 %v5238_v0, %v5237_v37  ;;  %v5241_v29 = vunpack.c.l.bf16 %v3975_v58  ;;  %v540_v7 = vunpack.c.l.bf16 %v149_v33  ;;  %v1666_v37 = vmul.f32 %v5243_v48, %v538_v23  ;;  %v150_v53 = vld [vmem:[%s4781_s0 + $0x440] sm:$0xff]  ;;  %v5247_v23 = vld [vmem:[#allocation43_spill] sm:$0xff] }
 0x116   :  { %v2179_v0 = vadd.f32 %v2178_v10, %v1664_v34  ;;  %v2032_v39 = vadd.f32 %v2031_v8, %v1520_v44  ;;  %v628_v20 = vunpack.c.l.bf16 %v193_v55  ;;  %v1754_v42 = vmul.f32 %v5244_v25, %v626_v32  ;;  %v195_v8 = vld [vmem:[%s4781_s0 + $0x5a8] sm:$0xff]  ;;  %v5248_v32 = vld [vmem:[#allocation5_spill] sm:$0xff]  ;;  %v5249_v25 = vld [vmem:[#allocation44_spill] sm:$0xff] }
 0x117   :  { %v1524_v16 = vmul.f32 %v5242_v18, %v5241_v29  ;;  %v2268_v27 = vadd.f32 %v2267_v31, %v1752_v21  ;;  %v5245_v30 = vunpack.c.h.bf16 %v3975_v58  ;;  %v541_v50 = vunpack.c.h.bf16 %v149_v33  ;;  %v4115_v33 = vld [vmem:[%s4781_s0 + $0x5b0] sm:$0xff] }
 0x118   :  { %v1667_v34 = vmul.f32 %v5247_v23, %v539_v43  ;;  %v2180_v44 = vadd.f32 %v2179_v0, %v1665_v22  ;;  %v2033_v10 = vadd.f32 %v2032_v39, %v1521_v14  ;;  %v629_v29 = vunpack.c.h.bf16 %v193_v55  ;;  %v5250_v14 = vld [vmem:[#allocation6_spill] sm:$0xff]  ;;  %v151_v55 = vld [vmem:[%s4781_s0 + $0x448] sm:$0xff] }
 0x119   :  { %v1525_v59 = vmul.f32 %v5246_v49, %v5245_v30  ;;  %v1755_v21 = vmul.f32 %v5248_v32, %v627_v61  ;;  %v2269_v31 = vadd.f32 %v2268_v27, %v1753_v52  ;;  %v630_v18 = vunpack.c.l.bf16 %v194_v51  ;;  %v5251_v52 = vld [vmem:[#allocation47_spill] sm:$0xff] }
 0x11a   :  { %v542_v48 = vunpack.c.l.bf16 %v150_v53  ;;  %v1668_v36 = vmul.f32 %v5249_v25, %v540_v7  ;;  %v2181_v58 = vadd.f32 %v2180_v44, %v1666_v37  ;;  %v2034_v60 = vadd.f32 %v2033_v10, %v1522_v35  ;;  %v4125_v35 = vld [vmem:[%s4781_s0 + $0x5b8] sm:$0xff] }
 0x11b   :  { %v631_v39 = vunpack.c.h.bf16 %v194_v51  ;;  %v1756_v0 = vmul.f32 %v5250_v14, %v628_v20  ;;  %v2270_v43 = vadd.f32 %v2269_v31, %v1754_v42  ;;  %v632_v22 = vunpack.c.l.bf16 %v195_v8  ;;  %v5252_v51 = vld [vmem:[#allocation7_spill] sm:$0xff]  ;;  %v5253_v31 = vld [vmem:[#allocation49_spill] sm:$0xff] }
 0x11c   :  { %v543_v61 = vunpack.c.h.bf16 %v150_v53  ;;  %v1669_v27 = vmul.f32 %v5251_v52, %v541_v50  ;;  %v2182_v7 = vadd.f32 %v2181_v58, %v1667_v34  ;;  %v2035_v37 = vadd.f32 %v2034_v60, %v1523_v3  ;;  %v4133_v3 = vld [vmem:[%s4781_s0 + $0x5c0] sm:$0xff]  ;;  %v5254_v50 = vld [vmem:[#allocation8_spill] sm:$0xff] }
 0x11d   :  { %v633_v30 = vunpack.c.h.bf16 %v195_v8  ;;  %v1757_v44 = vmul.f32 %v5252_v51, %v629_v29  ;;  %v2271_v20 = vadd.f32 %v2270_v43, %v1755_v21  ;;  %v634_v42 = vunpack.c.l.bf16 %v4115_v33  ;;  %v152_v29 = vld [vmem:[%s4781_s0 + $0x450] sm:$0xff]  ;;  %v5255_v21 = vld [vmem:[#allocation51_spill] sm:$0xff] }
 0x11e   :  { %v544_v10 = vunpack.c.l.bf16 %v151_v55  ;;  %v1670_v49 = vmul.f32 %v5253_v31, %v542_v48  ;;  %v2183_v25 = vadd.f32 %v2182_v7, %v1668_v36  ;;  %v2036_v53 = vadd.f32 %v2035_v37, %v1524_v16  ;;  %v4143_v48 = vld [vmem:[%s4781_s0 + $0x5c8] sm:$0xff]  ;;  %v5257_v52 = vld [vmem:[#allocation52_spill] sm:$0xff] }
 0x11f   :  { %v635_v60 = vunpack.c.h.bf16 %v4115_v33  ;;  %v1758_v34 = vmul.f32 %v5254_v50, %v630_v18  ;;  %v2272_v8 = vadd.f32 %v2271_v20, %v1756_v0  ;;  %v636_v36 = vunpack.c.l.bf16 %v4125_v35  ;;  %v5256_v18 = vld [vmem:[#allocation9_spill] sm:$0xff]  ;;  %v4152_v20 = vld [vmem:[%s4781_s0 + $0x5d0] sm:$0xff]  ;;  %v4180_v31 = vld [vmem:[%s4781_s0 + $0x5e8] sm:$0xff] }
 0x120   :  { %v545_v16 = vunpack.c.h.bf16 %v151_v55  ;;  %v1671_v58 = vmul.f32 %v5255_v21, %v543_v61  ;;  %v2184_v43 = vadd.f32 %v2183_v25, %v1669_v27  ;;  %v2037_v7 = vadd.f32 %v2036_v53, %v1525_v59  ;;  %v4159_v25 = vld [vmem:[%s4781_s0 + $0x5d8] sm:$0xff]  ;;  %v5258_v61 = vld [vmem:[#allocation10_spill] sm:$0xff] }
 0x121   :  { %v637_v33 = vunpack.c.h.bf16 %v4125_v35  ;;  %v1759_v0 = vmul.f32 %v5256_v18, %v631_v39  ;;  %v2273_v37 = vadd.f32 %v2272_v8, %v1757_v44  ;;  %v546_v50 = vunpack.c.l.bf16 %v152_v29  ;;  %v153_v44 = vld [vmem:[%s4781_s0 + $0x458] sm:$0xff] }
 0x122   :  { %v1672_v51 = vmul.f32 %v5257_v52, %v544_v10  ;;  %v2185_v55 = vadd.f32 %v2184_v43, %v1670_v49  ;;  %2038 = vadd.xlane.f32.xlu0 %v2037_v7  ;;  %v1760_v27 = vmul.f32 %v5258_v61, %v632_v22  ;;  %v4170_v49 = vld [vmem:[%s4781_s0 + $0x5e0] sm:$0xff]  ;;  %v547_v53 = vunpack.c.h.bf16 %v152_v29  ;;  %v5259_v8 = vld [vmem:[#allocation53_spill] sm:$0xff] }
 0x123   :  { %v2274_v35 = vadd.f32 %v2273_v37, %v1758_v34  ;;  %v1673_v43 = vmul.f32 %v5259_v8, %v545_v16  ;;  %v5260_v34 = vld [vmem:[#allocation11_spill] sm:$0xff]  ;;  %v548_v61 = vunpack.c.l.bf16 %v153_v44  ;;  %v5261_v10 = vld [vmem:[#allocation54_spill] sm:$0xff]  ;;  %v4187_v16 = vld [vmem:[%s4781_s0 + $0x5f0] sm:$0xff] }
 0x124   :  { %v2186_v7 = vadd.f32 %v2185_v55, %v1671_v58  ;;  %v1761_v37 = vmul.f32 %v5260_v34, %v633_v30  ;;  %v1674_v29 = vmul.f32 %v5261_v10, %v546_v50  ;;  %v154_v52 = vld [vmem:[%s4781_s0 + $0x460] sm:$0xff]  ;;  %v549_v50 = vunpack.c.h.bf16 %v153_v44  ;;  %v5264_v58 = vld [vmem:[#allocation13_spill] sm:$0xff] }
 0x125   :  { %v2275_v59 = vadd.f32 %v2274_v35, %v1759_v0  ;;  %v5262_v0 = vld [vmem:[#allocation12_spill] sm:$0xff]  ;;  %v1763_v34 = vmul.f32 %v5264_v58, %v635_v60  ;;  %v550_v44 = vunpack.c.l.bf16 %v154_v52  ;;  %v5266_v10 = vld [vmem:[#allocation14_spill] sm:$0xff]  ;;  %v551_v22 = vunpack.c.h.bf16 %v154_v52 }
 0x126   :  { %v2187_v21 = vadd.f32 %v2186_v7, %v1672_v51  ;;  %v1762_v55 = vmul.f32 %v5262_v0, %v634_v42  ;;  %v5263_v51 = vld [vmem:[#allocation55_spill] sm:$0xff]  ;;  %v238_v42 = vld [vmem:[%s4781_s0 + $0x700] sm:$0xff]  ;;  %v1764_v60 = vmul.f32 %v5266_v10, %v636_v36  ;;  %v156_v52 = vld [vmem:[%s4781_s0 + $0x470] sm:$0xff] }
 0x127   :  { %v2276_v35 = vadd.f32 %v2275_v59, %v1760_v27  ;;  %v1675_v7 = vmul.f32 %v5263_v51, %v547_v53  ;;  %v4206_v59 = vld [vmem:[%s4781_s0 + $0x5f8] sm:$0xff]  ;;  %v239_v51 = vld [vmem:[%s4781_s0 + $0x708] sm:$0xff]  ;;  %v1677_v27 = vmul.f32 %v5215_v40, %v549_v50  ;;  %v718_v0 = vunpack.c.l.bf16 %v238_v42  ;;  %v5271_v40 = vld [vmem:[#allocation32_spill] sm:$0xff] }
 0x128   :  { %v2188_v39 = vadd.f32 %v2187_v21, %v1673_v43  ;;  %v5265_v21 = vld [vmem:[#allocation56_spill] sm:$0xff]  ;;  %v5267_v36 = vld [vmem:[#allocation15_spill] sm:$0xff]  ;;  %v720_v14 = vunpack.c.l.bf16 %v239_v51  ;;  %v5269_v50 = vunpack.c.l.bf16 %v4133_v3 }
 0x129   :  { %v2277_v30 = vadd.f32 %v2276_v35, %v1761_v37  ;;  %v1676_v53 = vmul.f32 %v5265_v21, %v548_v61  ;;  %v155_v35 = vld [vmem:[%s4781_s0 + $0x468] sm:$0xff]  ;;  %v719_v61 = vunpack.c.h.bf16 %v238_v42  ;;  %v5268_v21 = vld [vmem:[#allocation58_spill] sm:$0xff] }
 0x12a   :  { %v2189_v43 = vadd.f32 %v2188_v39, %v1674_v29  ;;  %v552_v8 = vunpack.c.l.bf16 %v155_v35  ;;  %v1678_v10 = vmul.f32 %v5268_v21, %v550_v44  ;;  %v553_v39 = vunpack.c.h.bf16 %v155_v35 }
 0x12b   :  { %v2278_v37 = vadd.f32 %v2277_v30, %v1762_v55  ;;  %v1765_v30 = vmul.f32 %v5267_v36, %v637_v33  ;;  %v1679_v29 = vmul.f32 %v5219_v57, %v551_v22  ;;  %v240_v33 = vld [vmem:[%s4781_s0 + $0x710] sm:$0xff]  ;;  %v1846_v36 = vmul.f32 %v5271_v40, %v718_v0  ;;  %v157_v57 = vld [vmem:[%s4781_s0 + $0x478] sm:$0xff] }
 0x12c   :  { %v2190_v58 = vadd.f32 %v2189_v43, %v1675_v7  ;;  %v5270_v7 = vld [vmem:[#allocation16_spill] sm:$0xff]  ;;  %v1847_v44 = vmul.f32 %v5218_v41, %v719_v61  ;;  %v554_v22 = vunpack.c.l.bf16 %v156_v52  ;;  %v722_v0 = vunpack.c.l.bf16 %v240_v33  ;;  %v5277_v61 = vld [vmem:[#allocation19_spill] sm:$0xff] }
 0x12d   :  { %v2279_v55 = vadd.f32 %v2278_v37, %v1763_v34  ;;  %v1766_v42 = vmul.f32 %v5270_v7, %v5269_v50  ;;  %v721_v37 = vunpack.c.h.bf16 %v239_v51  ;;  %v5274_v50 = vunpack.c.l.bf16 %v4143_v48 }
 0x12e   :  { %v2191_v18 = vadd.f32 %v2190_v58, %v1676_v53  ;;  %v5272_v58 = vunpack.c.h.bf16 %v4133_v3  ;;  %v5273_v53 = vld [vmem:[#allocation17_spill] sm:$0xff]  ;;  %v5276_v3 = vunpack.c.h.bf16 %v4143_v48  ;;  %v555_v40 = vunpack.c.h.bf16 %v156_v52 }
 0x12f   :  { %v2280_v43 = vadd.f32 %v2279_v55, %v1764_v60  ;;  %v5275_v60 = vld [vmem:[#allocation18_spill] sm:$0xff] }
 0x130   :  { %v2192_v34 = vadd.f32 %v2191_v18, %v1677_v27  ;;  %v1767_v21 = vmul.f32 %v5273_v53, %v5272_v58  ;;  %v1768_v35 = vmul.f32 %v5275_v60, %v5274_v50  ;;  %v1680_v18 = vmul.f32 %v5224_v56, %v552_v8 }
 0x131   :  { %v2281_v55 = vadd.f32 %v2280_v43, %v1765_v30  ;;  %v1848_v27 = vmul.f32 %v5223_v4, %v720_v14  ;;  %v1769_v58 = vmul.f32 %v5277_v61, %v5276_v3  ;;  %v1681_v50 = vmul.f32 %v5175_v11, %v553_v39  ;;  %v241_v30 = vld [vmem:[%s4781_s0 + $0x718] sm:$0xff]  ;;  %v5279_v14 = vld [vmem:[#allocation20_spill] sm:$0xff]  ;;  %v158_v39 = vld [vmem:[%s4781_s0 + $0x480] sm:$0xff] }
 0x132   :  { %v2193_v51 = vadd.f32 %v2192_v34, %v1678_v10  ;;  %v723_v60 = vunpack.c.h.bf16 %v240_v33  ;;  %v1849_v8 = vmul.f32 %v5063_v62, %v721_v37  ;;  %v2365_v10 = vadd.f32 %v1847_v44, %v1846_v36  ;;  %v5281_v36 = vld [vmem:[#allocation21_spill] sm:$0xff] }
 0x133   :  { %v2282_v41 = vadd.f32 %v2281_v55, %v1766_v42  ;;  %v5278_v34 = vunpack.c.l.bf16 %v4152_v20  ;;  %v556_v56 = vunpack.c.l.bf16 %v157_v57  ;;  %v1682_v42 = vmul.f32 %v5177_v47, %v554_v22 }
 0x134   :  { %v2194_v43 = vadd.f32 %v2193_v51, %v1679_v29  ;;  %v724_v55 = vunpack.c.l.bf16 %v241_v30  ;;  %v1850_v29 = vmul.f32 %v5066_v26, %v722_v0  ;;  %v2366_v33 = vadd.f32 %v2365_v10, %v1848_v27 }
 0x135   :  { %v1770_v4 = vmul.f32 %v5279_v14, %v5278_v34  ;;  %v2283_v48 = vadd.f32 %v2282_v41, %v1767_v21  ;;  %v5280_v37 = vunpack.c.h.bf16 %v4152_v20  ;;  %v557_v3 = vunpack.c.h.bf16 %v157_v57  ;;  %v242_v21 = vld [vmem:[%s4781_s0 + $0x720] sm:$0xff] }
 0x136   :  { %v2195_v52 = vadd.f32 %v2194_v43, %v1680_v18  ;;  %v1683_v41 = vmul.f32 %v3071_v5, %v555_v40  ;;  %v725_v34 = vunpack.c.h.bf16 %v241_v30  ;;  %v1851_v18 = vmul.f32 %v5069_v63, %v723_v60  ;;  %v159_v40 = vld [vmem:[%s4781_s0 + $0x488] sm:$0xff] }
 0x137   :  { %v1771_v44 = vmul.f32 %v5281_v36, %v5280_v37  ;;  %v2284_v51 = vadd.f32 %v2283_v48, %v1768_v35  ;;  %v2367_v43 = vadd.f32 %v2366_v33, %v1849_v8  ;;  %v5282_v0 = vunpack.c.l.bf16 %v4159_v25 }
 0x138   :  { %v2196_v22 = vadd.f32 %v2195_v52, %v1681_v50  ;;  %v558_v10 = vunpack.c.l.bf16 %v158_v39  ;;  %v1684_v35 = vmul.f32 %v5180_v46, %v556_v56  ;;  %v726_v48 = vunpack.c.l.bf16 %v242_v21  ;;  %v243_v56 = vld [vmem:[%s4781_s0 + $0x728] sm:$0xff] }
 0x139   :  { %v1772_v27 = vmul.f32 %v5130_v12, %v5282_v0  ;;  %v2285_v20 = vadd.f32 %v2284_v51, %v1769_v58  ;;  %v1852_v50 = vmul.f32 %v2700_v28, %v724_v55  ;;  %v2368_v30 = vadd.f32 %v2367_v43, %v1850_v29 }
 0x13a   :  { %v2197_v57 = vadd.f32 %v2196_v22, %v1682_v42  ;;  %v5283_v60 = vunpack.c.h.bf16 %v4159_v25  ;;  %v559_v33 = vunpack.c.h.bf16 %v158_v39  ;;  %v1685_v58 = vmul.f32 %v3104_v6, %v557_v3  ;;  %v160_v39 = vld [vmem:[%s4781_s0 + $0x490] sm:$0xff] }
 0x13b   :  { %v2286_v52 = vadd.f32 %v2285_v20, %v1770_v4  ;;  %v727_v51 = vunpack.c.h.bf16 %v242_v21  ;;  %v1853_v42 = vmul.f32 %v5074_v45, %v725_v34  ;;  %v2369_v22 = vadd.f32 %v2368_v30, %v1851_v18 }
 0x13c   :  { %v1773_v8 = vmul.f32 %v5132_v54, %v5283_v60  ;;  %v2198_v37 = vadd.f32 %v2197_v57, %v1683_v41  ;;  %v5284_v55 = vunpack.c.l.bf16 %v4170_v49  ;;  %v560_v43 = vunpack.c.l.bf16 %v159_v40 }
 0x13d   :  { %v2287_v25 = vadd.f32 %v2286_v52, %v1771_v44  ;;  %v1686_v4 = vmul.f32 %v5231_v15, %v558_v10  ;;  %v728_v0 = vunpack.c.l.bf16 %v243_v56  ;;  %v1854_v41 = vmul.f32 %v2725_v2, %v726_v48  ;;  %v244_v10 = vld [vmem:[%s4781_s0 + $0x730] sm:$0xff] }
 0x13e   :  { %v1774_v29 = vmul.f32 %v5134_v24, %v5284_v55  ;;  %v2199_v3 = vadd.f32 %v2198_v37, %v1684_v35  ;;  %v2370_v21 = vadd.f32 %v2369_v22, %v1852_v50  ;;  %v5285_v34 = vunpack.c.h.bf16 %v4170_v49 }
 0x13f   :  { %v2288_v20 = vadd.f32 %v2287_v25, %v1772_v27  ;;  %v561_v57 = vunpack.c.h.bf16 %v159_v40  ;;  %v1687_v44 = vmul.f32 %v5233_v17, %v559_v33  ;;  %v729_v60 = vunpack.c.h.bf16 %v243_v56  ;;  %v161_v40 = vld [vmem:[%s4781_s0 + $0x498] sm:$0xff] }
 0x140   :  { %v1775_v18 = vmul.f32 %v5136_v38, %v5285_v34  ;;  %v2200_v30 = vadd.f32 %v2199_v3, %v1685_v58  ;;  %v1855_v35 = vmul.f32 %v5185_v19, %v727_v51  ;;  %v2371_v52 = vadd.f32 %v2370_v21, %v1853_v42  ;;  %v5288_v42 = vld [vmem:[#allocation27_spill] sm:$0xff]  ;;  %v5289_v21 = vld [vmem:[#allocation4_spill] sm:$0xff] }
 0x141   :  { %v5286_v48 = vunpack.c.l.bf16 %v4180_v31  ;;  %v2289_v49 = vadd.f32 %v2288_v20, %v1773_v8  ;;  %v562_v37 = vunpack.c.l.bf16 %v160_v39  ;;  %v1688_v27 = vmul.f32 %v5236_v1, %v560_v43  ;;  %v245_v43 = vld [vmem:[%s4781_s0 + $0x738] sm:$0xff] }
 0x142   :  { %v2201_v33 = vadd.f32 %v2200_v30, %v1686_v4  ;;  %v730_v22 = vunpack.c.l.bf16 %v244_v10  ;;  %v1856_v58 = vmul.f32 %v5235_v13, %v728_v0  ;;  %v2372_v56 = vadd.f32 %v2371_v52, %v1854_v41  ;;  %v5292_v41 = vld [vmem:[#allocation28_spill] sm:$0xff] }
 0x143   :  { %v1776_v50 = vmul.f32 %v5138_v9, %v5286_v48  ;;  %v5287_v51 = vunpack.c.h.bf16 %v4180_v31  ;;  %v2290_v25 = vadd.f32 %v2289_v49, %v1774_v29  ;;  %v563_v3 = vunpack.c.h.bf16 %v160_v39  ;;  %v5290_v48 = vld [vmem:[#allocation41_spill] sm:$0xff]  ;;  %v162_v39 = vld [vmem:[%s4781_s0 + $0x4a0] sm:$0xff] }
 0x144   :  { %v1689_v8 = vmul.f32 %v5289_v21, %v561_v57  ;;  %v2202_v34 = vadd.f32 %v2201_v33, %v1687_v44  ;;  %v731_v20 = vunpack.c.h.bf16 %v244_v10  ;;  %v1857_v4 = vmul.f32 %v5290_v48, %v729_v60  ;;  %v5294_v21 = vld [vmem:[#allocation42_spill] sm:$0xff] }
 0x145   :  { %v1777_v55 = vmul.f32 %v5288_v42, %v5287_v51  ;;  %v2373_v30 = vadd.f32 %v2372_v56, %v1855_v35  ;;  %v5291_v0 = vunpack.c.l.bf16 %v4187_v16  ;;  %v2291_v31 = vadd.f32 %v2290_v25, %v1775_v18  ;;  %v5293_v51 = vld [vmem:[#allocation65_spill] sm:$0xff] }
 0x146   :  { %v564_v13 = vunpack.c.l.bf16 %v161_v40  ;;  %v1690_v29 = vmul.f32 %v5293_v51, %v562_v37  ;;  %v2203_v57 = vadd.f32 %v2202_v34, %v1688_v27  ;;  %v732_v49 = vunpack.c.l.bf16 %v245_v43  ;;  %v5296_v35 = vld [vmem:[#allocation29_spill] sm:$0xff]  ;;  %v246_v37 = vld [vmem:[%s4781_s0 + $0x740] sm:$0xff] }
 0x147   :  { %v1778_v52 = vmul.f32 %v5292_v41, %v5291_v0  ;;  %v1858_v44 = vmul.f32 %v5294_v21, %v730_v22  ;;  %v2374_v10 = vadd.f32 %v2373_v30, %v1856_v58  ;;  %v5295_v60 = vunpack.c.h.bf16 %v4187_v16  ;;  %v5298_v58 = vld [vmem:[#allocation30_spill] sm:$0xff] }
 0x148   :  { %v2292_v56 = vadd.f32 %v2291_v31, %v1776_v50  ;;  %v565_v48 = vunpack.c.h.bf16 %v161_v40  ;;  %v1691_v18 = vmul.f32 %v5248_v32, %v563_v3  ;;  %v2204_v25 = vadd.f32 %v2203_v57, %v1689_v8  ;;  %v163_v40 = vld [vmem:[%s4781_s0 + $0x4a8] sm:$0xff]  ;;  %v5300_v32 = vld [vmem:[#allocation44_spill] sm:$0xff] }
 0x149   :  { %v1779_v33 = vmul.f32 %v5296_v35, %v5295_v60  ;;  %v733_v0 = vunpack.c.h.bf16 %v245_v43  ;;  %v1859_v27 = vmul.f32 %v5247_v23, %v731_v20  ;;  %v2375_v34 = vadd.f32 %v2374_v10, %v1857_v4  ;;  %v5299_v60 = vld [vmem:[#allocation6_spill] sm:$0xff]  ;;  %v5302_v4 = vld [vmem:[#allocation31_spill] sm:$0xff] }
 0x14a   :  { %v5297_v22 = vunpack.c.l.bf16 %v4206_v59  ;;  %v2293_v16 = vadd.f32 %v2292_v56, %v1777_v55  ;;  %v566_v21 = vunpack.c.l.bf16 %v162_v39  ;;  %v1692_v50 = vmul.f32 %v5299_v60, %v564_v13  ;;  %v247_v13 = vld [vmem:[%s4781_s0 + $0x748] sm:$0xff] }
 0x14b   :  { %v2205_v3 = vadd.f32 %v2204_v25, %v1690_v29  ;;  %v734_v31 = vunpack.c.l.bf16 %v246_v37  ;;  %v1860_v8 = vmul.f32 %v5300_v32, %v732_v49  ;;  %v2376_v43 = vadd.f32 %v2375_v34, %v1858_v44  ;;  %v164_v29 = vld [vmem:[%s4781_s0 + $0x4b0] sm:$0xff]  ;;  %v5304_v49 = vld [vmem:[#allocation47_spill] sm:$0xff] }
 0x14c   :  { %v1780_v30 = vmul.f32 %v5298_v58, %v5297_v22  ;;  %v5301_v20 = vunpack.c.h.bf16 %v4206_v59  ;;  %v2294_v10 = vadd.f32 %v2293_v16, %v1778_v52  ;;  %v567_v23 = vunpack.c.h.bf16 %v162_v39  ;;  %v5303_v22 = vld [vmem:[#allocation7_spill] sm:$0xff]  ;;  %v5305_v52 = vld [vmem:[#allocation8_spill] sm:$0xff] }
 0x14d   :  { %v1693_v55 = vmul.f32 %v5303_v22, %v565_v48  ;;  %v2206_v56 = vadd.f32 %v2205_v3, %v1691_v18  ;;  %v735_v25 = vunpack.c.h.bf16 %v246_v37  ;;  %v1861_v44 = vmul.f32 %v5304_v49, %v733_v0  ;;  %v4357_v48 = vld [vmem:[%s4781_s0 + $0x4b8] sm:$0xff] }
 0x14e   :  { %v1781_v57 = vmul.f32 %v5302_v4, %v5301_v20  ;;  %v2377_v34 = vadd.f32 %v2376_v43, %v1859_v27  ;;  %v2295_v59 = vadd.f32 %v2294_v10, %v1779_v33  ;;  %v568_v32 = vunpack.c.l.bf16 %v163_v40  ;;  %v5306_v4 = vld [vmem:[#allocation49_spill] sm:$0xff]  ;;  %v248_v33 = vld [vmem:[%s4781_s0 + $0x750] sm:$0xff] }
 0x14f   :  { %v569_v20 = vunpack.c.h.bf16 %v163_v40  ;;  %v1694_v39 = vmul.f32 %v5305_v52, %v566_v21  ;;  %v2207_v16 = vadd.f32 %v2206_v56, %v1692_v50  ;;  %v736_v22 = vunpack.c.l.bf16 %v247_v13  ;;  %v5307_v0 = vld [vmem:[#allocation9_spill] sm:$0xff]  ;;  %v4367_v21 = vld [vmem:[%s4781_s0 + $0x4c0] sm:$0xff]  ;;  %v4372_v50 = vld [vmem:[%s4781_s0 + $0x4c8] sm:$0xff] }
 0x150   :  { %v1862_v60 = vmul.f32 %v5306_v4, %v734_v31  ;;  %v2378_v58 = vadd.f32 %v2377_v34, %v1860_v8  ;;  %v2296_v18 = vadd.f32 %v2295_v59, %v1780_v30  ;;  %v570_v37 = vunpack.c.l.bf16 %v164_v29  ;;  %v5308_v31 = vld [vmem:[#allocation51_spill] sm:$0xff]  ;;  %v5309_v56 = vld [vmem:[#allocation10_spill] sm:$0xff]  ;;  %v4381_v59 = vld [vmem:[%s4781_s0 + $0x4d0] sm:$0xff] }
 0x151   :  { %v571_v3 = vunpack.c.h.bf16 %v164_v29  ;;  %v1695_v27 = vmul.f32 %v5307_v0, %v567_v23  ;;  %v2208_v40 = vadd.f32 %v2207_v16, %v1693_v55  ;;  %v737_v30 = vunpack.c.h.bf16 %v247_v13  ;;  %v5310_v52 = vld [vmem:[#allocation52_spill] sm:$0xff] }
 0x152   :  { %v1863_v8 = vmul.f32 %v5308_v31, %v735_v25  ;;  %v2379_v43 = vadd.f32 %v2378_v58, %v1861_v44  ;;  %v2297_v23 = vadd.f32 %v2296_v18, %v1781_v57  ;;  %v572_v10 = vunpack.c.l.bf16 %v4357_v48  ;;  %v5311_v44 = vld [vmem:[#allocation11_spill] sm:$0xff]  ;;  %v5312_v18 = vld [vmem:[#allocation53_spill] sm:$0xff]  ;;  %v5313_v25 = vld [vmem:[#allocation12_spill] sm:$0xff] }
 0x153   :  { %v573_v29 = vunpack.c.h.bf16 %v4357_v48  ;;  %v1696_v34 = vmul.f32 %v5309_v56, %v568_v32  ;;  %v2209_v0 = vadd.f32 %v2208_v40, %v1694_v39  ;;  %v738_v4 = vunpack.c.l.bf16 %v248_v33  ;;  %v249_v32 = vld [vmem:[%s4781_s0 + $0x758] sm:$0xff] }
 0x154   :  { %v1864_v55 = vmul.f32 %v5310_v52, %v736_v22  ;;  %v2380_v13 = vadd.f32 %v2379_v43, %v1862_v60  ;;  %2298 = vadd.xlane.f32.xlu1 %v2297_v23  ;;  %v574_v58 = vunpack.c.l.bf16 %v4367_v21  ;;  %v575_v57 = vunpack.c.h.bf16 %v4367_v21  ;;  %v4394_v39 = vld [vmem:[%s4781_s0 + $0x4d8] sm:$0xff]  ;;  %v4399_v60 = vld [vmem:[%s4781_s0 + $0x4e0] sm:$0xff]  ;;  %v4409_v52 = vld [vmem:[%s4781_s0 + $0x4e8] sm:$0xff] }
 0x155   :  { %v1697_v48 = vmul.f32 %v5311_v44, %v569_v20  ;;  %v2210_v22 = vadd.f32 %v2209_v0, %v1695_v27  ;;  %v739_v16 = vunpack.c.h.bf16 %v248_v33  ;;  %v1865_v21 = vmul.f32 %v5312_v18, %v737_v30  ;;  %v5314_v0 = vld [vmem:[#allocation54_spill] sm:$0xff]  ;;  %v4421_v43 = vld [vmem:[%s4781_s0 + $0x4f0] sm:$0xff]  ;;  %v207_v18 = vld [vmem:[%s4781_s0 + $0x608] sm:$0xff] }
 0x156   :  { %v2381_v40 = vadd.f32 %v2380_v13, %v1863_v8  ;;  %v1698_v44 = vmul.f32 %v5313_v25, %v570_v37  ;;  %v740_v31 = vunpack.c.l.bf16 %v249_v32  ;;  %v1866_v27 = vmul.f32 %v5314_v0, %v738_v4  ;;  %v250_v37 = vld [vmem:[%s4781_s0 + $0x760] sm:$0xff]  ;;  %v5319_v13 = vld [vmem:[#allocation15_spill] sm:$0xff] }
 0x157   :  { %v2211_v56 = vadd.f32 %v2210_v22, %v1696_v34  ;;  %v741_v23 = vunpack.c.h.bf16 %v249_v32  ;;  %v5315_v34 = vld [vmem:[#allocation13_spill] sm:$0xff]  ;;  %v5317_v0 = vld [vmem:[#allocation14_spill] sm:$0xff]  ;;  %v1701_v8 = vmul.f32 %v5319_v13, %v573_v29  ;;  %v252_v29 = vld [vmem:[%s4781_s0 + $0x770] sm:$0xff]  ;;  %v656_v13 = vunpack.c.l.bf16 %v207_v18 }
 0x158   :  { %v2382_v33 = vadd.f32 %v2381_v40, %v1864_v55  ;;  %v1699_v22 = vmul.f32 %v5315_v34, %v571_v3  ;;  %v5316_v55 = vld [vmem:[#allocation55_spill] sm:$0xff]  ;;  %v1700_v25 = vmul.f32 %v5317_v0, %v572_v10  ;;  %v206_v32 = vld [vmem:[%s4781_s0 + $0x600] sm:$0xff]  ;;  %v4435_v3 = vld [vmem:[%s4781_s0 + $0x4f8] sm:$0xff]  ;;  %v743_v0 = vunpack.c.h.bf16 %v250_v37 }
 0x159   :  { %v2212_v4 = vadd.f32 %v2211_v56, %v1697_v48  ;;  %v1867_v40 = vmul.f32 %v5316_v55, %v739_v16  ;;  %v251_v48 = vld [vmem:[%s4781_s0 + $0x768] sm:$0xff]  ;;  %v742_v16 = vunpack.c.l.bf16 %v250_v37  ;;  %v5320_v55 = vld [vmem:[#allocation57_spill] sm:$0xff]  ;;  %v654_v49 = vunpack.c.l.bf16 %v206_v32 }
 0x15a   :  { %v2383_v30 = vadd.f32 %v2382_v33, %v1865_v21  ;;  %v5318_v21 = vld [vmem:[#allocation56_spill] sm:$0xff]  ;;  %v1869_v34 = vmul.f32 %v5320_v55, %v741_v23  ;;  %v655_v35 = vunpack.c.h.bf16 %v206_v32  ;;  %v5321_v23 = vld [vmem:[#allocation58_spill] sm:$0xff] }
 0x15b   :  { %v2213_v56 = vadd.f32 %v2212_v4, %v1698_v44  ;;  %v1868_v33 = vmul.f32 %v5318_v21, %v740_v31  ;;  %v1870_v37 = vmul.f32 %v5321_v23, %v742_v16 }
 0x15c   :  { %v2384_v20 = vadd.f32 %v2383_v30, %v1866_v27  ;;  %v1702_v27 = vmul.f32 %v5270_v7, %v574_v58  ;;  %v744_v30 = vunpack.c.l.bf16 %v251_v48  ;;  %v657_v58 = vunpack.c.h.bf16 %v207_v18  ;;  %v5324_v7 = vld [vmem:[#allocation33_spill] sm:$0xff] }
 0x15d   :  { %v2214_v44 = vadd.f32 %v2213_v56, %v1699_v22  ;;  %v745_v22 = vunpack.c.h.bf16 %v251_v48  ;;  %v208_v56 = vld [vmem:[%s4781_s0 + $0x610] sm:$0xff]  ;;  %v1783_v21 = vmul.f32 %v5324_v7, %v655_v35  ;;  %v746_v48 = vunpack.c.l.bf16 %v252_v29  ;;  %v253_v18 = vld [vmem:[%s4781_s0 + $0x778] sm:$0xff]  ;;  %v5328_v35 = vld [vmem:[#allocation34_spill] sm:$0xff] }
 0x15e   :  { %v2385_v4 = vadd.f32 %v2384_v20, %v1867_v40  ;;  %v1703_v20 = vmul.f32 %v5273_v53, %v575_v57  ;;  %v5322_v40 = vld [vmem:[#allocation59_spill] sm:$0xff]  ;;  %v5327_v53 = vld [vmem:[#allocation60_spill] sm:$0xff]  ;;  %v658_v7 = vunpack.c.l.bf16 %v208_v56  ;;  %v1785_v16 = vmul.f32 %v5063_v62, %v657_v58 }
 0x15f   :  { %v2215_v10 = vadd.f32 %v2214_v44, %v1700_v25  ;;  %v1871_v32 = vmul.f32 %v5322_v40, %v743_v0  ;;  %v5323_v44 = vld [vmem:[#allocation32_spill] sm:$0xff]  ;;  %v1872_v0 = vmul.f32 %v5327_v53, %v744_v30  ;;  %v1873_v30 = vmul.f32 %v5175_v11, %v745_v22 }
 0x160   :  { %v2386_v55 = vadd.f32 %v2385_v4, %v1868_v33  ;;  %v1782_v51 = vmul.f32 %v5323_v44, %v654_v49  ;;  %v5325_v33 = vunpack.c.l.bf16 %v4372_v50  ;;  %v5326_v4 = vld [vmem:[#allocation18_spill] sm:$0xff]  ;;  %v209_v49 = vld [vmem:[%s4781_s0 + $0x618] sm:$0xff]  ;;  %v747_v44 = vunpack.c.h.bf16 %v252_v29 }
 0x161   :  { %v2216_v31 = vadd.f32 %v2215_v10, %v1701_v8  ;;  %v254_v29 = vld [vmem:[%s4781_s0 + $0x780] sm:$0xff]  ;;  %v1786_v62 = vmul.f32 %v5066_v26, %v658_v7  ;;  %v661_v58 = vunpack.c.h.bf16 %v209_v49 }
 0x162   :  { %v2387_v25 = vadd.f32 %v2386_v55, %v1869_v34  ;;  %v1704_v57 = vmul.f32 %v5326_v4, %v5325_v33  ;;  %v1784_v34 = vmul.f32 %v5328_v35, %v656_v13  ;;  %v5329_v55 = vunpack.c.h.bf16 %v4372_v50 }
 0x163   :  { %v2217_v40 = vadd.f32 %v2216_v31, %v1702_v27  ;;  %v659_v31 = vunpack.c.h.bf16 %v208_v56  ;;  %v748_v4 = vunpack.c.l.bf16 %v253_v18  ;;  %v1874_v13 = vmul.f32 %v5177_v47, %v746_v48 }
 0x164   :  { %v2388_v8 = vadd.f32 %v2387_v25, %v1870_v37  ;;  %v1705_v10 = vmul.f32 %v5277_v61, %v5329_v55  ;;  %v2300_v37 = vadd.f32 %v1783_v21, %v1782_v51  ;;  %v5330_v25 = vunpack.c.l.bf16 %v4381_v59 }
 0x165   :  { %v2218_v27 = vadd.f32 %v2217_v40, %v1703_v20  ;;  %v660_v35 = vunpack.c.l.bf16 %v209_v49  ;;  %v210_v20 = vld [vmem:[%s4781_s0 + $0x620] sm:$0xff]  ;;  %v5331_v21 = vunpack.c.h.bf16 %v4381_v59  ;;  %v1875_v56 = vmul.f32 %v3071_v5, %v747_v44  ;;  %v211_v49 = vld [vmem:[%s4781_s0 + $0x628] sm:$0xff] }
 0x166   :  { %v2389_v33 = vadd.f32 %v2388_v8, %v1871_v32  ;;  %v1706_v53 = vmul.f32 %v5279_v14, %v5330_v25  ;;  %v2301_v51 = vadd.f32 %v2300_v37, %v1784_v34  ;;  %v749_v32 = vunpack.c.h.bf16 %v253_v18  ;;  %v255_v18 = vld [vmem:[%s4781_s0 + $0x788] sm:$0xff] }
 0x167   :  { %v2219_v50 = vadd.f32 %v2218_v27, %v1704_v57  ;;  %v1707_v40 = vmul.f32 %v5281_v36, %v5331_v21  ;;  %v1787_v8 = vmul.f32 %v5069_v63, %v659_v31  ;;  %v5332_v55 = vunpack.c.l.bf16 %v4394_v39 }
 0x168   :  { %v2390_v22 = vadd.f32 %v2389_v33, %v1872_v0  ;;  %v2302_v0 = vadd.f32 %v2301_v51, %v1785_v16  ;;  %v750_v33 = vunpack.c.l.bf16 %v254_v29  ;;  %v1876_v26 = vmul.f32 %v5180_v46, %v748_v4 }
 0x169   :  { %v2220_v57 = vadd.f32 %v2219_v50, %v1705_v10  ;;  %v1708_v27 = vmul.f32 %v5130_v12, %v5332_v55  ;;  %v662_v7 = vunpack.c.l.bf16 %v210_v20  ;;  %v1788_v63 = vmul.f32 %v2700_v28, %v660_v35 }
 0x16a   :  { %v2391_v48 = vadd.f32 %v2390_v22, %v1873_v30  ;;  %v2303_v16 = vadd.f32 %v2302_v0, %v1786_v62  ;;  %v5333_v10 = vunpack.c.h.bf16 %v4394_v39  ;;  %v751_v30 = vunpack.c.h.bf16 %v254_v29  ;;  %v256_v29 = vld [vmem:[%s4781_s0 + $0x790] sm:$0xff] }
 0x16b   :  { %v2221_v59 = vadd.f32 %v2220_v57, %v1706_v53  ;;  %v1877_v4 = vmul.f32 %v3104_v6, %v749_v32  ;;  %v663_v53 = vunpack.c.h.bf16 %v210_v20  ;;  %v1789_v25 = vmul.f32 %v5074_v45, %v661_v58  ;;  %v212_v20 = vld [vmem:[%s4781_s0 + $0x630] sm:$0xff] }
 0x16c   :  { %v2392_v34 = vadd.f32 %v2391_v48, %v1874_v13  ;;  %v1709_v44 = vmul.f32 %v5132_v54, %v5333_v10  ;;  %v2304_v13 = vadd.f32 %v2303_v16, %v1787_v8  ;;  %v5334_v50 = vunpack.c.l.bf16 %v4399_v60 }
 0x16d   :  { %v2222_v31 = vadd.f32 %v2221_v59, %v1707_v40  ;;  %v752_v51 = vunpack.c.l.bf16 %v255_v18  ;;  %v1878_v28 = vmul.f32 %v5231_v15, %v750_v33  ;;  %v664_v35 = vunpack.c.l.bf16 %v211_v49  ;;  %v257_v59 = vld [vmem:[%s4781_s0 + $0x798] sm:$0xff] }
 0x16e   :  { %v2393_v37 = vadd.f32 %v2392_v34, %v1875_v56  ;;  %v1710_v22 = vmul.f32 %v5134_v24, %v5334_v50  ;;  %v1790_v45 = vmul.f32 %v2725_v2, %v662_v7  ;;  %v2305_v21 = vadd.f32 %v2304_v13, %v1788_v63  ;;  %v213_v34 = vld [vmem:[%s4781_s0 + $0x638] sm:$0xff] }
 0x16f   :  { %v2223_v39 = vadd.f32 %v2222_v31, %v1708_v27  ;;  %v5335_v40 = vunpack.c.h.bf16 %v4399_v60  ;;  %v753_v56 = vunpack.c.h.bf16 %v255_v18  ;;  %v1879_v58 = vmul.f32 %v5233_v17, %v751_v30  ;;  %v5339_v30 = vld [vmem:[#allocation4_spill] sm:$0xff] }
 0x170   :  { %v2394_v62 = vadd.f32 %v2393_v37, %v1876_v26  ;;  %v665_v57 = vunpack.c.h.bf16 %v211_v49  ;;  %v1791_v0 = vmul.f32 %v5185_v19, %v663_v53  ;;  %v2306_v55 = vadd.f32 %v2305_v21, %v1789_v25  ;;  %v5337_v19 = vld [vmem:[#allocation40_spill] sm:$0xff]  ;;  %v5340_v25 = vld [vmem:[#allocation41_spill] sm:$0xff]  ;;  %v5343_v21 = vld [vmem:[#allocation42_spill] sm:$0xff] }
 0x171   :  { %v1711_v32 = vmul.f32 %v5136_v38, %v5335_v40  ;;  %v2224_v48 = vadd.f32 %v2223_v39, %v1709_v44  ;;  %v5336_v27 = vunpack.c.l.bf16 %v4409_v52  ;;  %v754_v26 = vunpack.c.l.bf16 %v256_v29 }
 0x172   :  { %v2395_v8 = vadd.f32 %v2394_v62, %v1877_v4  ;;  %v1880_v2 = vmul.f32 %v5236_v1, %v752_v51  ;;  %v666_v7 = vunpack.c.l.bf16 %v212_v20  ;;  %v1792_v49 = vmul.f32 %v5337_v19, %v664_v35  ;;  %v5342_v35 = vld [vmem:[#allocation65_spill] sm:$0xff]  ;;  %v5349_v19 = vld [vmem:[#allocation30_spill] sm:$0xff] }
 0x173   :  { %v1712_v33 = vmul.f32 %v5138_v9, %v5336_v27  ;;  %v2225_v60 = vadd.f32 %v2224_v48, %v1710_v22  ;;  %v2307_v63 = vadd.f32 %v2306_v55, %v1790_v45  ;;  %v5338_v16 = vunpack.c.h.bf16 %v4409_v52 }
 0x174   :  { %v2396_v18 = vadd.f32 %v2395_v8, %v1878_v28  ;;  %v755_v44 = vunpack.c.h.bf16 %v256_v29  ;;  %v1881_v4 = vmul.f32 %v5339_v30, %v753_v56  ;;  %v667_v53 = vunpack.c.h.bf16 %v212_v20  ;;  %v258_v29 = vld [vmem:[%s4781_s0 + $0x7a0] sm:$0xff]  ;;  %v5346_v8 = vld [vmem:[#allocation5_spill] sm:$0xff] }
 0x175   :  { %v1713_v10 = vmul.f32 %v5288_v42, %v5338_v16  ;;  %v2226_v31 = vadd.f32 %v2225_v60, %v1711_v32  ;;  %v1793_v13 = vmul.f32 %v5340_v25, %v665_v57  ;;  %v2308_v50 = vadd.f32 %v2307_v63, %v1791_v0  ;;  %v214_v20 = vld [vmem:[%s4781_s0 + $0x640] sm:$0xff]  ;;  %v5353_v25 = vld [vmem:[#allocation31_spill] sm:$0xff] }
 0x176   :  { %v2397_v37 = vadd.f32 %v2396_v18, %v1879_v58  ;;  %v5341_v22 = vunpack.c.l.bf16 %v4421_v43  ;;  %v756_v28 = vunpack.c.l.bf16 %v257_v59  ;;  %v1882_v39 = vmul.f32 %v5342_v35, %v754_v26  ;;  %v5345_v58 = vld [vmem:[#allocation29_spill] sm:$0xff]  ;;  %v5347_v26 = vld [vmem:[#allocation43_spill] sm:$0xff] }
 0x177   :  { %v668_v62 = vunpack.c.l.bf16 %v213_v34  ;;  %v2227_v52 = vadd.f32 %v2226_v31, %v1712_v33  ;;  %v1794_v40 = vmul.f32 %v5343_v21, %v666_v7  ;;  %v2309_v32 = vadd.f32 %v2308_v50, %v1792_v49  ;;  %v5350_v7 = vld [vmem:[#allocation6_spill] sm:$0xff]  ;;  %v5355_v21 = vld [vmem:[#allocation47_spill] sm:$0xff] }
 0x178   :  { %v1714_v51 = vmul.f32 %v5292_v41, %v5341_v22  ;;  %v2398_v45 = vadd.f32 %v2397_v37, %v1880_v2  ;;  %v5344_v56 = vunpack.c.h.bf16 %v4421_v43  ;;  %v757_v48 = vunpack.c.h.bf16 %v257_v59  ;;  %v259_v59 = vld [vmem:[%s4781_s0 + $0x7a8] sm:$0xff] }
 0x179   :  { %v1883_v0 = vmul.f32 %v5346_v8, %v755_v44  ;;  %v669_v55 = vunpack.c.h.bf16 %v213_v34  ;;  %v2228_v27 = vadd.f32 %v2227_v52, %v1713_v10  ;;  %v1795_v60 = vmul.f32 %v5347_v26, %v667_v53  ;;  %v215_v34 = vld [vmem:[%s4781_s0 + $0x648] sm:$0xff]  ;;  %v5351_v10 = vld [vmem:[#allocation44_spill] sm:$0xff] }
 0x17a   :  { %v1715_v57 = vmul.f32 %v5345_v58, %v5344_v56  ;;  %v2399_v33 = vadd.f32 %v2398_v45, %v1881_v4  ;;  %v2310_v2 = vadd.f32 %v2309_v32, %v1793_v13  ;;  %v5348_v18 = vunpack.c.l.bf16 %v4435_v3  ;;  %v5354_v22 = vld [vmem:[#allocation7_spill] sm:$0xff] }
 0x17b   :  { %v758_v16 = vunpack.c.l.bf16 %v258_v29  ;;  %v1884_v49 = vmul.f32 %v5350_v7, %v756_v28  ;;  %v670_v31 = vunpack.c.l.bf16 %v214_v20  ;;  %v2229_v43 = vadd.f32 %v2228_v27, %v1714_v51  ;;  %v5356_v27 = vld [vmem:[#allocation8_spill] sm:$0xff] }
 0x17c   :  { %v1716_v63 = vmul.f32 %v5349_v19, %v5348_v18  ;;  %v2400_v44 = vadd.f32 %v2399_v33, %v1882_v39  ;;  %v1796_v4 = vmul.f32 %v5351_v10, %v668_v62  ;;  %v2311_v53 = vadd.f32 %v2310_v2, %v1794_v40  ;;  %v5357_v40 = vld [vmem:[#allocation49_spill] sm:$0xff] }
 0x17d   :  { %v5352_v37 = vunpack.c.h.bf16 %v4435_v3  ;;  %v759_v50 = vunpack.c.h.bf16 %v258_v29  ;;  %v1885_v28 = vmul.f32 %v5354_v22, %v757_v48  ;;  %v671_v51 = vunpack.c.h.bf16 %v214_v20  ;;  %v260_v3 = vld [vmem:[%s4781_s0 + $0x7b0] sm:$0xff]  ;;  %v5358_v20 = vld [vmem:[#allocation9_spill] sm:$0xff] }
 0x17e   :  { %v2230_v52 = vadd.f32 %v2229_v43, %v1715_v57  ;;  %v2401_v45 = vadd.f32 %v2400_v44, %v1883_v0  ;;  %v1797_v32 = vmul.f32 %v5355_v21, %v669_v55  ;;  %v2312_v39 = vadd.f32 %v2311_v53, %v1795_v60  ;;  %v216_v0 = vld [vmem:[%s4781_s0 + $0x650] sm:$0xff]  ;;  %v5359_v43 = vld [vmem:[#allocation51_spill] sm:$0xff]  ;;  %v5360_v53 = vld [vmem:[#allocation10_spill] sm:$0xff] }
 0x17f   :  { %v1717_v13 = vmul.f32 %v5353_v25, %v5352_v37  ;;  %v760_v56 = vunpack.c.l.bf16 %v259_v59  ;;  %v1886_v33 = vmul.f32 %v5356_v27, %v758_v16  ;;  %v672_v26 = vunpack.c.l.bf16 %v215_v34 }
 0x180   :  { %v2231_v18 = vadd.f32 %v2230_v52, %v1716_v63  ;;  %v2402_v62 = vadd.f32 %v2401_v45, %v1884_v49  ;;  %v1798_v29 = vmul.f32 %v5357_v40, %v670_v31  ;;  %v2313_v2 = vadd.f32 %v2312_v39, %v1796_v4  ;;  %v261_v49 = vld [vmem:[%s4781_s0 + $0x7b8] sm:$0xff]  ;;  %v5361_v4 = vld [vmem:[#allocation52_spill] sm:$0xff] }
 0x181   :  { %v761_v48 = vunpack.c.h.bf16 %v259_v59  ;;  %v1887_v57 = vmul.f32 %v5358_v20, %v759_v50  ;;  %v673_v55 = vunpack.c.h.bf16 %v215_v34  ;;  %v1799_v63 = vmul.f32 %v5359_v43, %v671_v51  ;;  %v5362_v34 = vld [vmem:[#allocation11_spill] sm:$0xff] }
 0x182   :  { %v2232_v60 = vadd.f32 %v2231_v18, %v1717_v13  ;;  %v2403_v16 = vadd.f32 %v2402_v62, %v1885_v28  ;;  %v2314_v44 = vadd.f32 %v2313_v2, %v1797_v32  ;;  %v762_v10 = vunpack.c.l.bf16 %v260_v3  ;;  %v217_v28 = vld [vmem:[%s4781_s0 + $0x658] sm:$0xff]  ;;  %v5364_v62 = vld [vmem:[#allocation12_spill] sm:$0xff] }
 0x183   :  { %v1888_v37 = vmul.f32 %v5360_v53, %v760_v56  ;;  %v674_v59 = vunpack.c.l.bf16 %v216_v0  ;;  %v1800_v50 = vmul.f32 %v5361_v4, %v672_v26  ;;  %v763_v45 = vunpack.c.h.bf16 %v260_v3  ;;  %v5363_v32 = vld [vmem:[#allocation53_spill] sm:$0xff]  ;;  %v5368_v4 = vld [vmem:[#allocation14_spill] sm:$0xff] }
 0x184   :  { %2233 = vadd.xlane.f32.xlu0 %v2232_v60  ;;  %v2404_v31 = vadd.f32 %v2403_v16, %v1886_v33  ;;  %v2315_v52 = vadd.f32 %v2314_v44, %v1798_v29  ;;  %v1889_v13 = vmul.f32 %v5362_v34, %v761_v48  ;;  %v675_v21 = vunpack.c.h.bf16 %v216_v0  ;;  %v262_v33 = vld [vmem:[%s4781_s0 + $0x7c0] sm:$0xff]  ;;  %v5366_v16 = vld [vmem:[#allocation13_spill] sm:$0xff] }
 0x185   :  { %v1801_v39 = vmul.f32 %v5363_v32, %v673_v55  ;;  %v764_v18 = vunpack.c.l.bf16 %v261_v49  ;;  %v1890_v40 = vmul.f32 %v5364_v62, %v762_v10  ;;  %v676_v3 = vunpack.c.l.bf16 %v217_v28  ;;  %v5365_v29 = vld [vmem:[#allocation54_spill] sm:$0xff] }
 0x186   :  { %v2405_v51 = vadd.f32 %v2404_v31, %v1887_v57  ;;  %v2316_v56 = vadd.f32 %v2315_v52, %v1799_v63  ;;  %v1802_v2 = vmul.f32 %v5365_v29, %v674_v59  ;;  %v765_v60 = vunpack.c.h.bf16 %v261_v49  ;;  %v218_v57 = vld [vmem:[%s4781_s0 + $0x660] sm:$0xff]  ;;  %v5367_v63 = vld [vmem:[#allocation55_spill] sm:$0xff] }
 0x187   :  { %v1891_v43 = vmul.f32 %v5366_v16, %v763_v45  ;;  %v677_v55 = vunpack.c.h.bf16 %v217_v28  ;;  %v1803_v44 = vmul.f32 %v5367_v63, %v675_v21  ;;  %v766_v31 = vunpack.c.l.bf16 %v262_v33  ;;  %v5372_v63 = vld [vmem:[#allocation16_spill] sm:$0xff] }
 0x188   :  { %v2406_v26 = vadd.f32 %v2405_v51, %v1888_v37  ;;  %v2317_v48 = vadd.f32 %v2316_v56, %v1800_v50  ;;  %v1892_v52 = vmul.f32 %v5368_v4, %v764_v18  ;;  %v263_v37 = vld [vmem:[%s4781_s0 + $0x7c8] sm:$0xff]  ;;  %v678_v49 = vunpack.c.l.bf16 %v218_v57  ;;  %v5369_v50 = vld [vmem:[#allocation56_spill] sm:$0xff] }
 0x189   :  { %v1804_v45 = vmul.f32 %v5369_v50, %v676_v3  ;;  %v767_v32 = vunpack.c.h.bf16 %v262_v33  ;;  %v5370_v56 = vld [vmem:[#allocation15_spill] sm:$0xff]  ;;  %v679_v21 = vunpack.c.h.bf16 %v218_v57  ;;  %v1894_v4 = vmul.f32 %v5372_v63, %v766_v31 }
 0x18a   :  { %v2407_v0 = vadd.f32 %v2406_v26, %v1889_v13  ;;  %v2318_v10 = vadd.f32 %v2317_v48, %v1801_v39  ;;  %v1893_v29 = vmul.f32 %v5370_v56, %v765_v60  ;;  %v219_v13 = vld [vmem:[%s4781_s0 + $0x668] sm:$0xff]  ;;  %v5371_v39 = vld [vmem:[#allocation57_spill] sm:$0xff]  ;;  %v768_v48 = vunpack.c.l.bf16 %v263_v37 }
 0x18b   :  { %v1805_v18 = vmul.f32 %v5371_v39, %v677_v55  ;;  %v680_v33 = vunpack.c.l.bf16 %v219_v13  ;;  %v681_v55 = vunpack.c.h.bf16 %v219_v13  ;;  %v5375_v39 = vld [vmem:[#allocation18_spill] sm:$0xff] }
 0x18c   :  { %v2408_v59 = vadd.f32 %v2407_v0, %v1890_v40  ;;  %v2319_v51 = vadd.f32 %v2318_v10, %v1802_v2  ;;  %v264_v40 = vld [vmem:[%s4781_s0 + $0x7d0] sm:$0xff]  ;;  %v1806_v2 = vmul.f32 %v5321_v23, %v678_v49  ;;  %v769_v0 = vunpack.c.h.bf16 %v263_v37  ;;  %v5373_v10 = vld [vmem:[#allocation17_spill] sm:$0xff] }
 0x18d   :  { %v1895_v50 = vmul.f32 %v5373_v10, %v767_v32  ;;  %v1896_v63 = vmul.f32 %v5375_v39, %v768_v48  ;;  %v265_v23 = vld [vmem:[%s4781_s0 + $0x7d8] sm:$0xff]  ;;  %v5376_v49 = vld [vmem:[#allocation60_spill] sm:$0xff] }
 0x18e   :  { %v2409_v28 = vadd.f32 %v2408_v59, %v1891_v43  ;;  %v2320_v26 = vadd.f32 %v2319_v51, %v1803_v44  ;;  %v220_v43 = vld [vmem:[%s4781_s0 + $0x670] sm:$0xff]  ;;  %v5374_v44 = vld [vmem:[#allocation59_spill] sm:$0xff]  ;;  %v770_v51 = vunpack.c.l.bf16 %v264_v40 }
 0x18f   :  { %v1807_v31 = vmul.f32 %v5374_v44, %v679_v21  ;;  %v682_v37 = vunpack.c.l.bf16 %v220_v43  ;;  %v683_v21 = vunpack.c.h.bf16 %v220_v43 }
 0x190   :  { %v2410_v3 = vadd.f32 %v2409_v28, %v1892_v52  ;;  %v2321_v60 = vadd.f32 %v2320_v26, %v1804_v45  ;;  %v1808_v45 = vmul.f32 %v5376_v49, %v680_v33  ;;  %v771_v28 = vunpack.c.h.bf16 %v264_v40 }
 0x191   :  { %v1897_v26 = vmul.f32 %v5277_v61, %v769_v0 }
 0x192   :  { %v2411_v57 = vadd.f32 %v2410_v3, %v1893_v29  ;;  %v2322_v59 = vadd.f32 %v2321_v60, %v1805_v18  ;;  %v221_v29 = vld [vmem:[%s4781_s0 + $0x678] sm:$0xff]  ;;  %v1809_v18 = vmul.f32 %v5175_v11, %v681_v55  ;;  %v772_v3 = vunpack.c.l.bf16 %v265_v23  ;;  %v222_v11 = vld [vmem:[%s4781_s0 + $0x680] sm:$0xff] }
 0x193   :  { %v1898_v60 = vmul.f32 %v5279_v14, %v770_v51  ;;  %v684_v40 = vunpack.c.l.bf16 %v221_v29  ;;  %v1899_v44 = vmul.f32 %v5281_v36, %v771_v28  ;;  %v685_v43 = vunpack.c.h.bf16 %v221_v29 }
 0x194   :  { %v2412_v52 = vadd.f32 %v2411_v57, %v1894_v4  ;;  %v2323_v32 = vadd.f32 %v2322_v59, %v1806_v2  ;;  %v266_v4 = vld [vmem:[%s4781_s0 + $0x7e0] sm:$0xff]  ;;  %v1810_v2 = vmul.f32 %v5177_v47, %v682_v37  ;;  %v773_v57 = vunpack.c.h.bf16 %v265_v23  ;;  %v267_v47 = vld [vmem:[%s4781_s0 + $0x7e8] sm:$0xff] }
 0x195   :  { %v1811_v55 = vmul.f32 %v3071_v5, %v683_v21  ;;  %v774_v59 = vunpack.c.l.bf16 %v266_v4  ;;  %v1900_v51 = vmul.f32 %v5130_v12, %v772_v3  ;;  %v686_v23 = vunpack.c.l.bf16 %v222_v11  ;;  %v223_v5 = vld [vmem:[%s4781_s0 + $0x688] sm:$0xff] }
 0x196   :  { %v2413_v13 = vadd.f32 %v2412_v52, %v1895_v50  ;;  %v2324_v48 = vadd.f32 %v2323_v32, %v1807_v31  ;;  %v1812_v52 = vmul.f32 %v5180_v46, %v684_v40  ;;  %v775_v49 = vunpack.c.h.bf16 %v266_v4  ;;  %v268_v46 = vld [vmem:[%s4781_s0 + $0x7f0] sm:$0xff] }
 0x197   :  { %v687_v28 = vunpack.c.h.bf16 %v222_v11  ;;  %v1902_v21 = vmul.f32 %v5134_v24, %v774_v59  ;;  %v1814_v3 = vmul.f32 %v5231_v15, %v686_v23  ;;  %v777_v4 = vunpack.c.h.bf16 %v267_v47  ;;  %v269_v15 = vld [vmem:[%s4781_s0 + $0x7f8] sm:$0xff] }
 0x198   :  { %v2414_v33 = vadd.f32 %v2413_v13, %v1896_v63  ;;  %v2325_v0 = vadd.f32 %v2324_v48, %v1808_v45  ;;  %v1901_v45 = vmul.f32 %v5132_v54, %v773_v57  ;;  %v776_v13 = vunpack.c.l.bf16 %v267_v47 }
 0x199   :  { %v688_v48 = vunpack.c.l.bf16 %v223_v5  ;;  %v779_v59 = vunpack.c.h.bf16 %v268_v46 }
 0x19a   :  { %v2415_v50 = vadd.f32 %v2414_v33, %v1897_v26  ;;  %v2326_v31 = vadd.f32 %v2325_v0, %v1809_v18  ;;  %v1813_v26 = vmul.f32 %v3104_v6, %v685_v43  ;;  %v1903_v33 = vmul.f32 %v5136_v38, %v775_v49  ;;  %v224_v6 = vld [vmem:[%s4781_s0 + $0x690] sm:$0xff] }
 0x19b   :  { %v1815_v0 = vmul.f32 %v5233_v17, %v687_v28  ;;  %v1904_v11 = vmul.f32 %v5138_v9, %v776_v13  ;;  %v690_v43 = vunpack.c.l.bf16 %v224_v6  ;;  %v225_v17 = vld [vmem:[%s4781_s0 + $0x698] sm:$0xff]  ;;  %v781_v28 = vunpack.c.h.bf16 %v269_v15 }
 0x19c   :  { %v2416_v63 = vadd.f32 %v2415_v50, %v1898_v60  ;;  %v2327_v37 = vadd.f32 %v2326_v31, %v1810_v2  ;;  %v689_v2 = vunpack.c.h.bf16 %v223_v5  ;;  %v692_v5 = vunpack.c.l.bf16 %v225_v17 }
 0x19e   :  { %v2417_v32 = vadd.f32 %v2416_v63, %v1899_v44  ;;  %v2328_v29 = vadd.f32 %v2327_v37, %v1811_v55  ;;  %v778_v44 = vunpack.c.l.bf16 %v268_v46  ;;  %v1816_v55 = vmul.f32 %v5236_v1, %v688_v48 }
 0x19f   :  { %v691_v63 = vunpack.c.h.bf16 %v224_v6  ;;  %v1817_v23 = vmul.f32 %v5339_v30, %v689_v2  ;;  %v780_v37 = vunpack.c.l.bf16 %v269_v15  ;;  %v1818_v1 = vmul.f32 %v5342_v35, %v690_v43 }
 0x1a0   :  { %v2418_v18 = vadd.f32 %v2417_v32, %v1900_v51  ;;  %v2329_v60 = vadd.f32 %v2328_v29, %v1812_v52  ;;  %v1905_v51 = vmul.f32 %v5288_v42, %v777_v4  ;;  %v1906_v49 = vmul.f32 %v5292_v41, %v778_v44  ;;  %v226_v29 = vld [vmem:[%s4781_s0 + $0x6a0] sm:$0xff] }
 0x1a1   :  { %v1819_v30 = vmul.f32 %v5346_v8, %v691_v63  ;;  %v1909_v4 = vmul.f32 %v5353_v25, %v781_v28 }
 0x1a2   :  { %v2419_v40 = vadd.f32 %v2418_v18, %v1901_v45  ;;  %v2330_v57 = vadd.f32 %v2329_v60, %v1813_v26  ;;  %v1907_v26 = vmul.f32 %v5345_v58, %v779_v59  ;;  %v1908_v18 = vmul.f32 %v5349_v19, %v780_v37 }
 0x1a3   :  { %v1820_v60 = vmul.f32 %v5350_v7, %v692_v5  ;;  %v228_v7 = vld [vmem:[%s4781_s0 + $0x6b0] sm:$0xff]  ;;  %v5377_v5 = vld [vmem:[#allocation14_spill] sm:$0xff] }
 0x1a4   :  { %v2420_v50 = vadd.f32 %v2419_v40, %v1902_v21  ;;  %v2331_v31 = vadd.f32 %v2330_v57, %v1814_v3  ;;  %v693_v21 = vunpack.c.h.bf16 %v225_v17  ;;  %v694_v3 = vunpack.c.l.bf16 %v226_v29 }
 0x1a5   :  { %v695_v40 = vunpack.c.h.bf16 %v226_v29 }
 0x1a6   :  { %v2421_v47 = vadd.f32 %v2420_v50, %v1903_v33  ;;  %v2332_v52 = vadd.f32 %v2331_v31, %v1815_v0  ;;  %v227_v33 = vld [vmem:[%s4781_s0 + $0x6a8] sm:$0xff]  ;;  %v1821_v2 = vmul.f32 %v5354_v22, %v693_v21  ;;  %v1822_v44 = vmul.f32 %v5356_v27, %v694_v3 }
 0x1a7   :  { %v696_v57 = vunpack.c.l.bf16 %v227_v33  ;;  %v697_v50 = vunpack.c.h.bf16 %v227_v33  ;;  %v1823_v43 = vmul.f32 %v5358_v20, %v695_v40  ;;  %v698_v31 = vunpack.c.l.bf16 %v228_v7  ;;  %v230_v20 = vld [vmem:[%s4781_s0 + $0x6c0] sm:$0xff] }
 0x1a8   :  { %v2422_v45 = vadd.f32 %v2421_v47, %v1904_v11  ;;  %v2333_v32 = vadd.f32 %v2332_v52, %v1816_v55  ;;  %v699_v27 = vunpack.c.h.bf16 %v228_v7  ;;  %v703_v28 = vunpack.c.h.bf16 %v230_v20 }
 0x1a9   :  { %v1824_v59 = vmul.f32 %v5360_v53, %v696_v57  ;;  %v1825_v17 = vmul.f32 %v5362_v34, %v697_v50  ;;  %v231_v34 = vld [vmem:[%s4781_s0 + $0x6c8] sm:$0xff] }
 0x1aa   :  { %v2423_v13 = vadd.f32 %v2422_v45, %v1905_v51  ;;  %v2334_v46 = vadd.f32 %v2333_v32, %v1817_v23  ;;  %v229_v51 = vld [vmem:[%s4781_s0 + $0x6b8] sm:$0xff]  ;;  %v1826_v23 = vmul.f32 %v5364_v62, %v698_v31  ;;  %v1827_v53 = vmul.f32 %v5366_v16, %v699_v27  ;;  %v232_v16 = vld [vmem:[%s4781_s0 + $0x6d0] sm:$0xff] }
 0x1ab   :  { %v700_v63 = vunpack.c.l.bf16 %v229_v51  ;;  %v701_v37 = vunpack.c.h.bf16 %v229_v51  ;;  %v702_v45 = vunpack.c.l.bf16 %v230_v20  ;;  %v704_v29 = vunpack.c.l.bf16 %v231_v34 }
 0x1ac   :  { %v2424_v48 = vadd.f32 %v2423_v13, %v1906_v49  ;;  %v2335_v35 = vadd.f32 %v2334_v46, %v1818_v1  ;;  %v5378_v13 = vld [vmem:[#allocation16_spill] sm:$0xff]  ;;  %v705_v46 = vunpack.c.h.bf16 %v231_v34  ;;  %v706_v3 = vunpack.c.l.bf16 %v232_v16  ;;  %v1974_v34 = vpop.xlane.xlu0 %1973 }
 0x1ad   :  { %v1828_v1 = vmul.f32 %v5377_v5, %v700_v63  ;;  %v1829_v62 = vmul.f32 %v5370_v56, %v701_v37  ;;  %v1830_v21 = vmul.f32 %v5378_v13, %v702_v45  ;;  %v233_v56 = vld [vmem:[%s4781_s0 + $0x6d8] sm:$0xff] }
 0x1ae   :  { %v2425_v6 = vadd.f32 %v2424_v48, %v1907_v26  ;;  %v2336_v0 = vadd.f32 %v2335_v35, %v1819_v30  ;;  %v1833_v33 = vmul.f32 %v5277_v61, %v705_v46  ;;  %v708_v40 = vunpack.c.l.bf16 %v233_v56  ;;  %v235_v61 = vld [vmem:[%s4781_s0 + $0x6e8] sm:$0xff] }
 0x1b0   :  { %v2426_v8 = vadd.f32 %v2425_v6, %v1908_v18  ;;  %v2337_v11 = vadd.f32 %v2336_v0, %v1820_v60  ;;  %v1831_v18 = vmul.f32 %v5373_v10, %v703_v28  ;;  %v1832_v60 = vmul.f32 %v5375_v39, %v704_v29  ;;  %v234_v10 = vld [vmem:[%s4781_s0 + $0x6e0] sm:$0xff] }
 0x1b2   :  { %v2427_v15 = vadd.f32 %v2426_v8, %v1909_v4  ;;  %v2338_v55 = vadd.f32 %v2337_v11, %v1821_v2  ;;  %v707_v4 = vunpack.c.h.bf16 %v232_v16  ;;  %v1834_v2 = vmul.f32 %v5279_v14, %v706_v3 }
 0x1b3   :  { %v709_v8 = vunpack.c.h.bf16 %v233_v56  ;;  %v1836_v11 = vmul.f32 %v5130_v12, %v708_v40 }
 0x1b4   :  { %2428 = vadd.xlane.f32.xlu1 %v2427_v15  ;;  %v2339_v22 = vadd.f32 %v2338_v55, %v1822_v44  ;;  %v1835_v39 = vmul.f32 %v5281_v36, %v707_v4  ;;  %v710_v44 = vunpack.c.l.bf16 %v234_v10  ;;  %v711_v15 = vunpack.c.h.bf16 %v234_v10  ;;  %v236_v36 = vld [vmem:[%s4781_s0 + $0x6f0] sm:$0xff] }
 0x1b5   :  { %v1837_v14 = vmul.f32 %v5132_v54, %v709_v8  ;;  %v714_v51 = vunpack.c.l.bf16 %v236_v36  ;;  %v237_v54 = vld [vmem:[%s4781_s0 + $0x6f8] sm:$0xff] }
 0x1b6   :  { %v2340_v47 = vadd.f32 %v2339_v22, %v1823_v43  ;;  %v712_v43 = vunpack.c.l.bf16 %v235_v61  ;;  %v1838_v55 = vmul.f32 %v5134_v24, %v710_v44  ;;  %v1839_v12 = vmul.f32 %v5136_v38, %v711_v15 }
 0x1b7   :  { %v717_v37 = vunpack.c.h.bf16 %v237_v54 }
 0x1b8   :  { %v2341_v52 = vadd.f32 %v2340_v47, %v1824_v59  ;;  %v713_v59 = vunpack.c.h.bf16 %v235_v61  ;;  %v1840_v27 = vmul.f32 %v5138_v9, %v712_v43  ;;  %v715_v47 = vunpack.c.h.bf16 %v236_v36 }
 0x1b9   :  { %v1845_v45 = vmul.f32 %v5353_v25, %v717_v37 }
 0x1ba   :  { %v2342_v49 = vadd.f32 %v2341_v52, %v1825_v17  ;;  %v1841_v24 = vmul.f32 %v5288_v42, %v713_v59  ;;  %v1842_v52 = vmul.f32 %v5292_v41, %v714_v51  ;;  %v1843_v38 = vmul.f32 %v5345_v58, %v715_v47  ;;  %v2469_v41 = vld [vmem:[%s4782_s2] ss:$0 sm:$0xff]  ;;  %v2039_v58 = vpop.xlane.xlu0 %2038 }
 0x1bb   :  { %v2436_v13 = vmul.f32 %v2469_v41, %v2039_v58 }
 0x1bc   :  { %v2343_v32 = vadd.f32 %v2342_v49, %v1826_v23  ;;  %v716_v23 = vunpack.c.l.bf16 %v237_v54 }
 0x1be   :  { %v2344_v26 = vadd.f32 %v2343_v32, %v1827_v53  ;;  %v1844_v49 = vmul.f32 %v5349_v19, %v716_v23  ;;  %v2470_v19 = vld [vmem:[%s4782_s2 + $0x1] ss:$0 sm:$0xff] }
 0x1bf   :  { %v2449_v16 = vadd.f32 %v2470_v19, %v2436_v13 }
 0x1c0   :  { %v2345_v30 = vadd.f32 %v2344_v26, %v1828_v1  ;;  %v2104_v1 = vpop.xlane.xlu1 %2103 }
 0x1c1   :  { %v2437_v26 = vmul.f32 %v2469_v41, %v2104_v1  ;;  %2458 = vst.msk [vmem:[%s4783_s3 + $0x8] sm:$0xff] %vm2456_vm0, %v2449_v16 }
 0x1c2   :  { %v2346_v48 = vadd.f32 %v2345_v30, %v1829_v62  ;;  %v2435_v62 = vmul.f32 %v2469_v41, %v1974_v34 }
 0x1c3   :  { %v2450_v25 = vadd.f32 %v2470_v19, %v2437_v26 }
 0x1c4   :  { %v2347_v35 = vadd.f32 %v2346_v48, %v1830_v21  ;;  %v2169_v42 = vpop.xlane.xlu1 %2168  ;;  %v2448_v29 = vadd.f32 %v2470_v19, %v2435_v62 }
 0x1c5   :  { %v2438_v21 = vmul.f32 %v2469_v41, %v2169_v42  ;;  %2459 = vst.msk [vmem:[%s4783_s3 + $0x10] sm:$0xff] %vm2456_vm0, %v2450_v25 }
 0x1c6   :  { %v2348_v6 = vadd.f32 %v2347_v35, %v1831_v18  ;;  %2457 = vst.msk [vmem:[%s4783_s3] sm:$0xff] %vm2456_vm0, %v2448_v29 }
 0x1c7   :  { %v2451_v46 = vadd.f32 %v2470_v19, %v2438_v21 }
 0x1c8   :  { %v2349_v0 = vadd.f32 %v2348_v6, %v1832_v60 }
 0x1c9   :  { %2460 = vst.msk [vmem:[%s4783_s3 + $0x18] sm:$0xff] %vm2456_vm0, %v2451_v46 }
 0x1ca   :  { %v2350_v57 = vadd.f32 %v2349_v0, %v1833_v33 }
 0x1cc   :  { %v2351_v7 = vadd.f32 %v2350_v57, %v1834_v2 }
 0x1ce   :  { %v2352_v50 = vadd.f32 %v2351_v7, %v1835_v39 }
 0x1d0   :  { %v2353_v31 = vadd.f32 %v2352_v50, %v1836_v11 }
 0x1d2   :  { %v2354_v22 = vadd.f32 %v2353_v31, %v1837_v14 }
 0x1d4   :  { %v2355_v17 = vadd.f32 %v2354_v22, %v1838_v55 }
 0x1d6   :  { %v2356_v63 = vadd.f32 %v2355_v17, %v1839_v12 }
 0x1d8   :  { %v2357_v20 = vadd.f32 %v2356_v63, %v1840_v27 }
 0x1da   :  { %v2358_v53 = vadd.f32 %v2357_v20, %v1841_v24 }
 0x1dc   :  { %v2359_v9 = vadd.f32 %v2358_v53, %v1842_v52 }
 0x1de   :  { %v2360_v5 = vadd.f32 %v2359_v9, %v1843_v38 }
 0x1e0   :  { %v2361_v32 = vadd.f32 %v2360_v5, %v1844_v49 }
 0x1e1   :  { %v2299_v30 = vpop.xlane.xlu1 %2298 }
 0x1e2   :  { %v2362_v28 = vadd.f32 %v2361_v32, %v1845_v45  ;;  %v2440_v18 = vmul.f32 %v2469_v41, %v2299_v30 }
 0x1e4   :  { %2363 = vadd.xlane.f32.xlu0 %v2362_v28  ;;  %v2453_v48 = vadd.f32 %v2470_v19, %v2440_v18 }
 0x1e6   :  { %2462 = vst.msk [vmem:[%s4783_s3 + $0x28] sm:$0xff] %vm2456_vm0, %v2453_v48 }
 0x211   :  { %v2234_v3 = vpop.xlane.xlu0 %2233 }
 0x212   :  { %v2439_v60 = vmul.f32 %v2469_v41, %v2234_v3 }
 0x214   :  { %v2452_v35 = vadd.f32 %v2470_v19, %v2439_v60 }
 0x216   :  { %2461 = vst.msk [vmem:[%s4783_s3 + $0x20] sm:$0xff] %vm2456_vm0, %v2452_v35 }
 0x241   :  { %v2429_v56 = vpop.xlane.xlu1 %2428 }
 0x242   :  { %v2442_v4 = vmul.f32 %v2469_v41, %v2429_v56 }
 0x244   :  { %v2455_v33 = vadd.f32 %v2470_v19, %v2442_v4 }
 0x246   :  { %2464 = vst.msk [vmem:[%s4783_s3 + $0x38] sm:$0xff] %vm2456_vm0, %v2455_v33 }
 0x271   :  { %v2364_v6 = vpop.xlane.xlu0 %2363 }
 0x272   :  { %v2441_v40 = vmul.f32 %v2469_v41, %v2364_v6 }
 0x274   :  { %v2454_v2 = vadd.f32 %v2470_v19, %v2441_v40 }
 0x276   :  { %2463 = vst.msk [vmem:[%s4783_s3 + $0x30] sm:$0xff] %vm2456_vm0, %v2454_v2 }

</bundles_post_ra>
